<compile_context>
chip_gen: v6e
topology: v6e:2x2x1
jax: 0.10.0
libtpu: 0.0.40
codegen_flags: <defaults>
</compile_context>

<pallas_src>
import jax
import jax.numpy as jnp
from jax import lax
from jax.experimental import pallas as pl
from jax.experimental.pallas import tpu as pltpu


def _build_program(dim):
    """Static layer list mirroring the PyTorch module: (kind, name, cin, cout, kh, kw)."""
    hidden = 2 * dim
    return (
        ("pw",      "conv1_0",      dim,    dim,    1, 1),   # u branch
        ("pw_silu", "conv1_1",      dim,    hidden, 1, 1),   # attn branch start (+ SiLU)
        ("dw",      "dwConv3",      hidden, hidden, 3, 3),
        ("pw",      "conv1_2",      hidden, hidden, 1, 1),
        ("dw",      "dwConv5",      hidden, hidden, 5, 5),
        ("pw",      "conv1_3",      hidden, hidden, 1, 1),
        ("dw",      "conv_spatial", hidden, hidden, 7, 7),
        ("pw",      "conv1_4",      hidden, hidden, 1, 1),
        ("dw",      "Conv11_0",     hidden, hidden, 1, 11),
        ("dw",      "Conv11_1",     hidden, hidden, 11, 1),
        ("pw",      "Conv21_0",     hidden, hidden, 1, 1),
        ("dw",      "Conv21_1",     hidden, hidden, 1, 21),
        ("dw",      "Conv21_2",     hidden, hidden, 21, 1),
        ("pw",      "conv1_5",      hidden, dim,    1, 1),   # ... then out1 = u * attn
        ("pw",      "proj_1",       dim,    dim,    1, 1),
    )


def _make_kernel(program, dim, H, W, pad_lanes):
    hidden = 2 * dim
    HW = H * W

    def kernel(*refs):
        x_ref = refs[0]
        p_refs = refs[1:-2]
        out_ref = refs[-2]
        pad_ref = refs[-1]                       # (hidden, 2*pad_lanes + HW) VMEM scratch

        # Zero the halo once per grid step; the interior is overwritten by each
        # depthwise conv (re-zeroed every step => safe under "parallel" grid).
        pad_ref[...] = jnp.zeros_like(pad_ref)

        x = x_ref[0].astype(jnp.float32)         # (dim, H*W), channel-major, lane-dense

        # 0/1 masks (per horizontal tap offset dx) that kill taps crossing a row
        # boundary of the flattened W axis.
        col = lax.broadcasted_iota(jnp.int32, (hidden, HW), 1) % W
        _mask_cache = {}

        def wmask(dx):
            if dx not in _mask_cache:
                ok = (col + dx >= 0) & (col + dx < W)
                _mask_cache[dx] = ok.astype(jnp.float32)
            return _mask_cache[dx]

        def pw(inp, w_ref, b_ref, silu=False):
            # 1x1 conv == one MXU matmul with a lane-dense (H*W wide) result.
            y = jnp.dot(w_ref[...], inp, preferred_element_type=jnp.float32)
            y = y + b_ref[...]
            if silu:
                y = y * (1.0 / (1.0 + jnp.exp(-y)))      # SiLU = x * sigmoid(x)
            return y

        def dw(inp, w_ref, b_ref, kh, kw):
            # Depthwise (kh, kw) conv, 'same' padding, on the flat (C, H*W) layout.
            ph, pw_ = kh // 2, kw // 2
            pad_ref[:, pad_lanes:pad_lanes + HW] = inp    # interior write; halo stays 0
            wfull = w_ref[...]                            # (C, kh*kw)
            acc = jnp.zeros_like(inp)
            for i in range(kh):
                for j in range(kw):
                    dy, dx = i - ph, j - pw_
                    off = dy * W + dx
                    start = pad_lanes + off
                    shifted = pad_ref[:, start:start + HW]     # x[c, f+off], 0 if OOB
                    if dx != 0:
                        shifted = shifted * wmask(dx)
                    tap = wfull[:, i * kw + j:i * kw + j + 1]  # (C, 1) per-channel tap
                    acc = acc + shifted * tap
            return acc + b_ref[...]

        u = None
        a = x
        pi = 0
        for kind, name, _cin, _cout, kh, kw in program:
            w_ref, b_ref = p_refs[pi], p_refs[pi + 1]
            pi += 2
            if name == "conv1_0":
                u = pw(x, w_ref, b_ref)                   # u branch
            elif name == "conv1_1":
                a = pw(x, w_ref, b_ref, silu=True)        # attn branch (+ SiLU)
            elif kind == "dw":
                a = dw(a, w_ref, b_ref, kh, kw)
            else:
                a = pw(a, w_ref, b_ref)
                if name == "conv1_5":
                    a = u * a                             # out1 = u * attn

        out_ref[0] = a.astype(out_ref.dtype)

    return kernel


def lka_forward(x, params):
    """x: (N, dim, H, W) float32 (PyTorch NCHW). params: dict of Conv2d weights/biases."""
    N, dim, H, W = x.shape
    HW = H * W
    hidden = 2 * dim
    program = _build_program(dim)

    max_halo = 0
    for kind, _name, _cin, _cout, kh, kw in program:
        if kind == "dw":
            max_halo = max(max_halo, (kh // 2) * W + (kw // 2))
    pad_lanes = ((max_halo + 127) // 128) * 128   # lane-aligned interior offset

    x_flat = x.reshape(N, dim, HW)                # free reshape of the NCHW layout

    flat_params = []
    in_specs = [pl.BlockSpec((1, dim, HW), lambda n: (n, 0, 0))]
    for kind, name, cin, cout, kh, kw in program:
        w = params[name + ".w"]
        b = params[name + ".b"]
        if kind == "dw":
            wmat = w.reshape(cout, kh * kw)       # (C, 1, kh, kw) -> (C, taps)
        else:
            wmat = w.reshape(cout, cin)           # (Cout, Cin, 1, 1) -> (Cout, Cin)
        bcol = b.reshape(cout, 1)
        flat_params += [wmat, bcol]
        in_specs += [pl.BlockSpec(wmat.shape, lambda n: (0, 0)),
                     pl.BlockSpec(bcol.shape, lambda n: (0, 0))]

    kernel = _make_kernel(program, dim, H, W, pad_lanes)

    out_flat = pl.pallas_call(
        kernel,
        out_shape=jax.ShapeDtypeStruct((N, dim, HW), x.dtype),
        grid_spec=pltpu.PrefetchScalarGridSpec(
            num_scalar_prefetch=0,
            grid=(N,),
            in_specs=in_specs,
            out_specs=pl.BlockSpec((1, dim, HW), lambda n: (n, 0, 0)),
            scratch_shapes=[pltpu.VMEM((hidden, 2 * pad_lanes + HW), jnp.float32)],
        ),
        compiler_params=pltpu.CompilerParams(
            dimension_semantics=("parallel",),
        ),
    )(x_flat, *flat_params)

    return out_flat.reshape(N, dim, H, W)


def lka_reference(x, params):
    """Pure-XLA NCHW reference mirroring the PyTorch forward (not the kernel path)."""
    dim = x.shape[1]
    program = _build_program(dim)

    def conv(inp, name, kh, kw, groups):
        w = params[name + ".w"]
        b = params[name + ".b"]
        ph, pw_ = kh // 2, kw // 2
        y = lax.conv_general_dilated(
            inp, w, window_strides=(1, 1), padding=((ph, ph), (pw_, pw_)),
            dimension_numbers=("NCHW", "OIHW", "NCHW"),
            feature_group_count=groups, precision=lax.Precision.HIGHEST)
        return y + b.reshape(1, -1, 1, 1)

    u = None
    a = x
    for kind, name, _cin, cout, kh, kw in program:
        groups = cout if kind == "dw" else 1
        if name == "conv1_0":
            u = conv(x, name, kh, kw, 1)
        elif name == "conv1_1":
            a = conv(x, name, kh, kw, 1)
            a = a * (1.0 / (1.0 + jnp.exp(-a)))   # SiLU
        else:
            a = conv(a, name, kh, kw, groups)
            if name == "conv1_5":
                a = u * a
    return a


def init_params(key, dim, dtype=jnp.float32):
    """Deterministic synthetic parameters in PyTorch Conv2d layout."""
    program = _build_program(dim)
    params = {}
    for kind, name, cin, cout, kh, kw in program:
        key, k_w, k_b = jax.random.split(key, 3)
        if kind == "dw":
            wshape, fan_in = (cout, 1, kh, kw), kh * kw
        else:
            wshape, fan_in = (cout, cin, 1, 1), cin
        bound = 1.0 / (fan_in ** 0.5)
        w = jax.random.uniform(k_w, wshape, dtype, -bound, bound)
        b = jax.random.uniform(k_b, (cout,), dtype, -bound, bound)
        # Round through bf16 so test values are exactly representable on any
        # matmul precision path (keeps the numeric check robust).
        params[name + ".w"] = w.astype(jnp.bfloat16).astype(dtype)
        params[name + ".b"] = b.astype(jnp.bfloat16).astype(dtype)
    return params


if __name__ == "__main__":
    dim, N, H, W = 4, 2, 16, 16   # hidden = 8, H*W = 256 (lane-dense)

    key = jax.random.PRNGKey(0)
    kx, kp = jax.random.split(key)
    x = jax.random.normal(kx, (N, dim, H, W), dtype=jnp.float32)
    x = x.astype(jnp.bfloat16).astype(jnp.float32)
    params = init_params(kp, dim)

    out = lka_forward(x, params)
    jax.block_until_ready(out)
    assert out.shape == (N, dim, H, W)

    ref = lka_reference(x, params)
    err = float(jnp.max(jnp.abs(out - ref)))
    # tolerance covers differing MXU precision paths between Mosaic and XLA
    assert jnp.allclose(out, ref, atol=2e-2, rtol=2e-2), f"max abs err {err}"

    print("KERNEL_OK")
</pallas_src>

<mosaic_0001>
module attributes {stable_mosaic.version = 11 : i64} {
  func.func @kernel(%arg0: i32, %arg1: memref<1x4x256xf32, #tpu.memory_space<vmem>>, %arg2: memref<4x4xf32, #tpu.memory_space<vmem>>, %arg3: memref<4x1xf32, #tpu.memory_space<vmem>>, %arg4: memref<8x4xf32, #tpu.memory_space<vmem>>, %arg5: memref<8x1xf32, #tpu.memory_space<vmem>>, %arg6: memref<8x9xf32, #tpu.memory_space<vmem>>, %arg7: memref<8x1xf32, #tpu.memory_space<vmem>>, %arg8: memref<8x8xf32, #tpu.memory_space<vmem>>, %arg9: memref<8x1xf32, #tpu.memory_space<vmem>>, %arg10: memref<8x25xf32, #tpu.memory_space<vmem>>, %arg11: memref<8x1xf32, #tpu.memory_space<vmem>>, %arg12: memref<8x8xf32, #tpu.memory_space<vmem>>, %arg13: memref<8x1xf32, #tpu.memory_space<vmem>>, %arg14: memref<8x49xf32, #tpu.memory_space<vmem>>, %arg15: memref<8x1xf32, #tpu.memory_space<vmem>>, %arg16: memref<8x8xf32, #tpu.memory_space<vmem>>, %arg17: memref<8x1xf32, #tpu.memory_space<vmem>>, %arg18: memref<8x11xf32, #tpu.memory_space<vmem>>, %arg19: memref<8x1xf32, #tpu.memory_space<vmem>>, %arg20: memref<8x11xf32, #tpu.memory_space<vmem>>, %arg21: memref<8x1xf32, #tpu.memory_space<vmem>>, %arg22: memref<8x8xf32, #tpu.memory_space<vmem>>, %arg23: memref<8x1xf32, #tpu.memory_space<vmem>>, %arg24: memref<8x21xf32, #tpu.memory_space<vmem>>, %arg25: memref<8x1xf32, #tpu.memory_space<vmem>>, %arg26: memref<8x21xf32, #tpu.memory_space<vmem>>, %arg27: memref<8x1xf32, #tpu.memory_space<vmem>>, %arg28: memref<4x8xf32, #tpu.memory_space<vmem>>, %arg29: memref<4x1xf32, #tpu.memory_space<vmem>>, %arg30: memref<4x4xf32, #tpu.memory_space<vmem>>, %arg31: memref<4x1xf32, #tpu.memory_space<vmem>>, %arg32: memref<1x4x256xf32, #tpu.memory_space<vmem>>, %arg33: memref<8x768xf32, #tpu.memory_space<vmem>>) attributes {dimension_semantics = [#tpu.dimension_semantics<parallel>], iteration_bounds = array<i64: 2>, scalar_prefetch = 0 : i64, scratch_operands = 1 : i64, tpu.core_type = #tpu.core_type<tc>, window_params = [{transform_indices = @transform_0, window_bounds = array<i64: 1, 4, 256>}, {pipeline_mode = #tpu.pipeline_mode<synchronous>, transform_indices = @transform_1, window_bounds = array<i64: 4, 4>}, {pipeline_mode = #tpu.pipeline_mode<synchronous>, transform_indices = @transform_2, window_bounds = array<i64: 4, 1>}, {pipeline_mode = #tpu.pipeline_mode<synchronous>, transform_indices = @transform_3, window_bounds = array<i64: 8, 4>}, {pipeline_mode = #tpu.pipeline_mode<synchronous>, transform_indices = @transform_4, window_bounds = array<i64: 8, 1>}, {pipeline_mode = #tpu.pipeline_mode<synchronous>, transform_indices = @transform_5, window_bounds = array<i64: 8, 9>}, {pipeline_mode = #tpu.pipeline_mode<synchronous>, transform_indices = @transform_6, window_bounds = array<i64: 8, 1>}, {pipeline_mode = #tpu.pipeline_mode<synchronous>, transform_indices = @transform_7, window_bounds = array<i64: 8, 8>}, {pipeline_mode = #tpu.pipeline_mode<synchronous>, transform_indices = @transform_8, window_bounds = array<i64: 8, 1>}, {pipeline_mode = #tpu.pipeline_mode<synchronous>, transform_indices = @transform_9, window_bounds = array<i64: 8, 25>}, {pipeline_mode = #tpu.pipeline_mode<synchronous>, transform_indices = @transform_10, window_bounds = array<i64: 8, 1>}, {pipeline_mode = #tpu.pipeline_mode<synchronous>, transform_indices = @transform_11, window_bounds = array<i64: 8, 8>}, {pipeline_mode = #tpu.pipeline_mode<synchronous>, transform_indices = @transform_12, window_bounds = array<i64: 8, 1>}, {pipeline_mode = #tpu.pipeline_mode<synchronous>, transform_indices = @transform_13, window_bounds = array<i64: 8, 49>}, {pipeline_mode = #tpu.pipeline_mode<synchronous>, transform_indices = @transform_14, window_bounds = array<i64: 8, 1>}, {pipeline_mode = #tpu.pipeline_mode<synchronous>, transform_indices = @transform_15, window_bounds = array<i64: 8, 8>}, {pipeline_mode = #tpu.pipeline_mode<synchronous>, transform_indices = @transform_16, window_bounds = array<i64: 8, 1>}, {pipeline_mode = #tpu.pipeline_mode<synchronous>, transform_indices = @transform_17, window_bounds = array<i64: 8, 11>}, {pipeline_mode = #tpu.pipeline_mode<synchronous>, transform_indices = @transform_18, window_bounds = array<i64: 8, 1>}, {pipeline_mode = #tpu.pipeline_mode<synchronous>, transform_indices = @transform_19, window_bounds = array<i64: 8, 11>}, {pipeline_mode = #tpu.pipeline_mode<synchronous>, transform_indices = @transform_20, window_bounds = array<i64: 8, 1>}, {pipeline_mode = #tpu.pipeline_mode<synchronous>, transform_indices = @transform_21, window_bounds = array<i64: 8, 8>}, {pipeline_mode = #tpu.pipeline_mode<synchronous>, transform_indices = @transform_22, window_bounds = array<i64: 8, 1>}, {pipeline_mode = #tpu.pipeline_mode<synchronous>, transform_indices = @transform_23, window_bounds = array<i64: 8, 21>}, {pipeline_mode = #tpu.pipeline_mode<synchronous>, transform_indices = @transform_24, window_bounds = array<i64: 8, 1>}, {pipeline_mode = #tpu.pipeline_mode<synchronous>, transform_indices = @transform_25, window_bounds = array<i64: 8, 21>}, {pipeline_mode = #tpu.pipeline_mode<synchronous>, transform_indices = @transform_26, window_bounds = array<i64: 8, 1>}, {pipeline_mode = #tpu.pipeline_mode<synchronous>, transform_indices = @transform_27, window_bounds = array<i64: 4, 8>}, {pipeline_mode = #tpu.pipeline_mode<synchronous>, transform_indices = @transform_28, window_bounds = array<i64: 4, 1>}, {pipeline_mode = #tpu.pipeline_mode<synchronous>, transform_indices = @transform_29, window_bounds = array<i64: 4, 4>}, {pipeline_mode = #tpu.pipeline_mode<synchronous>, transform_indices = @transform_30, window_bounds = array<i64: 4, 1>}, {transform_indices = @transform_31, window_bounds = array<i64: 1, 4, 256>}]} {
    %cst = arith.constant 0.000000e+00 : f32
    %0 = vector.broadcast %cst : f32 to vector<8x768xf32>
    %c0 = arith.constant 0 : index
    %c0_0 = arith.constant 0 : index
    %1 = vector.load %arg33[%c0, %c0_0] : memref<8x768xf32, #tpu.memory_space<vmem>>, vector<8x768xf32>
    tpu.vector_store %arg33[%c0, %c0_0], %0 {strides = array<i32>} : memref<8x768xf32, #tpu.memory_space<vmem>>, vector<8x768xf32>,
    %c0_1 = arith.constant 0 : index
    %c0_2 = arith.constant 0 : index
    %c0_3 = arith.constant 0 : index
    %2 = vector.load %arg1[%c0_1, %c0_2, %c0_3] : memref<1x4x256xf32, #tpu.memory_space<vmem>>, vector<1x4x256xf32>
    %3 = vector.shape_cast %2 : vector<1x4x256xf32> to vector<4x256xf32>
    %4 = tpu.iota {dimensions = array<i32: 1>} : vector<8x256xi32>
    %c16_i32 = arith.constant 16 : i32
    %c0_i32 = arith.constant 0 : i32
    %5 = arith.cmpi eq, %c16_i32, %c0_i32 : i32
    %c1_i32 = arith.constant 1 : i32
    %6 = arith.select %5, %c1_i32, %c16_i32 : i32
    %7 = vector.broadcast %6 : i32 to vector<8x256xi32>
    %8 = arith.remsi %4, %7 : vector<8x256xi32>
    %c0_i32_4 = arith.constant 0 : i32
    %9 = vector.broadcast %c0_i32_4 : i32 to vector<8x256xi32>
    %10 = arith.cmpi ne, %8, %9 : vector<8x256xi32>
    %c0_i32_5 = arith.constant 0 : i32
    %11 = vector.broadcast %c0_i32_5 : i32 to vector<8x256xi32>
    %12 = arith.cmpi slt, %8, %11 : vector<8x256xi32>
    %c0_i32_6 = arith.constant 0 : i32
    %13 = arith.cmpi slt, %6, %c0_i32_6 : i32
    %14 = vector.broadcast %13 : i1 to vector<8x256xi1>
    %15 = vector.broadcast %14 : vector<8x256xi1> to vector<8x256xi1>
    %16 = arith.xori %12, %15 : vector<8x256xi1>
    %17 = arith.andi %16, %10 : vector<8x256xi1>
    %18 = vector.broadcast %6 : i32 to vector<8x256xi32>
    %19 = arith.addi %8, %18 : vector<8x256xi32>
    %20 = arith.select %17, %19, %8 : vector<8x256xi1>, vector<8x256xi32>
    %c0_7 = arith.constant 0 : index
    %c0_8 = arith.constant 0 : index
    %21 = vector.load %arg2[%c0_7, %c0_8] : memref<4x4xf32, #tpu.memory_space<vmem>>, vector<4x4xf32>
    %cst_9 = arith.constant dense<0.000000e+00> : vector<4x256xf32>
    %22 = tpu.matmul %21, %3, %cst_9 {dimension_numbers = #tpu.dot_dimension_numbers<[1], [0], [0], [1], [0, 0, 1, 1], [], []>} : vector<4x4xf32>, vector<4x256xf32>, vector<4x256xf32> -> vector<4x256xf32>
    %c0_10 = arith.constant 0 : index
    %c0_11 = arith.constant 0 : index
    %23 = vector.load %arg3[%c0_10, %c0_11] : memref<4x1xf32, #tpu.memory_space<vmem>>, vector<4x1xf32>
    %24 = vector.broadcast %23 : vector<4x1xf32> to vector<4x256xf32>
    %25 = arith.addf %22, %24 : vector<4x256xf32>
    %c0_12 = arith.constant 0 : index
    %c0_13 = arith.constant 0 : index
    %26 = vector.load %arg4[%c0_12, %c0_13] : memref<8x4xf32, #tpu.memory_space<vmem>>, vector<8x4xf32>
    %cst_14 = arith.constant dense<0.000000e+00> : vector<8x256xf32>
    %27 = tpu.matmul %26, %3, %cst_14 {dimension_numbers = #tpu.dot_dimension_numbers<[1], [0], [0], [1], [0, 0, 1, 1], [], []>} : vector<8x4xf32>, vector<4x256xf32>, vector<8x256xf32> -> vector<8x256xf32>
    %c0_15 = arith.constant 0 : index
    %c0_16 = arith.constant 0 : index
    %28 = vector.load %arg5[%c0_15, %c0_16] : memref<8x1xf32, #tpu.memory_space<vmem>>, vector<8x1xf32>
    %29 = vector.broadcast %28 : vector<8x1xf32> to vector<8x256xf32>
    %30 = arith.addf %27, %29 : vector<8x256xf32>
    %cst_17 = arith.constant 0.000000e+00 : f32
    %31 = vector.broadcast %cst_17 : f32 to vector<8x256xf32>
    %32 = arith.subf %31, %30 : vector<8x256xf32>
    %33 = math.exp %32 : vector<8x256xf32>
    %cst_18 = arith.constant 1.000000e+00 : f32
    %34 = vector.broadcast %cst_18 : f32 to vector<8x256xf32>
    %35 = arith.addf %34, %33 : vector<8x256xf32>
    %cst_19 = arith.constant 1.000000e+00 : f32
    %36 = vector.broadcast %cst_19 : f32 to vector<8x256xf32>
    %37 = arith.divf %36, %35 : vector<8x256xf32>
    %38 = arith.mulf %30, %37 : vector<8x256xf32>
    %c0_20 = arith.constant 0 : index
    %c256 = arith.constant 256 : index
    %39 = vector.load %arg33[%c0_20, %c256] : memref<8x768xf32, #tpu.memory_space<vmem>>, vector<8x256xf32>
    tpu.vector_store %arg33[%c0_20, %c256], %38 {strides = array<i32>} : memref<8x768xf32, #tpu.memory_space<vmem>>, vector<8x256xf32>,
    %c0_21 = arith.constant 0 : index
    %c0_22 = arith.constant 0 : index
    %40 = vector.load %arg6[%c0_21, %c0_22] : memref<8x9xf32, #tpu.memory_space<vmem>>, vector<8x9xf32>
    %cst_23 = arith.constant 0.000000e+00 : f32
    %41 = vector.broadcast %cst_23 : f32 to vector<8x256xf32>
    %c0_24 = arith.constant 0 : index
    %c239 = arith.constant 239 : index
    %42 = vector.load %arg33[%c0_24, %c239] : memref<8x768xf32, #tpu.memory_space<vmem>>, vector<8x256xf32>
    %c-1_i32 = arith.constant -1 : i32
    %43 = vector.broadcast %c-1_i32 : i32 to vector<8x256xi32>
    %44 = arith.addi %20, %43 : vector<8x256xi32>
    %c0_i32_25 = arith.constant 0 : i32
    %45 = vector.broadcast %c0_i32_25 : i32 to vector<8x256xi32>
    %46 = arith.cmpi sge, %44, %45 : vector<8x256xi32>
    %c-1_i32_26 = arith.constant -1 : i32
    %47 = vector.broadcast %c-1_i32_26 : i32 to vector<8x256xi32>
    %48 = arith.addi %20, %47 : vector<8x256xi32>
    %c16_i32_27 = arith.constant 16 : i32
    %49 = vector.broadcast %c16_i32_27 : i32 to vector<8x256xi32>
    %50 = arith.cmpi slt, %48, %49 : vector<8x256xi32>
    %51 = arith.andi %46, %50 : vector<8x256xi1>
    %52 = arith.extui %51 : vector<8x256xi1> to vector<8x256xi32>
    %53 = arith.sitofp %52 : vector<8x256xi32> to vector<8x256xf32>
    %54 = arith.mulf %42, %53 : vector<8x256xf32>
    %55 = vector.extract_strided_slice %40 {offsets = [0, 0], sizes = [8, 1], strides = [1, 1]} : vector<8x9xf32> to vector<8x1xf32>
    %56 = vector.broadcast %55 : vector<8x1xf32> to vector<8x256xf32>
    %57 = arith.mulf %54, %56 : vector<8x256xf32>
    %58 = arith.addf %41, %57 : vector<8x256xf32>
    %c0_28 = arith.constant 0 : index
    %c240 = arith.constant 240 : index
    %59 = vector.load %arg33[%c0_28, %c240] : memref<8x768xf32, #tpu.memory_space<vmem>>, vector<8x256xf32>
    %60 = vector.extract_strided_slice %40 {offsets = [0, 1], sizes = [8, 1], strides = [1, 1]} : vector<8x9xf32> to vector<8x1xf32>
    %61 = vector.broadcast %60 : vector<8x1xf32> to vector<8x256xf32>
    %62 = arith.mulf %59, %61 : vector<8x256xf32>
    %63 = arith.addf %58, %62 : vector<8x256xf32>
    %c0_29 = arith.constant 0 : index
    %c241 = arith.constant 241 : index
    %64 = vector.load %arg33[%c0_29, %c241] : memref<8x768xf32, #tpu.memory_space<vmem>>, vector<8x256xf32>
    %c1_i32_30 = arith.constant 1 : i32
    %65 = vector.broadcast %c1_i32_30 : i32 to vector<8x256xi32>
    %66 = arith.addi %20, %65 : vector<8x256xi32>
    %c0_i32_31 = arith.constant 0 : i32
    %67 = vector.broadcast %c0_i32_31 : i32 to vector<8x256xi32>
    %68 = arith.cmpi sge, %66, %67 : vector<8x256xi32>
    %c1_i32_32 = arith.constant 1 : i32
    %69 = vector.broadcast %c1_i32_32 : i32 to vector<8x256xi32>
    %70 = arith.addi %20, %69 : vector<8x256xi32>
    %c16_i32_33 = arith.constant 16 : i32
    %71 = vector.broadcast %c16_i32_33 : i32 to vector<8x256xi32>
    %72 = arith.cmpi slt, %70, %71 : vector<8x256xi32>
    %73 = arith.andi %68, %72 : vector<8x256xi1>
    %74 = arith.extui %73 : vector<8x256xi1> to vector<8x256xi32>
    %75 = arith.sitofp %74 : vector<8x256xi32> to vector<8x256xf32>
    %76 = arith.mulf %64, %75 : vector<8x256xf32>
    %77 = vector.extract_strided_slice %40 {offsets = [0, 2], sizes = [8, 1], strides = [1, 1]} : vector<8x9xf32> to vector<8x1xf32>
    %78 = vector.broadcast %77 : vector<8x1xf32> to vector<8x256xf32>
    %79 = arith.mulf %76, %78 : vector<8x256xf32>
    %80 = arith.addf %63, %79 : vector<8x256xf32>
    %c0_34 = arith.constant 0 : index
    %c255 = arith.constant 255 : index
    %81 = vector.load %arg33[%c0_34, %c255] : memref<8x768xf32, #tpu.memory_space<vmem>>, vector<8x256xf32>
    %82 = arith.mulf %81, %53 : vector<8x256xf32>
    %83 = vector.extract_strided_slice %40 {offsets = [0, 3], sizes = [8, 1], strides = [1, 1]} : vector<8x9xf32> to vector<8x1xf32>
    %84 = vector.broadcast %83 : vector<8x1xf32> to vector<8x256xf32>
    %85 = arith.mulf %82, %84 : vector<8x256xf32>
    %86 = arith.addf %80, %85 : vector<8x256xf32>
    %c0_35 = arith.constant 0 : index
    %c256_36 = arith.constant 256 : index
    %87 = vector.load %arg33[%c0_35, %c256_36] : memref<8x768xf32, #tpu.memory_space<vmem>>, vector<8x256xf32>
    %88 = vector.extract_strided_slice %40 {offsets = [0, 4], sizes = [8, 1], strides = [1, 1]} : vector<8x9xf32> to vector<8x1xf32>
    %89 = vector.broadcast %88 : vector<8x1xf32> to vector<8x256xf32>
    %90 = arith.mulf %87, %89 : vector<8x256xf32>
    %91 = arith.addf %86, %90 : vector<8x256xf32>
    %c0_37 = arith.constant 0 : index
    %c257 = arith.constant 257 : index
    %92 = vector.load %arg33[%c0_37, %c257] : memref<8x768xf32, #tpu.memory_space<vmem>>, vector<8x256xf32>
    %93 = arith.mulf %92, %75 : vector<8x256xf32>
    %94 = vector.extract_strided_slice %40 {offsets = [0, 5], sizes = [8, 1], strides = [1, 1]} : vector<8x9xf32> to vector<8x1xf32>
    %95 = vector.broadcast %94 : vector<8x1xf32> to vector<8x256xf32>
    %96 = arith.mulf %93, %95 : vector<8x256xf32>
    %97 = arith.addf %91, %96 : vector<8x256xf32>
    %c0_38 = arith.constant 0 : index
    %c271 = arith.constant 271 : index
    %98 = vector.load %arg33[%c0_38, %c271] : memref<8x768xf32, #tpu.memory_space<vmem>>, vector<8x256xf32>
    %99 = arith.mulf %98, %53 : vector<8x256xf32>
    %100 = vector.extract_strided_slice %40 {offsets = [0, 6], sizes = [8, 1], strides = [1, 1]} : vector<8x9xf32> to vector<8x1xf32>
    %101 = vector.broadcast %100 : vector<8x1xf32> to vector<8x256xf32>
    %102 = arith.mulf %99, %101 : vector<8x256xf32>
    %103 = arith.addf %97, %102 : vector<8x256xf32>
    %c0_39 = arith.constant 0 : index
    %c272 = arith.constant 272 : index
    %104 = vector.load %arg33[%c0_39, %c272] : memref<8x768xf32, #tpu.memory_space<vmem>>, vector<8x256xf32>
    %105 = vector.extract_strided_slice %40 {offsets = [0, 7], sizes = [8, 1], strides = [1, 1]} : vector<8x9xf32> to vector<8x1xf32>
    %106 = vector.broadcast %105 : vector<8x1xf32> to vector<8x256xf32>
    %107 = arith.mulf %104, %106 : vector<8x256xf32>
    %108 = arith.addf %103, %107 : vector<8x256xf32>
    %c0_40 = arith.constant 0 : index
    %c273 = arith.constant 273 : index
    %109 = vector.load %arg33[%c0_40, %c273] : memref<8x768xf32, #tpu.memory_space<vmem>>, vector<8x256xf32>
    %110 = arith.mulf %109, %75 : vector<8x256xf32>
    %111 = vector.extract_strided_slice %40 {offsets = [0, 8], sizes = [8, 1], strides = [1, 1]} : vector<8x9xf32> to vector<8x1xf32>
    %112 = vector.broadcast %111 : vector<8x1xf32> to vector<8x256xf32>
    %113 = arith.mulf %110, %112 : vector<8x256xf32>
    %114 = arith.addf %108, %113 : vector<8x256xf32>
    %c0_41 = arith.constant 0 : index
    %c0_42 = arith.constant 0 : index
    %115 = vector.load %arg7[%c0_41, %c0_42] : memref<8x1xf32, #tpu.memory_space<vmem>>, vector<8x1xf32>
    %116 = vector.broadcast %115 : vector<8x1xf32> to vector<8x256xf32>
    %117 = arith.addf %114, %116 : vector<8x256xf32>
    %c0_43 = arith.constant 0 : index
    %c0_44 = arith.constant 0 : index
    %118 = vector.load %arg8[%c0_43, %c0_44] : memref<8x8xf32, #tpu.memory_space<vmem>>, vector<8x8xf32>
    %cst_45 = arith.constant dense<0.000000e+00> : vector<8x256xf32>
    %119 = tpu.matmul %118, %117, %cst_45 {dimension_numbers = #tpu.dot_dimension_numbers<[1], [0], [0], [1], [0, 0, 1, 1], [], []>} : vector<8x8xf32>, vector<8x256xf32>, vector<8x256xf32> -> vector<8x256xf32>
    %c0_46 = arith.constant 0 : index
    %c0_47 = arith.constant 0 : index
    %120 = vector.load %arg9[%c0_46, %c0_47] : memref<8x1xf32, #tpu.memory_space<vmem>>, vector<8x1xf32>
    %121 = vector.broadcast %120 : vector<8x1xf32> to vector<8x256xf32>
    %122 = arith.addf %119, %121 : vector<8x256xf32>
    %c0_48 = arith.constant 0 : index
    %c256_49 = arith.constant 256 : index
    %123 = vector.load %arg33[%c0_48, %c256_49] : memref<8x768xf32, #tpu.memory_space<vmem>>, vector<8x256xf32>
    tpu.vector_store %arg33[%c0_48, %c256_49], %122 {strides = array<i32>} : memref<8x768xf32, #tpu.memory_space<vmem>>, vector<8x256xf32>,
    %c0_50 = arith.constant 0 : index
    %c0_51 = arith.constant 0 : index
    %124 = vector.load %arg10[%c0_50, %c0_51] : memref<8x25xf32, #tpu.memory_space<vmem>>, vector<8x25xf32>
    %cst_52 = arith.constant 0.000000e+00 : f32
    %125 = vector.broadcast %cst_52 : f32 to vector<8x256xf32>
    %c0_53 = arith.constant 0 : index
    %c222 = arith.constant 222 : index
    %126 = vector.load %arg33[%c0_53, %c222] : memref<8x768xf32, #tpu.memory_space<vmem>>, vector<8x256xf32>
    %c-2_i32 = arith.constant -2 : i32
    %127 = vector.broadcast %c-2_i32 : i32 to vector<8x256xi32>
    %128 = arith.addi %20, %127 : vector<8x256xi32>
    %c0_i32_54 = arith.constant 0 : i32
    %129 = vector.broadcast %c0_i32_54 : i32 to vector<8x256xi32>
    %130 = arith.cmpi sge, %128, %129 : vector<8x256xi32>
    %c-2_i32_55 = arith.constant -2 : i32
    %131 = vector.broadcast %c-2_i32_55 : i32 to vector<8x256xi32>
    %132 = arith.addi %20, %131 : vector<8x256xi32>
    %c16_i32_56 = arith.constant 16 : i32
    %133 = vector.broadcast %c16_i32_56 : i32 to vector<8x256xi32>
    %134 = arith.cmpi slt, %132, %133 : vector<8x256xi32>
    %135 = arith.andi %130, %134 : vector<8x256xi1>
    %136 = arith.extui %135 : vector<8x256xi1> to vector<8x256xi32>
    %137 = arith.sitofp %136 : vector<8x256xi32> to vector<8x256xf32>
    %138 = arith.mulf %126, %137 : vector<8x256xf32>
    %139 = vector.extract_strided_slice %124 {offsets = [0, 0], sizes = [8, 1], strides = [1, 1]} : vector<8x25xf32> to vector<8x1xf32>
    %140 = vector.broadcast %139 : vector<8x1xf32> to vector<8x256xf32>
    %141 = arith.mulf %138, %140 : vector<8x256xf32>
    %142 = arith.addf %125, %141 : vector<8x256xf32>
    %c0_57 = arith.constant 0 : index
    %c223 = arith.constant 223 : index
    %143 = vector.load %arg33[%c0_57, %c223] : memref<8x768xf32, #tpu.memory_space<vmem>>, vector<8x256xf32>
    %144 = arith.mulf %143, %53 : vector<8x256xf32>
    %145 = vector.extract_strided_slice %124 {offsets = [0, 1], sizes = [8, 1], strides = [1, 1]} : vector<8x25xf32> to vector<8x1xf32>
    %146 = vector.broadcast %145 : vector<8x1xf32> to vector<8x256xf32>
    %147 = arith.mulf %144, %146 : vector<8x256xf32>
    %148 = arith.addf %142, %147 : vector<8x256xf32>
    %c0_58 = arith.constant 0 : index
    %c224 = arith.constant 224 : index
    %149 = vector.load %arg33[%c0_58, %c224] : memref<8x768xf32, #tpu.memory_space<vmem>>, vector<8x256xf32>
    %150 = vector.extract_strided_slice %124 {offsets = [0, 2], sizes = [8, 1], strides = [1, 1]} : vector<8x25xf32> to vector<8x1xf32>
    %151 = vector.broadcast %150 : vector<8x1xf32> to vector<8x256xf32>
    %152 = arith.mulf %149, %151 : vector<8x256xf32>
    %153 = arith.addf %148, %152 : vector<8x256xf32>
    %c0_59 = arith.constant 0 : index
    %c225 = arith.constant 225 : index
    %154 = vector.load %arg33[%c0_59, %c225] : memref<8x768xf32, #tpu.memory_space<vmem>>, vector<8x256xf32>
    %155 = arith.mulf %154, %75 : vector<8x256xf32>
    %156 = vector.extract_strided_slice %124 {offsets = [0, 3], sizes = [8, 1], strides = [1, 1]} : vector<8x25xf32> to vector<8x1xf32>
    %157 = vector.broadcast %156 : vector<8x1xf32> to vector<8x256xf32>
    %158 = arith.mulf %155, %157 : vector<8x256xf32>
    %159 = arith.addf %153, %158 : vector<8x256xf32>
    %c0_60 = arith.constant 0 : index
    %c226 = arith.constant 226 : index
    %160 = vector.load %arg33[%c0_60, %c226] : memref<8x768xf32, #tpu.memory_space<vmem>>, vector<8x256xf32>
    %c2_i32 = arith.constant 2 : i32
    %161 = vector.broadcast %c2_i32 : i32 to vector<8x256xi32>
    %162 = arith.addi %20, %161 : vector<8x256xi32>
    %c0_i32_61 = arith.constant 0 : i32
    %163 = vector.broadcast %c0_i32_61 : i32 to vector<8x256xi32>
    %164 = arith.cmpi sge, %162, %163 : vector<8x256xi32>
    %c2_i32_62 = arith.constant 2 : i32
    %165 = vector.broadcast %c2_i32_62 : i32 to vector<8x256xi32>
    %166 = arith.addi %20, %165 : vector<8x256xi32>
    %c16_i32_63 = arith.constant 16 : i32
    %167 = vector.broadcast %c16_i32_63 : i32 to vector<8x256xi32>
    %168 = arith.cmpi slt, %166, %167 : vector<8x256xi32>
    %169 = arith.andi %164, %168 : vector<8x256xi1>
    %170 = arith.extui %169 : vector<8x256xi1> to vector<8x256xi32>
    %171 = arith.sitofp %170 : vector<8x256xi32> to vector<8x256xf32>
    %172 = arith.mulf %160, %171 : vector<8x256xf32>
    %173 = vector.extract_strided_slice %124 {offsets = [0, 4], sizes = [8, 1], strides = [1, 1]} : vector<8x25xf32> to vector<8x1xf32>
    %174 = vector.broadcast %173 : vector<8x1xf32> to vector<8x256xf32>
    %175 = arith.mulf %172, %174 : vector<8x256xf32>
    %176 = arith.addf %159, %175 : vector<8x256xf32>
    %c0_64 = arith.constant 0 : index
    %c238 = arith.constant 238 : index
    %177 = vector.load %arg33[%c0_64, %c238] : memref<8x768xf32, #tpu.memory_space<vmem>>, vector<8x256xf32>
    %178 = arith.mulf %177, %137 : vector<8x256xf32>
    %179 = vector.extract_strided_slice %124 {offsets = [0, 5], sizes = [8, 1], strides = [1, 1]} : vector<8x25xf32> to vector<8x1xf32>
    %180 = vector.broadcast %179 : vector<8x1xf32> to vector<8x256xf32>
    %181 = arith.mulf %178, %180 : vector<8x256xf32>
    %182 = arith.addf %176, %181 : vector<8x256xf32>
    %c0_65 = arith.constant 0 : index
    %c239_66 = arith.constant 239 : index
    %183 = vector.load %arg33[%c0_65, %c239_66] : memref<8x768xf32, #tpu.memory_space<vmem>>, vector<8x256xf32>
    %184 = arith.mulf %183, %53 : vector<8x256xf32>
    %185 = vector.extract_strided_slice %124 {offsets = [0, 6], sizes = [8, 1], strides = [1, 1]} : vector<8x25xf32> to vector<8x1xf32>
    %186 = vector.broadcast %185 : vector<8x1xf32> to vector<8x256xf32>
    %187 = arith.mulf %184, %186 : vector<8x256xf32>
    %188 = arith.addf %182, %187 : vector<8x256xf32>
    %c0_67 = arith.constant 0 : index
    %c240_68 = arith.constant 240 : index
    %189 = vector.load %arg33[%c0_67, %c240_68] : memref<8x768xf32, #tpu.memory_space<vmem>>, vector<8x256xf32>
    %190 = vector.extract_strided_slice %124 {offsets = [0, 7], sizes = [8, 1], strides = [1, 1]} : vector<8x25xf32> to vector<8x1xf32>
    %191 = vector.broadcast %190 : vector<8x1xf32> to vector<8x256xf32>
    %192 = arith.mulf %189, %191 : vector<8x256xf32>
    %193 = arith.addf %188, %192 : vector<8x256xf32>
    %c0_69 = arith.constant 0 : index
    %c241_70 = arith.constant 241 : index
    %194 = vector.load %arg33[%c0_69, %c241_70] : memref<8x768xf32, #tpu.memory_space<vmem>>, vector<8x256xf32>
    %195 = arith.mulf %194, %75 : vector<8x256xf32>
    %196 = vector.extract_strided_slice %124 {offsets = [0, 8], sizes = [8, 1], strides = [1, 1]} : vector<8x25xf32> to vector<8x1xf32>
    %197 = vector.broadcast %196 : vector<8x1xf32> to vector<8x256xf32>
    %198 = arith.mulf %195, %197 : vector<8x256xf32>
    %199 = arith.addf %193, %198 : vector<8x256xf32>
    %c0_71 = arith.constant 0 : index
    %c242 = arith.constant 242 : index
    %200 = vector.load %arg33[%c0_71, %c242] : memref<8x768xf32, #tpu.memory_space<vmem>>, vector<8x256xf32>
    %201 = arith.mulf %200, %171 : vector<8x256xf32>
    %202 = vector.extract_strided_slice %124 {offsets = [0, 9], sizes = [8, 1], strides = [1, 1]} : vector<8x25xf32> to vector<8x1xf32>
    %203 = vector.broadcast %202 : vector<8x1xf32> to vector<8x256xf32>
    %204 = arith.mulf %201, %203 : vector<8x256xf32>
    %205 = arith.addf %199, %204 : vector<8x256xf32>
    %c0_72 = arith.constant 0 : index
    %c254 = arith.constant 254 : index
    %206 = vector.load %arg33[%c0_72, %c254] : memref<8x768xf32, #tpu.memory_space<vmem>>, vector<8x256xf32>
    %207 = arith.mulf %206, %137 : vector<8x256xf32>
    %208 = vector.extract_strided_slice %124 {offsets = [0, 10], sizes = [8, 1], strides = [1, 1]} : vector<8x25xf32> to vector<8x1xf32>
    %209 = vector.broadcast %208 : vector<8x1xf32> to vector<8x256xf32>
    %210 = arith.mulf %207, %209 : vector<8x256xf32>
    %211 = arith.addf %205, %210 : vector<8x256xf32>
    %c0_73 = arith.constant 0 : index
    %c255_74 = arith.constant 255 : index
    %212 = vector.load %arg33[%c0_73, %c255_74] : memref<8x768xf32, #tpu.memory_space<vmem>>, vector<8x256xf32>
    %213 = arith.mulf %212, %53 : vector<8x256xf32>
    %214 = vector.extract_strided_slice %124 {offsets = [0, 11], sizes = [8, 1], strides = [1, 1]} : vector<8x25xf32> to vector<8x1xf32>
    %215 = vector.broadcast %214 : vector<8x1xf32> to vector<8x256xf32>
    %216 = arith.mulf %213, %215 : vector<8x256xf32>
    %217 = arith.addf %211, %216 : vector<8x256xf32>
    %c0_75 = arith.constant 0 : index
    %c256_76 = arith.constant 256 : index
    %218 = vector.load %arg33[%c0_75, %c256_76] : memref<8x768xf32, #tpu.memory_space<vmem>>, vector<8x256xf32>
    %219 = vector.extract_strided_slice %124 {offsets = [0, 12], sizes = [8, 1], strides = [1, 1]} : vector<8x25xf32> to vector<8x1xf32>
    %220 = vector.broadcast %219 : vector<8x1xf32> to vector<8x256xf32>
    %221 = arith.mulf %218, %220 : vector<8x256xf32>
    %222 = arith.addf %217, %221 : vector<8x256xf32>
    %c0_77 = arith.constant 0 : index
    %c257_78 = arith.constant 257 : index
    %223 = vector.load %arg33[%c0_77, %c257_78] : memref<8x768xf32, #tpu.memory_space<vmem>>, vector<8x256xf32>
    %224 = arith.mulf %223, %75 : vector<8x256xf32>
    %225 = vector.extract_strided_slice %124 {offsets = [0, 13], sizes = [8, 1], strides = [1, 1]} : vector<8x25xf32> to vector<8x1xf32>
    %226 = vector.broadcast %225 : vector<8x1xf32> to vector<8x256xf32>
    %227 = arith.mulf %224, %226 : vector<8x256xf32>
    %228 = arith.addf %222, %227 : vector<8x256xf32>
    %c0_79 = arith.constant 0 : index
    %c258 = arith.constant 258 : index
    %229 = vector.load %arg33[%c0_79, %c258] : memref<8x768xf32, #tpu.memory_space<vmem>>, vector<8x256xf32>
    %230 = arith.mulf %229, %171 : vector<8x256xf32>
    %231 = vector.extract_strided_slice %124 {offsets = [0, 14], sizes = [8, 1], strides = [1, 1]} : vector<8x25xf32> to vector<8x1xf32>
    %232 = vector.broadcast %231 : vector<8x1xf32> to vector<8x256xf32>
    %233 = arith.mulf %230, %232 : vector<8x256xf32>
    %234 = arith.addf %228, %233 : vector<8x256xf32>
    %c0_80 = arith.constant 0 : index
    %c270 = arith.constant 270 : index
    %235 = vector.load %arg33[%c0_80, %c270] : memref<8x768xf32, #tpu.memory_space<vmem>>, vector<8x256xf32>
    %236 = arith.mulf %235, %137 : vector<8x256xf32>
    %237 = vector.extract_strided_slice %124 {offsets = [0, 15], sizes = [8, 1], strides = [1, 1]} : vector<8x25xf32> to vector<8x1xf32>
    %238 = vector.broadcast %237 : vector<8x1xf32> to vector<8x256xf32>
    %239 = arith.mulf %236, %238 : vector<8x256xf32>
    %240 = arith.addf %234, %239 : vector<8x256xf32>
    %c0_81 = arith.constant 0 : index
    %c271_82 = arith.constant 271 : index
    %241 = vector.load %arg33[%c0_81, %c271_82] : memref<8x768xf32, #tpu.memory_space<vmem>>, vector<8x256xf32>
    %242 = arith.mulf %241, %53 : vector<8x256xf32>
    %243 = vector.extract_strided_slice %124 {offsets = [0, 16], sizes = [8, 1], strides = [1, 1]} : vector<8x25xf32> to vector<8x1xf32>
    %244 = vector.broadcast %243 : vector<8x1xf32> to vector<8x256xf32>
    %245 = arith.mulf %242, %244 : vector<8x256xf32>
    %246 = arith.addf %240, %245 : vector<8x256xf32>
    %c0_83 = arith.constant 0 : index
    %c272_84 = arith.constant 272 : index
    %247 = vector.load %arg33[%c0_83, %c272_84] : memref<8x768xf32, #tpu.memory_space<vmem>>, vector<8x256xf32>
    %248 = vector.extract_strided_slice %124 {offsets = [0, 17], sizes = [8, 1], strides = [1, 1]} : vector<8x25xf32> to vector<8x1xf32>
    %249 = vector.broadcast %248 : vector<8x1xf32> to vector<8x256xf32>
    %250 = arith.mulf %247, %249 : vector<8x256xf32>
    %251 = arith.addf %246, %250 : vector<8x256xf32>
    %c0_85 = arith.constant 0 : index
    %c273_86 = arith.constant 273 : index
    %252 = vector.load %arg33[%c0_85, %c273_86] : memref<8x768xf32, #tpu.memory_space<vmem>>, vector<8x256xf32>
    %253 = arith.mulf %252, %75 : vector<8x256xf32>
    %254 = vector.extract_strided_slice %124 {offsets = [0, 18], sizes = [8, 1], strides = [1, 1]} : vector<8x25xf32> to vector<8x1xf32>
    %255 = vector.broadcast %254 : vector<8x1xf32> to vector<8x256xf32>
    %256 = arith.mulf %253, %255 : vector<8x256xf32>
    %257 = arith.addf %251, %256 : vector<8x256xf32>
    %c0_87 = arith.constant 0 : index
    %c274 = arith.constant 274 : index
    %258 = vector.load %arg33[%c0_87, %c274] : memref<8x768xf32, #tpu.memory_space<vmem>>, vector<8x256xf32>
    %259 = arith.mulf %258, %171 : vector<8x256xf32>
    %260 = vector.extract_strided_slice %124 {offsets = [0, 19], sizes = [8, 1], strides = [1, 1]} : vector<8x25xf32> to vector<8x1xf32>
    %261 = vector.broadcast %260 : vector<8x1xf32> to vector<8x256xf32>
    %262 = arith.mulf %259, %261 : vector<8x256xf32>
    %263 = arith.addf %257, %262 : vector<8x256xf32>
    %c0_88 = arith.constant 0 : index
    %c286 = arith.constant 286 : index
    %264 = vector.load %arg33[%c0_88, %c286] : memref<8x768xf32, #tpu.memory_space<vmem>>, vector<8x256xf32>
    %265 = arith.mulf %264, %137 : vector<8x256xf32>
    %266 = vector.extract_strided_slice %124 {offsets = [0, 20], sizes = [8, 1], strides = [1, 1]} : vector<8x25xf32> to vector<8x1xf32>
    %267 = vector.broadcast %266 : vector<8x1xf32> to vector<8x256xf32>
    %268 = arith.mulf %265, %267 : vector<8x256xf32>
    %269 = arith.addf %263, %268 : vector<8x256xf32>
    %c0_89 = arith.constant 0 : index
    %c287 = arith.constant 287 : index
    %270 = vector.load %arg33[%c0_89, %c287] : memref<8x768xf32, #tpu.memory_space<vmem>>, vector<8x256xf32>
    %271 = arith.mulf %270, %53 : vector<8x256xf32>
    %272 = vector.extract_strided_slice %124 {offsets = [0, 21], sizes = [8, 1], strides = [1, 1]} : vector<8x25xf32> to vector<8x1xf32>
    %273 = vector.broadcast %272 : vector<8x1xf32> to vector<8x256xf32>
    %274 = arith.mulf %271, %273 : vector<8x256xf32>
    %275 = arith.addf %269, %274 : vector<8x256xf32>
    %c0_90 = arith.constant 0 : index
    %c288 = arith.constant 288 : index
    %276 = vector.load %arg33[%c0_90, %c288] : memref<8x768xf32, #tpu.memory_space<vmem>>, vector<8x256xf32>
    %277 = vector.extract_strided_slice %124 {offsets = [0, 22], sizes = [8, 1], strides = [1, 1]} : vector<8x25xf32> to vector<8x1xf32>
    %278 = vector.broadcast %277 : vector<8x1xf32> to vector<8x256xf32>
    %279 = arith.mulf %276, %278 : vector<8x256xf32>
    %280 = arith.addf %275, %279 : vector<8x256xf32>
    %c0_91 = arith.constant 0 : index
    %c289 = arith.constant 289 : index
    %281 = vector.load %arg33[%c0_91, %c289] : memref<8x768xf32, #tpu.memory_space<vmem>>, vector<8x256xf32>
    %282 = arith.mulf %281, %75 : vector<8x256xf32>
    %283 = vector.extract_strided_slice %124 {offsets = [0, 23], sizes = [8, 1], strides = [1, 1]} : vector<8x25xf32> to vector<8x1xf32>
    %284 = vector.broadcast %283 : vector<8x1xf32> to vector<8x256xf32>
    %285 = arith.mulf %282, %284 : vector<8x256xf32>
    %286 = arith.addf %280, %285 : vector<8x256xf32>
    %c0_92 = arith.constant 0 : index
    %c290 = arith.constant 290 : index
    %287 = vector.load %arg33[%c0_92, %c290] : memref<8x768xf32, #tpu.memory_space<vmem>>, vector<8x256xf32>
    %288 = arith.mulf %287, %171 : vector<8x256xf32>
    %289 = vector.extract_strided_slice %124 {offsets = [0, 24], sizes = [8, 1], strides = [1, 1]} : vector<8x25xf32> to vector<8x1xf32>
    %290 = vector.broadcast %289 : vector<8x1xf32> to vector<8x256xf32>
    %291 = arith.mulf %288, %290 : vector<8x256xf32>
    %292 = arith.addf %286, %291 : vector<8x256xf32>
    %c0_93 = arith.constant 0 : index
    %c0_94 = arith.constant 0 : index
    %293 = vector.load %arg11[%c0_93, %c0_94] : memref<8x1xf32, #tpu.memory_space<vmem>>, vector<8x1xf32>
    %294 = vector.broadcast %293 : vector<8x1xf32> to vector<8x256xf32>
    %295 = arith.addf %292, %294 : vector<8x256xf32>
    %c0_95 = arith.constant 0 : index
    %c0_96 = arith.constant 0 : index
    %296 = vector.load %arg12[%c0_95, %c0_96] : memref<8x8xf32, #tpu.memory_space<vmem>>, vector<8x8xf32>
    %cst_97 = arith.constant dense<0.000000e+00> : vector<8x256xf32>
    %297 = tpu.matmul %296, %295, %cst_97 {dimension_numbers = #tpu.dot_dimension_numbers<[1], [0], [0], [1], [0, 0, 1, 1], [], []>} : vector<8x8xf32>, vector<8x256xf32>, vector<8x256xf32> -> vector<8x256xf32>
    %c0_98 = arith.constant 0 : index
    %c0_99 = arith.constant 0 : index
    %298 = vector.load %arg13[%c0_98, %c0_99] : memref<8x1xf32, #tpu.memory_space<vmem>>, vector<8x1xf32>
    %299 = vector.broadcast %298 : vector<8x1xf32> to vector<8x256xf32>
    %300 = arith.addf %297, %299 : vector<8x256xf32>
    %c0_100 = arith.constant 0 : index
    %c256_101 = arith.constant 256 : index
    %301 = vector.load %arg33[%c0_100, %c256_101] : memref<8x768xf32, #tpu.memory_space<vmem>>, vector<8x256xf32>
    tpu.vector_store %arg33[%c0_100, %c256_101], %300 {strides = array<i32>} : memref<8x768xf32, #tpu.memory_space<vmem>>, vector<8x256xf32>,
    %c0_102 = arith.constant 0 : index
    %c0_103 = arith.constant 0 : index
    %302 = vector.load %arg14[%c0_102, %c0_103] : memref<8x49xf32, #tpu.memory_space<vmem>>, vector<8x49xf32>
    %cst_104 = arith.constant 0.000000e+00 : f32
    %303 = vector.broadcast %cst_104 : f32 to vector<8x256xf32>
    %c0_105 = arith.constant 0 : index
    %c205 = arith.constant 205 : index
    %304 = vector.load %arg33[%c0_105, %c205] : memref<8x768xf32, #tpu.memory_space<vmem>>, vector<8x256xf32>
    %c-3_i32 = arith.constant -3 : i32
    %305 = vector.broadcast %c-3_i32 : i32 to vector<8x256xi32>
    %306 = arith.addi %20, %305 : vector<8x256xi32>
    %c0_i32_106 = arith.constant 0 : i32
    %307 = vector.broadcast %c0_i32_106 : i32 to vector<8x256xi32>
    %308 = arith.cmpi sge, %306, %307 : vector<8x256xi32>
    %c-3_i32_107 = arith.constant -3 : i32
    %309 = vector.broadcast %c-3_i32_107 : i32 to vector<8x256xi32>
    %310 = arith.addi %20, %309 : vector<8x256xi32>
    %c16_i32_108 = arith.constant 16 : i32
    %311 = vector.broadcast %c16_i32_108 : i32 to vector<8x256xi32>
    %312 = arith.cmpi slt, %310, %311 : vector<8x256xi32>
    %313 = arith.andi %308, %312 : vector<8x256xi1>
    %314 = arith.extui %313 : vector<8x256xi1> to vector<8x256xi32>
    %315 = arith.sitofp %314 : vector<8x256xi32> to vector<8x256xf32>
    %316 = arith.mulf %304, %315 : vector<8x256xf32>
    %317 = vector.extract_strided_slice %302 {offsets = [0, 0], sizes = [8, 1], strides = [1, 1]} : vector<8x49xf32> to vector<8x1xf32>
    %318 = vector.broadcast %317 : vector<8x1xf32> to vector<8x256xf32>
    %319 = arith.mulf %316, %318 : vector<8x256xf32>
    %320 = arith.addf %303, %319 : vector<8x256xf32>
    %c0_109 = arith.constant 0 : index
    %c206 = arith.constant 206 : index
    %321 = vector.load %arg33[%c0_109, %c206] : memref<8x768xf32, #tpu.memory_space<vmem>>, vector<8x256xf32>
    %322 = arith.mulf %321, %137 : vector<8x256xf32>
    %323 = vector.extract_strided_slice %302 {offsets = [0, 1], sizes = [8, 1], strides = [1, 1]} : vector<8x49xf32> to vector<8x1xf32>
    %324 = vector.broadcast %323 : vector<8x1xf32> to vector<8x256xf32>
    %325 = arith.mulf %322, %324 : vector<8x256xf32>
    %326 = arith.addf %320, %325 : vector<8x256xf32>
    %c0_110 = arith.constant 0 : index
    %c207 = arith.constant 207 : index
    %327 = vector.load %arg33[%c0_110, %c207] : memref<8x768xf32, #tpu.memory_space<vmem>>, vector<8x256xf32>
    %328 = arith.mulf %327, %53 : vector<8x256xf32>
    %329 = vector.extract_strided_slice %302 {offsets = [0, 2], sizes = [8, 1], strides = [1, 1]} : vector<8x49xf32> to vector<8x1xf32>
    %330 = vector.broadcast %329 : vector<8x1xf32> to vector<8x256xf32>
    %331 = arith.mulf %328, %330 : vector<8x256xf32>
    %332 = arith.addf %326, %331 : vector<8x256xf32>
    %c0_111 = arith.constant 0 : index
    %c208 = arith.constant 208 : index
    %333 = vector.load %arg33[%c0_111, %c208] : memref<8x768xf32, #tpu.memory_space<vmem>>, vector<8x256xf32>
    %334 = vector.extract_strided_slice %302 {offsets = [0, 3], sizes = [8, 1], strides = [1, 1]} : vector<8x49xf32> to vector<8x1xf32>
    %335 = vector.broadcast %334 : vector<8x1xf32> to vector<8x256xf32>
    %336 = arith.mulf %333, %335 : vector<8x256xf32>
    %337 = arith.addf %332, %336 : vector<8x256xf32>
    %c0_112 = arith.constant 0 : index
    %c209 = arith.constant 209 : index
    %338 = vector.load %arg33[%c0_112, %c209] : memref<8x768xf32, #tpu.memory_space<vmem>>, vector<8x256xf32>
    %339 = arith.mulf %338, %75 : vector<8x256xf32>
    %340 = vector.extract_strided_slice %302 {offsets = [0, 4], sizes = [8, 1], strides = [1, 1]} : vector<8x49xf32> to vector<8x1xf32>
    %341 = vector.broadcast %340 : vector<8x1xf32> to vector<8x256xf32>
    %342 = arith.mulf %339, %341 : vector<8x256xf32>
    %343 = arith.addf %337, %342 : vector<8x256xf32>
    %c0_113 = arith.constant 0 : index
    %c210 = arith.constant 210 : index
    %344 = vector.load %arg33[%c0_113, %c210] : memref<8x768xf32, #tpu.memory_space<vmem>>, vector<8x256xf32>
    %345 = arith.mulf %344, %171 : vector<8x256xf32>
    %346 = vector.extract_strided_slice %302 {offsets = [0, 5], sizes = [8, 1], strides = [1, 1]} : vector<8x49xf32> to vector<8x1xf32>
    %347 = vector.broadcast %346 : vector<8x1xf32> to vector<8x256xf32>
    %348 = arith.mulf %345, %347 : vector<8x256xf32>
    %349 = arith.addf %343, %348 : vector<8x256xf32>
    %c0_114 = arith.constant 0 : index
    %c211 = arith.constant 211 : index
    %350 = vector.load %arg33[%c0_114, %c211] : memref<8x768xf32, #tpu.memory_space<vmem>>, vector<8x256xf32>
    %c3_i32 = arith.constant 3 : i32
    %351 = vector.broadcast %c3_i32 : i32 to vector<8x256xi32>
    %352 = arith.addi %20, %351 : vector<8x256xi32>
    %c0_i32_115 = arith.constant 0 : i32
    %353 = vector.broadcast %c0_i32_115 : i32 to vector<8x256xi32>
    %354 = arith.cmpi sge, %352, %353 : vector<8x256xi32>
    %c3_i32_116 = arith.constant 3 : i32
    %355 = vector.broadcast %c3_i32_116 : i32 to vector<8x256xi32>
    %356 = arith.addi %20, %355 : vector<8x256xi32>
    %c16_i32_117 = arith.constant 16 : i32
    %357 = vector.broadcast %c16_i32_117 : i32 to vector<8x256xi32>
    %358 = arith.cmpi slt, %356, %357 : vector<8x256xi32>
    %359 = arith.andi %354, %358 : vector<8x256xi1>
    %360 = arith.extui %359 : vector<8x256xi1> to vector<8x256xi32>
    %361 = arith.sitofp %360 : vector<8x256xi32> to vector<8x256xf32>
    %362 = arith.mulf %350, %361 : vector<8x256xf32>
    %363 = vector.extract_strided_slice %302 {offsets = [0, 6], sizes = [8, 1], strides = [1, 1]} : vector<8x49xf32> to vector<8x1xf32>
    %364 = vector.broadcast %363 : vector<8x1xf32> to vector<8x256xf32>
    %365 = arith.mulf %362, %364 : vector<8x256xf32>
    %366 = arith.addf %349, %365 : vector<8x256xf32>
    %c0_118 = arith.constant 0 : index
    %c221 = arith.constant 221 : index
    %367 = vector.load %arg33[%c0_118, %c221] : memref<8x768xf32, #tpu.memory_space<vmem>>, vector<8x256xf32>
    %368 = arith.mulf %367, %315 : vector<8x256xf32>
    %369 = vector.extract_strided_slice %302 {offsets = [0, 7], sizes = [8, 1], strides = [1, 1]} : vector<8x49xf32> to vector<8x1xf32>
    %370 = vector.broadcast %369 : vector<8x1xf32> to vector<8x256xf32>
    %371 = arith.mulf %368, %370 : vector<8x256xf32>
    %372 = arith.addf %366, %371 : vector<8x256xf32>
    %c0_119 = arith.constant 0 : index
    %c222_120 = arith.constant 222 : index
    %373 = vector.load %arg33[%c0_119, %c222_120] : memref<8x768xf32, #tpu.memory_space<vmem>>, vector<8x256xf32>
    %374 = arith.mulf %373, %137 : vector<8x256xf32>
    %375 = vector.extract_strided_slice %302 {offsets = [0, 8], sizes = [8, 1], strides = [1, 1]} : vector<8x49xf32> to vector<8x1xf32>
    %376 = vector.broadcast %375 : vector<8x1xf32> to vector<8x256xf32>
    %377 = arith.mulf %374, %376 : vector<8x256xf32>
    %378 = arith.addf %372, %377 : vector<8x256xf32>
    %c0_121 = arith.constant 0 : index
    %c223_122 = arith.constant 223 : index
    %379 = vector.load %arg33[%c0_121, %c223_122] : memref<8x768xf32, #tpu.memory_space<vmem>>, vector<8x256xf32>
    %380 = arith.mulf %379, %53 : vector<8x256xf32>
    %381 = vector.extract_strided_slice %302 {offsets = [0, 9], sizes = [8, 1], strides = [1, 1]} : vector<8x49xf32> to vector<8x1xf32>
    %382 = vector.broadcast %381 : vector<8x1xf32> to vector<8x256xf32>
    %383 = arith.mulf %380, %382 : vector<8x256xf32>
    %384 = arith.addf %378, %383 : vector<8x256xf32>
    %c0_123 = arith.constant 0 : index
    %c224_124 = arith.constant 224 : index
    %385 = vector.load %arg33[%c0_123, %c224_124] : memref<8x768xf32, #tpu.memory_space<vmem>>, vector<8x256xf32>
    %386 = vector.extract_strided_slice %302 {offsets = [0, 10], sizes = [8, 1], strides = [1, 1]} : vector<8x49xf32> to vector<8x1xf32>
    %387 = vector.broadcast %386 : vector<8x1xf32> to vector<8x256xf32>
    %388 = arith.mulf %385, %387 : vector<8x256xf32>
    %389 = arith.addf %384, %388 : vector<8x256xf32>
    %c0_125 = arith.constant 0 : index
    %c225_126 = arith.constant 225 : index
    %390 = vector.load %arg33[%c0_125, %c225_126] : memref<8x768xf32, #tpu.memory_space<vmem>>, vector<8x256xf32>
    %391 = arith.mulf %390, %75 : vector<8x256xf32>
    %392 = vector.extract_strided_slice %302 {offsets = [0, 11], sizes = [8, 1], strides = [1, 1]} : vector<8x49xf32> to vector<8x1xf32>
    %393 = vector.broadcast %392 : vector<8x1xf32> to vector<8x256xf32>
    %394 = arith.mulf %391, %393 : vector<8x256xf32>
    %395 = arith.addf %389, %394 : vector<8x256xf32>
    %c0_127 = arith.constant 0 : index
    %c226_128 = arith.constant 226 : index
    %396 = vector.load %arg33[%c0_127, %c226_128] : memref<8x768xf32, #tpu.memory_space<vmem>>, vector<8x256xf32>
    %397 = arith.mulf %396, %171 : vector<8x256xf32>
    %398 = vector.extract_strided_slice %302 {offsets = [0, 12], sizes = [8, 1], strides = [1, 1]} : vector<8x49xf32> to vector<8x1xf32>
    %399 = vector.broadcast %398 : vector<8x1xf32> to vector<8x256xf32>
    %400 = arith.mulf %397, %399 : vector<8x256xf32>
    %401 = arith.addf %395, %400 : vector<8x256xf32>
    %c0_129 = arith.constant 0 : index
    %c227 = arith.constant 227 : index
    %402 = vector.load %arg33[%c0_129, %c227] : memref<8x768xf32, #tpu.memory_space<vmem>>, vector<8x256xf32>
    %403 = arith.mulf %402, %361 : vector<8x256xf32>
    %404 = vector.extract_strided_slice %302 {offsets = [0, 13], sizes = [8, 1], strides = [1, 1]} : vector<8x49xf32> to vector<8x1xf32>
    %405 = vector.broadcast %404 : vector<8x1xf32> to vector<8x256xf32>
    %406 = arith.mulf %403, %405 : vector<8x256xf32>
    %407 = arith.addf %401, %406 : vector<8x256xf32>
    %c0_130 = arith.constant 0 : index
    %c237 = arith.constant 237 : index
    %408 = vector.load %arg33[%c0_130, %c237] : memref<8x768xf32, #tpu.memory_space<vmem>>, vector<8x256xf32>
    %409 = arith.mulf %408, %315 : vector<8x256xf32>
    %410 = vector.extract_strided_slice %302 {offsets = [0, 14], sizes = [8, 1], strides = [1, 1]} : vector<8x49xf32> to vector<8x1xf32>
    %411 = vector.broadcast %410 : vector<8x1xf32> to vector<8x256xf32>
    %412 = arith.mulf %409, %411 : vector<8x256xf32>
    %413 = arith.addf %407, %412 : vector<8x256xf32>
    %c0_131 = arith.constant 0 : index
    %c238_132 = arith.constant 238 : index
    %414 = vector.load %arg33[%c0_131, %c238_132] : memref<8x768xf32, #tpu.memory_space<vmem>>, vector<8x256xf32>
    %415 = arith.mulf %414, %137 : vector<8x256xf32>
    %416 = vector.extract_strided_slice %302 {offsets = [0, 15], sizes = [8, 1], strides = [1, 1]} : vector<8x49xf32> to vector<8x1xf32>
    %417 = vector.broadcast %416 : vector<8x1xf32> to vector<8x256xf32>
    %418 = arith.mulf %415, %417 : vector<8x256xf32>
    %419 = arith.addf %413, %418 : vector<8x256xf32>
    %c0_133 = arith.constant 0 : index
    %c239_134 = arith.constant 239 : index
    %420 = vector.load %arg33[%c0_133, %c239_134] : memref<8x768xf32, #tpu.memory_space<vmem>>, vector<8x256xf32>
    %421 = arith.mulf %420, %53 : vector<8x256xf32>
    %422 = vector.extract_strided_slice %302 {offsets = [0, 16], sizes = [8, 1], strides = [1, 1]} : vector<8x49xf32> to vector<8x1xf32>
    %423 = vector.broadcast %422 : vector<8x1xf32> to vector<8x256xf32>
    %424 = arith.mulf %421, %423 : vector<8x256xf32>
    %425 = arith.addf %419, %424 : vector<8x256xf32>
    %c0_135 = arith.constant 0 : index
    %c240_136 = arith.constant 240 : index
    %426 = vector.load %arg33[%c0_135, %c240_136] : memref<8x768xf32, #tpu.memory_space<vmem>>, vector<8x256xf32>
    %427 = vector.extract_strided_slice %302 {offsets = [0, 17], sizes = [8, 1], strides = [1, 1]} : vector<8x49xf32> to vector<8x1xf32>
    %428 = vector.broadcast %427 : vector<8x1xf32> to vector<8x256xf32>
    %429 = arith.mulf %426, %428 : vector<8x256xf32>
    %430 = arith.addf %425, %429 : vector<8x256xf32>
    %c0_137 = arith.constant 0 : index
    %c241_138 = arith.constant 241 : index
    %431 = vector.load %arg33[%c0_137, %c241_138] : memref<8x768xf32, #tpu.memory_space<vmem>>, vector<8x256xf32>
    %432 = arith.mulf %431, %75 : vector<8x256xf32>
    %433 = vector.extract_strided_slice %302 {offsets = [0, 18], sizes = [8, 1], strides = [1, 1]} : vector<8x49xf32> to vector<8x1xf32>
    %434 = vector.broadcast %433 : vector<8x1xf32> to vector<8x256xf32>
    %435 = arith.mulf %432, %434 : vector<8x256xf32>
    %436 = arith.addf %430, %435 : vector<8x256xf32>
    %c0_139 = arith.constant 0 : index
    %c242_140 = arith.constant 242 : index
    %437 = vector.load %arg33[%c0_139, %c242_140] : memref<8x768xf32, #tpu.memory_space<vmem>>, vector<8x256xf32>
    %438 = arith.mulf %437, %171 : vector<8x256xf32>
    %439 = vector.extract_strided_slice %302 {offsets = [0, 19], sizes = [8, 1], strides = [1, 1]} : vector<8x49xf32> to vector<8x1xf32>
    %440 = vector.broadcast %439 : vector<8x1xf32> to vector<8x256xf32>
    %441 = arith.mulf %438, %440 : vector<8x256xf32>
    %442 = arith.addf %436, %441 : vector<8x256xf32>
    %c0_141 = arith.constant 0 : index
    %c243 = arith.constant 243 : index
    %443 = vector.load %arg33[%c0_141, %c243] : memref<8x768xf32, #tpu.memory_space<vmem>>, vector<8x256xf32>
    %444 = arith.mulf %443, %361 : vector<8x256xf32>
    %445 = vector.extract_strided_slice %302 {offsets = [0, 20], sizes = [8, 1], strides = [1, 1]} : vector<8x49xf32> to vector<8x1xf32>
    %446 = vector.broadcast %445 : vector<8x1xf32> to vector<8x256xf32>
    %447 = arith.mulf %444, %446 : vector<8x256xf32>
    %448 = arith.addf %442, %447 : vector<8x256xf32>
    %c0_142 = arith.constant 0 : index
    %c253 = arith.constant 253 : index
    %449 = vector.load %arg33[%c0_142, %c253] : memref<8x768xf32, #tpu.memory_space<vmem>>, vector<8x256xf32>
    %450 = arith.mulf %449, %315 : vector<8x256xf32>
    %451 = vector.extract_strided_slice %302 {offsets = [0, 21], sizes = [8, 1], strides = [1, 1]} : vector<8x49xf32> to vector<8x1xf32>
    %452 = vector.broadcast %451 : vector<8x1xf32> to vector<8x256xf32>
    %453 = arith.mulf %450, %452 : vector<8x256xf32>
    %454 = arith.addf %448, %453 : vector<8x256xf32>
    %c0_143 = arith.constant 0 : index
    %c254_144 = arith.constant 254 : index
    %455 = vector.load %arg33[%c0_143, %c254_144] : memref<8x768xf32, #tpu.memory_space<vmem>>, vector<8x256xf32>
    %456 = arith.mulf %455, %137 : vector<8x256xf32>
    %457 = vector.extract_strided_slice %302 {offsets = [0, 22], sizes = [8, 1], strides = [1, 1]} : vector<8x49xf32> to vector<8x1xf32>
    %458 = vector.broadcast %457 : vector<8x1xf32> to vector<8x256xf32>
    %459 = arith.mulf %456, %458 : vector<8x256xf32>
    %460 = arith.addf %454, %459 : vector<8x256xf32>
    %c0_145 = arith.constant 0 : index
    %c255_146 = arith.constant 255 : index
    %461 = vector.load %arg33[%c0_145, %c255_146] : memref<8x768xf32, #tpu.memory_space<vmem>>, vector<8x256xf32>
    %462 = arith.mulf %461, %53 : vector<8x256xf32>
    %463 = vector.extract_strided_slice %302 {offsets = [0, 23], sizes = [8, 1], strides = [1, 1]} : vector<8x49xf32> to vector<8x1xf32>
    %464 = vector.broadcast %463 : vector<8x1xf32> to vector<8x256xf32>
    %465 = arith.mulf %462, %464 : vector<8x256xf32>
    %466 = arith.addf %460, %465 : vector<8x256xf32>
    %c0_147 = arith.constant 0 : index
    %c256_148 = arith.constant 256 : index
    %467 = vector.load %arg33[%c0_147, %c256_148] : memref<8x768xf32, #tpu.memory_space<vmem>>, vector<8x256xf32>
    %468 = vector.extract_strided_slice %302 {offsets = [0, 24], sizes = [8, 1], strides = [1, 1]} : vector<8x49xf32> to vector<8x1xf32>
    %469 = vector.broadcast %468 : vector<8x1xf32> to vector<8x256xf32>
    %470 = arith.mulf %467, %469 : vector<8x256xf32>
    %471 = arith.addf %466, %470 : vector<8x256xf32>
    %c0_149 = arith.constant 0 : index
    %c257_150 = arith.constant 257 : index
    %472 = vector.load %arg33[%c0_149, %c257_150] : memref<8x768xf32, #tpu.memory_space<vmem>>, vector<8x256xf32>
    %473 = arith.mulf %472, %75 : vector<8x256xf32>
    %474 = vector.extract_strided_slice %302 {offsets = [0, 25], sizes = [8, 1], strides = [1, 1]} : vector<8x49xf32> to vector<8x1xf32>
    %475 = vector.broadcast %474 : vector<8x1xf32> to vector<8x256xf32>
    %476 = arith.mulf %473, %475 : vector<8x256xf32>
    %477 = arith.addf %471, %476 : vector<8x256xf32>
    %c0_151 = arith.constant 0 : index
    %c258_152 = arith.constant 258 : index
    %478 = vector.load %arg33[%c0_151, %c258_152] : memref<8x768xf32, #tpu.memory_space<vmem>>, vector<8x256xf32>
    %479 = arith.mulf %478, %171 : vector<8x256xf32>
    %480 = vector.extract_strided_slice %302 {offsets = [0, 26], sizes = [8, 1], strides = [1, 1]} : vector<8x49xf32> to vector<8x1xf32>
    %481 = vector.broadcast %480 : vector<8x1xf32> to vector<8x256xf32>
    %482 = arith.mulf %479, %481 : vector<8x256xf32>
    %483 = arith.addf %477, %482 : vector<8x256xf32>
    %c0_153 = arith.constant 0 : index
    %c259 = arith.constant 259 : index
    %484 = vector.load %arg33[%c0_153, %c259] : memref<8x768xf32, #tpu.memory_space<vmem>>, vector<8x256xf32>
    %485 = arith.mulf %484, %361 : vector<8x256xf32>
    %486 = vector.extract_strided_slice %302 {offsets = [0, 27], sizes = [8, 1], strides = [1, 1]} : vector<8x49xf32> to vector<8x1xf32>
    %487 = vector.broadcast %486 : vector<8x1xf32> to vector<8x256xf32>
    %488 = arith.mulf %485, %487 : vector<8x256xf32>
    %489 = arith.addf %483, %488 : vector<8x256xf32>
    %c0_154 = arith.constant 0 : index
    %c269 = arith.constant 269 : index
    %490 = vector.load %arg33[%c0_154, %c269] : memref<8x768xf32, #tpu.memory_space<vmem>>, vector<8x256xf32>
    %491 = arith.mulf %490, %315 : vector<8x256xf32>
    %492 = vector.extract_strided_slice %302 {offsets = [0, 28], sizes = [8, 1], strides = [1, 1]} : vector<8x49xf32> to vector<8x1xf32>
    %493 = vector.broadcast %492 : vector<8x1xf32> to vector<8x256xf32>
    %494 = arith.mulf %491, %493 : vector<8x256xf32>
    %495 = arith.addf %489, %494 : vector<8x256xf32>
    %c0_155 = arith.constant 0 : index
    %c270_156 = arith.constant 270 : index
    %496 = vector.load %arg33[%c0_155, %c270_156] : memref<8x768xf32, #tpu.memory_space<vmem>>, vector<8x256xf32>
    %497 = arith.mulf %496, %137 : vector<8x256xf32>
    %498 = vector.extract_strided_slice %302 {offsets = [0, 29], sizes = [8, 1], strides = [1, 1]} : vector<8x49xf32> to vector<8x1xf32>
    %499 = vector.broadcast %498 : vector<8x1xf32> to vector<8x256xf32>
    %500 = arith.mulf %497, %499 : vector<8x256xf32>
    %501 = arith.addf %495, %500 : vector<8x256xf32>
    %c0_157 = arith.constant 0 : index
    %c271_158 = arith.constant 271 : index
    %502 = vector.load %arg33[%c0_157, %c271_158] : memref<8x768xf32, #tpu.memory_space<vmem>>, vector<8x256xf32>
    %503 = arith.mulf %502, %53 : vector<8x256xf32>
    %504 = vector.extract_strided_slice %302 {offsets = [0, 30], sizes = [8, 1], strides = [1, 1]} : vector<8x49xf32> to vector<8x1xf32>
    %505 = vector.broadcast %504 : vector<8x1xf32> to vector<8x256xf32>
    %506 = arith.mulf %503, %505 : vector<8x256xf32>
    %507 = arith.addf %501, %506 : vector<8x256xf32>
    %c0_159 = arith.constant 0 : index
    %c272_160 = arith.constant 272 : index
    %508 = vector.load %arg33[%c0_159, %c272_160] : memref<8x768xf32, #tpu.memory_space<vmem>>, vector<8x256xf32>
    %509 = vector.extract_strided_slice %302 {offsets = [0, 31], sizes = [8, 1], strides = [1, 1]} : vector<8x49xf32> to vector<8x1xf32>
    %510 = vector.broadcast %509 : vector<8x1xf32> to vector<8x256xf32>
    %511 = arith.mulf %508, %510 : vector<8x256xf32>
    %512 = arith.addf %507, %511 : vector<8x256xf32>
    %c0_161 = arith.constant 0 : index
    %c273_162 = arith.constant 273 : index
    %513 = vector.load %arg33[%c0_161, %c273_162] : memref<8x768xf32, #tpu.memory_space<vmem>>, vector<8x256xf32>
    %514 = arith.mulf %513, %75 : vector<8x256xf32>
    %515 = vector.extract_strided_slice %302 {offsets = [0, 32], sizes = [8, 1], strides = [1, 1]} : vector<8x49xf32> to vector<8x1xf32>
    %516 = vector.broadcast %515 : vector<8x1xf32> to vector<8x256xf32>
    %517 = arith.mulf %514, %516 : vector<8x256xf32>
    %518 = arith.addf %512, %517 : vector<8x256xf32>
    %c0_163 = arith.constant 0 : index
    %c274_164 = arith.constant 274 : index
    %519 = vector.load %arg33[%c0_163, %c274_164] : memref<8x768xf32, #tpu.memory_space<vmem>>, vector<8x256xf32>
    %520 = arith.mulf %519, %171 : vector<8x256xf32>
    %521 = vector.extract_strided_slice %302 {offsets = [0, 33], sizes = [8, 1], strides = [1, 1]} : vector<8x49xf32> to vector<8x1xf32>
    %522 = vector.broadcast %521 : vector<8x1xf32> to vector<8x256xf32>
    %523 = arith.mulf %520, %522 : vector<8x256xf32>
    %524 = arith.addf %518, %523 : vector<8x256xf32>
    %c0_165 = arith.constant 0 : index
    %c275 = arith.constant 275 : index
    %525 = vector.load %arg33[%c0_165, %c275] : memref<8x768xf32, #tpu.memory_space<vmem>>, vector<8x256xf32>
    %526 = arith.mulf %525, %361 : vector<8x256xf32>
    %527 = vector.extract_strided_slice %302 {offsets = [0, 34], sizes = [8, 1], strides = [1, 1]} : vector<8x49xf32> to vector<8x1xf32>
    %528 = vector.broadcast %527 : vector<8x1xf32> to vector<8x256xf32>
    %529 = arith.mulf %526, %528 : vector<8x256xf32>
    %530 = arith.addf %524, %529 : vector<8x256xf32>
    %c0_166 = arith.constant 0 : index
    %c285 = arith.constant 285 : index
    %531 = vector.load %arg33[%c0_166, %c285] : memref<8x768xf32, #tpu.memory_space<vmem>>, vector<8x256xf32>
    %532 = arith.mulf %531, %315 : vector<8x256xf32>
    %533 = vector.extract_strided_slice %302 {offsets = [0, 35], sizes = [8, 1], strides = [1, 1]} : vector<8x49xf32> to vector<8x1xf32>
    %534 = vector.broadcast %533 : vector<8x1xf32> to vector<8x256xf32>
    %535 = arith.mulf %532, %534 : vector<8x256xf32>
    %536 = arith.addf %530, %535 : vector<8x256xf32>
    %c0_167 = arith.constant 0 : index
    %c286_168 = arith.constant 286 : index
    %537 = vector.load %arg33[%c0_167, %c286_168] : memref<8x768xf32, #tpu.memory_space<vmem>>, vector<8x256xf32>
    %538 = arith.mulf %537, %137 : vector<8x256xf32>
    %539 = vector.extract_strided_slice %302 {offsets = [0, 36], sizes = [8, 1], strides = [1, 1]} : vector<8x49xf32> to vector<8x1xf32>
    %540 = vector.broadcast %539 : vector<8x1xf32> to vector<8x256xf32>
    %541 = arith.mulf %538, %540 : vector<8x256xf32>
    %542 = arith.addf %536, %541 : vector<8x256xf32>
    %c0_169 = arith.constant 0 : index
    %c287_170 = arith.constant 287 : index
    %543 = vector.load %arg33[%c0_169, %c287_170] : memref<8x768xf32, #tpu.memory_space<vmem>>, vector<8x256xf32>
    %544 = arith.mulf %543, %53 : vector<8x256xf32>
    %545 = vector.extract_strided_slice %302 {offsets = [0, 37], sizes = [8, 1], strides = [1, 1]} : vector<8x49xf32> to vector<8x1xf32>
    %546 = vector.broadcast %545 : vector<8x1xf32> to vector<8x256xf32>
    %547 = arith.mulf %544, %546 : vector<8x256xf32>
    %548 = arith.addf %542, %547 : vector<8x256xf32>
    %c0_171 = arith.constant 0 : index
    %c288_172 = arith.constant 288 : index
    %549 = vector.load %arg33[%c0_171, %c288_172] : memref<8x768xf32, #tpu.memory_space<vmem>>, vector<8x256xf32>
    %550 = vector.extract_strided_slice %302 {offsets = [0, 38], sizes = [8, 1], strides = [1, 1]} : vector<8x49xf32> to vector<8x1xf32>
    %551 = vector.broadcast %550 : vector<8x1xf32> to vector<8x256xf32>
    %552 = arith.mulf %549, %551 : vector<8x256xf32>
    %553 = arith.addf %548, %552 : vector<8x256xf32>
    %c0_173 = arith.constant 0 : index
    %c289_174 = arith.constant 289 : index
    %554 = vector.load %arg33[%c0_173, %c289_174] : memref<8x768xf32, #tpu.memory_space<vmem>>, vector<8x256xf32>
    %555 = arith.mulf %554, %75 : vector<8x256xf32>
    %556 = vector.extract_strided_slice %302 {offsets = [0, 39], sizes = [8, 1], strides = [1, 1]} : vector<8x49xf32> to vector<8x1xf32>
    %557 = vector.broadcast %556 : vector<8x1xf32> to vector<8x256xf32>
    %558 = arith.mulf %555, %557 : vector<8x256xf32>
    %559 = arith.addf %553, %558 : vector<8x256xf32>
    %c0_175 = arith.constant 0 : index
    %c290_176 = arith.constant 290 : index
    %560 = vector.load %arg33[%c0_175, %c290_176] : memref<8x768xf32, #tpu.memory_space<vmem>>, vector<8x256xf32>
    %561 = arith.mulf %560, %171 : vector<8x256xf32>
    %562 = vector.extract_strided_slice %302 {offsets = [0, 40], sizes = [8, 1], strides = [1, 1]} : vector<8x49xf32> to vector<8x1xf32>
    %563 = vector.broadcast %562 : vector<8x1xf32> to vector<8x256xf32>
    %564 = arith.mulf %561, %563 : vector<8x256xf32>
    %565 = arith.addf %559, %564 : vector<8x256xf32>
    %c0_177 = arith.constant 0 : index
    %c291 = arith.constant 291 : index
    %566 = vector.load %arg33[%c0_177, %c291] : memref<8x768xf32, #tpu.memory_space<vmem>>, vector<8x256xf32>
    %567 = arith.mulf %566, %361 : vector<8x256xf32>
    %568 = vector.extract_strided_slice %302 {offsets = [0, 41], sizes = [8, 1], strides = [1, 1]} : vector<8x49xf32> to vector<8x1xf32>
    %569 = vector.broadcast %568 : vector<8x1xf32> to vector<8x256xf32>
    %570 = arith.mulf %567, %569 : vector<8x256xf32>
    %571 = arith.addf %565, %570 : vector<8x256xf32>
    %c0_178 = arith.constant 0 : index
    %c301 = arith.constant 301 : index
    %572 = vector.load %arg33[%c0_178, %c301] : memref<8x768xf32, #tpu.memory_space<vmem>>, vector<8x256xf32>
    %573 = arith.mulf %572, %315 : vector<8x256xf32>
    %574 = vector.extract_strided_slice %302 {offsets = [0, 42], sizes = [8, 1], strides = [1, 1]} : vector<8x49xf32> to vector<8x1xf32>
    %575 = vector.broadcast %574 : vector<8x1xf32> to vector<8x256xf32>
    %576 = arith.mulf %573, %575 : vector<8x256xf32>
    %577 = arith.addf %571, %576 : vector<8x256xf32>
    %c0_179 = arith.constant 0 : index
    %c302 = arith.constant 302 : index
    %578 = vector.load %arg33[%c0_179, %c302] : memref<8x768xf32, #tpu.memory_space<vmem>>, vector<8x256xf32>
    %579 = arith.mulf %578, %137 : vector<8x256xf32>
    %580 = vector.extract_strided_slice %302 {offsets = [0, 43], sizes = [8, 1], strides = [1, 1]} : vector<8x49xf32> to vector<8x1xf32>
    %581 = vector.broadcast %580 : vector<8x1xf32> to vector<8x256xf32>
    %582 = arith.mulf %579, %581 : vector<8x256xf32>
    %583 = arith.addf %577, %582 : vector<8x256xf32>
    %c0_180 = arith.constant 0 : index
    %c303 = arith.constant 303 : index
    %584 = vector.load %arg33[%c0_180, %c303] : memref<8x768xf32, #tpu.memory_space<vmem>>, vector<8x256xf32>
    %585 = arith.mulf %584, %53 : vector<8x256xf32>
    %586 = vector.extract_strided_slice %302 {offsets = [0, 44], sizes = [8, 1], strides = [1, 1]} : vector<8x49xf32> to vector<8x1xf32>
    %587 = vector.broadcast %586 : vector<8x1xf32> to vector<8x256xf32>
    %588 = arith.mulf %585, %587 : vector<8x256xf32>
    %589 = arith.addf %583, %588 : vector<8x256xf32>
    %c0_181 = arith.constant 0 : index
    %c304 = arith.constant 304 : index
    %590 = vector.load %arg33[%c0_181, %c304] : memref<8x768xf32, #tpu.memory_space<vmem>>, vector<8x256xf32>
    %591 = vector.extract_strided_slice %302 {offsets = [0, 45], sizes = [8, 1], strides = [1, 1]} : vector<8x49xf32> to vector<8x1xf32>
    %592 = vector.broadcast %591 : vector<8x1xf32> to vector<8x256xf32>
    %593 = arith.mulf %590, %592 : vector<8x256xf32>
    %594 = arith.addf %589, %593 : vector<8x256xf32>
    %c0_182 = arith.constant 0 : index
    %c305 = arith.constant 305 : index
    %595 = vector.load %arg33[%c0_182, %c305] : memref<8x768xf32, #tpu.memory_space<vmem>>, vector<8x256xf32>
    %596 = arith.mulf %595, %75 : vector<8x256xf32>
    %597 = vector.extract_strided_slice %302 {offsets = [0, 46], sizes = [8, 1], strides = [1, 1]} : vector<8x49xf32> to vector<8x1xf32>
    %598 = vector.broadcast %597 : vector<8x1xf32> to vector<8x256xf32>
    %599 = arith.mulf %596, %598 : vector<8x256xf32>
    %600 = arith.addf %594, %599 : vector<8x256xf32>
    %c0_183 = arith.constant 0 : index
    %c306 = arith.constant 306 : index
    %601 = vector.load %arg33[%c0_183, %c306] : memref<8x768xf32, #tpu.memory_space<vmem>>, vector<8x256xf32>
    %602 = arith.mulf %601, %171 : vector<8x256xf32>
    %603 = vector.extract_strided_slice %302 {offsets = [0, 47], sizes = [8, 1], strides = [1, 1]} : vector<8x49xf32> to vector<8x1xf32>
    %604 = vector.broadcast %603 : vector<8x1xf32> to vector<8x256xf32>
    %605 = arith.mulf %602, %604 : vector<8x256xf32>
    %606 = arith.addf %600, %605 : vector<8x256xf32>
    %c0_184 = arith.constant 0 : index
    %c307 = arith.constant 307 : index
    %607 = vector.load %arg33[%c0_184, %c307] : memref<8x768xf32, #tpu.memory_space<vmem>>, vector<8x256xf32>
    %608 = arith.mulf %607, %361 : vector<8x256xf32>
    %609 = vector.extract_strided_slice %302 {offsets = [0, 48], sizes = [8, 1], strides = [1, 1]} : vector<8x49xf32> to vector<8x1xf32>
    %610 = vector.broadcast %609 : vector<8x1xf32> to vector<8x256xf32>
    %611 = arith.mulf %608, %610 : vector<8x256xf32>
    %612 = arith.addf %606, %611 : vector<8x256xf32>
    %c0_185 = arith.constant 0 : index
    %c0_186 = arith.constant 0 : index
    %613 = vector.load %arg15[%c0_185, %c0_186] : memref<8x1xf32, #tpu.memory_space<vmem>>, vector<8x1xf32>
    %614 = vector.broadcast %613 : vector<8x1xf32> to vector<8x256xf32>
    %615 = arith.addf %612, %614 : vector<8x256xf32>
    %c0_187 = arith.constant 0 : index
    %c0_188 = arith.constant 0 : index
    %616 = vector.load %arg16[%c0_187, %c0_188] : memref<8x8xf32, #tpu.memory_space<vmem>>, vector<8x8xf32>
    %cst_189 = arith.constant dense<0.000000e+00> : vector<8x256xf32>
    %617 = tpu.matmul %616, %615, %cst_189 {dimension_numbers = #tpu.dot_dimension_numbers<[1], [0], [0], [1], [0, 0, 1, 1], [], []>} : vector<8x8xf32>, vector<8x256xf32>, vector<8x256xf32> -> vector<8x256xf32>
    %c0_190 = arith.constant 0 : index
    %c0_191 = arith.constant 0 : index
    %618 = vector.load %arg17[%c0_190, %c0_191] : memref<8x1xf32, #tpu.memory_space<vmem>>, vector<8x1xf32>
    %619 = vector.broadcast %618 : vector<8x1xf32> to vector<8x256xf32>
    %620 = arith.addf %617, %619 : vector<8x256xf32>
    %c0_192 = arith.constant 0 : index
    %c256_193 = arith.constant 256 : index
    %621 = vector.load %arg33[%c0_192, %c256_193] : memref<8x768xf32, #tpu.memory_space<vmem>>, vector<8x256xf32>
    tpu.vector_store %arg33[%c0_192, %c256_193], %620 {strides = array<i32>} : memref<8x768xf32, #tpu.memory_space<vmem>>, vector<8x256xf32>,
    %c0_194 = arith.constant 0 : index
    %c0_195 = arith.constant 0 : index
    %622 = vector.load %arg18[%c0_194, %c0_195] : memref<8x11xf32, #tpu.memory_space<vmem>>, vector<8x11xf32>
    %cst_196 = arith.constant 0.000000e+00 : f32
    %623 = vector.broadcast %cst_196 : f32 to vector<8x256xf32>
    %c0_197 = arith.constant 0 : index
    %c251 = arith.constant 251 : index
    %624 = vector.load %arg33[%c0_197, %c251] : memref<8x768xf32, #tpu.memory_space<vmem>>, vector<8x256xf32>
    %c-5_i32 = arith.constant -5 : i32
    %625 = vector.broadcast %c-5_i32 : i32 to vector<8x256xi32>
    %626 = arith.addi %20, %625 : vector<8x256xi32>
    %c0_i32_198 = arith.constant 0 : i32
    %627 = vector.broadcast %c0_i32_198 : i32 to vector<8x256xi32>
    %628 = arith.cmpi sge, %626, %627 : vector<8x256xi32>
    %c-5_i32_199 = arith.constant -5 : i32
    %629 = vector.broadcast %c-5_i32_199 : i32 to vector<8x256xi32>
    %630 = arith.addi %20, %629 : vector<8x256xi32>
    %c16_i32_200 = arith.constant 16 : i32
    %631 = vector.broadcast %c16_i32_200 : i32 to vector<8x256xi32>
    %632 = arith.cmpi slt, %630, %631 : vector<8x256xi32>
    %633 = arith.andi %628, %632 : vector<8x256xi1>
    %634 = arith.extui %633 : vector<8x256xi1> to vector<8x256xi32>
    %635 = arith.sitofp %634 : vector<8x256xi32> to vector<8x256xf32>
    %636 = arith.mulf %624, %635 : vector<8x256xf32>
    %637 = vector.extract_strided_slice %622 {offsets = [0, 0], sizes = [8, 1], strides = [1, 1]} : vector<8x11xf32> to vector<8x1xf32>
    %638 = vector.broadcast %637 : vector<8x1xf32> to vector<8x256xf32>
    %639 = arith.mulf %636, %638 : vector<8x256xf32>
    %640 = arith.addf %623, %639 : vector<8x256xf32>
    %c0_201 = arith.constant 0 : index
    %c252 = arith.constant 252 : index
    %641 = vector.load %arg33[%c0_201, %c252] : memref<8x768xf32, #tpu.memory_space<vmem>>, vector<8x256xf32>
    %c-4_i32 = arith.constant -4 : i32
    %642 = vector.broadcast %c-4_i32 : i32 to vector<8x256xi32>
    %643 = arith.addi %20, %642 : vector<8x256xi32>
    %c0_i32_202 = arith.constant 0 : i32
    %644 = vector.broadcast %c0_i32_202 : i32 to vector<8x256xi32>
    %645 = arith.cmpi sge, %643, %644 : vector<8x256xi32>
    %c-4_i32_203 = arith.constant -4 : i32
    %646 = vector.broadcast %c-4_i32_203 : i32 to vector<8x256xi32>
    %647 = arith.addi %20, %646 : vector<8x256xi32>
    %c16_i32_204 = arith.constant 16 : i32
    %648 = vector.broadcast %c16_i32_204 : i32 to vector<8x256xi32>
    %649 = arith.cmpi slt, %647, %648 : vector<8x256xi32>
    %650 = arith.andi %645, %649 : vector<8x256xi1>
    %651 = arith.extui %650 : vector<8x256xi1> to vector<8x256xi32>
    %652 = arith.sitofp %651 : vector<8x256xi32> to vector<8x256xf32>
    %653 = arith.mulf %641, %652 : vector<8x256xf32>
    %654 = vector.extract_strided_slice %622 {offsets = [0, 1], sizes = [8, 1], strides = [1, 1]} : vector<8x11xf32> to vector<8x1xf32>
    %655 = vector.broadcast %654 : vector<8x1xf32> to vector<8x256xf32>
    %656 = arith.mulf %653, %655 : vector<8x256xf32>
    %657 = arith.addf %640, %656 : vector<8x256xf32>
    %c0_205 = arith.constant 0 : index
    %c253_206 = arith.constant 253 : index
    %658 = vector.load %arg33[%c0_205, %c253_206] : memref<8x768xf32, #tpu.memory_space<vmem>>, vector<8x256xf32>
    %659 = arith.mulf %658, %315 : vector<8x256xf32>
    %660 = vector.extract_strided_slice %622 {offsets = [0, 2], sizes = [8, 1], strides = [1, 1]} : vector<8x11xf32> to vector<8x1xf32>
    %661 = vector.broadcast %660 : vector<8x1xf32> to vector<8x256xf32>
    %662 = arith.mulf %659, %661 : vector<8x256xf32>
    %663 = arith.addf %657, %662 : vector<8x256xf32>
    %c0_207 = arith.constant 0 : index
    %c254_208 = arith.constant 254 : index
    %664 = vector.load %arg33[%c0_207, %c254_208] : memref<8x768xf32, #tpu.memory_space<vmem>>, vector<8x256xf32>
    %665 = arith.mulf %664, %137 : vector<8x256xf32>
    %666 = vector.extract_strided_slice %622 {offsets = [0, 3], sizes = [8, 1], strides = [1, 1]} : vector<8x11xf32> to vector<8x1xf32>
    %667 = vector.broadcast %666 : vector<8x1xf32> to vector<8x256xf32>
    %668 = arith.mulf %665, %667 : vector<8x256xf32>
    %669 = arith.addf %663, %668 : vector<8x256xf32>
    %c0_209 = arith.constant 0 : index
    %c255_210 = arith.constant 255 : index
    %670 = vector.load %arg33[%c0_209, %c255_210] : memref<8x768xf32, #tpu.memory_space<vmem>>, vector<8x256xf32>
    %671 = arith.mulf %670, %53 : vector<8x256xf32>
    %672 = vector.extract_strided_slice %622 {offsets = [0, 4], sizes = [8, 1], strides = [1, 1]} : vector<8x11xf32> to vector<8x1xf32>
    %673 = vector.broadcast %672 : vector<8x1xf32> to vector<8x256xf32>
    %674 = arith.mulf %671, %673 : vector<8x256xf32>
    %675 = arith.addf %669, %674 : vector<8x256xf32>
    %c0_211 = arith.constant 0 : index
    %c256_212 = arith.constant 256 : index
    %676 = vector.load %arg33[%c0_211, %c256_212] : memref<8x768xf32, #tpu.memory_space<vmem>>, vector<8x256xf32>
    %677 = vector.extract_strided_slice %622 {offsets = [0, 5], sizes = [8, 1], strides = [1, 1]} : vector<8x11xf32> to vector<8x1xf32>
    %678 = vector.broadcast %677 : vector<8x1xf32> to vector<8x256xf32>
    %679 = arith.mulf %676, %678 : vector<8x256xf32>
    %680 = arith.addf %675, %679 : vector<8x256xf32>
    %c0_213 = arith.constant 0 : index
    %c257_214 = arith.constant 257 : index
    %681 = vector.load %arg33[%c0_213, %c257_214] : memref<8x768xf32, #tpu.memory_space<vmem>>, vector<8x256xf32>
    %682 = arith.mulf %681, %75 : vector<8x256xf32>
    %683 = vector.extract_strided_slice %622 {offsets = [0, 6], sizes = [8, 1], strides = [1, 1]} : vector<8x11xf32> to vector<8x1xf32>
    %684 = vector.broadcast %683 : vector<8x1xf32> to vector<8x256xf32>
    %685 = arith.mulf %682, %684 : vector<8x256xf32>
    %686 = arith.addf %680, %685 : vector<8x256xf32>
    %c0_215 = arith.constant 0 : index
    %c258_216 = arith.constant 258 : index
    %687 = vector.load %arg33[%c0_215, %c258_216] : memref<8x768xf32, #tpu.memory_space<vmem>>, vector<8x256xf32>
    %688 = arith.mulf %687, %171 : vector<8x256xf32>
    %689 = vector.extract_strided_slice %622 {offsets = [0, 7], sizes = [8, 1], strides = [1, 1]} : vector<8x11xf32> to vector<8x1xf32>
    %690 = vector.broadcast %689 : vector<8x1xf32> to vector<8x256xf32>
    %691 = arith.mulf %688, %690 : vector<8x256xf32>
    %692 = arith.addf %686, %691 : vector<8x256xf32>
    %c0_217 = arith.constant 0 : index
    %c259_218 = arith.constant 259 : index
    %693 = vector.load %arg33[%c0_217, %c259_218] : memref<8x768xf32, #tpu.memory_space<vmem>>, vector<8x256xf32>
    %694 = arith.mulf %693, %361 : vector<8x256xf32>
    %695 = vector.extract_strided_slice %622 {offsets = [0, 8], sizes = [8, 1], strides = [1, 1]} : vector<8x11xf32> to vector<8x1xf32>
    %696 = vector.broadcast %695 : vector<8x1xf32> to vector<8x256xf32>
    %697 = arith.mulf %694, %696 : vector<8x256xf32>
    %698 = arith.addf %692, %697 : vector<8x256xf32>
    %c0_219 = arith.constant 0 : index
    %c260 = arith.constant 260 : index
    %699 = vector.load %arg33[%c0_219, %c260] : memref<8x768xf32, #tpu.memory_space<vmem>>, vector<8x256xf32>
    %c4_i32 = arith.constant 4 : i32
    %700 = vector.broadcast %c4_i32 : i32 to vector<8x256xi32>
    %701 = arith.addi %20, %700 : vector<8x256xi32>
    %c0_i32_220 = arith.constant 0 : i32
    %702 = vector.broadcast %c0_i32_220 : i32 to vector<8x256xi32>
    %703 = arith.cmpi sge, %701, %702 : vector<8x256xi32>
    %c4_i32_221 = arith.constant 4 : i32
    %704 = vector.broadcast %c4_i32_221 : i32 to vector<8x256xi32>
    %705 = arith.addi %20, %704 : vector<8x256xi32>
    %c16_i32_222 = arith.constant 16 : i32
    %706 = vector.broadcast %c16_i32_222 : i32 to vector<8x256xi32>
    %707 = arith.cmpi slt, %705, %706 : vector<8x256xi32>
    %708 = arith.andi %703, %707 : vector<8x256xi1>
    %709 = arith.extui %708 : vector<8x256xi1> to vector<8x256xi32>
    %710 = arith.sitofp %709 : vector<8x256xi32> to vector<8x256xf32>
    %711 = arith.mulf %699, %710 : vector<8x256xf32>
    %712 = vector.extract_strided_slice %622 {offsets = [0, 9], sizes = [8, 1], strides = [1, 1]} : vector<8x11xf32> to vector<8x1xf32>
    %713 = vector.broadcast %712 : vector<8x1xf32> to vector<8x256xf32>
    %714 = arith.mulf %711, %713 : vector<8x256xf32>
    %715 = arith.addf %698, %714 : vector<8x256xf32>
    %c0_223 = arith.constant 0 : index
    %c261 = arith.constant 261 : index
    %716 = vector.load %arg33[%c0_223, %c261] : memref<8x768xf32, #tpu.memory_space<vmem>>, vector<8x256xf32>
    %c5_i32 = arith.constant 5 : i32
    %717 = vector.broadcast %c5_i32 : i32 to vector<8x256xi32>
    %718 = arith.addi %20, %717 : vector<8x256xi32>
    %c0_i32_224 = arith.constant 0 : i32
    %719 = vector.broadcast %c0_i32_224 : i32 to vector<8x256xi32>
    %720 = arith.cmpi sge, %718, %719 : vector<8x256xi32>
    %c5_i32_225 = arith.constant 5 : i32
    %721 = vector.broadcast %c5_i32_225 : i32 to vector<8x256xi32>
    %722 = arith.addi %20, %721 : vector<8x256xi32>
    %c16_i32_226 = arith.constant 16 : i32
    %723 = vector.broadcast %c16_i32_226 : i32 to vector<8x256xi32>
    %724 = arith.cmpi slt, %722, %723 : vector<8x256xi32>
    %725 = arith.andi %720, %724 : vector<8x256xi1>
    %726 = arith.extui %725 : vector<8x256xi1> to vector<8x256xi32>
    %727 = arith.sitofp %726 : vector<8x256xi32> to vector<8x256xf32>
    %728 = arith.mulf %716, %727 : vector<8x256xf32>
    %729 = vector.extract_strided_slice %622 {offsets = [0, 10], sizes = [8, 1], strides = [1, 1]} : vector<8x11xf32> to vector<8x1xf32>
    %730 = vector.broadcast %729 : vector<8x1xf32> to vector<8x256xf32>
    %731 = arith.mulf %728, %730 : vector<8x256xf32>
    %732 = arith.addf %715, %731 : vector<8x256xf32>
    %c0_227 = arith.constant 0 : index
    %c0_228 = arith.constant 0 : index
    %733 = vector.load %arg19[%c0_227, %c0_228] : memref<8x1xf32, #tpu.memory_space<vmem>>, vector<8x1xf32>
    %734 = vector.broadcast %733 : vector<8x1xf32> to vector<8x256xf32>
    %735 = arith.addf %732, %734 : vector<8x256xf32>
    %c0_229 = arith.constant 0 : index
    %c256_230 = arith.constant 256 : index
    %736 = vector.load %arg33[%c0_229, %c256_230] : memref<8x768xf32, #tpu.memory_space<vmem>>, vector<8x256xf32>
    tpu.vector_store %arg33[%c0_229, %c256_230], %735 {strides = array<i32>} : memref<8x768xf32, #tpu.memory_space<vmem>>, vector<8x256xf32>,
    %c0_231 = arith.constant 0 : index
    %c0_232 = arith.constant 0 : index
    %737 = vector.load %arg20[%c0_231, %c0_232] : memref<8x11xf32, #tpu.memory_space<vmem>>, vector<8x11xf32>
    %cst_233 = arith.constant 0.000000e+00 : f32
    %738 = vector.broadcast %cst_233 : f32 to vector<8x256xf32>
    %c0_234 = arith.constant 0 : index
    %c176 = arith.constant 176 : index
    %739 = vector.load %arg33[%c0_234, %c176] : memref<8x768xf32, #tpu.memory_space<vmem>>, vector<8x256xf32>
    %740 = vector.extract_strided_slice %737 {offsets = [0, 0], sizes = [8, 1], strides = [1, 1]} : vector<8x11xf32> to vector<8x1xf32>
    %741 = vector.broadcast %740 : vector<8x1xf32> to vector<8x256xf32>
    %742 = arith.mulf %739, %741 : vector<8x256xf32>
    %743 = arith.addf %738, %742 : vector<8x256xf32>
    %c0_235 = arith.constant 0 : index
    %c192 = arith.constant 192 : index
    %744 = vector.load %arg33[%c0_235, %c192] : memref<8x768xf32, #tpu.memory_space<vmem>>, vector<8x256xf32>
    %745 = vector.extract_strided_slice %737 {offsets = [0, 1], sizes = [8, 1], strides = [1, 1]} : vector<8x11xf32> to vector<8x1xf32>
    %746 = vector.broadcast %745 : vector<8x1xf32> to vector<8x256xf32>
    %747 = arith.mulf %744, %746 : vector<8x256xf32>
    %748 = arith.addf %743, %747 : vector<8x256xf32>
    %c0_236 = arith.constant 0 : index
    %c208_237 = arith.constant 208 : index
    %749 = vector.load %arg33[%c0_236, %c208_237] : memref<8x768xf32, #tpu.memory_space<vmem>>, vector<8x256xf32>
    %750 = vector.extract_strided_slice %737 {offsets = [0, 2], sizes = [8, 1], strides = [1, 1]} : vector<8x11xf32> to vector<8x1xf32>
    %751 = vector.broadcast %750 : vector<8x1xf32> to vector<8x256xf32>
    %752 = arith.mulf %749, %751 : vector<8x256xf32>
    %753 = arith.addf %748, %752 : vector<8x256xf32>
    %c0_238 = arith.constant 0 : index
    %c224_239 = arith.constant 224 : index
    %754 = vector.load %arg33[%c0_238, %c224_239] : memref<8x768xf32, #tpu.memory_space<vmem>>, vector<8x256xf32>
    %755 = vector.extract_strided_slice %737 {offsets = [0, 3], sizes = [8, 1], strides = [1, 1]} : vector<8x11xf32> to vector<8x1xf32>
    %756 = vector.broadcast %755 : vector<8x1xf32> to vector<8x256xf32>
    %757 = arith.mulf %754, %756 : vector<8x256xf32>
    %758 = arith.addf %753, %757 : vector<8x256xf32>
    %c0_240 = arith.constant 0 : index
    %c240_241 = arith.constant 240 : index
    %759 = vector.load %arg33[%c0_240, %c240_241] : memref<8x768xf32, #tpu.memory_space<vmem>>, vector<8x256xf32>
    %760 = vector.extract_strided_slice %737 {offsets = [0, 4], sizes = [8, 1], strides = [1, 1]} : vector<8x11xf32> to vector<8x1xf32>
    %761 = vector.broadcast %760 : vector<8x1xf32> to vector<8x256xf32>
    %762 = arith.mulf %759, %761 : vector<8x256xf32>
    %763 = arith.addf %758, %762 : vector<8x256xf32>
    %c0_242 = arith.constant 0 : index
    %c256_243 = arith.constant 256 : index
    %764 = vector.load %arg33[%c0_242, %c256_243] : memref<8x768xf32, #tpu.memory_space<vmem>>, vector<8x256xf32>
    %765 = vector.extract_strided_slice %737 {offsets = [0, 5], sizes = [8, 1], strides = [1, 1]} : vector<8x11xf32> to vector<8x1xf32>
    %766 = vector.broadcast %765 : vector<8x1xf32> to vector<8x256xf32>
    %767 = arith.mulf %764, %766 : vector<8x256xf32>
    %768 = arith.addf %763, %767 : vector<8x256xf32>
    %c0_244 = arith.constant 0 : index
    %c272_245 = arith.constant 272 : index
    %769 = vector.load %arg33[%c0_244, %c272_245] : memref<8x768xf32, #tpu.memory_space<vmem>>, vector<8x256xf32>
    %770 = vector.extract_strided_slice %737 {offsets = [0, 6], sizes = [8, 1], strides = [1, 1]} : vector<8x11xf32> to vector<8x1xf32>
    %771 = vector.broadcast %770 : vector<8x1xf32> to vector<8x256xf32>
    %772 = arith.mulf %769, %771 : vector<8x256xf32>
    %773 = arith.addf %768, %772 : vector<8x256xf32>
    %c0_246 = arith.constant 0 : index
    %c288_247 = arith.constant 288 : index
    %774 = vector.load %arg33[%c0_246, %c288_247] : memref<8x768xf32, #tpu.memory_space<vmem>>, vector<8x256xf32>
    %775 = vector.extract_strided_slice %737 {offsets = [0, 7], sizes = [8, 1], strides = [1, 1]} : vector<8x11xf32> to vector<8x1xf32>
    %776 = vector.broadcast %775 : vector<8x1xf32> to vector<8x256xf32>
    %777 = arith.mulf %774, %776 : vector<8x256xf32>
    %778 = arith.addf %773, %777 : vector<8x256xf32>
    %c0_248 = arith.constant 0 : index
    %c304_249 = arith.constant 304 : index
    %779 = vector.load %arg33[%c0_248, %c304_249] : memref<8x768xf32, #tpu.memory_space<vmem>>, vector<8x256xf32>
    %780 = vector.extract_strided_slice %737 {offsets = [0, 8], sizes = [8, 1], strides = [1, 1]} : vector<8x11xf32> to vector<8x1xf32>
    %781 = vector.broadcast %780 : vector<8x1xf32> to vector<8x256xf32>
    %782 = arith.mulf %779, %781 : vector<8x256xf32>
    %783 = arith.addf %778, %782 : vector<8x256xf32>
    %c0_250 = arith.constant 0 : index
    %c320 = arith.constant 320 : index
    %784 = vector.load %arg33[%c0_250, %c320] : memref<8x768xf32, #tpu.memory_space<vmem>>, vector<8x256xf32>
    %785 = vector.extract_strided_slice %737 {offsets = [0, 9], sizes = [8, 1], strides = [1, 1]} : vector<8x11xf32> to vector<8x1xf32>
    %786 = vector.broadcast %785 : vector<8x1xf32> to vector<8x256xf32>
    %787 = arith.mulf %784, %786 : vector<8x256xf32>
    %788 = arith.addf %783, %787 : vector<8x256xf32>
    %c0_251 = arith.constant 0 : index
    %c336 = arith.constant 336 : index
    %789 = vector.load %arg33[%c0_251, %c336] : memref<8x768xf32, #tpu.memory_space<vmem>>, vector<8x256xf32>
    %790 = vector.extract_strided_slice %737 {offsets = [0, 10], sizes = [8, 1], strides = [1, 1]} : vector<8x11xf32> to vector<8x1xf32>
    %791 = vector.broadcast %790 : vector<8x1xf32> to vector<8x256xf32>
    %792 = arith.mulf %789, %791 : vector<8x256xf32>
    %793 = arith.addf %788, %792 : vector<8x256xf32>
    %c0_252 = arith.constant 0 : index
    %c0_253 = arith.constant 0 : index
    %794 = vector.load %arg21[%c0_252, %c0_253] : memref<8x1xf32, #tpu.memory_space<vmem>>, vector<8x1xf32>
    %795 = vector.broadcast %794 : vector<8x1xf32> to vector<8x256xf32>
    %796 = arith.addf %793, %795 : vector<8x256xf32>
    %c0_254 = arith.constant 0 : index
    %c0_255 = arith.constant 0 : index
    %797 = vector.load %arg22[%c0_254, %c0_255] : memref<8x8xf32, #tpu.memory_space<vmem>>, vector<8x8xf32>
    %cst_256 = arith.constant dense<0.000000e+00> : vector<8x256xf32>
    %798 = tpu.matmul %797, %796, %cst_256 {dimension_numbers = #tpu.dot_dimension_numbers<[1], [0], [0], [1], [0, 0, 1, 1], [], []>} : vector<8x8xf32>, vector<8x256xf32>, vector<8x256xf32> -> vector<8x256xf32>
    %c0_257 = arith.constant 0 : index
    %c0_258 = arith.constant 0 : index
    %799 = vector.load %arg23[%c0_257, %c0_258] : memref<8x1xf32, #tpu.memory_space<vmem>>, vector<8x1xf32>
    %800 = vector.broadcast %799 : vector<8x1xf32> to vector<8x256xf32>
    %801 = arith.addf %798, %800 : vector<8x256xf32>
    %c0_259 = arith.constant 0 : index
    %c256_260 = arith.constant 256 : index
    %802 = vector.load %arg33[%c0_259, %c256_260] : memref<8x768xf32, #tpu.memory_space<vmem>>, vector<8x256xf32>
    tpu.vector_store %arg33[%c0_259, %c256_260], %801 {strides = array<i32>} : memref<8x768xf32, #tpu.memory_space<vmem>>, vector<8x256xf32>,
    %c0_261 = arith.constant 0 : index
    %c0_262 = arith.constant 0 : index
    %803 = vector.load %arg24[%c0_261, %c0_262] : memref<8x21xf32, #tpu.memory_space<vmem>>, vector<8x21xf32>
    %cst_263 = arith.constant 0.000000e+00 : f32
    %804 = vector.broadcast %cst_263 : f32 to vector<8x256xf32>
    %c0_264 = arith.constant 0 : index
    %c246 = arith.constant 246 : index
    %805 = vector.load %arg33[%c0_264, %c246] : memref<8x768xf32, #tpu.memory_space<vmem>>, vector<8x256xf32>
    %c-10_i32 = arith.constant -10 : i32
    %806 = vector.broadcast %c-10_i32 : i32 to vector<8x256xi32>
    %807 = arith.addi %20, %806 : vector<8x256xi32>
    %c0_i32_265 = arith.constant 0 : i32
    %808 = vector.broadcast %c0_i32_265 : i32 to vector<8x256xi32>
    %809 = arith.cmpi sge, %807, %808 : vector<8x256xi32>
    %c-10_i32_266 = arith.constant -10 : i32
    %810 = vector.broadcast %c-10_i32_266 : i32 to vector<8x256xi32>
    %811 = arith.addi %20, %810 : vector<8x256xi32>
    %c16_i32_267 = arith.constant 16 : i32
    %812 = vector.broadcast %c16_i32_267 : i32 to vector<8x256xi32>
    %813 = arith.cmpi slt, %811, %812 : vector<8x256xi32>
    %814 = arith.andi %809, %813 : vector<8x256xi1>
    %815 = arith.extui %814 : vector<8x256xi1> to vector<8x256xi32>
    %816 = arith.sitofp %815 : vector<8x256xi32> to vector<8x256xf32>
    %817 = arith.mulf %805, %816 : vector<8x256xf32>
    %818 = vector.extract_strided_slice %803 {offsets = [0, 0], sizes = [8, 1], strides = [1, 1]} : vector<8x21xf32> to vector<8x1xf32>
    %819 = vector.broadcast %818 : vector<8x1xf32> to vector<8x256xf32>
    %820 = arith.mulf %817, %819 : vector<8x256xf32>
    %821 = arith.addf %804, %820 : vector<8x256xf32>
    %c0_268 = arith.constant 0 : index
    %c247 = arith.constant 247 : index
    %822 = vector.load %arg33[%c0_268, %c247] : memref<8x768xf32, #tpu.memory_space<vmem>>, vector<8x256xf32>
    %c-9_i32 = arith.constant -9 : i32
    %823 = vector.broadcast %c-9_i32 : i32 to vector<8x256xi32>
    %824 = arith.addi %20, %823 : vector<8x256xi32>
    %c0_i32_269 = arith.constant 0 : i32
    %825 = vector.broadcast %c0_i32_269 : i32 to vector<8x256xi32>
    %826 = arith.cmpi sge, %824, %825 : vector<8x256xi32>
    %c-9_i32_270 = arith.constant -9 : i32
    %827 = vector.broadcast %c-9_i32_270 : i32 to vector<8x256xi32>
    %828 = arith.addi %20, %827 : vector<8x256xi32>
    %c16_i32_271 = arith.constant 16 : i32
    %829 = vector.broadcast %c16_i32_271 : i32 to vector<8x256xi32>
    %830 = arith.cmpi slt, %828, %829 : vector<8x256xi32>
    %831 = arith.andi %826, %830 : vector<8x256xi1>
    %832 = arith.extui %831 : vector<8x256xi1> to vector<8x256xi32>
    %833 = arith.sitofp %832 : vector<8x256xi32> to vector<8x256xf32>
    %834 = arith.mulf %822, %833 : vector<8x256xf32>
    %835 = vector.extract_strided_slice %803 {offsets = [0, 1], sizes = [8, 1], strides = [1, 1]} : vector<8x21xf32> to vector<8x1xf32>
    %836 = vector.broadcast %835 : vector<8x1xf32> to vector<8x256xf32>
    %837 = arith.mulf %834, %836 : vector<8x256xf32>
    %838 = arith.addf %821, %837 : vector<8x256xf32>
    %c0_272 = arith.constant 0 : index
    %c248 = arith.constant 248 : index
    %839 = vector.load %arg33[%c0_272, %c248] : memref<8x768xf32, #tpu.memory_space<vmem>>, vector<8x256xf32>
    %c-8_i32 = arith.constant -8 : i32
    %840 = vector.broadcast %c-8_i32 : i32 to vector<8x256xi32>
    %841 = arith.addi %20, %840 : vector<8x256xi32>
    %c0_i32_273 = arith.constant 0 : i32
    %842 = vector.broadcast %c0_i32_273 : i32 to vector<8x256xi32>
    %843 = arith.cmpi sge, %841, %842 : vector<8x256xi32>
    %c-8_i32_274 = arith.constant -8 : i32
    %844 = vector.broadcast %c-8_i32_274 : i32 to vector<8x256xi32>
    %845 = arith.addi %20, %844 : vector<8x256xi32>
    %c16_i32_275 = arith.constant 16 : i32
    %846 = vector.broadcast %c16_i32_275 : i32 to vector<8x256xi32>
    %847 = arith.cmpi slt, %845, %846 : vector<8x256xi32>
    %848 = arith.andi %843, %847 : vector<8x256xi1>
    %849 = arith.extui %848 : vector<8x256xi1> to vector<8x256xi32>
    %850 = arith.sitofp %849 : vector<8x256xi32> to vector<8x256xf32>
    %851 = arith.mulf %839, %850 : vector<8x256xf32>
    %852 = vector.extract_strided_slice %803 {offsets = [0, 2], sizes = [8, 1], strides = [1, 1]} : vector<8x21xf32> to vector<8x1xf32>
    %853 = vector.broadcast %852 : vector<8x1xf32> to vector<8x256xf32>
    %854 = arith.mulf %851, %853 : vector<8x256xf32>
    %855 = arith.addf %838, %854 : vector<8x256xf32>
    %c0_276 = arith.constant 0 : index
    %c249 = arith.constant 249 : index
    %856 = vector.load %arg33[%c0_276, %c249] : memref<8x768xf32, #tpu.memory_space<vmem>>, vector<8x256xf32>
    %c-7_i32 = arith.constant -7 : i32
    %857 = vector.broadcast %c-7_i32 : i32 to vector<8x256xi32>
    %858 = arith.addi %20, %857 : vector<8x256xi32>
    %c0_i32_277 = arith.constant 0 : i32
    %859 = vector.broadcast %c0_i32_277 : i32 to vector<8x256xi32>
    %860 = arith.cmpi sge, %858, %859 : vector<8x256xi32>
    %c-7_i32_278 = arith.constant -7 : i32
    %861 = vector.broadcast %c-7_i32_278 : i32 to vector<8x256xi32>
    %862 = arith.addi %20, %861 : vector<8x256xi32>
    %c16_i32_279 = arith.constant 16 : i32
    %863 = vector.broadcast %c16_i32_279 : i32 to vector<8x256xi32>
    %864 = arith.cmpi slt, %862, %863 : vector<8x256xi32>
    %865 = arith.andi %860, %864 : vector<8x256xi1>
    %866 = arith.extui %865 : vector<8x256xi1> to vector<8x256xi32>
    %867 = arith.sitofp %866 : vector<8x256xi32> to vector<8x256xf32>
    %868 = arith.mulf %856, %867 : vector<8x256xf32>
    %869 = vector.extract_strided_slice %803 {offsets = [0, 3], sizes = [8, 1], strides = [1, 1]} : vector<8x21xf32> to vector<8x1xf32>
    %870 = vector.broadcast %869 : vector<8x1xf32> to vector<8x256xf32>
    %871 = arith.mulf %868, %870 : vector<8x256xf32>
    %872 = arith.addf %855, %871 : vector<8x256xf32>
    %c0_280 = arith.constant 0 : index
    %c250 = arith.constant 250 : index
    %873 = vector.load %arg33[%c0_280, %c250] : memref<8x768xf32, #tpu.memory_space<vmem>>, vector<8x256xf32>
    %c-6_i32 = arith.constant -6 : i32
    %874 = vector.broadcast %c-6_i32 : i32 to vector<8x256xi32>
    %875 = arith.addi %20, %874 : vector<8x256xi32>
    %c0_i32_281 = arith.constant 0 : i32
    %876 = vector.broadcast %c0_i32_281 : i32 to vector<8x256xi32>
    %877 = arith.cmpi sge, %875, %876 : vector<8x256xi32>
    %c-6_i32_282 = arith.constant -6 : i32
    %878 = vector.broadcast %c-6_i32_282 : i32 to vector<8x256xi32>
    %879 = arith.addi %20, %878 : vector<8x256xi32>
    %c16_i32_283 = arith.constant 16 : i32
    %880 = vector.broadcast %c16_i32_283 : i32 to vector<8x256xi32>
    %881 = arith.cmpi slt, %879, %880 : vector<8x256xi32>
    %882 = arith.andi %877, %881 : vector<8x256xi1>
    %883 = arith.extui %882 : vector<8x256xi1> to vector<8x256xi32>
    %884 = arith.sitofp %883 : vector<8x256xi32> to vector<8x256xf32>
    %885 = arith.mulf %873, %884 : vector<8x256xf32>
    %886 = vector.extract_strided_slice %803 {offsets = [0, 4], sizes = [8, 1], strides = [1, 1]} : vector<8x21xf32> to vector<8x1xf32>
    %887 = vector.broadcast %886 : vector<8x1xf32> to vector<8x256xf32>
    %888 = arith.mulf %885, %887 : vector<8x256xf32>
    %889 = arith.addf %872, %888 : vector<8x256xf32>
    %c0_284 = arith.constant 0 : index
    %c251_285 = arith.constant 251 : index
    %890 = vector.load %arg33[%c0_284, %c251_285] : memref<8x768xf32, #tpu.memory_space<vmem>>, vector<8x256xf32>
    %891 = arith.mulf %890, %635 : vector<8x256xf32>
    %892 = vector.extract_strided_slice %803 {offsets = [0, 5], sizes = [8, 1], strides = [1, 1]} : vector<8x21xf32> to vector<8x1xf32>
    %893 = vector.broadcast %892 : vector<8x1xf32> to vector<8x256xf32>
    %894 = arith.mulf %891, %893 : vector<8x256xf32>
    %895 = arith.addf %889, %894 : vector<8x256xf32>
    %c0_286 = arith.constant 0 : index
    %c252_287 = arith.constant 252 : index
    %896 = vector.load %arg33[%c0_286, %c252_287] : memref<8x768xf32, #tpu.memory_space<vmem>>, vector<8x256xf32>
    %897 = arith.mulf %896, %652 : vector<8x256xf32>
    %898 = vector.extract_strided_slice %803 {offsets = [0, 6], sizes = [8, 1], strides = [1, 1]} : vector<8x21xf32> to vector<8x1xf32>
    %899 = vector.broadcast %898 : vector<8x1xf32> to vector<8x256xf32>
    %900 = arith.mulf %897, %899 : vector<8x256xf32>
    %901 = arith.addf %895, %900 : vector<8x256xf32>
    %c0_288 = arith.constant 0 : index
    %c253_289 = arith.constant 253 : index
    %902 = vector.load %arg33[%c0_288, %c253_289] : memref<8x768xf32, #tpu.memory_space<vmem>>, vector<8x256xf32>
    %903 = arith.mulf %902, %315 : vector<8x256xf32>
    %904 = vector.extract_strided_slice %803 {offsets = [0, 7], sizes = [8, 1], strides = [1, 1]} : vector<8x21xf32> to vector<8x1xf32>
    %905 = vector.broadcast %904 : vector<8x1xf32> to vector<8x256xf32>
    %906 = arith.mulf %903, %905 : vector<8x256xf32>
    %907 = arith.addf %901, %906 : vector<8x256xf32>
    %c0_290 = arith.constant 0 : index
    %c254_291 = arith.constant 254 : index
    %908 = vector.load %arg33[%c0_290, %c254_291] : memref<8x768xf32, #tpu.memory_space<vmem>>, vector<8x256xf32>
    %909 = arith.mulf %908, %137 : vector<8x256xf32>
    %910 = vector.extract_strided_slice %803 {offsets = [0, 8], sizes = [8, 1], strides = [1, 1]} : vector<8x21xf32> to vector<8x1xf32>
    %911 = vector.broadcast %910 : vector<8x1xf32> to vector<8x256xf32>
    %912 = arith.mulf %909, %911 : vector<8x256xf32>
    %913 = arith.addf %907, %912 : vector<8x256xf32>
    %c0_292 = arith.constant 0 : index
    %c255_293 = arith.constant 255 : index
    %914 = vector.load %arg33[%c0_292, %c255_293] : memref<8x768xf32, #tpu.memory_space<vmem>>, vector<8x256xf32>
    %915 = arith.mulf %914, %53 : vector<8x256xf32>
    %916 = vector.extract_strided_slice %803 {offsets = [0, 9], sizes = [8, 1], strides = [1, 1]} : vector<8x21xf32> to vector<8x1xf32>
    %917 = vector.broadcast %916 : vector<8x1xf32> to vector<8x256xf32>
    %918 = arith.mulf %915, %917 : vector<8x256xf32>
    %919 = arith.addf %913, %918 : vector<8x256xf32>
    %c0_294 = arith.constant 0 : index
    %c256_295 = arith.constant 256 : index
    %920 = vector.load %arg33[%c0_294, %c256_295] : memref<8x768xf32, #tpu.memory_space<vmem>>, vector<8x256xf32>
    %921 = vector.extract_strided_slice %803 {offsets = [0, 10], sizes = [8, 1], strides = [1, 1]} : vector<8x21xf32> to vector<8x1xf32>
    %922 = vector.broadcast %921 : vector<8x1xf32> to vector<8x256xf32>
    %923 = arith.mulf %920, %922 : vector<8x256xf32>
    %924 = arith.addf %919, %923 : vector<8x256xf32>
    %c0_296 = arith.constant 0 : index
    %c257_297 = arith.constant 257 : index
    %925 = vector.load %arg33[%c0_296, %c257_297] : memref<8x768xf32, #tpu.memory_space<vmem>>, vector<8x256xf32>
    %926 = arith.mulf %925, %75 : vector<8x256xf32>
    %927 = vector.extract_strided_slice %803 {offsets = [0, 11], sizes = [8, 1], strides = [1, 1]} : vector<8x21xf32> to vector<8x1xf32>
    %928 = vector.broadcast %927 : vector<8x1xf32> to vector<8x256xf32>
    %929 = arith.mulf %926, %928 : vector<8x256xf32>
    %930 = arith.addf %924, %929 : vector<8x256xf32>
    %c0_298 = arith.constant 0 : index
    %c258_299 = arith.constant 258 : index
    %931 = vector.load %arg33[%c0_298, %c258_299] : memref<8x768xf32, #tpu.memory_space<vmem>>, vector<8x256xf32>
    %932 = arith.mulf %931, %171 : vector<8x256xf32>
    %933 = vector.extract_strided_slice %803 {offsets = [0, 12], sizes = [8, 1], strides = [1, 1]} : vector<8x21xf32> to vector<8x1xf32>
    %934 = vector.broadcast %933 : vector<8x1xf32> to vector<8x256xf32>
    %935 = arith.mulf %932, %934 : vector<8x256xf32>
    %936 = arith.addf %930, %935 : vector<8x256xf32>
    %c0_300 = arith.constant 0 : index
    %c259_301 = arith.constant 259 : index
    %937 = vector.load %arg33[%c0_300, %c259_301] : memref<8x768xf32, #tpu.memory_space<vmem>>, vector<8x256xf32>
    %938 = arith.mulf %937, %361 : vector<8x256xf32>
    %939 = vector.extract_strided_slice %803 {offsets = [0, 13], sizes = [8, 1], strides = [1, 1]} : vector<8x21xf32> to vector<8x1xf32>
    %940 = vector.broadcast %939 : vector<8x1xf32> to vector<8x256xf32>
    %941 = arith.mulf %938, %940 : vector<8x256xf32>
    %942 = arith.addf %936, %941 : vector<8x256xf32>
    %c0_302 = arith.constant 0 : index
    %c260_303 = arith.constant 260 : index
    %943 = vector.load %arg33[%c0_302, %c260_303] : memref<8x768xf32, #tpu.memory_space<vmem>>, vector<8x256xf32>
    %944 = arith.mulf %943, %710 : vector<8x256xf32>
    %945 = vector.extract_strided_slice %803 {offsets = [0, 14], sizes = [8, 1], strides = [1, 1]} : vector<8x21xf32> to vector<8x1xf32>
    %946 = vector.broadcast %945 : vector<8x1xf32> to vector<8x256xf32>
    %947 = arith.mulf %944, %946 : vector<8x256xf32>
    %948 = arith.addf %942, %947 : vector<8x256xf32>
    %c0_304 = arith.constant 0 : index
    %c261_305 = arith.constant 261 : index
    %949 = vector.load %arg33[%c0_304, %c261_305] : memref<8x768xf32, #tpu.memory_space<vmem>>, vector<8x256xf32>
    %950 = arith.mulf %949, %727 : vector<8x256xf32>
    %951 = vector.extract_strided_slice %803 {offsets = [0, 15], sizes = [8, 1], strides = [1, 1]} : vector<8x21xf32> to vector<8x1xf32>
    %952 = vector.broadcast %951 : vector<8x1xf32> to vector<8x256xf32>
    %953 = arith.mulf %950, %952 : vector<8x256xf32>
    %954 = arith.addf %948, %953 : vector<8x256xf32>
    %c0_306 = arith.constant 0 : index
    %c262 = arith.constant 262 : index
    %955 = vector.load %arg33[%c0_306, %c262] : memref<8x768xf32, #tpu.memory_space<vmem>>, vector<8x256xf32>
    %c6_i32 = arith.constant 6 : i32
    %956 = vector.broadcast %c6_i32 : i32 to vector<8x256xi32>
    %957 = arith.addi %20, %956 : vector<8x256xi32>
    %c0_i32_307 = arith.constant 0 : i32
    %958 = vector.broadcast %c0_i32_307 : i32 to vector<8x256xi32>
    %959 = arith.cmpi sge, %957, %958 : vector<8x256xi32>
    %c6_i32_308 = arith.constant 6 : i32
    %960 = vector.broadcast %c6_i32_308 : i32 to vector<8x256xi32>
    %961 = arith.addi %20, %960 : vector<8x256xi32>
    %c16_i32_309 = arith.constant 16 : i32
    %962 = vector.broadcast %c16_i32_309 : i32 to vector<8x256xi32>
    %963 = arith.cmpi slt, %961, %962 : vector<8x256xi32>
    %964 = arith.andi %959, %963 : vector<8x256xi1>
    %965 = arith.extui %964 : vector<8x256xi1> to vector<8x256xi32>
    %966 = arith.sitofp %965 : vector<8x256xi32> to vector<8x256xf32>
    %967 = arith.mulf %955, %966 : vector<8x256xf32>
    %968 = vector.extract_strided_slice %803 {offsets = [0, 16], sizes = [8, 1], strides = [1, 1]} : vector<8x21xf32> to vector<8x1xf32>
    %969 = vector.broadcast %968 : vector<8x1xf32> to vector<8x256xf32>
    %970 = arith.mulf %967, %969 : vector<8x256xf32>
    %971 = arith.addf %954, %970 : vector<8x256xf32>
    %c0_310 = arith.constant 0 : index
    %c263 = arith.constant 263 : index
    %972 = vector.load %arg33[%c0_310, %c263] : memref<8x768xf32, #tpu.memory_space<vmem>>, vector<8x256xf32>
    %c7_i32 = arith.constant 7 : i32
    %973 = vector.broadcast %c7_i32 : i32 to vector<8x256xi32>
    %974 = arith.addi %20, %973 : vector<8x256xi32>
    %c0_i32_311 = arith.constant 0 : i32
    %975 = vector.broadcast %c0_i32_311 : i32 to vector<8x256xi32>
    %976 = arith.cmpi sge, %974, %975 : vector<8x256xi32>
    %c7_i32_312 = arith.constant 7 : i32
    %977 = vector.broadcast %c7_i32_312 : i32 to vector<8x256xi32>
    %978 = arith.addi %20, %977 : vector<8x256xi32>
    %c16_i32_313 = arith.constant 16 : i32
    %979 = vector.broadcast %c16_i32_313 : i32 to vector<8x256xi32>
    %980 = arith.cmpi slt, %978, %979 : vector<8x256xi32>
    %981 = arith.andi %976, %980 : vector<8x256xi1>
    %982 = arith.extui %981 : vector<8x256xi1> to vector<8x256xi32>
    %983 = arith.sitofp %982 : vector<8x256xi32> to vector<8x256xf32>
    %984 = arith.mulf %972, %983 : vector<8x256xf32>
    %985 = vector.extract_strided_slice %803 {offsets = [0, 17], sizes = [8, 1], strides = [1, 1]} : vector<8x21xf32> to vector<8x1xf32>
    %986 = vector.broadcast %985 : vector<8x1xf32> to vector<8x256xf32>
    %987 = arith.mulf %984, %986 : vector<8x256xf32>
    %988 = arith.addf %971, %987 : vector<8x256xf32>
    %c0_314 = arith.constant 0 : index
    %c264 = arith.constant 264 : index
    %989 = vector.load %arg33[%c0_314, %c264] : memref<8x768xf32, #tpu.memory_space<vmem>>, vector<8x256xf32>
    %c8_i32 = arith.constant 8 : i32
    %990 = vector.broadcast %c8_i32 : i32 to vector<8x256xi32>
    %991 = arith.addi %20, %990 : vector<8x256xi32>
    %c0_i32_315 = arith.constant 0 : i32
    %992 = vector.broadcast %c0_i32_315 : i32 to vector<8x256xi32>
    %993 = arith.cmpi sge, %991, %992 : vector<8x256xi32>
    %c8_i32_316 = arith.constant 8 : i32
    %994 = vector.broadcast %c8_i32_316 : i32 to vector<8x256xi32>
    %995 = arith.addi %20, %994 : vector<8x256xi32>
    %c16_i32_317 = arith.constant 16 : i32
    %996 = vector.broadcast %c16_i32_317 : i32 to vector<8x256xi32>
    %997 = arith.cmpi slt, %995, %996 : vector<8x256xi32>
    %998 = arith.andi %993, %997 : vector<8x256xi1>
    %999 = arith.extui %998 : vector<8x256xi1> to vector<8x256xi32>
    %1000 = arith.sitofp %999 : vector<8x256xi32> to vector<8x256xf32>
    %1001 = arith.mulf %989, %1000 : vector<8x256xf32>
    %1002 = vector.extract_strided_slice %803 {offsets = [0, 18], sizes = [8, 1], strides = [1, 1]} : vector<8x21xf32> to vector<8x1xf32>
    %1003 = vector.broadcast %1002 : vector<8x1xf32> to vector<8x256xf32>
    %1004 = arith.mulf %1001, %1003 : vector<8x256xf32>
    %1005 = arith.addf %988, %1004 : vector<8x256xf32>
    %c0_318 = arith.constant 0 : index
    %c265 = arith.constant 265 : index
    %1006 = vector.load %arg33[%c0_318, %c265] : memref<8x768xf32, #tpu.memory_space<vmem>>, vector<8x256xf32>
    %c9_i32 = arith.constant 9 : i32
    %1007 = vector.broadcast %c9_i32 : i32 to vector<8x256xi32>
    %1008 = arith.addi %20, %1007 : vector<8x256xi32>
    %c0_i32_319 = arith.constant 0 : i32
    %1009 = vector.broadcast %c0_i32_319 : i32 to vector<8x256xi32>
    %1010 = arith.cmpi sge, %1008, %1009 : vector<8x256xi32>
    %c9_i32_320 = arith.constant 9 : i32
    %1011 = vector.broadcast %c9_i32_320 : i32 to vector<8x256xi32>
    %1012 = arith.addi %20, %1011 : vector<8x256xi32>
    %c16_i32_321 = arith.constant 16 : i32
    %1013 = vector.broadcast %c16_i32_321 : i32 to vector<8x256xi32>
    %1014 = arith.cmpi slt, %1012, %1013 : vector<8x256xi32>
    %1015 = arith.andi %1010, %1014 : vector<8x256xi1>
    %1016 = arith.extui %1015 : vector<8x256xi1> to vector<8x256xi32>
    %1017 = arith.sitofp %1016 : vector<8x256xi32> to vector<8x256xf32>
    %1018 = arith.mulf %1006, %1017 : vector<8x256xf32>
    %1019 = vector.extract_strided_slice %803 {offsets = [0, 19], sizes = [8, 1], strides = [1, 1]} : vector<8x21xf32> to vector<8x1xf32>
    %1020 = vector.broadcast %1019 : vector<8x1xf32> to vector<8x256xf32>
    %1021 = arith.mulf %1018, %1020 : vector<8x256xf32>
    %1022 = arith.addf %1005, %1021 : vector<8x256xf32>
    %c0_322 = arith.constant 0 : index
    %c266 = arith.constant 266 : index
    %1023 = vector.load %arg33[%c0_322, %c266] : memref<8x768xf32, #tpu.memory_space<vmem>>, vector<8x256xf32>
    %c10_i32 = arith.constant 10 : i32
    %1024 = vector.broadcast %c10_i32 : i32 to vector<8x256xi32>
    %1025 = arith.addi %20, %1024 : vector<8x256xi32>
    %c0_i32_323 = arith.constant 0 : i32
    %1026 = vector.broadcast %c0_i32_323 : i32 to vector<8x256xi32>
    %1027 = arith.cmpi sge, %1025, %1026 : vector<8x256xi32>
    %c10_i32_324 = arith.constant 10 : i32
    %1028 = vector.broadcast %c10_i32_324 : i32 to vector<8x256xi32>
    %1029 = arith.addi %20, %1028 : vector<8x256xi32>
    %c16_i32_325 = arith.constant 16 : i32
    %1030 = vector.broadcast %c16_i32_325 : i32 to vector<8x256xi32>
    %1031 = arith.cmpi slt, %1029, %1030 : vector<8x256xi32>
    %1032 = arith.andi %1027, %1031 : vector<8x256xi1>
    %1033 = arith.extui %1032 : vector<8x256xi1> to vector<8x256xi32>
    %1034 = arith.sitofp %1033 : vector<8x256xi32> to vector<8x256xf32>
    %1035 = arith.mulf %1023, %1034 : vector<8x256xf32>
    %1036 = vector.extract_strided_slice %803 {offsets = [0, 20], sizes = [8, 1], strides = [1, 1]} : vector<8x21xf32> to vector<8x1xf32>
    %1037 = vector.broadcast %1036 : vector<8x1xf32> to vector<8x256xf32>
    %1038 = arith.mulf %1035, %1037 : vector<8x256xf32>
    %1039 = arith.addf %1022, %1038 : vector<8x256xf32>
    %c0_326 = arith.constant 0 : index
    %c0_327 = arith.constant 0 : index
    %1040 = vector.load %arg25[%c0_326, %c0_327] : memref<8x1xf32, #tpu.memory_space<vmem>>, vector<8x1xf32>
    %1041 = vector.broadcast %1040 : vector<8x1xf32> to vector<8x256xf32>
    %1042 = arith.addf %1039, %1041 : vector<8x256xf32>
    %c0_328 = arith.constant 0 : index
    %c256_329 = arith.constant 256 : index
    %1043 = vector.load %arg33[%c0_328, %c256_329] : memref<8x768xf32, #tpu.memory_space<vmem>>, vector<8x256xf32>
    tpu.vector_store %arg33[%c0_328, %c256_329], %1042 {strides = array<i32>} : memref<8x768xf32, #tpu.memory_space<vmem>>, vector<8x256xf32>,
    %c0_330 = arith.constant 0 : index
    %c0_331 = arith.constant 0 : index
    %1044 = vector.load %arg26[%c0_330, %c0_331] : memref<8x21xf32, #tpu.memory_space<vmem>>, vector<8x21xf32>
    %cst_332 = arith.constant 0.000000e+00 : f32
    %1045 = vector.broadcast %cst_332 : f32 to vector<8x256xf32>
    %c0_333 = arith.constant 0 : index
    %c96 = arith.constant 96 : index
    %1046 = vector.load %arg33[%c0_333, %c96] : memref<8x768xf32, #tpu.memory_space<vmem>>, vector<8x256xf32>
    %1047 = vector.extract_strided_slice %1044 {offsets = [0, 0], sizes = [8, 1], strides = [1, 1]} : vector<8x21xf32> to vector<8x1xf32>
    %1048 = vector.broadcast %1047 : vector<8x1xf32> to vector<8x256xf32>
    %1049 = arith.mulf %1046, %1048 : vector<8x256xf32>
    %1050 = arith.addf %1045, %1049 : vector<8x256xf32>
    %c0_334 = arith.constant 0 : index
    %c112 = arith.constant 112 : index
    %1051 = vector.load %arg33[%c0_334, %c112] : memref<8x768xf32, #tpu.memory_space<vmem>>, vector<8x256xf32>
    %1052 = vector.extract_strided_slice %1044 {offsets = [0, 1], sizes = [8, 1], strides = [1, 1]} : vector<8x21xf32> to vector<8x1xf32>
    %1053 = vector.broadcast %1052 : vector<8x1xf32> to vector<8x256xf32>
    %1054 = arith.mulf %1051, %1053 : vector<8x256xf32>
    %1055 = arith.addf %1050, %1054 : vector<8x256xf32>
    %c0_335 = arith.constant 0 : index
    %c128 = arith.constant 128 : index
    %1056 = vector.load %arg33[%c0_335, %c128] : memref<8x768xf32, #tpu.memory_space<vmem>>, vector<8x256xf32>
    %1057 = vector.extract_strided_slice %1044 {offsets = [0, 2], sizes = [8, 1], strides = [1, 1]} : vector<8x21xf32> to vector<8x1xf32>
    %1058 = vector.broadcast %1057 : vector<8x1xf32> to vector<8x256xf32>
    %1059 = arith.mulf %1056, %1058 : vector<8x256xf32>
    %1060 = arith.addf %1055, %1059 : vector<8x256xf32>
    %c0_336 = arith.constant 0 : index
    %c144 = arith.constant 144 : index
    %1061 = vector.load %arg33[%c0_336, %c144] : memref<8x768xf32, #tpu.memory_space<vmem>>, vector<8x256xf32>
    %1062 = vector.extract_strided_slice %1044 {offsets = [0, 3], sizes = [8, 1], strides = [1, 1]} : vector<8x21xf32> to vector<8x1xf32>
    %1063 = vector.broadcast %1062 : vector<8x1xf32> to vector<8x256xf32>
    %1064 = arith.mulf %1061, %1063 : vector<8x256xf32>
    %1065 = arith.addf %1060, %1064 : vector<8x256xf32>
    %c0_337 = arith.constant 0 : index
    %c160 = arith.constant 160 : index
    %1066 = vector.load %arg33[%c0_337, %c160] : memref<8x768xf32, #tpu.memory_space<vmem>>, vector<8x256xf32>
    %1067 = vector.extract_strided_slice %1044 {offsets = [0, 4], sizes = [8, 1], strides = [1, 1]} : vector<8x21xf32> to vector<8x1xf32>
    %1068 = vector.broadcast %1067 : vector<8x1xf32> to vector<8x256xf32>
    %1069 = arith.mulf %1066, %1068 : vector<8x256xf32>
    %1070 = arith.addf %1065, %1069 : vector<8x256xf32>
    %c0_338 = arith.constant 0 : index
    %c176_339 = arith.constant 176 : index
    %1071 = vector.load %arg33[%c0_338, %c176_339] : memref<8x768xf32, #tpu.memory_space<vmem>>, vector<8x256xf32>
    %1072 = vector.extract_strided_slice %1044 {offsets = [0, 5], sizes = [8, 1], strides = [1, 1]} : vector<8x21xf32> to vector<8x1xf32>
    %1073 = vector.broadcast %1072 : vector<8x1xf32> to vector<8x256xf32>
    %1074 = arith.mulf %1071, %1073 : vector<8x256xf32>
    %1075 = arith.addf %1070, %1074 : vector<8x256xf32>
    %c0_340 = arith.constant 0 : index
    %c192_341 = arith.constant 192 : index
    %1076 = vector.load %arg33[%c0_340, %c192_341] : memref<8x768xf32, #tpu.memory_space<vmem>>, vector<8x256xf32>
    %1077 = vector.extract_strided_slice %1044 {offsets = [0, 6], sizes = [8, 1], strides = [1, 1]} : vector<8x21xf32> to vector<8x1xf32>
    %1078 = vector.broadcast %1077 : vector<8x1xf32> to vector<8x256xf32>
    %1079 = arith.mulf %1076, %1078 : vector<8x256xf32>
    %1080 = arith.addf %1075, %1079 : vector<8x256xf32>
    %c0_342 = arith.constant 0 : index
    %c208_343 = arith.constant 208 : index
    %1081 = vector.load %arg33[%c0_342, %c208_343] : memref<8x768xf32, #tpu.memory_space<vmem>>, vector<8x256xf32>
    %1082 = vector.extract_strided_slice %1044 {offsets = [0, 7], sizes = [8, 1], strides = [1, 1]} : vector<8x21xf32> to vector<8x1xf32>
    %1083 = vector.broadcast %1082 : vector<8x1xf32> to vector<8x256xf32>
    %1084 = arith.mulf %1081, %1083 : vector<8x256xf32>
    %1085 = arith.addf %1080, %1084 : vector<8x256xf32>
    %c0_344 = arith.constant 0 : index
    %c224_345 = arith.constant 224 : index
    %1086 = vector.load %arg33[%c0_344, %c224_345] : memref<8x768xf32, #tpu.memory_space<vmem>>, vector<8x256xf32>
    %1087 = vector.extract_strided_slice %1044 {offsets = [0, 8], sizes = [8, 1], strides = [1, 1]} : vector<8x21xf32> to vector<8x1xf32>
    %1088 = vector.broadcast %1087 : vector<8x1xf32> to vector<8x256xf32>
    %1089 = arith.mulf %1086, %1088 : vector<8x256xf32>
    %1090 = arith.addf %1085, %1089 : vector<8x256xf32>
    %c0_346 = arith.constant 0 : index
    %c240_347 = arith.constant 240 : index
    %1091 = vector.load %arg33[%c0_346, %c240_347] : memref<8x768xf32, #tpu.memory_space<vmem>>, vector<8x256xf32>
    %1092 = vector.extract_strided_slice %1044 {offsets = [0, 9], sizes = [8, 1], strides = [1, 1]} : vector<8x21xf32> to vector<8x1xf32>
    %1093 = vector.broadcast %1092 : vector<8x1xf32> to vector<8x256xf32>
    %1094 = arith.mulf %1091, %1093 : vector<8x256xf32>
    %1095 = arith.addf %1090, %1094 : vector<8x256xf32>
    %c0_348 = arith.constant 0 : index
    %c256_349 = arith.constant 256 : index
    %1096 = vector.load %arg33[%c0_348, %c256_349] : memref<8x768xf32, #tpu.memory_space<vmem>>, vector<8x256xf32>
    %1097 = vector.extract_strided_slice %1044 {offsets = [0, 10], sizes = [8, 1], strides = [1, 1]} : vector<8x21xf32> to vector<8x1xf32>
    %1098 = vector.broadcast %1097 : vector<8x1xf32> to vector<8x256xf32>
    %1099 = arith.mulf %1096, %1098 : vector<8x256xf32>
    %1100 = arith.addf %1095, %1099 : vector<8x256xf32>
    %c0_350 = arith.constant 0 : index
    %c272_351 = arith.constant 272 : index
    %1101 = vector.load %arg33[%c0_350, %c272_351] : memref<8x768xf32, #tpu.memory_space<vmem>>, vector<8x256xf32>
    %1102 = vector.extract_strided_slice %1044 {offsets = [0, 11], sizes = [8, 1], strides = [1, 1]} : vector<8x21xf32> to vector<8x1xf32>
    %1103 = vector.broadcast %1102 : vector<8x1xf32> to vector<8x256xf32>
    %1104 = arith.mulf %1101, %1103 : vector<8x256xf32>
    %1105 = arith.addf %1100, %1104 : vector<8x256xf32>
    %c0_352 = arith.constant 0 : index
    %c288_353 = arith.constant 288 : index
    %1106 = vector.load %arg33[%c0_352, %c288_353] : memref<8x768xf32, #tpu.memory_space<vmem>>, vector<8x256xf32>
    %1107 = vector.extract_strided_slice %1044 {offsets = [0, 12], sizes = [8, 1], strides = [1, 1]} : vector<8x21xf32> to vector<8x1xf32>
    %1108 = vector.broadcast %1107 : vector<8x1xf32> to vector<8x256xf32>
    %1109 = arith.mulf %1106, %1108 : vector<8x256xf32>
    %1110 = arith.addf %1105, %1109 : vector<8x256xf32>
    %c0_354 = arith.constant 0 : index
    %c304_355 = arith.constant 304 : index
    %1111 = vector.load %arg33[%c0_354, %c304_355] : memref<8x768xf32, #tpu.memory_space<vmem>>, vector<8x256xf32>
    %1112 = vector.extract_strided_slice %1044 {offsets = [0, 13], sizes = [8, 1], strides = [1, 1]} : vector<8x21xf32> to vector<8x1xf32>
    %1113 = vector.broadcast %1112 : vector<8x1xf32> to vector<8x256xf32>
    %1114 = arith.mulf %1111, %1113 : vector<8x256xf32>
    %1115 = arith.addf %1110, %1114 : vector<8x256xf32>
    %c0_356 = arith.constant 0 : index
    %c320_357 = arith.constant 320 : index
    %1116 = vector.load %arg33[%c0_356, %c320_357] : memref<8x768xf32, #tpu.memory_space<vmem>>, vector<8x256xf32>
    %1117 = vector.extract_strided_slice %1044 {offsets = [0, 14], sizes = [8, 1], strides = [1, 1]} : vector<8x21xf32> to vector<8x1xf32>
    %1118 = vector.broadcast %1117 : vector<8x1xf32> to vector<8x256xf32>
    %1119 = arith.mulf %1116, %1118 : vector<8x256xf32>
    %1120 = arith.addf %1115, %1119 : vector<8x256xf32>
    %c0_358 = arith.constant 0 : index
    %c336_359 = arith.constant 336 : index
    %1121 = vector.load %arg33[%c0_358, %c336_359] : memref<8x768xf32, #tpu.memory_space<vmem>>, vector<8x256xf32>
    %1122 = vector.extract_strided_slice %1044 {offsets = [0, 15], sizes = [8, 1], strides = [1, 1]} : vector<8x21xf32> to vector<8x1xf32>
    %1123 = vector.broadcast %1122 : vector<8x1xf32> to vector<8x256xf32>
    %1124 = arith.mulf %1121, %1123 : vector<8x256xf32>
    %1125 = arith.addf %1120, %1124 : vector<8x256xf32>
    %c0_360 = arith.constant 0 : index
    %c352 = arith.constant 352 : index
    %1126 = vector.load %arg33[%c0_360, %c352] : memref<8x768xf32, #tpu.memory_space<vmem>>, vector<8x256xf32>
    %1127 = vector.extract_strided_slice %1044 {offsets = [0, 16], sizes = [8, 1], strides = [1, 1]} : vector<8x21xf32> to vector<8x1xf32>
    %1128 = vector.broadcast %1127 : vector<8x1xf32> to vector<8x256xf32>
    %1129 = arith.mulf %1126, %1128 : vector<8x256xf32>
    %1130 = arith.addf %1125, %1129 : vector<8x256xf32>
    %c0_361 = arith.constant 0 : index
    %c368 = arith.constant 368 : index
    %1131 = vector.load %arg33[%c0_361, %c368] : memref<8x768xf32, #tpu.memory_space<vmem>>, vector<8x256xf32>
    %1132 = vector.extract_strided_slice %1044 {offsets = [0, 17], sizes = [8, 1], strides = [1, 1]} : vector<8x21xf32> to vector<8x1xf32>
    %1133 = vector.broadcast %1132 : vector<8x1xf32> to vector<8x256xf32>
    %1134 = arith.mulf %1131, %1133 : vector<8x256xf32>
    %1135 = arith.addf %1130, %1134 : vector<8x256xf32>
    %c0_362 = arith.constant 0 : index
    %c384 = arith.constant 384 : index
    %1136 = vector.load %arg33[%c0_362, %c384] : memref<8x768xf32, #tpu.memory_space<vmem>>, vector<8x256xf32>
    %1137 = vector.extract_strided_slice %1044 {offsets = [0, 18], sizes = [8, 1], strides = [1, 1]} : vector<8x21xf32> to vector<8x1xf32>
    %1138 = vector.broadcast %1137 : vector<8x1xf32> to vector<8x256xf32>
    %1139 = arith.mulf %1136, %1138 : vector<8x256xf32>
    %1140 = arith.addf %1135, %1139 : vector<8x256xf32>
    %c0_363 = arith.constant 0 : index
    %c400 = arith.constant 400 : index
    %1141 = vector.load %arg33[%c0_363, %c400] : memref<8x768xf32, #tpu.memory_space<vmem>>, vector<8x256xf32>
    %1142 = vector.extract_strided_slice %1044 {offsets = [0, 19], sizes = [8, 1], strides = [1, 1]} : vector<8x21xf32> to vector<8x1xf32>
    %1143 = vector.broadcast %1142 : vector<8x1xf32> to vector<8x256xf32>
    %1144 = arith.mulf %1141, %1143 : vector<8x256xf32>
    %1145 = arith.addf %1140, %1144 : vector<8x256xf32>
    %c0_364 = arith.constant 0 : index
    %c416 = arith.constant 416 : index
    %1146 = vector.load %arg33[%c0_364, %c416] : memref<8x768xf32, #tpu.memory_space<vmem>>, vector<8x256xf32>
    %1147 = vector.extract_strided_slice %1044 {offsets = [0, 20], sizes = [8, 1], strides = [1, 1]} : vector<8x21xf32> to vector<8x1xf32>
    %1148 = vector.broadcast %1147 : vector<8x1xf32> to vector<8x256xf32>
    %1149 = arith.mulf %1146, %1148 : vector<8x256xf32>
    %1150 = arith.addf %1145, %1149 : vector<8x256xf32>
    %c0_365 = arith.constant 0 : index
    %c0_366 = arith.constant 0 : index
    %1151 = vector.load %arg27[%c0_365, %c0_366] : memref<8x1xf32, #tpu.memory_space<vmem>>, vector<8x1xf32>
    %1152 = vector.broadcast %1151 : vector<8x1xf32> to vector<8x256xf32>
    %1153 = arith.addf %1150, %1152 : vector<8x256xf32>
    %c0_367 = arith.constant 0 : index
    %c0_368 = arith.constant 0 : index
    %1154 = vector.load %arg28[%c0_367, %c0_368] : memref<4x8xf32, #tpu.memory_space<vmem>>, vector<4x8xf32>
    %cst_369 = arith.constant dense<0.000000e+00> : vector<4x256xf32>
    %1155 = tpu.matmul %1154, %1153, %cst_369 {dimension_numbers = #tpu.dot_dimension_numbers<[1], [0], [0], [1], [0, 0, 1, 1], [], []>} : vector<4x8xf32>, vector<8x256xf32>, vector<4x256xf32> -> vector<4x256xf32>
    %c0_370 = arith.constant 0 : index
    %c0_371 = arith.constant 0 : index
    %1156 = vector.load %arg29[%c0_370, %c0_371] : memref<4x1xf32, #tpu.memory_space<vmem>>, vector<4x1xf32>
    %1157 = vector.broadcast %1156 : vector<4x1xf32> to vector<4x256xf32>
    %1158 = arith.addf %1155, %1157 : vector<4x256xf32>
    %1159 = arith.mulf %25, %1158 : vector<4x256xf32>
    %c0_372 = arith.constant 0 : index
    %c0_373 = arith.constant 0 : index
    %1160 = vector.load %arg30[%c0_372, %c0_373] : memref<4x4xf32, #tpu.memory_space<vmem>>, vector<4x4xf32>
    %cst_374 = arith.constant dense<0.000000e+00> : vector<4x256xf32>
    %1161 = tpu.matmul %1160, %1159, %cst_374 {dimension_numbers = #tpu.dot_dimension_numbers<[1], [0], [0], [1], [0, 0, 1, 1], [], []>} : vector<4x4xf32>, vector<4x256xf32>, vector<4x256xf32> -> vector<4x256xf32>
    %c0_375 = arith.constant 0 : index
    %c0_376 = arith.constant 0 : index
    %1162 = vector.load %arg31[%c0_375, %c0_376] : memref<4x1xf32, #tpu.memory_space<vmem>>, vector<4x1xf32>
    %1163 = vector.broadcast %1162 : vector<4x1xf32> to vector<4x256xf32>
    %1164 = arith.addf %1161, %1163 : vector<4x256xf32>
    %c0_377 = arith.constant 0 : index
    %c0_378 = arith.constant 0 : index
    %c0_379 = arith.constant 0 : index
    %1165 = vector.load %arg32[%c0_377, %c0_378, %c0_379] : memref<1x4x256xf32, #tpu.memory_space<vmem>>, vector<1x4x256xf32>
    %1166 = vector.shape_cast %1165 : vector<1x4x256xf32> to vector<4x256xf32>
    %1167 = vector.shape_cast %1164 : vector<4x256xf32> to vector<1x4x256xf32>
    tpu.vector_store %arg32[%c0_377, %c0_378, %c0_379], %1167 {strides = array<i32>} : memref<1x4x256xf32, #tpu.memory_space<vmem>>, vector<1x4x256xf32>,
    return
  }
  func.func @transform_0(%arg0: i32) -> (i32, i32, i32) {
    %c0_i32 = arith.constant 0 : i32
    %c0_i32_0 = arith.constant 0 : i32
    %c0_i32_1 = arith.constant 0 : i32
    return %arg0, %c0_i32, %c0_i32_0 : i32, i32, i32
  }
  func.func @transform_1(%arg0: i32) -> (i32, i32) {
    %c0_i32 = arith.constant 0 : i32
    %c0_i32_0 = arith.constant 0 : i32
    %c0_i32_1 = arith.constant 0 : i32
    return %c0_i32, %c0_i32_0 : i32, i32
  }
  func.func @transform_2(%arg0: i32) -> (i32, i32) {
    %c0_i32 = arith.constant 0 : i32
    %c0_i32_0 = arith.constant 0 : i32
    %c0_i32_1 = arith.constant 0 : i32
    return %c0_i32, %c0_i32_0 : i32, i32
  }
  func.func @transform_3(%arg0: i32) -> (i32, i32) {
    %c0_i32 = arith.constant 0 : i32
    %c0_i32_0 = arith.constant 0 : i32
    %c0_i32_1 = arith.constant 0 : i32
    return %c0_i32, %c0_i32_0 : i32, i32
  }
  func.func @transform_4(%arg0: i32) -> (i32, i32) {
    %c0_i32 = arith.constant 0 : i32
    %c0_i32_0 = arith.constant 0 : i32
    %c0_i32_1 = arith.constant 0 : i32
    return %c0_i32, %c0_i32_0 : i32, i32
  }
  func.func @transform_5(%arg0: i32) -> (i32, i32) {
    %c0_i32 = arith.constant 0 : i32
    %c0_i32_0 = arith.constant 0 : i32
    %c0_i32_1 = arith.constant 0 : i32
    return %c0_i32, %c0_i32_0 : i32, i32
  }
  func.func @transform_6(%arg0: i32) -> (i32, i32) {
    %c0_i32 = arith.constant 0 : i32
    %c0_i32_0 = arith.constant 0 : i32
    %c0_i32_1 = arith.constant 0 : i32
    return %c0_i32, %c0_i32_0 : i32, i32
  }
  func.func @transform_7(%arg0: i32) -> (i32, i32) {
    %c0_i32 = arith.constant 0 : i32
    %c0_i32_0 = arith.constant 0 : i32
    %c0_i32_1 = arith.constant 0 : i32
    return %c0_i32, %c0_i32_0 : i32, i32
  }
  func.func @transform_8(%arg0: i32) -> (i32, i32) {
    %c0_i32 = arith.constant 0 : i32
    %c0_i32_0 = arith.constant 0 : i32
    %c0_i32_1 = arith.constant 0 : i32
    return %c0_i32, %c0_i32_0 : i32, i32
  }
  func.func @transform_9(%arg0: i32) -> (i32, i32) {
    %c0_i32 = arith.constant 0 : i32
    %c0_i32_0 = arith.constant 0 : i32
    %c0_i32_1 = arith.constant 0 : i32
    return %c0_i32, %c0_i32_0 : i32, i32
  }
  func.func @transform_10(%arg0: i32) -> (i32, i32) {
    %c0_i32 = arith.constant 0 : i32
    %c0_i32_0 = arith.constant 0 : i32
    %c0_i32_1 = arith.constant 0 : i32
    return %c0_i32, %c0_i32_0 : i32, i32
  }
  func.func @transform_11(%arg0: i32) -> (i32, i32) {
    %c0_i32 = arith.constant 0 : i32
    %c0_i32_0 = arith.constant 0 : i32
    %c0_i32_1 = arith.constant 0 : i32
    return %c0_i32, %c0_i32_0 : i32, i32
  }
  func.func @transform_12(%arg0: i32) -> (i32, i32) {
    %c0_i32 = arith.constant 0 : i32
    %c0_i32_0 = arith.constant 0 : i32
    %c0_i32_1 = arith.constant 0 : i32
    return %c0_i32, %c0_i32_0 : i32, i32
  }
  func.func @transform_13(%arg0: i32) -> (i32, i32) {
    %c0_i32 = arith.constant 0 : i32
    %c0_i32_0 = arith.constant 0 : i32
    %c0_i32_1 = arith.constant 0 : i32
    return %c0_i32, %c0_i32_0 : i32, i32
  }
  func.func @transform_14(%arg0: i32) -> (i32, i32) {
    %c0_i32 = arith.constant 0 : i32
    %c0_i32_0 = arith.constant 0 : i32
    %c0_i32_1 = arith.constant 0 : i32
    return %c0_i32, %c0_i32_0 : i32, i32
  }
  func.func @transform_15(%arg0: i32) -> (i32, i32) {
    %c0_i32 = arith.constant 0 : i32
    %c0_i32_0 = arith.constant 0 : i32
    %c0_i32_1 = arith.constant 0 : i32
    return %c0_i32, %c0_i32_0 : i32, i32
  }
  func.func @transform_16(%arg0: i32) -> (i32, i32) {
    %c0_i32 = arith.constant 0 : i32
    %c0_i32_0 = arith.constant 0 : i32
    %c0_i32_1 = arith.constant 0 : i32
    return %c0_i32, %c0_i32_0 : i32, i32
  }
  func.func @transform_17(%arg0: i32) -> (i32, i32) {
    %c0_i32 = arith.constant 0 : i32
    %c0_i32_0 = arith.constant 0 : i32
    %c0_i32_1 = arith.constant 0 : i32
    return %c0_i32, %c0_i32_0 : i32, i32
  }
  func.func @transform_18(%arg0: i32) -> (i32, i32) {
    %c0_i32 = arith.constant 0 : i32
    %c0_i32_0 = arith.constant 0 : i32
    %c0_i32_1 = arith.constant 0 : i32
    return %c0_i32, %c0_i32_0 : i32, i32
  }
  func.func @transform_19(%arg0: i32) -> (i32, i32) {
    %c0_i32 = arith.constant 0 : i32
    %c0_i32_0 = arith.constant 0 : i32
    %c0_i32_1 = arith.constant 0 : i32
    return %c0_i32, %c0_i32_0 : i32, i32
  }
  func.func @transform_20(%arg0: i32) -> (i32, i32) {
    %c0_i32 = arith.constant 0 : i32
    %c0_i32_0 = arith.constant 0 : i32
    %c0_i32_1 = arith.constant 0 : i32
    return %c0_i32, %c0_i32_0 : i32, i32
  }
  func.func @transform_21(%arg0: i32) -> (i32, i32) {
    %c0_i32 = arith.constant 0 : i32
    %c0_i32_0 = arith.constant 0 : i32
    %c0_i32_1 = arith.constant 0 : i32
    return %c0_i32, %c0_i32_0 : i32, i32
  }
  func.func @transform_22(%arg0: i32) -> (i32, i32) {
    %c0_i32 = arith.constant 0 : i32
    %c0_i32_0 = arith.constant 0 : i32
    %c0_i32_1 = arith.constant 0 : i32
    return %c0_i32, %c0_i32_0 : i32, i32
  }
  func.func @transform_23(%arg0: i32) -> (i32, i32) {
    %c0_i32 = arith.constant 0 : i32
    %c0_i32_0 = arith.constant 0 : i32
    %c0_i32_1 = arith.constant 0 : i32
    return %c0_i32, %c0_i32_0 : i32, i32
  }
  func.func @transform_24(%arg0: i32) -> (i32, i32) {
    %c0_i32 = arith.constant 0 : i32
    %c0_i32_0 = arith.constant 0 : i32
    %c0_i32_1 = arith.constant 0 : i32
    return %c0_i32, %c0_i32_0 : i32, i32
  }
  func.func @transform_25(%arg0: i32) -> (i32, i32) {
    %c0_i32 = arith.constant 0 : i32
    %c0_i32_0 = arith.constant 0 : i32
    %c0_i32_1 = arith.constant 0 : i32
    return %c0_i32, %c0_i32_0 : i32, i32
  }
  func.func @transform_26(%arg0: i32) -> (i32, i32) {
    %c0_i32 = arith.constant 0 : i32
    %c0_i32_0 = arith.constant 0 : i32
    %c0_i32_1 = arith.constant 0 : i32
    return %c0_i32, %c0_i32_0 : i32, i32
  }
  func.func @transform_27(%arg0: i32) -> (i32, i32) {
    %c0_i32 = arith.constant 0 : i32
    %c0_i32_0 = arith.constant 0 : i32
    %c0_i32_1 = arith.constant 0 : i32
    return %c0_i32, %c0_i32_0 : i32, i32
  }
  func.func @transform_28(%arg0: i32) -> (i32, i32) {
    %c0_i32 = arith.constant 0 : i32
    %c0_i32_0 = arith.constant 0 : i32
    %c0_i32_1 = arith.constant 0 : i32
    return %c0_i32, %c0_i32_0 : i32, i32
  }
  func.func @transform_29(%arg0: i32) -> (i32, i32) {
    %c0_i32 = arith.constant 0 : i32
    %c0_i32_0 = arith.constant 0 : i32
    %c0_i32_1 = arith.constant 0 : i32
    return %c0_i32, %c0_i32_0 : i32, i32
  }
  func.func @transform_30(%arg0: i32) -> (i32, i32) {
    %c0_i32 = arith.constant 0 : i32
    %c0_i32_0 = arith.constant 0 : i32
    %c0_i32_1 = arith.constant 0 : i32
    return %c0_i32, %c0_i32_0 : i32, i32
  }
  func.func @transform_31(%arg0: i32) -> (i32, i32, i32) {
    %c0_i32 = arith.constant 0 : i32
    %c0_i32_0 = arith.constant 0 : i32
    %c0_i32_1 = arith.constant 0 : i32
    return %arg0, %c0_i32, %c0_i32_0 : i32, i32, i32
  }
}

</mosaic_0001>

<bundles_post_ra>
// kernel: tpu_custom_call.1
= control target key start
LH: loop header
LB: loop body
LE: loop exit
PB: predicated region body
PF: predicated region fallthrough
CT: control target
= control target key end

     0   :  { %s7235_s6 = smov 1   ;;  %s7236_s10 = smov 2   ;;  %s11507_s0 = inlined_call_operand.smem [shape: u32[32], index: -1, kind: input, shape index: {}] }
   0x1   :  { %s7411_s5 = sld [smem:[%s11507_s0]]   ;;  %s7237_s14 = smov 3  }
   0x2   :  { %s7416_s9 = sld [smem:[%s11507_s0 + %s7235_s6]]   ;;  %s7238_s18 = smov 4  }
   0x3   :  { %s7421_s13 = sld [smem:[%s11507_s0 + %s7236_s10]]   ;;  %s7239_s22 = smov 5  }
   0x4   :  { %s7426_s17 = sld [smem:[%s11507_s0 + %s7237_s14]]   ;;  %s7240_s26 = smov 6  }
   0x5   :  { %s7431_s21 = sld [smem:[%s11507_s0 + %s7238_s18]]   ;;  %s7241_s30 = smov 7  }
   0x6   :  { %s7436_s25 = sld [smem:[%s11507_s0 + %s7239_s22]]   ;;  %s7242_s4 = smov 8  }
   0x7   :  { %11914 = sst [smem:[#allocation6_spill]] %s7411_s5  ;;  %s7243_s10 = smov 9  }
   0x8   :  { %11915 = sst [smem:[#allocation7_spill]] %s7416_s9  ;;  %s7244_s15 = smov 10  }
   0x9   :  { %11916 = sst [smem:[#allocation8_spill]] %s7421_s13  ;;  %s7245_s20 = smov 11  }
   0xa   :  { %11917 = sst [smem:[#allocation9_spill]] %s7426_s17  ;;  %s7247_s1 = smov 13  }
   0xb   :  { %11918 = sst [smem:[#allocation10_spill]] %s7431_s21  ;;  %s7248_s7 = smov 14  }
   0xc   :  { %11919 = sst [smem:[#allocation11_spill]] %s7436_s25  ;;  %s7250_s22 = smov 16  }
   0xd   :  { %s7441_s29 = sld [smem:[%s11507_s0 + %s7240_s26]]   ;;  %s7246_s26 = smov 12  }
   0xe   :  { %s7446_s3 = sld [smem:[%s11507_s0 + %s7241_s30]]   ;;  %s7251_s28 = smov 17  }
   0xf   :  { %s7451_s8 = sld [smem:[%s11507_s0 + %s7242_s4]]  }
  0x10   :  { %s7456_s14 = sld [smem:[%s11507_s0 + %s7243_s10]]  }
  0x11   :  { %s7461_s19 = sld [smem:[%s11507_s0 + %s7244_s15]]   ;;  %s7249_s15 = smov 15  }
  0x12   :  { %s7466_s24 = sld [smem:[%s11507_s0 + %s7245_s20]]  }
  0x13   :  { %11920 = sst [smem:[#allocation12_spill]] %s7441_s29 }
  0x14   :  { %11921 = sst [smem:[#allocation13_spill]] %s7446_s3 }
  0x15   :  { %11922 = sst [smem:[#allocation14_spill]] %s7451_s8 }
  0x16   :  { %11923 = sst [smem:[#allocation15_spill]] %s7456_s14 }
  0x17   :  { %11924 = sst [smem:[#allocation16_spill]] %s7461_s19 }
  0x18   :  { %11925 = sst [smem:[#allocation17_spill]] %s7466_s24 }
  0x19   :  { %s7471_s30 = sld [smem:[%s11507_s0 + %s7246_s26]]  }
  0x1a   :  { %s7476_s6 = sld [smem:[%s11507_s0 + %s7247_s1]]  }
  0x1b   :  { %s7481_s12 = sld [smem:[%s11507_s0 + %s7248_s7]]   ;;  %s7252_s7 = smov 18  }
  0x1c   :  { %s7486_s20 = sld [smem:[%s11507_s0 + %s7249_s15]]   ;;  %s7253_s15 = smov 19  }
  0x1d   :  { %s7491_s27 = sld [smem:[%s11507_s0 + %s7250_s22]]   ;;  %s7254_s22 = smov 20  }
  0x1e   :  { %s7496_s4 = sld [smem:[%s11507_s0 + %s7251_s28]]   ;;  %s7255_s28 = smov 21  }
  0x1f   :  { %11926 = sst [smem:[#allocation18_spill]] %s7471_s30 }
  0x20   :  { %11927 = sst [smem:[#allocation19_spill]] %s7476_s6 }
  0x21   :  { %11928 = sst [smem:[#allocation20_spill]] %s7481_s12 }
  0x22   :  { %11929 = sst [smem:[#allocation21_spill]] %s7486_s20 }
  0x23   :  { %11930 = sst [smem:[#allocation22_spill]] %s7491_s27 }
  0x24   :  { %11931 = sst [smem:[#allocation23_spill]] %s7496_s4 }
  0x25   :  { %s7501_s13 = sld [smem:[%s11507_s0 + %s7252_s7]]   ;;  %s7256_s7 = smov 22  }
  0x26   :  { %s7506_s20 = sld [smem:[%s11507_s0 + %s7253_s15]]   ;;  %s7257_s15 = smov 23  }
  0x27   :  { %s7511_s27 = sld [smem:[%s11507_s0 + %s7254_s22]]   ;;  %s7258_s22 = smov 24  }
  0x28   :  { %s7516_s4 = sld [smem:[%s11507_s0 + %s7255_s28]]   ;;  %s7259_s28 = smov 25  }
  0x2b   :  { %11932 = sst [smem:[#allocation24_spill]] %s7501_s13 }
  0x2c   :  { %11933 = sst [smem:[#allocation25_spill]] %s7506_s20 }
  0x2d   :  { %11934 = sst [smem:[#allocation26_spill]] %s7511_s27 }
  0x2e   :  { %11935 = sst [smem:[#allocation27_spill]] %s7516_s4 }
  0x2f   :  { %s7521_s13 = sld [smem:[%s11507_s0 + %s7256_s7]]   ;;  %s7260_s7 = smov 26  }
  0x30   :  { %s7526_s20 = sld [smem:[%s11507_s0 + %s7257_s15]]   ;;  %s7261_s15 = smov 27  }
  0x31   :  { %s7531_s27 = sld [smem:[%s11507_s0 + %s7258_s22]]   ;;  %s7262_s22 = smov 28  }
  0x32   :  { %s7536_s4 = sld [smem:[%s11507_s0 + %s7259_s28]]   ;;  %s7263_s28 = smov 29  }
  0x35   :  { %11936 = sst [smem:[#allocation28_spill]] %s7521_s13 }
  0x36   :  { %11937 = sst [smem:[#allocation29_spill]] %s7526_s20 }
  0x37   :  { %11938 = sst [smem:[#allocation30_spill]] %s7531_s27 }
  0x38   :  { %11939 = sst [smem:[#allocation31_spill]] %s7536_s4 }
  0x39   :  { %s7541_s13 = sld [smem:[%s11507_s0 + %s7260_s7]]   ;;  %s7264_s7 = smov 30  }
  0x3a   :  { %s7546_s20 = sld [smem:[%s11507_s0 + %s7261_s15]]   ;;  %s7265_s15 = smov 31  }
  0x3b   :  { %s7551_s27 = sld [smem:[%s11507_s0 + %s7262_s22]]  }
  0x3c   :  { %s7556_s4 = sld [smem:[%s11507_s0 + %s7263_s28]]  }
  0x3f   :  { %11940 = sst [smem:[#allocation32_spill]] %s7541_s13 }
  0x40   :  { %11941 = sst [smem:[#allocation33_spill]] %s7546_s20 }
  0x41   :  { %11942 = sst [smem:[#allocation34_spill]] %s7551_s27 }
  0x42   :  { %11943 = sst [smem:[#allocation35_spill]] %s7556_s4 }
  0x43   :  { %s7561_s13 = sld [smem:[%s11507_s0 + %s7264_s7]]  }
  0x44   :  { %s7566_s20 = sld [smem:[%s11507_s0 + %s7265_s15]]  }
  0x49   :  { %11944 = sst [smem:[#allocation36_spill]] %s7561_s13 }
  0x4a   :  { %11945 = sst [smem:[#allocation37_spill]] %s7566_s20 }
  0x4b   :  { %68 = vsyncpa [#allocation4], 0 }
  0x4c   :  { %70 = vsyncpa [#allocation4 + $0x1], 0  ;;  %s7568_s22 = smov 0   ;;  %s7570_s23 = smov 0  }
  0x4d   :  { %s7572_s26 = smov 0   ;;  %s7574_s28 = smov 0  }
  0x4e LB: > { %s11946_s6 = sld [smem:[#allocation19_spill]]  ;;  %s7589_s0 = sadd.s32 4294967295, %s7233_s28   ;;  %s7221_s22 = sphi %s7568_s22, %s12694_s22   ;;  %s7233_s28 = sphi %s7574_s28, %s12693_s28   ;;  %s7229_s26 = sphi %s7572_s26, %s12696_s26   ;;  %s7225_s23 = sphi %s7570_s23, %s12695_s23  }
  0x4f   : > { %11947 = sst [smem:[#allocation38_spill]] %s7221_s22  ;;  %s6459_s1 = sadd.s32 4294967294, %s7233_s28  }
  0x50   : > { %11948 = sst [smem:[#allocation39_spill]] %s7225_s23  ;;  %s7593_s2 = sadd.s32 1, %s7233_s28  }
  0x51   : > { %11949 = sst [smem:[#allocation40_spill]] %s7229_s26  ;;  %s739_s7 = sadd.s32 1, %s7229_s26 }
  0x52   : > { %11950 = sst [smem:[#allocation41_spill]] %s7233_s28  ;;  %s736_s10 = ssub.s32 %s7233_s28, %s7593_s2 }
  0x53   : > { %11951 = sst [smem:[#allocation42_spill]] %s7589_s0  ;;  %p749_p0 = scmp.ne.s32.totalorder %s7229_s26, %s7225_s23 }
  0x54   : > { %11952 = sst [smem:[#allocation43_spill]] %s7593_s2  ;;  %p737_p1 = scmp.eq.s32.totalorder %s736_s10, 0 }
  0x55   : > { %p750_p2 = scmp.eq.s32.totalorder %s7589_s0, 1  ;;  %p755_p3 = scmp.ne.s32.totalorder %s7225_s23, %s7221_s22 }
  0x56   : > { %p756_p4 = scmp.eq.s32.totalorder %s6459_s1, 1  ;;  %p6462_p7 = scmp.ge.s32.totalorder %s7233_s28, 1 }
  0x57   : > { %s7604_s11 = scalar_select %p737_p1, %s7229_s26, %s739_s7  }
  0x58   : > { %p7606_p5 = por %p750_p2, %p749_p0  ;;  %p7610_p6 = por %p756_p4, %p755_p3 }
  0x59   : > { %11953 = sst [smem:[#allocation44_spill]] %s7604_s11  ;;  %p872_p8 = scmp.lt.s32.totalorder %s7233_s28, 3 }
  0x5a   : > { %s11954_s15 = scalar_select %p7606_p5, 1, 0 }
  0x5b   : > { %s11956_s16 = scalar_select %p7610_p6, 1, 0 }
  0x5c   : > { %11955 = sst [smem:[#allocation45_spill]] %s11954_s15  ;;  %p873_p9 = pnand %p6462_p7, %p872_p8 }
  0x5d   : > { %11957 = sst [smem:[#allocation46_spill]] %s11956_s16 }
  0x5e   : > { %876 = sbr.rel (%p873_p9) target bundleno = 3981 (0xf8d), region = 144 }
  0x63   : > { %s11958_s25 = sld [smem:[#allocation11_spill]]  ;;  %p952_p10 = scmp.lt.s32.totalorder %s7589_s0, 1  ;;  %v11578_v0 = vmov 0.0   ;;  %v11530_v1 = vmov 2   ;;  %v964_v3 = vlaneseq  ;;  %v11528_v6 = vmov 0  }
  0x64   : > { %s11959_s21 = sld [smem:[#allocation10_spill]]  ;;  %1154 = vmatprep.mubr.f32.mxu1 %v11578_v0  ;;  %6735 = vset.pattern.permute.xlu1 %v11530_v1  ;;  %vm11699_vm0 = vcmask 1043456   ;;  %v11582_v10 = vmov 3   ;;  %vm11711_vm1 = vcmask 31744   ;;  %v11526_v16 = vmov 1   ;;  %s11514_s10 = smov 127  }
  0x65   : > { %s11960_s5 = sld [smem:[#allocation6_spill]]  ;;  %1073 = vmatprep.mubr.f32.mxu0 %v11578_v0  ;;  %v965_v5 = vand.u32 127, %v964_v3  ;;  %6733 = vset.pattern.permute.xlu0 %v11528_v6  ;;  %v11580_v21 = vmov 4   ;;  %v11576_v26 = vmov 5   ;;  %v11572_v27 = vmov 6   ;;  %s12082_s11 = smov 92  }
  0x66   : > { %s953_s18 = scalar_select %p952_p10, %s7589_s0, 1  ;;  %v11567_v28 = vmov 8   ;;  %v11570_v29 = vmov 7   ;;  %vm1234_vm6 = vcmask 1039360   ;;  %vm11701_vm7 = vcmask 924672  }
  0x67   : > { %s11961_s17 = sld [smem:[#allocation9_spill]]  ;;  %v966_v7 = vadd.s32 128, %v965_v5  ;;  %v7628_v8 = vand.u32 15, %v965_v5  ;;  %vm1356_vm8 = vcmask 7168   ;;  %vm1393_vm9 = vcmask 121856   ;;  %s12083_s26 = smov 124  }
  0x68   : > { %s6525_s1 = sshll.u32 %s953_s18, 3  ;;  %s11508_s18 = smov 113   ;;  %vm1455_vm10 = vcmask 138240   ;;  %vm11745_vm11 = vcmask 908288   ;;  %vm1285_vm12 = vcmask 1031168   ;;  %vm1321_vm13 = vcmask 916480  }
  0x69   : > { %v7620_v2 = vld [vmem:[%s11958_s25] sm:$0xff]  ;;  %11962 = vst [vmem:[#allocation47_spill] sm:$0xff] %v7628_v8  ;;  %v7632_v12 = vand.u32 15, %v966_v7  ;;  %v1243_v13 = vadd.s32 1, %v7628_v8  ;;  %v1181_v14 = vadd.s32 4294967295, %v7628_v8  ;;  %s11985_s29 = sld [smem:[#allocation12_spill]] }
  0x6a   : > { %1270 = vperm.xlu1 %6735, %v7620_v2   ;;  %v1081_v4 = vld [vmem:[%s11959_s21] sm:$0xff]  ;;  %s11983_s21 = smov 95   ;;  %s11532_s25 = smov 94   ;;  %vm11744_vm14 = vcmask 900096   ;;  %vm11738_vm15 = vcmask 785408  }
  0x6b   : > { %1084 = vperm.xlu0 %6733, %v1081_v4   ;;  %s956_s7 = scalar_lea.vmem %s11960_s5, %s6525_s1  ;;  %11963 = vst [vmem:[#allocation48_spill] sm:$0xff] %v7632_v12  ;;  %v1244_v17 = vadd.s32 1, %v7632_v12  ;;  %vm1247_vm2 = vcmp.lt.s32.totalorder %v1243_v13, 16  ;;  %v1182_v18 = vadd.s32 4294967295, %v7632_v12  ;;  %vm1183_vm3 = vcmp.ge.s32.totalorder %v1181_v14, 0  ;;  %s7276_s1 = smov 1  }
  0x6c   : > { %v963_v9 = vld [vmem:[%s956_s7] sm:$0xff]  ;;  %v6474_v19 = vsel %vm1247_vm2, 1.0, %v11578_v0  ;;  %v6472_v20 = vsel %vm1183_vm3, 1.0, %v11578_v0  ;;  %s7277_s7 = smov 15   ;;  %s11980_s5 = smov 96   ;;  %vm11740_vm2 = vcmask 777216  }
  0x6d   : > { %v999_v11 = vcombine.high %v963_v9, %v963_v9  ;;  %v1080_v15 = vld [vmem:[%s11961_s17] sm:$0xff]  ;;  %vm1248_vm4 = vcmp.lt.s32.totalorder %v1244_v17, 16  ;;  %vm1184_vm5 = vcmp.ge.s32.totalorder %v1182_v18, 0  ;;  %s11982_s17 = smov 110   ;;  %s11992_s9 = sld [smem:[#allocation7_spill]]  ;;  %vm11739_vm3 = vcmask 769024  }
  0x6e   : > { %6736 = vset.pattern.permute.xlu1 %v11582_v10  ;;  %v6475_v22 = vsel %vm1248_vm4, 1.0, %v11578_v0  ;;  %v6473_v23 = vsel %vm1184_vm5, 1.0, %v11578_v0  ;;  %s11993_s8 = sld [smem:[#allocation14_spill]]  ;;  %s12086_s2 = smov 77  }
  0x6f   : > { %1306 = vperm.xlu1 %6736, %v7620_v2   ;;  %6734 = vset.pattern.permute.xlu0 %v11526_v16  ;;  %v7652_v24 = vpack.i.bf16 %v6475_v22, %v6474_v19  ;;  %v7654_v25 = vpack.i.bf16 %v6473_v23, %v6472_v20  ;;  %s11994_s14 = sld [smem:[#allocation15_spill]]  ;;  %s12089_s16 = smov 109  }
  0x70   : > { %6469 = vmatprep.subr.msk.mxu1 %vm11699_vm0, %v999_v11  ;;  %1219 = vperm.xlu0 %6734, %v7620_v2   ;;  %s12000_s3 = sld [smem:[#allocation13_spill]]  ;;  %s12090_s22 = smov 64  }
  0x71   : > { %6470 = vmatpush1.msk.msra.mxu1 %vm11699_vm0, %v963_v9  ;;  %6466 = vmatprep.subr.msk.mxu0 %vm11699_vm0, %v999_v11  ;;  %11964 = vst [vmem:[#allocation49_spill] sm:$0xff] %v7652_v24  ;;  %11965 = vst [vmem:[#allocation50_spill] sm:$0xff] %v7654_v25  ;;  %s12012_s19 = sld [smem:[#allocation16_spill]]  ;;  %s12094_s28 = smov 80  }
  0x72   : > { %6471 = vmatmul.mubr.msk.f32.vlgmr.msra.gmra.mxu1 %vm11711_vm1, %v1080_v15  ;;  %6467 = vmatpush1.msk.msra.mxu0 %vm11699_vm0, %v963_v9  ;;  %s7333_s15 = smov 99   ;;  %s12096_s20 = smov 76   ;;  %vm2376_vm0 = vcmask 277504  }
  0x73   : > { %6737 = vset.pattern.permute.xlu1 %v11580_v21  ;;  %2505 = vmatprep.mubr.f32.mxu1 %v11578_v0  ;;  %s12102_s0 = smov 61   ;;  %s12105_s23 = smov 60  }
  0x74   : > { %1331 = vperm.xlu1 %6737, %v7620_v2   ;;  %6748 = vset.pattern.permute.xlu0 %v11576_v26  ;;  %s11702_s4 = smov 115   ;;  %s7341_s13 = smov 13  }
  0x75   : > { %6744 = vrot.lane.b32.xlu0 %v7654_v25, %s11514_s10  ;;  %s12177_s30 = sld [smem:[#allocation18_spill]]  ;;  %s12263_s27 = smov 123  }
  0x76   : > { %s12182_s24 = sld [smem:[#allocation17_spill]]  ;;  %s12266_s12 = smov 122  }
  0x78   : > { %6739 = vrot.lane.b32.xlu1 %v7652_v24, %s11508_s18  ;;  %s11516_s18 = smov 111  }
  0x79   : > { %6754 = vset.pattern.permute.xlu1 %v11572_v27  ;;  %1365 = vperm.xlu0 %6748, %v7620_v2  }
  0x7c   : > { %6750 = vrot.lane.b32.xlu1 %v7652_v24, %s7276_s1  ;;  %s11510_s1 = smov 17  }
  0x7d   : > { %6756 = vrot.lane.b32.xlu0 %v7654_v25, %s7277_s7  ;;  %s11512_s7 = smov 112  }
  0x7e   : > { %6761 = vset.pattern.permute.xlu0 %v11567_v28 }
  0x80   : > { %1402 = vperm.xlu1 %6754, %v7620_v2  }
  0x81   : > { %1464 = vperm.xlu0 %6761, %v7620_v2  }
  0x84   : > { %6760 = vset.pattern.permute.xlu1 %v11570_v29 }
  0x85   : > { %1427 = vperm.xlu1 %6760, %v7620_v2   ;;  %6769 = vrot.lane.b32.xlu0 %v7654_v25, %s11516_s18  ;;  %s11518_s18 = smov 110  }
  0x86   : > { %6773 = vset.pattern.permute.xlu0 %v11528_v6 }
  0x89   : > { %6763 = vrot.lane.b32.xlu1 %v7652_v24, %s11510_s1  ;;  %s11520_s1 = smov 96  }
  0x8a   : > { %6767 = vset.pattern.permute.xlu1 %v11528_v6 }
  0x8d   : > { %1209 = vperm.xlu1 %6767, %v7620_v2  }
  0xe5   : > { %v7678_v30 = vpop.permute.xlu1 %1270 }
  0xe6   : > { %v1085_v31 = vpop.permute.xlu0 %1084 }
  0xea   : > { %v7680_v32 = vpop.permute.xlu1 %1306 }
  0xeb   : > { %v7682_v33 = vpop.permute.xlu0 %1219 }
  0xec   : > { %v1222_v34 = vmul.f32 0.0, %v7682_v33 }
  0xee   : > { %1228 = vrot.lane.b32.xlu1 %v1222_v34, %s11514_s10  ;;  %s11522_s10 = smov 126  }
  0xef   : > { %v7685_v35 = vpop.permute.xlu1 %1331  ;;  %v6745_v36 = vpop.permute.xlu0 %6744 }
  0xf0   : > { %v6746_v37 = vunpack.i.l.bf16 %v6745_v36  ;;  %v7729_v7 = vunpack.i.h.bf16 %v6745_v36 }
  0xf2   : > { %v7690_v39 = vmul.f32 0.0, %v6746_v37  ;;  %11970 = vst [vmem:[#allocation55_spill] sm:$0xff] %v7729_v7  ;;  %v7735_v13 = vsel %vm1234_vm6, %v6746_v37, %v7729_v7 }
  0xf3   : > { %v7688_v38 = vpop.permute.xlu1 %6739  ;;  %11971 = vst [vmem:[#allocation56_spill] sm:$0xff] %v7735_v13 }
  0xf4   : > { %11966 = vst [vmem:[#allocation51_spill] sm:$0xff] %v7690_v39  ;;  %v1309_v40 = vmul.f32 %v7680_v32, %v7690_v39  ;;  %v7694_v41 = vpop.permute.xlu0 %1365  ;;  %v6741_v44 = vunpack.i.l.bf16 %v7688_v38  ;;  %v7746_v19 = vunpack.i.h.bf16 %v7688_v38 }
  0xf6   : > { %1315 = vrot.lane.b32.xlu1 %v1309_v40, %s11512_s7  ;;  %v7709_v48 = vmul.f32 0.0, %v6741_v44  ;;  %s11524_s7 = smov 95   ;;  %11974 = vst [vmem:[#allocation57_spill] sm:$0xff] %v7746_v19  ;;  %v7760_v34 = vsel %vm11701_vm7, %v6741_v44, %v7746_v19  ;;  %vm11902_vm7 = vcmask 1014784  }
  0xf7   : > { %v7696_v42 = vpop.permute.xlu1 %6750  ;;  %11977 = vst [vmem:[#allocation59_spill] sm:$0xff] %v7760_v34 }
  0xf8   : > { %v7699_v43 = vpop.permute.xlu0 %6756  ;;  %11968 = vst [vmem:[#allocation53_spill] sm:$0xff] %v7709_v48  ;;  %v6753_v49 = vunpack.i.h.bf16 %v7696_v42  ;;  %v1273_v54 = vmul.f32 %v7678_v30, %v7709_v48 }
  0xf9   : > { %v6759_v46 = vunpack.i.h.bf16 %v7699_v43 }
  0xfa   : > { %v7720_v53 = vmul.f32 0.0, %v6753_v49 }
  0xfb   : > { %v7702_v45 = vpop.permute.xlu1 %1402  ;;  %v7707_v47 = vmul.f32 0.0, %v6759_v46 }
  0xfc   : > { %11969 = vst [vmem:[#allocation54_spill] sm:$0xff] %v7720_v53  ;;  %v1370_v55 = vmul.f32 %v7694_v41, %v7720_v53 }
  0xfd   : > { %11967 = vst [vmem:[#allocation52_spill] sm:$0xff] %v7707_v47  ;;  %v1407_v50 = vmul.f32 %v7702_v45, %v7707_v47 }
  0xff   : > { %1415 = vrot.lane.b32.xlu1 %v1407_v50, %s11520_s1  ;;  %s11973_s1 = smov 127   ;;  %v7771_v50 = vunpack.i.l.bf16 %v7696_v42 }
 0x100   : > { %v7714_v51 = vpop.permute.xlu1 %1427 }
 0x101   : > { %v1432_v52 = vmul.f32 0.0, %v7714_v51  ;;  %11978 = vst [vmem:[#allocation60_spill] sm:$0xff] %v7771_v50 }
 0x103   : > { %1440 = vrot.lane.b32.xlu0 %v1432_v52, %s11524_s7 }
 0x104   : > { %v6764_v44 = vpop.permute.xlu1 %6763 }
 0x107   : > { %1279 = vrot.lane.b32.xlu0 %v1273_v54, %s11522_s10  ;;  %s11976_s10 = smov 112   ;;  %v7781_v54 = vunpack.i.l.bf16 %v6764_v44 }
 0x109   : > { %11981 = vst [vmem:[#allocation61_spill] sm:$0xff] %v7781_v54 }
 0x10b   : > { %1378 = vrot.lane.b32.xlu0 %v1370_v55, %s11518_s18  ;;  %s11972_s18 = smov 111  }
 0x132   : > { %v1156_v56 = vpop.f32.mrf.mxu1 }
 0x133   : > { %v1157_v57 = vadd.f32 %v1156_v56, %v1085_v31 }
 0x134   : > { %v1158_v58 = vpop.f32.mrf.mxu1 }
 0x135   : > { %v1161_v59 = vsub.f32 0.0, %v1157_v57  ;;  %v1159_v60 = vadd.f32 %v1158_v58, %v1085_v31  ;;  %v7754_v31 = vunpack.i.l.bf16 %v7699_v43  ;;  %v1488_v43 = vld [vmem:[%s11985_s29] sm:$0xff]  ;;  %s12056_s29 = smov 108  }
 0x137   : > { %v1163_v61 = vmul.f32 1.442695, %v1161_v59  ;;  %v1162_v62 = vsub.f32 0.0, %v1159_v60  ;;  %11975 = vst [vmem:[#allocation58_spill] sm:$0xff] %v7754_v31  ;;  %v7795_v59 = vsel %vm1356_vm8, %v7771_v50, %v6753_v49  ;;  %v7808_v42 = vsel %vm1393_vm9, %v7754_v31, %v6759_v46 }
 0x138   : > { %11984 = vst [vmem:[#allocation62_spill] sm:$0xff] %v7795_v59  ;;  %11986 = vst [vmem:[#allocation63_spill] sm:$0xff] %v7808_v42 }
 0x139   : > { %7164 = vpow2.f32 %v1163_v61  ;;  %v1165_v63 = vmul.f32 1.442695, %v1162_v62 }
 0x13b   : > { %7166 = vpow2.f32 %v1165_v63  ;;  %v6766_v63 = vunpack.i.h.bf16 %v6764_v44 }
 0x146   : > { %v7165_v2 = vpop.eup %7164 }
 0x147   : > { %v1167_v3 = vadd.f32 1.0, %v7165_v2 }
 0x148   : > { %v7167_v4 = vpop.eup %7166 }
 0x149   : > { %7168 = vrcp.f32 %v1167_v3  ;;  %v1168_v5 = vadd.f32 1.0, %v7167_v4  ;;  %v7815_v3 = vsel %vm1455_vm10, %v7781_v54, %v6766_v63  ;;  %v7817_v4 = vmul.f32 0.0, %v6766_v63 }
 0x14a   : > { %11987 = vst [vmem:[#allocation64_spill] sm:$0xff] %v7815_v3 }
 0x14b   : > { %7170 = vrcp.f32 %v1168_v5  ;;  %11988 = vst [vmem:[#allocation65_spill] sm:$0xff] %v7817_v4 }
 0x156   : > { %v7169_v9 = vpop.eup %7168 }
 0x157   : > { %v7731_v11 = vmul.f32 %v7169_v9, %v1157_v57 }
 0x158   : > { %v7171_v17 = vpop.eup %7170 }
 0x159   : > { %v1334_v14 = vmul.f32 %v7685_v35, %v7731_v11  ;;  %v1223_v15 = vmul.f32 %v7682_v33, %v7731_v11  ;;  %v1303_v18 = vmul.f32 %v7735_v13, %v7731_v11  ;;  %v7748_v20 = vmul.f32 %v7171_v17, %v1159_v60 }
 0x15a   : > { %v1430_v22 = vmul.f32 %v7714_v51, %v7731_v11  ;;  %v1267_v38 = vmul.f32 %v7760_v34, %v7731_v11  ;;  %v1398_v40 = vmul.f32 %v7754_v31, %v7731_v11  ;;  %v1460_v61 = vmul.f32 %v7781_v54, %v7731_v11 }
 0x15b   : > { %1338 = vrot.lane.b32.xlu0 %v1334_v14, %s11972_s18  ;;  %1230 = vrot.lane.b32.xlu1 %v1223_v15, %s11973_s1  ;;  %v1310_v23 = vmul.f32 %v7680_v32, %v1303_v18  ;;  %v1224_v36 = vmul.f32 %v7682_v33, %v7748_v20  ;;  %v1335_v37 = vmul.f32 %v7685_v35, %v7748_v20  ;;  %v1210_v15 = vpop.permute.xlu1 %1209 }
 0x15c   : > { %v1274_v52 = vmul.f32 %v7678_v30, %v1267_v38  ;;  %v1405_v33 = vmul.f32 %v7702_v45, %v1398_v40  ;;  %v1361_v35 = vmul.f32 %v7771_v50, %v7731_v11  ;;  %v1431_v56 = vmul.f32 %v7714_v51, %v7748_v20 }
 0x15d   : > { %v1304_v57 = vmul.f32 %v7729_v7, %v7748_v20  ;;  %v1268_v58 = vmul.f32 %v7746_v19, %v7748_v20  ;;  %v1362_v62 = vmul.f32 %v7795_v59, %v7748_v20  ;;  %v1399_v2 = vmul.f32 %v7808_v42, %v7748_v20 }
 0x15e   : > { %v1368_v55 = vmul.f32 %v7694_v41, %v1361_v35 }
 0x15f   : > { %1436 = vrot.lane.b32.xlu0 %v1430_v22, %s11524_s7  ;;  %1317 = vrot.lane.b32.xlu1 %v1310_v23, %s11976_s10  ;;  %s11979_s7 = smov 126   ;;  %v1311_v60 = vmul.f32 %v7680_v32, %v1304_v57  ;;  %v1275_v51 = vmul.f32 %v7678_v30, %v1268_v58  ;;  %v1465_v32 = vpop.permute.xlu0 %1464  ;;  %v1369_v49 = vmul.f32 %v7694_v41, %v1362_v62 }
 0x160   : > { %v1467_v30 = vmul.f32 %v1465_v32, %v1460_v61  ;;  %v1406_v46 = vmul.f32 %v7702_v45, %v1399_v2  ;;  %v1461_v41 = vmul.f32 %v7815_v3, %v7748_v20  ;;  %v1469_v5 = vmul.f32 %v1465_v32, %v7817_v4  ;;  %v1229_v45 = vpop.permute.xlu1 %1228 }
 0x162   : > { %v1468_v9 = vmul.f32 %v1465_v32, %v1461_v41 }
 0x163   : > { %1232 = vrot.lane.b32.xlu0 %v1224_v36, %s11973_s1  ;;  %1340 = vrot.lane.b32.xlu1 %v1335_v37, %s11972_s18  ;;  %v6770_v14 = vpop.permute.xlu0 %6769 }
 0x167   : > { %1281 = vrot.lane.b32.xlu0 %v1274_v52, %s11979_s7  ;;  %1411 = vrot.lane.b32.xlu1 %v1405_v33, %s11980_s5  ;;  %v7834_v52 = vunpack.i.h.bf16 %v6770_v14  ;;  %v6771_v33 = vunpack.i.l.bf16 %v6770_v14 }
 0x168   : > { %v1316_v22 = vpop.permute.xlu1 %1315 }
 0x169   : > { %11989 = vst [vmem:[#allocation66_spill] sm:$0xff] %v7834_v52  ;;  %v7844_v61 = vmul.f32 0.0, %v6771_v33 }
 0x16b   : > { %1374 = vrot.lane.b32.xlu0 %v1368_v55, %s11982_s17  ;;  %1438 = vrot.lane.b32.xlu1 %v1431_v56, %s11983_s21  ;;  %v7838_v56 = vsel %vm11745_vm11, %v6771_v33, %v7834_v52  ;;  %11991 = vst [vmem:[#allocation68_spill] sm:$0xff] %v7844_v61 }
 0x16c   : > { %11990 = vst [vmem:[#allocation67_spill] sm:$0xff] %v7838_v56 }
 0x16f   : > { %1319 = vrot.lane.b32.xlu0 %v1311_v60, %s11976_s10  ;;  %1283 = vrot.lane.b32.xlu1 %v1275_v51, %s11979_s7  ;;  %v1206_v60 = vmul.f32 %v7834_v52, %v7748_v20  ;;  %v1205_v51 = vmul.f32 %v7838_v56, %v7731_v11 }
 0x171   : > { %v1416_v36 = vpop.permute.xlu1 %1415  ;;  %v1214_v32 = vmul.f32 %v1210_v15, %v1206_v60 }
 0x173   : > { %1473 = vrot.lane.b32.xlu0 %v1467_v30, %s11532_s25  ;;  %1376 = vrot.lane.b32.xlu1 %v1369_v49, %s11982_s17  ;;  %v1213_v49 = vmul.f32 %v1210_v15, %v1205_v51 }
 0x175   : > { %v7830_v17 = vpop.permute.xlu0 %1440 }
 0x177   : > { %1413 = vrot.lane.b32.xlu0 %v1406_v46, %s11980_s5  ;;  %1491 = vperm.xlu1 %6767, %v1488_v43   ;;  %v1212_v43 = vmul.f32 %v1210_v15, %v7844_v61 }
 0x179   : > { %v1280_v18 = vpop.permute.xlu0 %1279 }
 0x17b   : > { %1475 = vrot.lane.b32.xlu1 %v1468_v9, %s11532_s25  ;;  %1477 = vrot.lane.b32.xlu0 %v1469_v5, %s11532_s25  ;;  %s11995_s25 = smov 17  }
 0x17c   : > { %6774 = vset.pattern.permute.xlu1 %v11526_v16 }
 0x17d   : > { %v1379_v23 = vpop.permute.xlu0 %1378 }
 0x1cd   : > { %v1339_v37 = vpop.permute.xlu0 %1338  ;;  %v1231_v38 = vpop.permute.xlu1 %1230 }
 0x1ce   : > { %v1235_v2 = vsel %vm1234_vm6, %v1229_v45, %v1231_v38 }
 0x1cf   : > { %v1240_v11 = vadd.f32 %v1235_v2, %v1212_v43 }
 0x1d1   : > { %v7832_v40 = vpop.permute.xlu0 %1436  ;;  %v1318_v44 = vpop.permute.xlu1 %1317 }
 0x1d2   : > { %v1322_v15 = vsel %vm1321_vm13, %v1316_v22, %v1318_v44 }
 0x1d5   : > { %v1233_v35 = vpop.permute.xlu0 %1232  ;;  %v1341_v55 = vpop.permute.xlu1 %1340 }
 0x1d6   : > { %v1236_v30 = vsel %vm1234_vm6, %v1231_v38, %v1233_v35  ;;  %v1242_v46 = vadd.f32 %v1233_v35, %v1214_v32  ;;  %v1342_v35 = vsel %vm11745_vm11, %v1339_v37, %v1341_v55 }
 0x1d7   : > { %v1241_v41 = vadd.f32 %v1236_v30, %v1213_v49 }
 0x1d9   : > { %v1282_v57 = vpop.permute.xlu0 %1281  ;;  %v1412_v58 = vpop.permute.xlu1 %1411 }
 0x1da   : > { %v1286_v20 = vsel %vm1285_vm12, %v1280_v18, %v1282_v57 }
 0x1db   : > { %v1291_v60 = vadd.f32 %v1286_v20, %v1240_v11 }
 0x1dd   : > { %v1375_v62 = vpop.permute.xlu0 %1374  ;;  %v1439_v63 = vpop.permute.xlu1 %1438  ;;  %v1327_v38 = vadd.f32 %v1322_v15, %v1291_v60 }
 0x1df   : > { %v1346_v49 = vadd.f32 %v1339_v37, %v1327_v38  ;;  %v1443_v37 = vsel %vm11740_vm2, %v7832_v40, %v1439_v63 }
 0x1e1   : > { %v1320_v5 = vpop.permute.xlu0 %1319  ;;  %v1284_v9 = vpop.permute.xlu1 %1283 }
 0x1e2   : > { %v1287_v14 = vsel %vm1285_vm12, %v1282_v57, %v1284_v9  ;;  %v1293_v33 = vadd.f32 %v1284_v9, %v1242_v46  ;;  %v1323_v6 = vsel %vm1321_vm13, %v1318_v44, %v1320_v5  ;;  %v1386_v44 = vadd.f32 %v1375_v62, %v1346_v49 }
 0x1e3   : > { %v1292_v16 = vadd.f32 %v1287_v14, %v1241_v41  ;;  %v991_v41 = vld [vmem:[%s11992_s9] sm:$0xf]  ;;  %v1730_v49 = vadd.s32 2, %v7628_v8  ;;  %s7291_s9 = smov 98  }
 0x1e4   : > { %v1329_v1 = vadd.f32 %v1320_v5, %v1293_v33  ;;  %6468 = vmatmul.mubr.msk.f32.vlgmr.msra.gmra.mxu0 %vm11711_vm1, %v991_v41  ;;  %v1444_v5 = vsel %vm11740_vm2, %v1439_v63, %v7830_v17  ;;  %v1599_v17 = vadd.s32 4294967294, %v7632_v12  ;;  %v11565_v41 = vmov 10  }
 0x1e5   : > { %v1328_v51 = vadd.f32 %v1323_v6, %v1292_v16  ;;  %v1474_v45 = vpop.permute.xlu0 %1473  ;;  %v1377_v18 = vpop.permute.xlu1 %1376  ;;  %1585 = vmatprep.mubr.f32.mxu0 %v11578_v0  ;;  %vm1734_vm8 = vcmp.lt.s32.totalorder %v1730_v49, 16  ;;  %vm11741_vm1 = vcmask 883712  }
 0x1e6   : > { %v1348_v32 = vadd.f32 %v1341_v55, %v1329_v1  ;;  %v1382_v57 = vsel %vm11744_vm14, %v1377_v18, %v1379_v23  ;;  %v1381_v43 = vsel %vm11744_vm14, %v1375_v62, %v1377_v18  ;;  %v1423_v23 = vadd.f32 %v1412_v58, %v1386_v44 }
 0x1e7   : > { %v1347_v30 = vadd.f32 %v1342_v35, %v1328_v51  ;;  %v1598_v18 = vadd.s32 4294967294, %v7628_v8  ;;  %v1498_v35 = vld [vmem:[%s11993_s8] sm:$0xff]  ;;  %vm1601_vm5 = vcmp.ge.s32.totalorder %v1599_v17, 0  ;;  %s11534_s8 = smov 114   ;;  %v11538_v44 = vmov 23  }
 0x1e8   : > { %v1388_v16 = vadd.f32 %v1382_v57, %v1348_v32  ;;  %v1448_v60 = vadd.f32 %v7832_v40, %v1423_v23  ;;  %v7875_v40 = vld [vmem:[%s11994_s14] sm:$0xff]  ;;  %v6478_v57 = vsel %vm1601_vm5, 1.0, %v11578_v0  ;;  %s7292_s14 = smov 2   ;;  %v11550_v23 = vmov 14  }
 0x1e9   : > { %v1414_v2 = vpop.permute.xlu0 %1413  ;;  %v1387_v6 = vadd.f32 %v1381_v43, %v1347_v30  ;;  %vm1600_vm4 = vcmp.ge.s32.totalorder %v1598_v18, 0  ;;  %v6479_v43 = vsel %vm1734_vm8, 1.0, %v11578_v0  ;;  %v1497_v18 = vld [vmem:[%s12000_s3] sm:$0xff]  ;;  %s7330_s3 = smov 81  }
 0x1ea   : > { %v1418_v46 = vsel %vm11738_vm15, %v1412_v58, %v1414_v2  ;;  %v1419_v22 = vsel %vm11738_vm15, %v1414_v2, %v1416_v36  ;;  %v1485_v63 = vadd.f32 %v1474_v45, %v1448_v60  ;;  %v6477_v30 = vsel %vm1600_vm4, 1.0, %v11578_v0 }
 0x1eb   : > { %v1424_v1 = vadd.f32 %v1418_v46, %v1387_v6  ;;  %v1425_v55 = vadd.f32 %v1419_v22, %v1388_v16  ;;  %v7884_v2 = vpack.i.bf16 %v6478_v57, %v6477_v30  ;;  %v11552_v46 = vmov 17  }
 0x1ec   : > { %v11574_v22 = vmov 9   ;;  %v12001_v60 = vmov 0   ;;  %vm11836_vm4 = vcmask 64512  }
 0x1ed   : > { %v1478_v9 = vpop.permute.xlu0 %1477  ;;  %v1450_v36 = vadd.f32 %v1444_v5, %v1425_v55  ;;  %v1449_v11 = vadd.f32 %v1443_v37, %v1424_v1  ;;  %11996 = vst [vmem:[#allocation69_spill] sm:$0xff] %v7884_v2  ;;  %v11563_v1 = vmov 11   ;;  %v11998_v55 = vmov 2  }
 0x1ee   : > { %v11554_v37 = vmov 15   ;;  %v11543_v5 = vmov 16  }
 0x1f2   : > { %v1492_v20 = vpop.permute.xlu1 %1491 }
 0x1f3   : > { %v1494_v32 = vadd.f32 %v1492_v20, %v1485_v63 }
 0x1f6   : > { %v1476_v62 = vpop.permute.xlu1 %1475 }
 0x1f7   : > { %v1480_v14 = vsel %vm11739_vm3, %v1474_v45, %v1476_v62  ;;  %v1481_v33 = vsel %vm11739_vm3, %v1476_v62, %v1478_v9  ;;  %v1731_v45 = vadd.s32 2, %v7632_v12  ;;  %v11548_v9 = vmov 18  }
 0x1f8   : > { %v1486_v58 = vadd.f32 %v1480_v14, %v1449_v11  ;;  %v1487_v51 = vadd.f32 %v1481_v33, %v1450_v36  ;;  %v11541_v36 = vmov 19   ;;  %v11546_v62 = vmov 20  }
 0x1f9   : > { %vm1735_vm9 = vcmp.lt.s32.totalorder %v1731_v45, 16  ;;  %v11539_v11 = vmov 21   ;;  %v11545_v14 = vmov 22   ;;  %v11540_v33 = vmov 24  }
 0x1fa   : > { %v1496_v15 = vadd.f32 %v1492_v20, %v1487_v51  ;;  %v1495_v38 = vadd.f32 %v1492_v20, %v1486_v58  ;;  %v6480_v6 = vsel %vm1735_vm9, 1.0, %v11578_v0  ;;  %v11559_v20 = vmov 13  }
 0x1fb   : > { %v7896_v16 = vpack.i.bf16 %v6480_v6, %v6479_v43 }
 0x1fc   : > { %1511 = vrot.lane.b32.xlu0 %v1496_v15, %s11995_s25  ;;  %1509 = vrot.lane.b32.xlu1 %v1495_v38, %s11995_s25 }
 0x1fd   : > { %11997 = vst [vmem:[#allocation70_spill] sm:$0xff] %v7896_v16 }
 0x200   : > { %1501 = vperm.xlu0 %6773, %v1498_v35   ;;  %1507 = vrot.lane.b32.xlu1 %v1494_v32, %s11995_s25  ;;  %s7288_s25 = smov 97  }
 0x204   : > { %6786 = vset.pattern.permute.xlu0 %v11580_v21  ;;  %1646 = vperm.xlu1 %6774, %v7875_v40  }
 0x205   : > { %1757 = vperm.xlu0 %6786, %v7875_v40  }
 0x208   : > { %6776 = vrot.lane.b32.xlu1 %v7654_v25, %s11983_s21 }
 0x209   : > { %6794 = vrot.lane.b32.xlu0 %v7884_v2, %s11982_s17  ;;  %6780 = vset.pattern.permute.xlu1 %v11582_v10 }
 0x20a   : > { %6799 = vset.pattern.permute.xlu0 %v11570_v29 }
 0x20c   : > { %1706 = vperm.xlu1 %6780, %v7875_v40  }
 0x20d   : > { %1844 = vperm.xlu0 %6799, %v7875_v40  }
 0x210   : > { %6782 = vrot.lane.b32.xlu1 %v7652_v24, %s7288_s25  ;;  %s7293_s25 = smov 14  }
 0x211   : > { %6803 = vrot.lane.b32.xlu0 %v7896_v16, %s11534_s8  ;;  %6792 = vset.pattern.permute.xlu1 %v11576_v26  ;;  %s11999_s8 = smov 94  }
 0x212   : > { %6828 = vset.pattern.permute.xlu0 %v11552_v46 }
 0x214   : > { %6788 = vrot.lane.b32.xlu1 %v7896_v16, %s7291_s9  ;;  %s7294_s9 = smov 18  }
 0x215   : > { %6809 = vrot.lane.b32.xlu0 %v7884_v2, %s11979_s7 }
 0x218   : > { %1793 = vperm.xlu1 %6792, %v7875_v40  }
 0x219   : > { %6817 = vrot.lane.b32.xlu0 %v7896_v16, %s7292_s14  ;;  %s11536_s14 = smov 30  }
 0x21c   : > { %6798 = vset.pattern.permute.xlu1 %v11572_v27 }
 0x21d   : > { %6823 = vrot.lane.b32.xlu0 %v7884_v2, %s7293_s25  ;;  %1820 = vperm.xlu1 %6798, %v7875_v40   ;;  %s11561_s25 = smov 31  }
 0x221   : > { %2147 = vperm.xlu0 %6828, %v7875_v40   ;;  %6800 = vset.pattern.permute.xlu1 %v11567_v28 }
 0x222   : > { %1871 = vperm.xlu1 %6800, %v7875_v40  }
 0x225   : > { %6832 = vrot.lane.b32.xlu0 %v7896_v16, %s7294_s9  ;;  %s11584_s9 = smov 34  }
 0x226   : > { %6801 = vset.pattern.permute.xlu1 %v11574_v22  ;;  %6849 = vset.pattern.permute.xlu0 %v11538_v44 }
 0x227   : > { %1908 = vperm.xlu1 %6801, %v7875_v40  }
 0x229   : > { %6838 = vrot.lane.b32.xlu0 %v7884_v2, %s11536_s14  ;;  %s7311_s14 = smov 33  }
 0x22b   : > { %6807 = vset.pattern.permute.xlu1 %v11565_v41 }
 0x22c   : > { %1944 = vperm.xlu1 %6807, %v7875_v40  }
 0x22d   : > { %6844 = vrot.lane.b32.xlu0 %v7654_v25, %s11561_s25  ;;  %s11586_s25 = smov 108  }
 0x230   : > { %6813 = vset.pattern.permute.xlu1 %v11563_v1 }
 0x231   : > { %2348 = vperm.xlu0 %6849, %v7875_v40   ;;  %1971 = vperm.xlu1 %6813, %v7875_v40  }
 0x235   : > { %6850 = vset.pattern.permute.xlu0 %v11998_v55  ;;  %6814 = vset.pattern.permute.xlu1 %v11559_v20 }
 0x236   : > { %1670 = vperm.xlu0 %6850, %v7875_v40   ;;  %2020 = vperm.xlu1 %6814, %v7875_v40  }
 0x23a   : > { %6815 = vset.pattern.permute.xlu1 %v11550_v23  ;;  %6858 = vrot.lane.b32.xlu0 %v7896_v16, %s11584_s9  ;;  %s11594_s9 = smov 124  }
 0x23b   : > { %2057 = vperm.xlu1 %6815, %v7875_v40  }
 0x23e   : > { %6864 = vrot.lane.b32.xlu0 %v7884_v2, %s11999_s8 }
 0x23f   : > { %6821 = vset.pattern.permute.xlu1 %v11554_v37 }
 0x240   : > { %2094 = vperm.xlu1 %6821, %v7875_v40  }
 0x244   : > { %6827 = vset.pattern.permute.xlu1 %v11543_v5 }
 0x245   : > { %2122 = vperm.xlu1 %6827, %v7875_v40  }
 0x249   : > { %6829 = vset.pattern.permute.xlu1 %v11548_v9 }
 0x24a   : > { %2175 = vperm.xlu1 %6829, %v7875_v40  }
 0x24e   : > { %6830 = vset.pattern.permute.xlu1 %v11541_v36 }
 0x24f   : > { %2212 = vperm.xlu1 %6830, %v7875_v40  }
 0x253   : > { %6836 = vset.pattern.permute.xlu1 %v11546_v62 }
 0x254   : > { %2249 = vperm.xlu1 %6836, %v7875_v40  }
 0x258   : > { %6842 = vset.pattern.permute.xlu1 %v11539_v11 }
 0x259   : > { %2286 = vperm.xlu1 %6842, %v7875_v40  }
 0x25d   : > { %6848 = vset.pattern.permute.xlu1 %v11545_v14 }
 0x25e   : > { %2311 = vperm.xlu1 %6848, %v7875_v40  }
 0x262   : > { %6852 = vrot.lane.b32.xlu1 %v7652_v24, %s7311_s14  ;;  %s11604_s14 = smov 125  }
 0x263   : > { %6856 = vset.pattern.permute.xlu1 %v11540_v33 }
 0x266   : > { %2385 = vperm.xlu1 %6856, %v7875_v40  }
 0x26a   : > { %6862 = vset.pattern.permute.xlu1 %v12001_v60  ;;  %v12016_v60 = vmov 1  }
 0x26b   : > { %1625 = vperm.xlu1 %6862, %v7875_v40  }
 0x26e   : > { %v1512_v58 = vpop.permute.xlu0 %1511  ;;  %v1510_v51 = vpop.permute.xlu1 %1509 }
 0x26f   : > { %v1514_v15 = vsel %vm1455_vm10, %v1510_v51, %v1512_v58 }
 0x270   : > { %1551 = vmatprep.subr.mxu0 %v1514_v15 }
 0x272   : > { %v1508_v38 = vpop.permute.xlu1 %1507 }
 0x273   : > { %v1513_v17 = vsel %vm1455_vm10, %v1508_v38, %v1510_v51 }
 0x274   : > { %1552 = vmatpush1.msra.mxu0 %v1513_v17 }
 0x275   : > { %6476 = vmatmul.mubr.msk.f32.vlgmr.msra.gmra.mxu0 %vm11836_vm4, %v1497_v18 }
 0x276   : > { %4139 = vmatprep.mubr.f32.mxu0 %v11578_v0 }
 0x27b   : > { %v7961_v63 = vpop.permute.xlu0 %1501 }
 0x27f   : > { %v7963_v35 = vpop.permute.xlu1 %1646 }
 0x280   : > { %v7965_v32 = vpop.permute.xlu0 %1757 }
 0x283   : > { %v7967_v30 = vpop.permute.xlu1 %6776 }
 0x284   : > { %v11558_v57 = vunpack.i.l.bf16 %v7967_v30  ;;  %v7970_v49 = vpop.permute.xlu0 %6794 }
 0x285   : > { %v11556_v18 = vunpack.i.l.bf16 %v7970_v49 }
 0x286   : > { %v7974_v45 = vmul.f32 0.0, %v11558_v57 }
 0x287   : > { %v7976_v43 = vpop.permute.xlu1 %1706 }
 0x288   : > { %12002 = vst [vmem:[#allocation71_spill] sm:$0xff] %v7974_v45  ;;  %v7978_v6 = vpop.permute.xlu0 %1844  ;;  %v1649_v58 = vmul.f32 %v7963_v35, %v7974_v45  ;;  %v8163_v45 = vld [vmem:[%s11946_s6] sm:$0xff] }
 0x289   : > { %v1847_v62 = vmul.f32 0.0, %v7978_v6 }
 0x28a   : > { %1655 = vrot.lane.b32.xlu1 %v1649_v58, %s11973_s1  ;;  %v8001_v58 = vmul.f32 0.0, %v11556_v18 }
 0x28b   : > { %v7983_v51 = vpop.permute.xlu1 %6782 }
 0x28c   : > { %v11557_v15 = vunpack.i.l.bf16 %v7983_v51  ;;  %v7986_v38 = vpop.permute.xlu0 %6803  ;;  %12004 = vst [vmem:[#allocation73_spill] sm:$0xff] %v8001_v58 }
 0x28e   : > { %v7991_v17 = vmul.f32 0.0, %v11557_v15 }
 0x28f   : > { %v7993_v44 = vpop.permute.xlu1 %6788 }
 0x290   : > { %12003 = vst [vmem:[#allocation72_spill] sm:$0xff] %v7991_v17  ;;  %v7995_v11 = vpop.permute.xlu0 %6809  ;;  %v1709_v33 = vmul.f32 %v7976_v43, %v7991_v17  ;;  %v11588_v29 = vunpack.i.l.bf16 %v7993_v44 }
 0x292   : > { %1715 = vrot.lane.b32.xlu1 %v1709_v33, %s11604_s14  ;;  %v11569_v33 = vunpack.i.l.bf16 %v7986_v38  ;;  %v8054_v26 = vmul.f32 0.0, %v11588_v29  ;;  %s11616_s14 = smov 77  }
 0x293   : > { %v8004_v36 = vpop.permute.xlu1 %1793 }
 0x294   : > { %v8006_v5 = vpop.permute.xlu0 %6817  ;;  %v1796_v14 = vmul.f32 %v8004_v36, %v8001_v58  ;;  %v8026_v15 = vmul.f32 0.0, %v11569_v33  ;;  %12006 = vst [vmem:[#allocation75_spill] sm:$0xff] %v8054_v26 }
 0x295   : > { %v11589_v27 = vunpack.i.h.bf16 %v8006_v5 }
 0x296   : > { %1802 = vrot.lane.b32.xlu1 %v1796_v14, %s11976_s10  ;;  %12005 = vst [vmem:[#allocation74_spill] sm:$0xff] %v8026_v15 }
 0x297   : > { %v8060_v21 = vmul.f32 0.0, %v11589_v27  ;;  %v11599_v27 = vunpack.i.l.bf16 %v7995_v11 }
 0x298   : > { %v8012_v9 = vpop.permute.xlu0 %6823  ;;  %v8014_v23 = vpop.permute.xlu1 %1820 }
 0x299   : > { %12007 = vst [vmem:[#allocation76_spill] sm:$0xff] %v8060_v21 }
 0x29a   : > { %1853 = vrot.lane.b32.xlu1 %v1847_v62, %s11982_s17 }
 0x29c   : > { %v8017_v46 = vpop.permute.xlu0 %2147 }
 0x29d   : > { %v8020_v37 = vpop.permute.xlu1 %1871 }
 0x2a0   : > { %v8022_v18 = vpop.permute.xlu0 %6832 }
 0x2a1   : > { %v11624_v58 = vunpack.i.h.bf16 %v8022_v18 }
 0x2a2   : > { %v8028_v14 = vpop.permute.xlu1 %1908 }
 0x2a3   : > { %v1911_v57 = vmul.f32 %v8028_v14, %v8026_v15 }
 0x2a4   : > { %v8032_v20 = vpop.permute.xlu0 %6838 }
 0x2a5   : > { %1917 = vrot.lane.b32.xlu1 %v1911_v57, %s11586_s25  ;;  %s11597_s25 = smov 92  }
 0x2a7   : > { %v8035_v62 = vpop.permute.xlu1 %1944 }
 0x2a8   : > { %v8037_v1 = vpop.permute.xlu0 %6844 }
 0x2ac   : > { %v8039_v41 = vpop.permute.xlu1 %1971  ;;  %v8041_v28 = vpop.permute.xlu0 %2348 }
 0x2ad   : > { %v1974_v33 = vmul.f32 %v8039_v41, %v7690_v39  ;;  %v1874_v39 = vmul.f32 %v8020_v37, %v7709_v48 }
 0x2af   : > { %1980 = vrot.lane.b32.xlu1 %v1974_v33, %s11983_s21  ;;  %v1760_v33 = vmul.f32 %v7965_v32, %v8054_v26 }
 0x2b1   : > { %v8048_v22 = vpop.permute.xlu0 %1670  ;;  %v8050_v57 = vpop.permute.xlu1 %2020 }
 0x2b2   : > { %v1673_v0 = vmul.f32 0.0, %v8048_v22 }
 0x2b4   : > { %1679 = vrot.lane.b32.xlu0 %v1673_v0, %s11979_s7  ;;  %v1823_v0 = vmul.f32 %v8014_v23, %v7844_v61 }
 0x2b6   : > { %v8062_v10 = vpop.permute.xlu1 %2057 }
 0x2b7   : > { %v2062_v55 = vmul.f32 %v8062_v10, %v8060_v21  ;;  %v8080_v21 = vmul.f32 0.0, %v11599_v27 }
 0x2b8   : > { %1766 = vrot.lane.b32.xlu0 %v1760_v33, %s11594_s9  ;;  %s11602_s9 = smov 109  }
 0x2b9   : > { %2070 = vrot.lane.b32.xlu1 %v2062_v55, %s11597_s25  ;;  %12008 = vst [vmem:[#allocation77_spill] sm:$0xff] %v8080_v21  ;;  %v1947_v15 = vmul.f32 %v8035_v62, %v8080_v21  ;;  %s11608_s25 = smov 79   ;;  %v8121_v21 = vmul.f32 0.0, %v11624_v58 }
 0x2bb   : > { %v8072_v29 = vpop.permute.xlu1 %2094  ;;  %12011 = vst [vmem:[#allocation80_spill] sm:$0xff] %v8121_v21 }
 0x2bc   : > { %1829 = vrot.lane.b32.xlu0 %v1823_v0, %s11972_s18  ;;  %v11610_v0 = vunpack.i.h.bf16 %v8012_v9 }
 0x2c0   : > { %v8082_v33 = vpop.permute.xlu1 %2122  ;;  %1880 = vrot.lane.b32.xlu0 %v1874_v39, %s11602_s9  ;;  %v2025_v39 = vmul.f32 %v8050_v57, %v7720_v53  ;;  %s11622_s9 = smov 93  }
 0x2c1   : > { %v2127_v55 = vmul.f32 %v8082_v33, %v7707_v47  ;;  %v8100_v47 = vmul.f32 0.0, %v11610_v0 }
 0x2c3   : > { %2135 = vrot.lane.b32.xlu1 %v2127_v55, %s11608_s25  ;;  %12009 = vst [vmem:[#allocation78_spill] sm:$0xff] %v8100_v47  ;;  %s11618_s25 = smov 80  }
 0x2c4   : > { %1953 = vrot.lane.b32.xlu0 %v1947_v15, %s11980_s5  ;;  %v11620_v15 = vunpack.i.h.bf16 %v8032_v20 }
 0x2c5   : > { %v8092_v27 = vpop.permute.xlu1 %2175 }
 0x2c6   : > { %v2180_v61 = vmul.f32 %v8092_v27, %v7817_v4  ;;  %v2099_v4 = vmul.f32 %v8072_v29, %v8100_v47  ;;  %v8113_v0 = vmul.f32 0.0, %v11620_v15 }
 0x2c8   : > { %2033 = vrot.lane.b32.xlu0 %v2025_v39, %s11622_s9  ;;  %2188 = vrot.lane.b32.xlu1 %v2180_v61, %s11616_s14  ;;  %12010 = vst [vmem:[#allocation79_spill] sm:$0xff] %v8113_v0  ;;  %v2152_v39 = vmul.f32 0.0, %v8017_v46  ;;  %v11630_v61 = vunpack.i.h.bf16 %v8037_v1  ;;  %s11625_s14 = smov 78   ;;  %s11639_s9 = smov 76  }
 0x2ca   : > { %v8105_v55 = vpop.permute.xlu1 %2212  ;;  %v8131_v15 = vmul.f32 0.0, %v11630_v61 }
 0x2cc   : > { %2107 = vrot.lane.b32.xlu0 %v2099_v4, %s11618_s25  ;;  %s11628_s25 = smov 64   ;;  %v2217_v4 = vmul.f32 %v8105_v55, %v8121_v21  ;;  %12013 = vst [vmem:[#allocation81_spill] sm:$0xff] %v8131_v15 }
 0x2cf   : > { %v8117_v53 = vpop.permute.xlu1 %2249 }
 0x2d0   : > { %v2254_v47 = vmul.f32 %v8117_v53, %v8113_v0  ;;  %2160 = vrot.lane.b32.xlu0 %v2152_v39, %s11625_s14  ;;  %s11636_s14 = smov 63   ;;  %v8141_v39 = vpop.permute.xlu0 %6858 }
 0x2d1   : > { %v11643_v61 = vunpack.i.h.bf16 %v8141_v39 }
 0x2d2   : > { %2262 = vrot.lane.b32.xlu1 %v2254_v47, %s11628_s25  ;;  %s11641_s25 = smov 62  }
 0x2d4   : > { %v8133_v48 = vpop.permute.xlu1 %2286  ;;  %2225 = vrot.lane.b32.xlu0 %v2217_v4, %s11639_s9  ;;  %v2409_v4 = vld [vmem:[%s12012_s19] sm:$0xff]  ;;  %s11649_s9 = smov 60   ;;  %s7331_s19 = smov 83  }
 0x2d5   : > { %v2291_v58 = vmul.f32 %v8133_v48, %v8131_v15 }
 0x2d8   : > { %2299 = vrot.lane.b32.xlu0 %v2291_v58, %s11636_s14  ;;  %v8156_v58 = vmul.f32 0.0, %v11643_v61  ;;  %s11645_s14 = smov 61   ;;  %v2721_v61 = vadd.s32 3, %v7628_v8 }
 0x2d9   : > { %v8139_v47 = vpop.permute.xlu1 %2311 }
 0x2da   : > { %v2316_v0 = vmul.f32 0.0, %v8139_v47  ;;  %12015 = vst [vmem:[#allocation83_spill] sm:$0xff] %v8156_v58  ;;  %vm2725_vm10 = vcmp.lt.s32.totalorder %v2721_v61, 16  ;;  %v12022_v61 = vmov 5  }
 0x2dc   : > { %2324 = vrot.lane.b32.xlu1 %v2316_v0, %s11641_s25  ;;  %s12017_s25 = smov 78  }
 0x2dd   : > { %v8146_v21 = vpop.permute.xlu1 %6852 }
 0x2de   : > { %v11638_v15 = vunpack.i.h.bf16 %v8146_v21 }
 0x2e0   : > { %v8152_v26 = vmul.f32 0.0, %v11638_v15  ;;  %2412 = vperm.xlu1 %6862, %v2409_v4   ;;  %v12018_v4 = vmov 3  }
 0x2e1   : > { %v8158_v17 = vpop.permute.xlu1 %2385 }
 0x2e2   : > { %12014 = vst [vmem:[#allocation82_spill] sm:$0xff] %v8152_v26  ;;  %v2353_v0 = vmul.f32 %v8041_v28, %v8152_v26  ;;  %v2390_v15 = vmul.f32 %v8158_v17, %v8156_v58  ;;  %v2722_v26 = vadd.s32 3, %v7632_v12  ;;  %v12020_v58 = vmov 4  }
 0x2e4   : > { %2361 = vrot.lane.b32.xlu0 %v2353_v0, %s11645_s14  ;;  %6868 = vset.pattern.permute.xlu1 %v12016_v60  ;;  %s12019_s14 = smov 79   ;;  %vm2726_vm5 = vcmp.lt.s32.totalorder %v2722_v26, 16  ;;  %v2518_v0 = vadd.s32 4294967293, %v7628_v8  ;;  %v12023_v8 = vmov 9  }
 0x2e5   : > { %2566 = vperm.xlu1 %6868, %v8163_v45  }
 0x2e6   : > { %vm2520_vm8 = vcmp.ge.s32.totalorder %v2518_v0, 0 }
 0x2e8   : > { %2398 = vrot.lane.b32.xlu0 %v2390_v15, %s11649_s9  ;;  %v2519_v15 = vadd.s32 4294967293, %v7632_v12  ;;  %s7329_s9 = smov 82  }
 0x2e9   : > { %6870 = vrot.lane.b32.xlu1 %v7884_v2, %s12017_s25 }
 0x2ea   : > { %6879 = vset.pattern.permute.xlu1 %v12018_v4  ;;  %v12021_v4 = vmov 0.0   ;;  %vm2521_vm9 = vcmp.ge.s32.totalorder %v2519_v15, 0  ;;  %v11655_v15 = vmov 12  }
 0x2eb   : > { %v6484_v60 = vsel %vm2725_vm10, 1.0, %v12021_v4  ;;  %v6485_v2 = vsel %vm2726_vm5, 1.0, %v12021_v4  ;;  %v6483_v12 = vsel %vm2521_vm9, 1.0, %v12021_v4  ;;  %vm1697_vm10 = vcmask 793600  }
 0x2ec   : > { %2601 = vperm.xlu0 %6850, %v8163_v45   ;;  %v8188_v26 = vpack.i.bf16 %v6485_v2, %v6484_v60  ;;  %v12025_v2 = vmov 6   ;;  %v12026_v60 = vmov 7   ;;  %vm11710_vm5 = vcmask 932864  }
 0x2ed   : > { %6875 = vrot.lane.b32.xlu1 %v7654_v25, %s12019_s14  ;;  %vm2085_vm9 = vcmask 113664  }
 0x2f0   : > { %6880 = vset.pattern.permute.xlu0 %v12020_v58  ;;  %v6482_v58 = vsel %vm2520_vm8, 1.0, %v12021_v4  ;;  %vm1748_vm8 = vcmask 801792  }
 0x2f1   : > { %2661 = vperm.xlu0 %6880, %v8163_v45   ;;  %2625 = vperm.xlu1 %6879, %v8163_v45   ;;  %v8196_v0 = vpack.i.bf16 %v6483_v12, %v6482_v58  ;;  %v12027_v12 = vmov 8   ;;  %v12028_v58 = vmov 10  }
 0x2f5   : > { %6888 = vrot.lane.b32.xlu0 %v7896_v16, %s7329_s9  ;;  %6882 = vrot.lane.b32.xlu1 %v7652_v24, %s7330_s3  ;;  %s12024_s9 = smov 93   ;;  %s12041_s3 = smov 62  }
 0x2f6   : > { %6886 = vset.pattern.permute.xlu1 %v12022_v61  ;;  %6905 = vset.pattern.permute.xlu0 %v12023_v8  ;;  %v12029_v61 = vmov 11   ;;  %v8214_v8 = vpop.permute.xlu0 %6864 }
 0x2f9   : > { %6894 = vrot.lane.b32.xlu0 %v8188_v26, %s7331_s19  ;;  %2697 = vperm.xlu1 %6886, %v8163_v45   ;;  %s12051_s19 = smov 125  }
 0x2fd   : > { %6900 = vrot.lane.b32.xlu0 %v8196_v0, %s12024_s9  ;;  %6892 = vset.pattern.permute.xlu1 %v12025_v2 }
 0x2fe   : > { %2748 = vperm.xlu1 %6892, %v8163_v45  }
 0x301   : > { %2838 = vperm.xlu0 %6905, %v8163_v45  }
 0x302   : > { %6898 = vset.pattern.permute.xlu1 %v12026_v60  ;;  %v12030_v60 = vmov 13  }
 0x303   : > { %2784 = vperm.xlu1 %6898, %v8163_v45  }
 0x305   : > { %6906 = vset.pattern.permute.xlu0 %v11655_v15 }
 0x306   : > { %1995 = vperm.xlu0 %6906, %v7875_v40   ;;  %v8220_v40 = vpop.f32.mrf.mxu0 }
 0x307   : > { %6904 = vset.pattern.permute.xlu1 %v12027_v12  ;;  %12033 = vst [vmem:[#allocation86_spill] sm:$0xff] %v8220_v40  ;;  %v12038_v40 = vunpack.i.l.bf16 %v7967_v30 }
 0x308   : > { %2811 = vperm.xlu1 %6904, %v8163_v45   ;;  %v8224_v4 = vpop.f32.mrf.mxu0 }
 0x309   : > { %12035 = vst [vmem:[#allocation88_spill] sm:$0xff] %v8224_v4 }
 0x30c   : > { %6907 = vset.pattern.permute.xlu1 %v12028_v58 }
 0x30d   : > { %2862 = vperm.xlu1 %6907, %v8163_v45  }
 0x311   : > { %6908 = vset.pattern.permute.xlu1 %v12029_v61 }
 0x312   : > { %2889 = vperm.xlu1 %6908, %v8163_v45  }
 0x316   : > { %6909 = vset.pattern.permute.xlu1 %v12030_v60  ;;  %v8232_v60 = vunpack.i.h.bf16 %v7967_v30 }
 0x318   : > { %12037 = vst [vmem:[#allocation90_spill] sm:$0xff] %v8232_v60  ;;  %v8244_v4 = vsel %vm11740_vm2, %v12038_v40, %v8232_v60 }
 0x319   : > { %12039 = vst [vmem:[#allocation91_spill] sm:$0xff] %v8244_v4 }
 0x326   : > { %v8216_v2 = vpop.permute.xlu0 %1679 }
 0x327   : > { %12031 = vst [vmem:[#allocation84_spill] sm:$0xff] %v8216_v2 }
 0x32a   : > { %v8218_v15 = vpop.permute.xlu0 %1766 }
 0x32b   : > { %12032 = vst [vmem:[#allocation85_spill] sm:$0xff] %v8218_v15 }
 0x32e   : > { %v8222_v12 = vpop.permute.xlu0 %1829 }
 0x32f   : > { %12034 = vst [vmem:[#allocation87_spill] sm:$0xff] %v8222_v12 }
 0x332   : > { %v8226_v58 = vpop.permute.xlu0 %1880 }
 0x333   : > { %12036 = vst [vmem:[#allocation89_spill] sm:$0xff] %v8226_v58 }
 0x335   : > { %v1587_v16 = vpop.f32.mrf.mxu0 }
 0x336   : > { %v8229_v61 = vadd.f32 %v1587_v16, %v7961_v63  ;;  %v8246_v16 = vpop.permute.xlu0 %1953 }
 0x337   : > { %12040 = vst [vmem:[#allocation92_spill] sm:$0xff] %v8246_v16  ;;  %v1589_v15 = vpop.f32.mrf.mxu0  ;;  %v8264_v16 = vunpack.i.h.bf16 %v7970_v49 }
 0x338   : > { %v1848_v24 = vmul.f32 %v7978_v6, %v8229_v61  ;;  %v1674_v25 = vmul.f32 %v8048_v22, %v8229_v61  ;;  %v2314_v58 = vmul.f32 %v8139_v47, %v8229_v61  ;;  %v1643_v12 = vmul.f32 %v8244_v4, %v8229_v61 }
 0x339   : > { %12044 = vst [vmem:[#allocation95_spill] sm:$0xff] %v8264_v16  ;;  %v12045_v4 = vunpack.i.l.bf16 %v7983_v51 }
 0x33a   : > { %1855 = vrot.lane.b32.xlu1 %v1848_v24, %s11982_s17  ;;  %1681 = vrot.lane.b32.xlu0 %v1674_v25, %s11979_s7  ;;  %v8254_v24 = vunpack.i.h.bf16 %v7983_v51  ;;  %v8257_v25 = vadd.f32 %v1589_v15, %v7961_v63  ;;  %v1650_v30 = vmul.f32 %v7963_v35, %v1643_v12  ;;  %v8260_v40 = vpop.permute.xlu0 %2033  ;;  %v12047_v15 = vunpack.i.l.bf16 %v7970_v49 }
 0x33b   : > { %12043 = vst [vmem:[#allocation94_spill] sm:$0xff] %v8260_v40 }
 0x33c   : > { %12042 = vst [vmem:[#allocation93_spill] sm:$0xff] %v8254_v24  ;;  %v1675_v2 = vmul.f32 %v8048_v22, %v8257_v25  ;;  %v8280_v12 = vsel %vm11744_vm14, %v12047_v15, %v8264_v16  ;;  %v8297_v15 = vpop.permute.xlu1 %1625 }
 0x33d   : > { %12048 = vst [vmem:[#allocation97_spill] sm:$0xff] %v8280_v12  ;;  %v1790_v22 = vmul.f32 %v8280_v12, %v8229_v61  ;;  %12054 = vst [vmem:[#allocation101_spill] sm:$0xff] %v8297_v15 }
 0x33e   : > { %2320 = vrot.lane.b32.xlu1 %v2314_v58, %s12041_s3  ;;  %v8269_v58 = vsel %vm1697_vm10, %v12045_v4, %v8254_v24  ;;  %v8285_v51 = vpop.permute.xlu0 %2107  ;;  %vm2203_vm10 = vcmask 146432  }
 0x33f   : > { %12046 = vst [vmem:[#allocation96_spill] sm:$0xff] %v8269_v58  ;;  %v1703_v63 = vmul.f32 %v8269_v58, %v8229_v61  ;;  %12050 = vst [vmem:[#allocation99_spill] sm:$0xff] %v8285_v51  ;;  %v1797_v58 = vmul.f32 %v8004_v36, %v1790_v22 }
 0x341   : > { %v1710_v4 = vmul.f32 %v7976_v43, %v1703_v63 }
 0x342   : > { %1657 = vrot.lane.b32.xlu1 %v1650_v30, %s11973_s1  ;;  %v8283_v30 = vunpack.i.h.bf16 %v7986_v38  ;;  %v8302_v40 = vpop.permute.xlu0 %2160 }
 0x343   : > { %12055 = vst [vmem:[#allocation102_spill] sm:$0xff] %v8302_v40 }
 0x344   : > { %12049 = vst [vmem:[#allocation98_spill] sm:$0xff] %v8283_v30 }
 0x346   : > { %1683 = vrot.lane.b32.xlu1 %v1675_v2, %s11979_s7  ;;  %v12052_v2 = vunpack.i.l.bf16 %v7986_v38  ;;  %v8308_v38 = vpop.permute.xlu1 %1655 }
 0x348   : > { %v8295_v49 = vsel %vm11710_vm5, %v12052_v2, %v8283_v30  ;;  %v8311_v2 = vpop.permute.xlu0 %2225  ;;  %vm11894_vm5 = vcmask 891904  }
 0x349   : > { %12053 = vst [vmem:[#allocation100_spill] sm:$0xff] %v8295_v49  ;;  %v1905_v51 = vmul.f32 %v8295_v49, %v8229_v61  ;;  %12057 = vst [vmem:[#allocation103_spill] sm:$0xff] %v8311_v2 }
 0x34a   : > { %1717 = vrot.lane.b32.xlu1 %v1710_v4, %s12051_s19  ;;  %v1968_v4 = vmul.f32 %v8229_v61, %v7735_v13  ;;  %v8314_v12 = vpop.permute.xlu1 %1715 }
 0x34b   : > { %v1912_v63 = vmul.f32 %v8028_v14, %v1905_v51  ;;  %12058 = vst [vmem:[#allocation104_spill] sm:$0xff] %v8314_v12 }
 0x34c   : > { %v1975_v22 = vmul.f32 %v8039_v41, %v1968_v4  ;;  %v8317_v49 = vpop.permute.xlu0 %2299 }
 0x34d   : > { %12059 = vst [vmem:[#allocation105_spill] sm:$0xff] %v8317_v49 }
 0x34e   : > { %1804 = vrot.lane.b32.xlu1 %v1797_v58, %s11976_s10  ;;  %v8319_v58 = vpop.permute.xlu1 %1802 }
 0x34f   : > { %12060 = vst [vmem:[#allocation106_spill] sm:$0xff] %v8319_v58 }
 0x352   : > { %1919 = vrot.lane.b32.xlu1 %v1912_v63, %s12056_s29  ;;  %v8323_v40 = vpop.permute.xlu1 %1853 }
 0x353   : > { %12062 = vst [vmem:[#allocation108_spill] sm:$0xff] %v8323_v40 }
 0x356   : > { %1982 = vrot.lane.b32.xlu1 %v1975_v22, %s11983_s21  ;;  %v8321_v51 = vpop.permute.xlu0 %2361  ;;  %v8327_v15 = vpop.permute.xlu1 %1917 }
 0x357   : > { %12061 = vst [vmem:[#allocation107_spill] sm:$0xff] %v8321_v51  ;;  %12064 = vst [vmem:[#allocation110_spill] sm:$0xff] %v8327_v15 }
 0x35a   : > { %v8325_v13 = vpop.permute.xlu0 %2398  ;;  %v8331_v2 = vpop.permute.xlu1 %1980 }
 0x35b   : > { %12063 = vst [vmem:[#allocation109_spill] sm:$0xff] %v8325_v13  ;;  %12066 = vst [vmem:[#allocation112_spill] sm:$0xff] %v8331_v2 }
 0x35e   : > { %v8335_v12 = vpop.permute.xlu1 %2070 }
 0x35f   : > { %12068 = vst [vmem:[#allocation114_spill] sm:$0xff] %v8335_v12  ;;  %v8357_v12 = vunpack.i.h.bf16 %v7993_v44 }
 0x361   : > { %12078 = vst [vmem:[#allocation124_spill] sm:$0xff] %v8357_v12 }
 0x362   : > { %v8339_v49 = vpop.permute.xlu1 %2135 }
 0x363   : > { %12070 = vst [vmem:[#allocation116_spill] sm:$0xff] %v8339_v49  ;;  %v2150_v49 = vmul.f32 %v8017_v46, %v8229_v61 }
 0x366   : > { %v8343_v51 = vpop.permute.xlu1 %2188 }
 0x367   : > { %v8329_v63 = vpop.permute.xlu0 %2601  ;;  %12072 = vst [vmem:[#allocation118_spill] sm:$0xff] %v8343_v51 }
 0x368   : > { %12065 = vst [vmem:[#allocation111_spill] sm:$0xff] %v8329_v63  ;;  %v8352_v63 = vunpack.i.l.bf16 %v8006_v5 }
 0x36a   : > { %v8347_v13 = vpop.permute.xlu1 %2262  ;;  %12076 = vst [vmem:[#allocation122_spill] sm:$0xff] %v8352_v63 }
 0x36b   : > { %12074 = vst [vmem:[#allocation120_spill] sm:$0xff] %v8347_v13 }
 0x36c   : > { %v8333_v4 = vpop.permute.xlu0 %2661 }
 0x36d   : > { %12067 = vst [vmem:[#allocation113_spill] sm:$0xff] %v8333_v4 }
 0x36e   : > { %v8354_v4 = vpop.permute.xlu1 %2324 }
 0x36f   : > { %12077 = vst [vmem:[#allocation123_spill] sm:$0xff] %v8354_v4 }
 0x370   : > { %v8337_v22 = vpop.permute.xlu0 %6888 }
 0x371   : > { %12069 = vst [vmem:[#allocation115_spill] sm:$0xff] %v8337_v22 }
 0x372   : > { %v8363_v13 = vpop.permute.xlu1 %2412 }
 0x373   : > { %12079 = vst [vmem:[#allocation125_spill] sm:$0xff] %v8363_v13  ;;  %v2118_v13 = vmul.f32 %v7754_v31, %v8229_v61  ;;  %v8395_v31 = vunpack.i.l.bf16 %v8032_v20 }
 0x374   : > { %v8341_v58 = vpop.permute.xlu0 %6894 }
 0x375   : > { %12071 = vst [vmem:[#allocation117_spill] sm:$0xff] %v8341_v58  ;;  %12084 = vst [vmem:[#allocation127_spill] sm:$0xff] %v8395_v31 }
 0x378   : > { %v8345_v40 = vpop.permute.xlu0 %6900 }
 0x379   : > { %12073 = vst [vmem:[#allocation119_spill] sm:$0xff] %v8345_v40  ;;  %v2053_v40 = vmul.f32 %v8352_v63, %v8229_v61 }
 0x37b   : > { %v2060_v2 = vmul.f32 %v8062_v10, %v2053_v40 }
 0x37c   : > { %v8349_v15 = vpop.permute.xlu0 %2838 }
 0x37d   : > { %12075 = vst [vmem:[#allocation121_spill] sm:$0xff] %v8349_v15  ;;  %v12080_v15 = vunpack.i.l.bf16 %v7993_v44 }
 0x37f   : > { %v8370_v4 = vsel %vm1748_vm8, %v12080_v15, %v8357_v12  ;;  %v2125_v15 = vmul.f32 %v8082_v33, %v2118_v13  ;;  %v8402_v13 = vunpack.i.h.bf16 %v7995_v11  ;;  %vm11737_vm8 = vcmask 252928  }
 0x380   : > { %12081 = vst [vmem:[#allocation126_spill] sm:$0xff] %v8370_v4 }
 0x381   : > { %v1996_v22 = vpop.permute.xlu0 %1995  ;;  %12085 = vst [vmem:[#allocation128_spill] sm:$0xff] %v8402_v13 }
 0x382   : > { %v1998_v58 = vmul.f32 %v1996_v22, %v8229_v61  ;;  %v1999_v51 = vmul.f32 %v1996_v22, %v8257_v25  ;;  %v1754_v22 = vmul.f32 %v8370_v4, %v8229_v61  ;;  %v12142_v4 = vld [vmem:[#allocation125_spill] sm:$0xff] }
 0x384   : > { %2002 = vrot.lane.b32.xlu0 %v1998_v58, %s11999_s8  ;;  %2004 = vrot.lane.b32.xlu1 %v1999_v51, %s11999_s8  ;;  %v8381_v58 = vpop.permute.xlu1 %2566  ;;  %v1761_v44 = vmul.f32 %v7965_v32, %v1754_v22  ;;  %v1817_v51 = vmul.f32 %v8229_v61, %v7838_v56 }
 0x386   : > { %v1824_v40 = vmul.f32 %v8014_v23, %v1817_v51  ;;  %v2245_v51 = vmul.f32 %v8395_v31, %v8229_v61 }
 0x388   : > { %2156 = vrot.lane.b32.xlu0 %v2150_v49, %s12017_s25  ;;  %2066 = vrot.lane.b32.xlu1 %v2060_v2, %s12082_s11  ;;  %v2151_v49 = vmul.f32 %v8017_v46, %v8257_v25  ;;  %v2171_v2 = vmul.f32 %v7781_v54, %v8229_v61  ;;  %v8397_v22 = vpop.permute.xlu1 %6870 }
 0x38a   : > { %v2178_v46 = vmul.f32 %v8092_v27, %v2171_v2  ;;  %v2252_v2 = vmul.f32 %v8117_v53, %v2245_v51 }
 0x38c   : > { %1768 = vrot.lane.b32.xlu0 %v1761_v44, %s12083_s26  ;;  %2131 = vrot.lane.b32.xlu1 %v2125_v15, %s12019_s14  ;;  %v1849_v44 = vmul.f32 %v7978_v6, %v8257_v25  ;;  %v1868_v15 = vmul.f32 %v8229_v61, %v7760_v34  ;;  %v8419_v54 = vpop.permute.xlu1 %6875 }
 0x38e   : > { %v1875_v6 = vmul.f32 %v8020_v37, %v1868_v15  ;;  %v8434_v15 = vunpack.i.l.bf16 %v8012_v9 }
 0x390   : > { %1831 = vrot.lane.b32.xlu0 %v1824_v40, %s11972_s18  ;;  %2158 = vrot.lane.b32.xlu1 %v2151_v49, %s12017_s25  ;;  %v12087_v40 = vunpack.i.l.bf16 %v7995_v11  ;;  %12091 = vst [vmem:[#allocation130_spill] sm:$0xff] %v8434_v15  ;;  %v8436_v51 = vpop.permute.xlu1 %2625 }
 0x392   : > { %v8417_v49 = vsel %vm1285_vm12, %v12087_v40, %v8402_v13  ;;  %v2016_v40 = vmul.f32 %v7771_v50, %v8229_v61 }
 0x393   : > { %12088 = vst [vmem:[#allocation129_spill] sm:$0xff] %v8417_v49  ;;  %v1941_v34 = vmul.f32 %v8417_v49, %v8229_v61 }
 0x394   : > { %1857 = vrot.lane.b32.xlu0 %v1849_v44, %s11982_s17  ;;  %2184 = vrot.lane.b32.xlu1 %v2178_v46, %s12086_s2  ;;  %v1755_v44 = vmul.f32 %v8357_v12, %v8257_v25 }
 0x395   : > { %v1948_v11 = vmul.f32 %v8035_v62, %v1941_v34  ;;  %v8444_v34 = vunpack.i.l.bf16 %v8022_v18 }
 0x396   : > { %v1762_v46 = vmul.f32 %v7965_v32, %v1755_v44  ;;  %v8448_v32 = vpop.permute.xlu1 %6882 }
 0x397   : > { %12092 = vst [vmem:[#allocation131_spill] sm:$0xff] %v8444_v34 }
 0x398   : > { %1882 = vrot.lane.b32.xlu0 %v1875_v6, %s12089_s16  ;;  %2258 = vrot.lane.b32.xlu1 %v2252_v2, %s12090_s22  ;;  %v2023_v6 = vmul.f32 %v8050_v57, %v2016_v40  ;;  %v2090_v2 = vmul.f32 %v8434_v15, %v8229_v61  ;;  %v8456_v40 = vunpack.i.l.bf16 %v8037_v1 }
 0x39a   : > { %v2097_v44 = vmul.f32 %v8072_v29, %v2090_v2  ;;  %12093 = vst [vmem:[#allocation132_spill] sm:$0xff] %v8456_v40  ;;  %v2282_v50 = vmul.f32 %v8456_v40, %v8229_v61  ;;  %v8467_v49 = vpop.permute.xlu1 %2697 }
 0x39c   : > { %1955 = vrot.lane.b32.xlu0 %v1948_v11, %s11980_s5  ;;  %1770 = vrot.lane.b32.xlu1 %v1762_v46, %s12083_s26  ;;  %v2208_v11 = vmul.f32 %v8444_v34, %v8229_v61  ;;  %v1818_v46 = vmul.f32 %v7834_v52, %v8257_v25  ;;  %v1869_v52 = vmul.f32 %v7746_v19, %v8257_v25 }
 0x39e   : > { %v2215_v12 = vmul.f32 %v8105_v55, %v2208_v11  ;;  %v1825_v2 = vmul.f32 %v8014_v23, %v1818_v46  ;;  %v1942_v11 = vmul.f32 %v8402_v13, %v8257_v25  ;;  %v8476_v23 = vunpack.i.l.bf16 %v8146_v21  ;;  %v8480_v46 = vpop.permute.xlu1 %2748 }
 0x3a0   : > { %2029 = vrot.lane.b32.xlu0 %v2023_v6, %s12024_s9  ;;  %2953 = vperm.xlu1 %6909, %v8163_v45   ;;  %v12095_v6 = vmov 15   ;;  %12097 = vst [vmem:[#allocation133_spill] sm:$0xff] %v8476_v23 }
 0x3a2   : > { %v8505_v13 = vpop.permute.xlu1 %2784 }
 0x3a4   : > { %2103 = vrot.lane.b32.xlu0 %v2097_v44, %s12094_s28  ;;  %6911 = vrot.lane.b32.xlu1 %v8188_v26, %s7333_s15  ;;  %v2289_v44 = vmul.f32 %v8133_v48, %v2282_v50  ;;  %s12098_s15 = smov 63   ;;  %v1949_v50 = vmul.f32 %v8035_v62, %v1942_v11 }
 0x3a5   : > { %6921 = vset.pattern.permute.xlu1 %v12095_v6  ;;  %v1876_v6 = vmul.f32 %v8020_v37, %v1869_v52  ;;  %v2344_v52 = vmul.f32 %v8476_v23, %v8229_v61  ;;  %v2017_v37 = vmul.f32 %v8257_v25, %v7795_v59 }
 0x3a7   : > { %v2351_v62 = vmul.f32 %v8041_v28, %v2344_v52  ;;  %v1644_v52 = vmul.f32 %v8232_v60, %v8257_v25 }
 0x3a8   : > { %2221 = vrot.lane.b32.xlu0 %v2215_v12, %s12096_s20  ;;  %1833 = vrot.lane.b32.xlu1 %v1825_v2, %s11972_s18  ;;  %v2315_v12 = vmul.f32 %v8139_v47, %v8257_v25  ;;  %v8490_v2 = vunpack.i.l.bf16 %v8141_v39  ;;  %v2024_v47 = vmul.f32 %v8050_v57, %v2017_v37 }
 0x3aa   : > { %12099 = vst [vmem:[#allocation134_spill] sm:$0xff] %v8490_v2  ;;  %v2381_v11 = vmul.f32 %v8490_v2, %v8229_v61 }
 0x3ac   : > { %2295 = vrot.lane.b32.xlu0 %v2289_v44, %s12098_s15  ;;  %1884 = vrot.lane.b32.xlu1 %v1876_v6, %s12089_s16  ;;  %v12100_v6 = vunpack.i.h.bf16 %v8012_v9  ;;  %v12103_v9 = vunpack.i.h.bf16 %v8022_v18  ;;  %v1651_v18 = vmul.f32 %v7963_v35, %v1644_v52  ;;  %v12108_v52 = vmov 17  }
 0x3ae   : > { %v8497_v44 = vsel %vm2085_vm9, %v8434_v15, %v12100_v6  ;;  %v8522_v6 = vpop.permute.xlu1 %2811  ;;  %vm2339_vm9 = vcmask 269312  }
 0x3af   : > { %12101 = vst [vmem:[#allocation135_spill] sm:$0xff] %v8497_v44  ;;  %v2091_v59 = vmul.f32 %v8497_v44, %v8257_v25  ;;  %v7345_v44 = vmov 32  }
 0x3b0   : > { %2322 = vrot.lane.b32.xlu0 %v2315_v12, %s12041_s3  ;;  %1957 = vrot.lane.b32.xlu1 %v1949_v50, %s11980_s5  ;;  %v8512_v12 = vsel %vm2203_vm10, %v8444_v34, %v12103_v9  ;;  %v2388_v50 = vmul.f32 %v8158_v17, %v2381_v11  ;;  %v1791_v11 = vmul.f32 %v8264_v16, %v8257_v25  ;;  %v12106_v9 = vunpack.i.h.bf16 %v8037_v1 }
 0x3b1   : > { %12104 = vst [vmem:[#allocation136_spill] sm:$0xff] %v8512_v12  ;;  %v2098_v57 = vmul.f32 %v8072_v29, %v2091_v59  ;;  %v2209_v37 = vmul.f32 %v8512_v12, %v8257_v25  ;;  %vm2048_vm10 = vcmask 15360   ;;  %v12109_v1 = vunpack.i.h.bf16 %v8146_v21 }
 0x3b2   : > { %v8530_v29 = vpop.permute.xlu1 %2862  ;;  %v1798_v35 = vmul.f32 %v8004_v36, %v1791_v11  ;;  %v12111_v11 = vunpack.i.h.bf16 %v8006_v5  ;;  %v7343_v16 = vmov 33  }
 0x3b4   : > { %2357 = vrot.lane.b32.xlu0 %v2351_v62, %s12102_s0  ;;  %2031 = vrot.lane.b32.xlu1 %v2024_v47, %s12024_s9  ;;  %v2216_v62 = vmul.f32 %v8105_v55, %v2209_v37  ;;  %v1704_v47 = vmul.f32 %v8254_v24, %v8257_v25  ;;  %v8561_v37 = vsel %vm2339_vm9, %v8476_v23, %v12109_v1  ;;  %vm11736_vm9 = vcmask 244736   ;;  %v12136_v24 = vld [vmem:[#allocation92_spill] sm:$0xff] }
 0x3b5   : > { %12110 = vst [vmem:[#allocation138_spill] sm:$0xff] %v8561_v37  ;;  %v8573_v21 = vsel %vm2048_vm10, %v8352_v63, %v12111_v11  ;;  %vm1721_vm10 = vcmask 1022976  }
 0x3b6   : > { %v1711_v59 = vmul.f32 %v7976_v43, %v1704_v47  ;;  %v8539_v55 = vpop.permute.xlu1 %2889  ;;  %v8547_v43 = vsel %vm11737_vm8, %v8456_v40, %v12106_v9  ;;  %12112 = vst [vmem:[#allocation139_spill] sm:$0xff] %v8573_v21  ;;  %v2054_v5 = vmul.f32 %v8573_v21, %v8257_v25  ;;  %vm2035_vm8 = vcmask 760832  }
 0x3b7   : > { %12107 = vst [vmem:[#allocation137_spill] sm:$0xff] %v8547_v43  ;;  %v2283_v36 = vmul.f32 %v8547_v43, %v8257_v25 }
 0x3b8   : > { %2394 = vrot.lane.b32.xlu0 %v2388_v50, %s12105_s23  ;;  %2105 = vrot.lane.b32.xlu1 %v2098_v57, %s12094_s28  ;;  %v1906_v50 = vmul.f32 %v8283_v30, %v8257_v25 }
 0x3b9   : > { %v2290_v47 = vmul.f32 %v8133_v48, %v2283_v36  ;;  %v12116_v36 = vmov 18  }
 0x3ba   : > { %v8553_v57 = vpop.permute.xlu1 %1855 }
 0x3bc   : > { %1659 = vrot.lane.b32.xlu0 %v1651_v18, %s11973_s1  ;;  %2223 = vrot.lane.b32.xlu1 %v2216_v62, %s12096_s20  ;;  %v1913_v18 = vmul.f32 %v8028_v14, %v1906_v50  ;;  %v1969_v62 = vmul.f32 %v7729_v7, %v8257_v25  ;;  %v12114_v14 = vunpack.i.h.bf16 %v8141_v39  ;;  %v2061_v39 = vmul.f32 %v8062_v10, %v2054_v5 }
 0x3bd   : > { %v12117_v10 = vunpack.i.h.bf16 %v8032_v20 }
 0x3be   : > { %v8581_v9 = vsel %vm2376_vm0, %v8490_v2, %v12114_v14  ;;  %v8583_v48 = vpop.permute.xlu1 %2320  ;;  %v1976_v50 = vmul.f32 %v8039_v41, %v1969_v62  ;;  %v8754_v2 = vunpack.i.h.bf16 %v8214_v8 }
 0x3bf   : > { %12115 = vst [vmem:[#allocation140_spill] sm:$0xff] %v8581_v9  ;;  %v8610_v11 = vsel %vm11736_vm9, %v8395_v31, %v12117_v10  ;;  %vm11743_vm9 = vcmask 752640  }
 0x3c0   : > { %1719 = vrot.lane.b32.xlu0 %v1711_v59, %s12051_s19  ;;  %6917 = vrot.lane.b32.xlu1 %v8196_v0, %s12089_s16  ;;  %v2345_v59 = vmul.f32 %v8561_v37, %v8257_v25  ;;  %12118 = vst [vmem:[#allocation141_spill] sm:$0xff] %v8610_v11  ;;  %v1622_v34 = vmul.f32 %v8754_v2, %v8257_v25 }
 0x3c2   : > { %v2352_v1 = vmul.f32 %v8041_v28, %v2345_v59  ;;  %v8598_v62 = vpop.permute.xlu1 %1657  ;;  %v2172_v59 = vmul.f32 %v8257_v25, %v7815_v3 }
 0x3c4   : > { %1806 = vrot.lane.b32.xlu0 %v1798_v35, %s11976_s10  ;;  %3016 = vperm.xlu1 %6921, %v8163_v45   ;;  %v12113_v35 = vmov 14   ;;  %v2179_v14 = vmul.f32 %v8092_v27, %v2172_v59  ;;  %v12120_v27 = vmov 22   ;;  %v8647_v59 = vpop.permute.xlu0 %1681 }
 0x3c8   : > { %2916 = vperm.xlu0 %6906, %v8163_v45   ;;  %6923 = vset.pattern.permute.xlu1 %v12108_v52  ;;  %v12128_v52 = vld [vmem:[#allocation104_spill] sm:$0xff] }
 0x3c9   : > { %3067 = vperm.xlu1 %6923, %v8163_v45  }
 0x3cc   : > { %1921 = vrot.lane.b32.xlu0 %v1913_v18, %s12056_s29  ;;  %v2382_v18 = vmul.f32 %v8581_v9, %v8257_v25 }
 0x3cd   : > { %2297 = vrot.lane.b32.xlu1 %v2290_v47, %s12098_s15  ;;  %6915 = vset.pattern.permute.xlu0 %v12113_v35  ;;  %v2119_v47 = vmul.f32 %v8257_v25, %v7808_v42 }
 0x3ce   : > { %6924 = vset.pattern.permute.xlu1 %v12116_v36  ;;  %v2389_v41 = vmul.f32 %v8158_v17, %v2382_v18  ;;  %v8613_v17 = vpop.permute.xlu1 %1683  ;;  %v12121_v18 = vmov 16  }
 0x3cf   : > { %v2126_v28 = vmul.f32 %v8082_v33, %v2119_v47  ;;  %v2246_v33 = vmul.f32 %v8610_v11, %v8257_v25  ;;  %v11700_v47 = vunpack.i.l.bf16 %v8214_v8  ;;  %v7339_v11 = vmov 29  }
 0x3d0   : > { %1984 = vrot.lane.b32.xlu0 %v1976_v50, %s11983_s21  ;;  %v12119_v50 = vmov 20  }
 0x3d1   : > { %2359 = vrot.lane.b32.xlu1 %v2352_v1, %s12102_s0  ;;  %v2253_v20 = vmul.f32 %v8117_v53, %v2246_v33  ;;  %v7335_v33 = vmov 25  }
 0x3d2   : > { %v8622_v5 = vpop.permute.xlu1 %1717 }
 0x3d4   : > { %2068 = vrot.lane.b32.xlu0 %v2061_v39, %s12082_s11  ;;  %v12122_v39 = vmov 19  }
 0x3d5   : > { %2396 = vrot.lane.b32.xlu1 %v2389_v41, %s12105_s23  ;;  %v12123_v41 = vmov 24  }
 0x3d6   : > { %v8629_v1 = vpop.permute.xlu1 %1804 }
 0x3d8   : > { %2133 = vrot.lane.b32.xlu0 %v2126_v28, %s12019_s14  ;;  %v8645_v28 = vmul.f32 0.0, %v11700_v47 }
 0x3d9   : > { %3094 = vperm.xlu1 %6924, %v8163_v45  }
 0x3da   : > { %v8636_v53 = vpop.permute.xlu1 %1919 }
 0x3dc   : > { %2186 = vrot.lane.b32.xlu0 %v2179_v14, %s12086_s2  ;;  %v12124_v14 = vmov 21  }
 0x3dd   : > { %6926 = vset.pattern.permute.xlu1 %v12119_v50 }
 0x3de   : > { %3158 = vperm.xlu1 %6926, %v8163_v45   ;;  %v8649_v10 = vpop.permute.xlu1 %1982 }
 0x3e0   : > { %2260 = vrot.lane.b32.xlu0 %v2253_v20, %s12090_s22  ;;  %v1661_v20 = vsel %vm1234_vm6, %v8308_v38, %v8598_v62 }
 0x3e2   : > { %6928 = vrot.lane.b32.xlu1 %v8188_v26, %s11702_s4  ;;  %s7338_s4 = smov 3  }
 0x3e3   : > { %6938 = vset.pattern.permute.xlu1 %v12120_v27  ;;  %v12125_v27 = vld [vmem:[#allocation101_spill] sm:$0xff] }
 0x3e4   : > { %2989 = vperm.xlu0 %6915, %v8163_v45  }
 0x3e6   : > { %6934 = vrot.lane.b32.xlu1 %v8196_v0, %s12051_s19 }
 0x3e8   : > { %6922 = vset.pattern.permute.xlu0 %v12121_v18  ;;  %v12127_v18 = vld [vmem:[#allocation84_spill] sm:$0xff] }
 0x3e9   : > { %3043 = vperm.xlu0 %6922, %v8163_v45   ;;  %v1685_v35 = vsel %vm1285_vm12, %v12127_v18, %v8647_v59  ;;  %v12129_v18 = vld [vmem:[#allocation85_spill] sm:$0xff]  ;;  %12139 = vst [vmem:[#allocation84_spill] sm:$0xff] %v8754_v2 }
 0x3ea   : > { %3221 = vperm.xlu1 %6938, %v8163_v45  }
 0x3ed   : > { %6925 = vset.pattern.permute.xlu0 %v12122_v39  ;;  %v12126_v39 = vmov 23  }
 0x3ee   : > { %3121 = vperm.xlu0 %6925, %v8163_v45   ;;  %6940 = vset.pattern.permute.xlu1 %v12123_v41  ;;  %v1628_v41 = vmul.f32 %v12125_v27, %v8645_v28 }
 0x3ef   : > { %3272 = vperm.xlu1 %6940, %v8163_v45  }
 0x3f2   : > { %6932 = vset.pattern.permute.xlu0 %v12124_v14  ;;  %v1666_v14 = vadd.f32 %v1661_v20, %v1628_v41  ;;  %v7337_v41 = vmov 26  }
 0x3f3   : > { %3194 = vperm.xlu0 %6932, %v8163_v45   ;;  %6941 = vset.pattern.permute.xlu1 %v7335_v33  ;;  %v7336_v33 = vmov 27  }
 0x3f4   : > { %3297 = vperm.xlu1 %6941, %v8163_v45   ;;  %v1690_v20 = vadd.f32 %v1685_v35, %v1666_v14  ;;  %v12130_v35 = vld [vmem:[#allocation106_spill] sm:$0xff] }
 0x3f5   : > { %v1808_v14 = vsel %vm1321_vm13, %v12130_v35, %v8629_v1 }
 0x3f6   : > { %v8659_v47 = vpop.permute.xlu0 %2002  ;;  %v8661_v50 = vpop.permute.xlu1 %2004 }
 0x3f7   : > { %6939 = vset.pattern.permute.xlu0 %v12126_v39  ;;  %v1722_v39 = vsel %vm1721_vm10, %v12128_v52, %v8622_v5 }
 0x3f8   : > { %3248 = vperm.xlu0 %6939, %v8163_v45   ;;  %6943 = vset.pattern.permute.xlu1 %v7336_v33  ;;  %v1727_v33 = vadd.f32 %v1722_v39, %v1690_v20  ;;  %v12131_v20 = vld [vmem:[#allocation87_spill] sm:$0xff] }
 0x3f9   : > { %3361 = vperm.xlu1 %6943, %v8163_v45  }
 0x3fa   : > { %v8666_v36 = vpop.permute.xlu0 %2156  ;;  %v8668_v38 = vpop.permute.xlu1 %2066 }
 0x3fc   : > { %6942 = vset.pattern.permute.xlu0 %v7337_v41  ;;  %v7340_v41 = vmov 28  }
 0x3fd   : > { %3324 = vperm.xlu0 %6942, %v8163_v45   ;;  %6945 = vrot.lane.b32.xlu1 %v8188_v26, %s7338_s4  ;;  %s7347_s4 = smov 19  }
 0x3fe   : > { %v8678_v9 = vpop.permute.xlu0 %1768  ;;  %6955 = vset.pattern.permute.xlu1 %v7339_v11  ;;  %v8683_v42 = vpop.permute.xlu1 %2131 }
 0x3ff   : > { %v1773_v3 = vsel %vm11902_vm7, %v12129_v18, %v8678_v9 }
 0x400   : > { %v1778_v52 = vadd.f32 %v1773_v3, %v1727_v33  ;;  %v7342_v33 = vmov 30  }
 0x401   : > { %6949 = vset.pattern.permute.xlu0 %v7340_v41  ;;  %6951 = vrot.lane.b32.xlu1 %v8196_v0, %s7341_s13  ;;  %v12132_v41 = vld [vmem:[#allocation108_spill] sm:$0xff]  ;;  %s12143_s13 = smov 34  }
 0x402   : > { %3398 = vperm.xlu0 %6949, %v8163_v45   ;;  %v8690_v39 = vpop.permute.xlu0 %1831  ;;  %v1813_v11 = vadd.f32 %v1808_v14, %v1778_v52  ;;  %v8695_v21 = vpop.permute.xlu1 %2158  ;;  %v1859_v52 = vsel %vm11744_vm14, %v12132_v41, %v8553_v57  ;;  %v12133_v14 = vmov 0   ;;  %v12135_v41 = vld [vmem:[#allocation110_spill] sm:$0xff] }
 0x403   : > { %v1835_v18 = vsel %vm11745_vm11, %v12131_v20, %v8690_v39  ;;  %v1924_v37 = vsel %vm11741_vm1, %v12135_v41, %v8636_v53 }
 0x404   : > { %v1840_v3 = vadd.f32 %v1835_v18, %v1813_v11  ;;  %v12134_v18 = vld [vmem:[#allocation89_spill] sm:$0xff] }
 0x405   : > { %3425 = vperm.xlu1 %6955, %v8163_v45  }
 0x406   : > { %6956 = vset.pattern.permute.xlu0 %v7342_v33  ;;  %v8698_v35 = vpop.permute.xlu0 %1857  ;;  %v1864_v7 = vadd.f32 %v1859_v52, %v1840_v3  ;;  %v8708_v11 = vpop.permute.xlu1 %2184  ;;  %v7344_v52 = vmov 31  }
 0x407   : > { %3452 = vperm.xlu0 %6956, %v8163_v45  }
 0x409   : > { %6957 = vset.pattern.permute.xlu1 %v12133_v14 }
 0x40a   : > { %v8705_v20 = vpop.permute.xlu0 %1882  ;;  %2545 = vperm.xlu1 %6957, %v8163_v45  }
 0x40b   : > { %v1887_v33 = vsel %vm11894_vm5, %v12134_v18, %v8705_v20  ;;  %6960 = vrot.lane.b32.xlu0 %v8196_v0, %s12086_s2 }
 0x40c   : > { %v1892_v30 = vadd.f32 %v1887_v33, %v1864_v7  ;;  %6965 = vset.pattern.permute.xlu0 %v7343_v16  ;;  %v12137_v7 = vld [vmem:[#allocation112_spill] sm:$0xff]  ;;  %v8727_v33 = vpop.permute.xlu1 %2258 }
 0x40d   : > { %v1986_v16 = vsel %vm11740_vm2, %v12137_v7, %v8649_v10 }
 0x40e   : > { %v8718_v43 = vpop.permute.xlu0 %1955  ;;  %v1929_v3 = vadd.f32 %v1924_v37, %v1892_v30  ;;  %6958 = vset.pattern.permute.xlu1 %v7344_v52  ;;  %v7346_v52 = vmov 34  }
 0x40f   : > { %v1959_v12 = vsel %vm11738_vm15, %v12136_v24, %v8718_v43  ;;  %3476 = vperm.xlu1 %6958, %v8163_v45  }
 0x410   : > { %v1964_v18 = vadd.f32 %v1959_v12, %v1929_v3  ;;  %v1771_v12 = vpop.permute.xlu1 %1770 }
 0x412   : > { %v1991_v60 = vadd.f32 %v1986_v16, %v1964_v18  ;;  %v8729_v41 = vpop.permute.xlu0 %2029 }
 0x413   : > { %6964 = vset.pattern.permute.xlu1 %v7345_v44 }
 0x414   : > { %v2010_v30 = vadd.f32 %v8659_v47, %v1991_v60  ;;  %3503 = vperm.xlu1 %6964, %v8163_v45  }
 0x416   : > { %v2041_v24 = vadd.f32 %v8729_v41, %v2010_v30  ;;  %v8734_v37 = vpop.permute.xlu0 %2103 }
 0x418   : > { %v2078_v3 = vadd.f32 %v8668_v38, %v2041_v24  ;;  %6966 = vset.pattern.permute.xlu1 %v7346_v52 }
 0x41a   : > { %v2115_v7 = vadd.f32 %v8734_v37, %v2078_v3  ;;  %v8738_v18 = vpop.permute.xlu0 %2221 }
 0x41b   : > { %v8740_v16 = vpop.permute.xlu1 %2953 }
 0x41c   : > { %12138 = vst [vmem:[#allocation101_spill] sm:$0xff] %v8740_v16  ;;  %v2143_v44 = vadd.f32 %v8683_v42, %v2115_v7 }
 0x41e   : > { %v2168_v60 = vadd.f32 %v8666_v36, %v2143_v44  ;;  %v8744_v45 = vpop.permute.xlu0 %2295 }
 0x41f   : > { %v8746_v30 = vpop.permute.xlu1 %6911 }
 0x420   : > { %v2196_v19 = vadd.f32 %v8708_v11, %v2168_v60  ;;  %v12140_v60 = vunpack.i.l.bf16 %v8214_v8 }
 0x422   : > { %v2233_v24 = vadd.f32 %v8738_v18, %v2196_v19  ;;  %v8750_v23 = vpop.permute.xlu0 %2322  ;;  %v8764_v19 = vsel %vm11739_vm3, %v12140_v60, %v8754_v2 }
 0x423   : > { %v1834_v52 = vpop.permute.xlu1 %1833  ;;  %12141 = vst [vmem:[#allocation104_spill] sm:$0xff] %v8764_v19 }
 0x424   : > { %v2270_v3 = vadd.f32 %v8727_v33, %v2233_v24 }
 0x426   : > { %v2307_v7 = vadd.f32 %v8744_v45, %v2270_v3  ;;  %v8757_v40 = vpop.permute.xlu0 %2357  ;;  %v1621_v3 = vmul.f32 %v8764_v19, %v8229_v61  ;;  %v1686_v61 = vsel %vm1285_vm12, %v8647_v59, %v8613_v17 }
 0x427   : > { %v1885_v44 = vpop.permute.xlu1 %1884 }
 0x428   : > { %v2332_v31 = vadd.f32 %v8583_v48, %v2307_v7  ;;  %v1630_v7 = vmul.f32 %v12125_v27, %v1622_v34  ;;  %v1629_v60 = vmul.f32 %v12125_v27, %v1621_v3 }
 0x42a   : > { %v2369_v24 = vadd.f32 %v8757_v40, %v2332_v31  ;;  %v8769_v15 = vpop.permute.xlu0 %2394 }
 0x42b   : > { %v1958_v56 = vpop.permute.xlu1 %1957 }
 0x42c   : > { %v2406_v63 = vadd.f32 %v8769_v15, %v2369_v24 }
 0x42e   : > { %v2415_v8 = vadd.f32 %v12142_v4, %v2406_v63  ;;  %v1660_v14 = vpop.permute.xlu0 %1659 }
 0x42f   : > { %v1662_v25 = vsel %vm1234_vm6, %v8598_v62, %v1660_v14  ;;  %v1668_v2 = vadd.f32 %v1660_v14, %v1630_v7  ;;  %v2032_v19 = vpop.permute.xlu1 %2031  ;;  %v1774_v62 = vsel %vm11902_vm7, %v8678_v9, %v1771_v12  ;;  %v1860_v9 = vsel %vm11744_vm14, %v8553_v57, %v8698_v35 }
 0x430   : > { %v1667_v31 = vadd.f32 %v1662_v25, %v1629_v60  ;;  %2428 = vrot.lane.b32.xlu1 %v2415_v8, %s12143_s13  ;;  %v1960_v57 = vsel %vm11738_vm15, %v8718_v43, %v1958_v56  ;;  %vm11742_vm15 = vcmask 654336   ;;  %vm11848_vm14 = vcmask 515072  }
 0x431   : > { %v1692_v24 = vadd.f32 %v8613_v17, %v1668_v2  ;;  %v1836_v17 = vsel %vm11745_vm11, %v8690_v39, %v1834_v52  ;;  %vm11841_vm11 = vcmask 506880  }
 0x432   : > { %v1720_v34 = vpop.permute.xlu0 %1719  ;;  %v1691_v16 = vadd.f32 %v1686_v61, %v1667_v31 }
 0x433   : > { %v1723_v63 = vsel %vm1721_vm10, %v8622_v5, %v1720_v34  ;;  %v1729_v27 = vadd.f32 %v1720_v34, %v1692_v24  ;;  %v2106_v60 = vpop.permute.xlu1 %2105 }
 0x434   : > { %v1728_v3 = vadd.f32 %v1723_v63, %v1691_v16 }
 0x435   : > { %v1780_v7 = vadd.f32 %v1771_v12, %v1729_v27 }
 0x436   : > { %v1807_v14 = vpop.permute.xlu0 %1806  ;;  %v1779_v8 = vadd.f32 %v1774_v62, %v1728_v3 }
 0x437   : > { %v1809_v59 = vsel %vm1321_vm13, %v8629_v1, %v1807_v14  ;;  %v1815_v25 = vadd.f32 %v1807_v14, %v1780_v7  ;;  %v8792_v61 = vpop.permute.xlu1 %2223  ;;  %v1888_v1 = vsel %vm11894_vm5, %v8705_v20, %v1885_v44 }
 0x438   : > { %v1814_v2 = vadd.f32 %v1809_v59, %v1779_v8 }
 0x439   : > { %v1842_v31 = vadd.f32 %v1834_v52, %v1815_v25 }
 0x43a   : > { %v1841_v5 = vadd.f32 %v1836_v17, %v1814_v2  ;;  %v12144_v2 = vld [vmem:[#allocation94_spill] sm:$0xff] }
 0x43b   : > { %v1866_v12 = vadd.f32 %v8698_v35, %v1842_v31  ;;  %v8800_v34 = vpop.permute.xlu1 %6917  ;;  %v2037_v43 = vsel %vm2035_vm8, %v2032_v19, %v12144_v2  ;;  %v2036_v31 = vsel %vm2035_vm8, %v8729_v41, %v2032_v19  ;;  %v2110_v41 = vsel %vm11742_vm15, %v8734_v37, %v2106_v60 }
 0x43c   : > { %v1865_v24 = vadd.f32 %v1860_v9, %v1841_v5  ;;  %v12145_v9 = vld [vmem:[#allocation114_spill] sm:$0xff] }
 0x43d   : > { %v1894_v63 = vadd.f32 %v1885_v44, %v1866_v12 }
 0x43e   : > { %v1893_v52 = vadd.f32 %v1888_v1, %v1865_v24  ;;  %v12146_v1 = vld [vmem:[#allocation99_spill] sm:$0xff] }
 0x43f   : > { %v8808_v35 = vpop.permute.xlu1 %3016 }
 0x443   : > { %v8798_v16 = vpop.permute.xlu0 %2916 }
 0x447   : > { %v1922_v39 = vpop.permute.xlu0 %1921 }
 0x448   : > { %v1925_v27 = vsel %vm11741_vm1, %v8636_v53, %v1922_v39  ;;  %v1931_v3 = vadd.f32 %v1922_v39, %v1894_v63  ;;  %v2006_v53 = vsel %vm11739_vm3, %v8659_v47, %v8661_v50  ;;  %vm2137_vm3 = vcmask 646144  }
 0x449   : > { %v1930_v62 = vadd.f32 %v1925_v27, %v1893_v52  ;;  %v2111_v63 = vsel %vm11742_vm15, %v2106_v60, %v12146_v1  ;;  %v12147_v27 = vld [vmem:[#allocation116_spill] sm:$0xff]  ;;  %vm2162_vm1 = vcmask 637952   ;;  %vm11746_vm15 = vcmask 621568  }
 0x44a   : > { %v1966_v14 = vadd.f32 %v1958_v56, %v1931_v3  ;;  %v2163_v37 = vsel %vm2162_vm1, %v8666_v36, %v8695_v21 }
 0x44b   : > { %v1985_v7 = vpop.permute.xlu0 %1984  ;;  %v1965_v8 = vadd.f32 %v1960_v57, %v1930_v62 }
 0x44c   : > { %v1987_v59 = vsel %vm11740_vm2, %v8649_v10, %v1985_v7  ;;  %v1993_v20 = vadd.f32 %v1985_v7, %v1966_v14  ;;  %v8820_v10 = vpop.permute.xlu1 %3067  ;;  %vm11849_vm2 = vcmask 629760   ;;  %v12148_v7 = vld [vmem:[#allocation102_spill] sm:$0xff] }
 0x44d   : > { %v1992_v44 = vadd.f32 %v1987_v59, %v1965_v8  ;;  %v2164_v8 = vsel %vm2162_vm1, %v8695_v21, %v12148_v7  ;;  %v2228_v21 = vsel %vm11746_vm15, %v8738_v18, %v8792_v61 }
 0x44e   : > { %v2012_v25 = vadd.f32 %v8661_v50, %v1993_v20 }
 0x44f   : > { %v2011_v17 = vadd.f32 %v2006_v53, %v1992_v44  ;;  %v2069_v56 = vpop.permute.xlu0 %2068  ;;  %v12149_v44 = vld [vmem:[#allocation118_spill] sm:$0xff] }
 0x450   : > { %v2043_v5 = vadd.f32 %v2037_v43, %v2012_v25  ;;  %v2074_v12 = vsel %vm11743_vm9, %v2069_v56, %v12145_v9  ;;  %v2073_v47 = vsel %vm11743_vm9, %v8668_v38, %v2069_v56  ;;  %v2298_v57 = vpop.permute.xlu1 %2297  ;;  %vm11747_vm9 = vcmask 523264   ;;  %v12150_v43 = vld [vmem:[#allocation103_spill] sm:$0xff]  ;;  %v12151_v9 = vld [vmem:[#allocation120_spill] sm:$0xff] }
 0x451   : > { %v2042_v24 = vadd.f32 %v2036_v31, %v2011_v17  ;;  %v2229_v17 = vsel %vm11746_vm15, %v8792_v61, %v12150_v43  ;;  %vm11839_vm15 = vcmask 498688   ;;  %v12153_v61 = vld [vmem:[#allocation123_spill] sm:$0xff]  ;;  %v7349_v43 = vmov 37  }
 0x452   : > { %v2080_v50 = vadd.f32 %v2074_v12, %v2043_v5 }
 0x453   : > { %v2079_v39 = vadd.f32 %v2073_v47, %v2042_v24  ;;  %v2134_v52 = vpop.permute.xlu0 %2133 }
 0x454   : > { %v2117_v19 = vadd.f32 %v2111_v63, %v2080_v50  ;;  %v2139_v3 = vsel %vm2137_vm3, %v2134_v52, %v12147_v27  ;;  %v2138_v38 = vsel %vm2137_vm3, %v8683_v42, %v2134_v52  ;;  %v2360_v36 = vpop.permute.xlu1 %2359  ;;  %v12152_v50 = vld [vmem:[#allocation105_spill] sm:$0xff]  ;;  %v2328_v52 = vsel %vm11841_vm11, %v8750_v23, %v12153_v61 }
 0x455   : > { %v2116_v62 = vadd.f32 %v2110_v41, %v2079_v39  ;;  %v2303_v1 = vsel %vm11848_vm14, %v2298_v57, %v12152_v50  ;;  %v2302_v39 = vsel %vm11848_vm14, %v8744_v45, %v2298_v57  ;;  %v2364_v45 = vsel %vm11839_vm15, %v8757_v40, %v2360_v36 }
 0x456   : > { %v2145_v14 = vadd.f32 %v2139_v3, %v2117_v19  ;;  %v2327_v19 = vsel %vm11841_vm11, %v8583_v48, %v8750_v23  ;;  %v12154_v3 = vld [vmem:[#allocation107_spill] sm:$0xff]  ;;  %v7353_v50 = vmov 39   ;;  %vm11885_vm11 = vcmask 384000  }
 0x457   : > { %v2144_v59 = vadd.f32 %v2138_v38, %v2116_v62  ;;  %v2187_v20 = vpop.permute.xlu0 %2186  ;;  %v2365_v62 = vsel %vm11839_vm15, %v2360_v36, %v12154_v3  ;;  %v12157_v36 = vld [vmem:[#allocation115_spill] sm:$0xff]  ;;  %vm3769_vm15 = vcmask 285696   ;;  %vm11882_vm14 = vcmask 375808  }
 0x458   : > { %v2170_v60 = vadd.f32 %v2164_v8, %v2145_v14  ;;  %v2192_v53 = vsel %vm11849_vm2, %v2187_v20, %v12149_v44  ;;  %v2191_v42 = vsel %vm11849_vm2, %v8708_v11, %v2187_v20  ;;  %v12155_v14 = vld [vmem:[#allocation109_spill] sm:$0xff]  ;;  %v11776_v20 = vunpack.i.l.bf16 %v8397_v22 }
 0x459   : > { %v2169_v25 = vadd.f32 %v2163_v37, %v2144_v59  ;;  %v11774_v44 = vunpack.i.l.bf16 %v8419_v54  ;;  %vm11881_vm2 = vcmask 367616  }
 0x45a   : > { %v2198_v2 = vadd.f32 %v2192_v53, %v2170_v60  ;;  %v2562_v40 = vmul.f32 0.0, %v11776_v20  ;;  %v8881_v53 = vld [vmem:[%s11946_s6] sm:$0xff]  ;;  %s11757_s6 = smov 47  }
 0x45b   : > { %v2197_v56 = vadd.f32 %v2191_v42, %v2169_v25  ;;  %v2261_v31 = vpop.permute.xlu0 %2260  ;;  %v7348_v25 = vmov 35   ;;  %v12156_v42 = vld [vmem:[#allocation111_spill] sm:$0xff] }
 0x45c   : > { %v2235_v5 = vadd.f32 %v2229_v17, %v2198_v2  ;;  %v2266_v12 = vsel %vm11747_vm9, %v2261_v31, %v12151_v9  ;;  %v2265_v11 = vsel %vm11747_vm9, %v8727_v33, %v2261_v31  ;;  %vm11837_vm9 = vcmask 490496   ;;  %v2397_v33 = vpop.permute.xlu1 %2396 }
 0x45d   : > { %v2234_v24 = vadd.f32 %v2228_v21, %v2197_v56  ;;  %v2402_v7 = vsel %vm11837_vm9, %v2397_v33, %v12155_v14  ;;  %v2401_v59 = vsel %vm11837_vm9, %v8769_v15, %v2397_v33  ;;  %v2597_v15 = vmul.f32 0.0, %v11774_v44  ;;  %v2418_v44 = vld [vmem:[%s12182_s24] sm:$0xff]  ;;  %s12208_s24 = smov 45  }
 0x45e   : > { %v2272_v47 = vadd.f32 %v2266_v12, %v2235_v5  ;;  %v2628_v17 = vmul.f32 0.0, %v8436_v51  ;;  %v11772_v56 = vunpack.i.l.bf16 %v8448_v32  ;;  %v7351_v31 = vmov 38  }
 0x45f   : > { %v2271_v63 = vadd.f32 %v2265_v11, %v2234_v24  ;;  %v2604_v2 = vmul.f32 %v12156_v42, %v2597_v15  ;;  %v7352_v21 = vmov 36   ;;  %v11773_v5 = vunpack.i.l.bf16 %v12157_v36  ;;  %v12158_v11 = vld [vmem:[#allocation117_spill] sm:$0xff] }
 0x460   : > { %v2309_v18 = vadd.f32 %v2303_v1, %v2272_v47  ;;  %v2657_v9 = vmul.f32 0.0, %v11772_v56  ;;  %v8903_v12 = vpop.permute.xlu1 %3094  ;;  %v11771_v47 = vunpack.i.l.bf16 %v12158_v11  ;;  %v12159_v1 = vld [vmem:[#allocation113_spill] sm:$0xff]  ;;  %vm11875_vm9 = vcmask 236544  }
 0x461   : > { %v2308_v41 = vadd.f32 %v2302_v39, %v2271_v63  ;;  %v2693_v24 = vmul.f32 0.0, %v11773_v5  ;;  %v7354_v39 = vmov 42  }
 0x462   : > { %v2334_v27 = vadd.f32 %v2328_v52, %v2309_v18  ;;  %v2664_v63 = vmul.f32 %v12159_v1, %v2657_v9  ;;  %v2744_v18 = vmul.f32 0.0, %v11771_v47 }
 0x463   : > { %v2333_v38 = vadd.f32 %v2327_v19, %v2308_v41  ;;  %v2700_v61 = vmul.f32 %v8467_v49, %v2693_v24  ;;  %v7355_v41 = vmov 40   ;;  %v12160_v19 = vld [vmem:[#allocation119_spill] sm:$0xff]  ;;  %v8964_v24 = vpop.permute.xlu0 %2989 }
 0x464   : > { %v2371_v57 = vadd.f32 %v2365_v62, %v2334_v27  ;;  %v8915_v52 = vpop.permute.xlu1 %3158  ;;  %v11770_v33 = vunpack.i.l.bf16 %v12160_v19  ;;  %v2751_v27 = vmul.f32 %v8480_v46, %v2744_v18 }
 0x465   : > { %v2370_v8 = vadd.f32 %v2364_v45, %v2333_v38  ;;  %v7358_v38 = vmov 41  }
 0x466   : > { %v2408_v23 = vadd.f32 %v2402_v7, %v2371_v57  ;;  %v2780_v3 = vmul.f32 0.0, %v11770_v33  ;;  %v2814_v57 = vmul.f32 %v8522_v6, %v8645_v28  ;;  %v7360_v7 = vmov 46   ;;  %v12164_v28 = vld [vmem:[#allocation69_spill] sm:$0xff] }
 0x467   : > { %v2407_v48 = vadd.f32 %v2401_v59, %v2370_v8  ;;  %v12162_v8 = vld [vmem:[#allocation71_spill] sm:$0xff]  ;;  %v12163_v59 = vld [vmem:[#allocation121_spill] sm:$0xff] }
 0x468   : > { %v2417_v37 = vadd.f32 %v12142_v4, %v2408_v23  ;;  %v8923_v62 = vpop.permute.xlu1 %6928  ;;  %v2787_v45 = vmul.f32 %v8505_v13, %v2780_v3  ;;  %v2841_v23 = vmul.f32 %v12163_v59, %v12162_v8  ;;  %v7370_v3 = vmov 45   ;;  %v12172_v8 = vld [vmem:[#allocation101_spill] sm:$0xff] }
 0x469   : > { %v2416_v60 = vadd.f32 %v12142_v4, %v2407_v48  ;;  %v2569_v4 = vmul.f32 %v8381_v58, %v2562_v40  ;;  %12161 = vst [vmem:[#allocation85_spill] sm:$0xff] %v8923_v62  ;;  %v7364_v40 = vmov 43   ;;  %v11777_v9 = vunpack.i.l.bf16 %v8923_v62 }
 0x46a   : > { %2432 = vrot.lane.b32.xlu0 %v2417_v37, %s12143_s13 }
 0x46b   : > { %2430 = vrot.lane.b32.xlu1 %v2416_v60, %s12143_s13  ;;  %s11748_s13 = smov 29   ;;  %v12165_v60 = vld [vmem:[#allocation50_spill] sm:$0xff] }
 0x46c   : > { %v8932_v14 = vpop.permute.xlu1 %6934 }
 0x46e   : > { %3530 = vperm.xlu0 %6965, %v8881_v53  }
 0x46f   : > { %3567 = vperm.xlu1 %6966, %v8881_v53  }
 0x470   : > { %v8939_v48 = vpop.permute.xlu1 %3221 }
 0x472   : > { %2575 = vrot.lane.b32.xlu0 %v2569_v4, %s11973_s1  ;;  %v12166_v4 = vld [vmem:[#allocation49_spill] sm:$0xff] }
 0x473   : > { %6968 = vrot.lane.b32.xlu1 %v8188_v26, %s7347_s4  ;;  %6972 = vset.pattern.permute.xlu0 %v7348_v25  ;;  %s11750_s4 = smov 123   ;;  %v12167_v25 = vld [vmem:[#allocation72_spill] sm:$0xff] }
 0x474   : > { %6979 = vset.pattern.permute.xlu1 %v7349_v43  ;;  %v8944_v37 = vpop.permute.xlu1 %3272  ;;  %v12168_v43 = vmov 1  }
 0x476   : > { %2610 = vrot.lane.b32.xlu0 %v2604_v2, %s11979_s7  ;;  %v2892_v2 = vmul.f32 %v8539_v55, %v12167_v25  ;;  %v7373_v25 = vmov 47  }
 0x477   : > { %6974 = vrot.lane.b32.xlu1 %v8196_v0, %s11748_s13  ;;  %s11752_s13 = smov 122  }
 0x478   : > { %v8952_v15 = vpop.permute.xlu1 %3297 }
 0x47a   : > { %3604 = vperm.xlu0 %6972, %v8881_v53  }
 0x47b   : > { %3660 = vperm.xlu1 %6979, %v8881_v53  }
 0x47e   : > { %2634 = vrot.lane.b32.xlu0 %v2628_v17, %s12051_s19  ;;  %v8959_v17 = vpop.permute.xlu1 %3361 }
 0x47f   : > { %6980 = vset.pattern.permute.xlu1 %v7351_v31  ;;  %6978 = vset.pattern.permute.xlu0 %v7352_v21  ;;  %v12169_v31 = vld [vmem:[#allocation70_spill] sm:$0xff]  ;;  %v7367_v21 = vmov 44  }
 0x480   : > { %3685 = vperm.xlu1 %6980, %v8881_v53  }
 0x482   : > { %3632 = vperm.xlu0 %6978, %v8881_v53   ;;  %v8972_v18 = vpop.permute.xlu1 %6945 }
 0x484   : > { %6981 = vset.pattern.permute.xlu1 %v7353_v50  ;;  %v11767_v50 = vunpack.i.l.bf16 %v8746_v30 }
 0x485   : > { %3713 = vperm.xlu1 %6981, %v8881_v53  }
 0x486   : > { %2670 = vrot.lane.b32.xlu0 %v2664_v63, %s12083_s26  ;;  %v12170_v63 = vld [vmem:[#allocation75_spill] sm:$0xff] }
 0x487   : > { %6989 = vset.pattern.permute.xlu0 %v7354_v39  ;;  %v2919_v39 = vmul.f32 %v8798_v16, %v12170_v63 }
 0x489   : > { %6982 = vset.pattern.permute.xlu1 %v7355_v41 }
 0x48a   : > { %2706 = vrot.lane.b32.xlu0 %v2700_v61, %s11750_s4  ;;  %3741 = vperm.xlu1 %6982, %v8881_v53   ;;  %s7359_s4 = smov 35   ;;  %v12171_v61 = vld [vmem:[#allocation53_spill] sm:$0xff] }
 0x48b   : > { %v3097_v41 = vmul.f32 %v8903_v12, %v12171_v61 }
 0x48e   : > { %2757 = vrot.lane.b32.xlu0 %v2751_v27, %s11752_s13  ;;  %6983 = vset.pattern.permute.xlu1 %v7358_v38  ;;  %s11755_s13 = smov 45   ;;  %v3154_v27 = vmul.f32 0.0, %v11777_v9  ;;  %v8982_v38 = vpop.permute.xlu0 %3043  ;;  %v12188_v9 = vld [vmem:[#allocation76_spill] sm:$0xff] }
 0x48f   : > { %3778 = vperm.xlu1 %6983, %v8881_v53  }
 0x492   : > { %2793 = vrot.lane.b32.xlu0 %v2787_v45, %s11976_s10  ;;  %v3161_v45 = vmul.f32 %v8915_v52, %v3154_v27 }
 0x493   : > { %6985 = vrot.lane.b32.xlu1 %v8188_v26, %s7359_s4  ;;  %s11798_s4 = smov 46  }
 0x494   : > { %7008 = vset.pattern.permute.xlu1 %v7360_v7  ;;  %v8986_v7 = vpop.permute.xlu1 %6951 }
 0x495   : > { %v11782_v20 = vunpack.i.h.bf16 %v8986_v7 }
 0x496   : > { %2820 = vrot.lane.b32.xlu0 %v2814_v57, %s11972_s18  ;;  %v11766_v57 = vunpack.i.l.bf16 %v8800_v34 }
 0x497   : > { %6991 = vrot.lane.b32.xlu1 %v8196_v0, %s11755_s13  ;;  %v2865_v0 = vmul.f32 0.0, %v8530_v29  ;;  %s7365_s13 = smov 49  }
 0x49a   : > { %2847 = vrot.lane.b32.xlu0 %v2841_v23, %s11982_s17 }
 0x49b   : > { %6997 = vrot.lane.b32.xlu1 %v12164_v28, %s11798_s4  ;;  %v12173_v28 = vld [vmem:[#allocation77_spill] sm:$0xff] }
 0x49e   : > { %3814 = vperm.xlu0 %6989, %v8881_v53  }
 0x49f   : > { %7003 = vrot.lane.b32.xlu1 %v12165_v60, %s11757_s6  ;;  %s7366_s6 = smov 50   ;;  %v3224_v60 = vmul.f32 %v8939_v48, %v12173_v28 }
 0x4a2   : > { %2871 = vrot.lane.b32.xlu0 %v2865_v0, %s12089_s16  ;;  %v11765_v0 = vunpack.i.h.bf16 %v8972_v18 }
 0x4a3   : > { %3945 = vperm.xlu1 %7008, %v8881_v53   ;;  %6995 = vset.pattern.permute.xlu0 %v7364_v40  ;;  %v2985_v40 = vmul.f32 0.0, %v11766_v57 }
 0x4a6   : > { %3850 = vperm.xlu0 %6995, %v8881_v53  }
 0x4a7   : > { %7010 = vrot.lane.b32.xlu1 %v12166_v4, %s7365_s13  ;;  %s11759_s13 = smov 51   ;;  %v8996_v4 = vpop.permute.xlu0 %3121 }
 0x4a8   : > { %7027 = vset.pattern.permute.xlu1 %v12168_v43 }
 0x4aa   : > { %2898 = vrot.lane.b32.xlu0 %v2892_v2, %s12056_s29  ;;  %v2992_v2 = vmul.f32 %v8964_v24, %v2985_v40 }
 0x4ab   : > { %7016 = vrot.lane.b32.xlu1 %v12169_v31, %s7366_s6  ;;  %7001 = vset.pattern.permute.xlu0 %v7367_v21  ;;  %s11761_s6 = smov 107   ;;  %v9001_v31 = vpop.permute.xlu1 %3425  ;;  %v12174_v21 = vld [vmem:[#allocation54_spill] sm:$0xff]  ;;  %v9009_v61 = vpop.permute.xlu0 %3194 }
 0x4ac   : > { %v3302_v63 = vmul.f32 %v8952_v15, %v12174_v21 }
 0x4ae   : > { %3885 = vperm.xlu0 %7001, %v8881_v53  }
 0x4af   : > { %7023 = vrot.lane.b32.xlu1 %v8188_v26, %s11759_s13  ;;  %v2949_v26 = vmul.f32 0.0, %v11767_v50  ;;  %s11763_s13 = smov 90  }
 0x4b1   : > { %v2956_v23 = vmul.f32 %v12172_v8, %v2949_v26 }
 0x4b2   : > { %2925 = vrot.lane.b32.xlu0 %v2919_v39, %s11761_s6  ;;  %s11780_s6 = smov 106   ;;  %v9007_v39 = vmul.f32 0.0, %v11765_v0  ;;  %v12181_v0 = vld [vmem:[#allocation68_spill] sm:$0xff] }
 0x4b3   : > { %3103 = vrot.lane.b32.xlu1 %v3097_v41, %s12082_s11  ;;  %7007 = vset.pattern.permute.xlu0 %v7370_v3  ;;  %v9013_v41 = vpop.permute.xlu1 %2545  ;;  %v12178_v3 = vld [vmem:[#allocation73_spill] sm:$0xff] }
 0x4b4   : > { %12175 = vst [vmem:[#allocation106_spill] sm:$0xff] %v9007_v39  ;;  %12176 = vst [vmem:[#allocation87_spill] sm:$0xff] %v9013_v41  ;;  %v3366_v27 = vmul.f32 %v8959_v17, %v9007_v39  ;;  %v3019_v26 = vmul.f32 %v8808_v35, %v12178_v3  ;;  %v12194_v39 = vld [vmem:[#allocation65_spill] sm:$0xff] }
 0x4b6   : > { %3909 = vperm.xlu0 %7007, %v8881_v53  }
 0x4b7   : > { %3167 = vrot.lane.b32.xlu1 %v3161_v45, %s11763_s13  ;;  %s11768_s13 = smov 74   ;;  %v9021_v45 = vpop.permute.xlu0 %3248  ;;  %v9025_v40 = vpop.permute.xlu1 %3476 }
 0x4ba   : > { %2962 = vrot.lane.b32.xlu0 %v2956_v23, %s11780_s6  ;;  %v12179_v23 = vld [vmem:[#allocation78_spill] sm:$0xff]  ;;  %s11785_s6 = smov 59  }
 0x4bb   : > { %3230 = vrot.lane.b32.xlu1 %v3224_v60, %s12019_s14  ;;  %7014 = vset.pattern.permute.xlu0 %v7373_v25  ;;  %v3430_v60 = vmul.f32 %v9001_v31, %v12179_v23  ;;  %v3481_v25 = vmul.f32 0.0, %v9025_v40  ;;  %v12180_v23 = vmov 0   ;;  %v9045_v57 = vpop.permute.xlu1 %3503 }
 0x4be   : > { %2998 = vrot.lane.b32.xlu0 %v2992_v2, %s11980_s5  ;;  %v7375_v2 = vmov 48  }
 0x4bf   : > { %3310 = vrot.lane.b32.xlu1 %v3302_v63, %s12096_s20  ;;  %v9030_v63 = vpop.permute.xlu0 %3324  ;;  %v2429_v50 = vpop.permute.xlu1 %2428 }
 0x4c2   : > { %3982 = vperm.xlu0 %7014, %v8881_v53  }
 0x4c3   : > { %3374 = vrot.lane.b32.xlu1 %v3366_v27, %s11768_s13  ;;  %v2419_v27 = vld [vmem:[%s12177_s30] sm:$0xff]  ;;  %v9035_v3 = vpop.permute.xlu0 %3398  ;;  %s11778_s13 = smov 91   ;;  %s12228_s30 = smov 29  }
 0x4c6   : > { %3025 = vrot.lane.b32.xlu0 %v3019_v26, %s11983_s21  ;;  %v3046_v26 = vmul.f32 %v8982_v38, %v12181_v0  ;;  %v12185_v0 = vld [vmem:[#allocation74_spill] sm:$0xff] }
 0x4c7   : > { %3438 = vrot.lane.b32.xlu1 %v3430_v60, %s12098_s15  ;;  %7020 = vset.pattern.permute.xlu0 %v7375_v2  ;;  %v9041_v60 = vpop.permute.xlu0 %3452  ;;  %v3070_v2 = vmul.f32 0.0, %v8820_v10 }
 0x4ca   : > { %4019 = vperm.xlu0 %7020, %v8881_v53   ;;  %v11775_v53 = vunpack.i.l.bf16 %v8932_v14 }
 0x4cb   : > { %3489 = vrot.lane.b32.xlu1 %v3481_v25, %s12102_s0  ;;  %v9048_v25 = vpop.permute.xlu0 %6960 }
 0x4cc   : > { %12183 = vst [vmem:[#allocation108_spill] sm:$0xff] %v9048_v25 }
 0x4ce   : > { %7021 = vset.pattern.permute.xlu0 %v12180_v23 }
 0x4cf   : > { %2422 = vperm.xlu0 %7021, %v2419_v27   ;;  %v9052_v27 = vmul.f32 0.0, %v11775_v53  ;;  %v12186_v53 = vld [vmem:[#allocation51_spill] sm:$0xff] }
 0x4d1   : > { %12184 = vst [vmem:[#allocation89_spill] sm:$0xff] %v9052_v27  ;;  %v3197_v47 = vmul.f32 %v9009_v61, %v9052_v27 }
 0x4d3   : > { %3052 = vrot.lane.b32.xlu0 %v3046_v26, %s11999_s8  ;;  %v3124_v26 = vmul.f32 %v8996_v4, %v12185_v0  ;;  %v3251_v0 = vmul.f32 %v9021_v45, %v12186_v53 }
 0x4d7   : > { %3076 = vrot.lane.b32.xlu0 %v3070_v2, %s12024_s9 }
 0x4db   : > { %3130 = vrot.lane.b32.xlu0 %v3124_v26, %s11778_s13  ;;  %v12187_v26 = vmov 0.0   ;;  %s11788_s13 = smov 75  }
 0x4dc   : > { %v2433_v33 = vpop.permute.xlu0 %2432 }
 0x4dd   : > { %v2431_v56 = vpop.permute.xlu1 %2430 }
 0x4de   : > { %v2435_v2 = vsel %vm2376_vm0, %v2431_v56, %v2433_v33  ;;  %v2434_v5 = vsel %vm2376_vm0, %v2429_v50, %v2431_v56  ;;  %v3329_v33 = vmul.f32 %v9030_v63, %v12188_v9  ;;  %v3396_v56 = vmul.f32 0.0, %v11782_v20  ;;  %v12190_v50 = vld [vmem:[#allocation80_spill] sm:$0xff] }
 0x4df   : > { %3203 = vrot.lane.b32.xlu0 %v3197_v47, %s12094_s28  ;;  %2471 = vmatprep.subr.mxu1 %v2435_v2  ;;  %vm11834_vm0 = vcmask 941056  }
 0x4e0   : > { %2472 = vmatpush1.msra.mxu1 %v2434_v5  ;;  %v3403_v5 = vmul.f32 %v9035_v3, %v3396_v56 }
 0x4e1   : > { %6481 = vmatmul.mubr.msk.f32.vlgmr.msra.gmra.mxu1 %vm11836_vm4, %v2418_v44  ;;  %vm3558_vm4 = vcmask 154624  }
 0x4e2   : > { %4884 = vmatprep.mubr.f32.mxu1 %v12187_v26 }
 0x4e3   : > { %3257 = vrot.lane.b32.xlu0 %v3251_v0, %s12017_s25  ;;  %v12192_v0 = vld [vmem:[#allocation52_spill] sm:$0xff] }
 0x4e4   : > { %v3457_v20 = vmul.f32 %v9041_v60, %v12192_v0 }
 0x4e7   : > { %3337 = vrot.lane.b32.xlu0 %v3329_v33, %s11788_s13  ;;  %s11795_s13 = smov 48  }
 0x4e9   : > { %v9075_v47 = vpop.permute.xlu0 %3530 }
 0x4ea   : > { %12189 = vst [vmem:[#allocation110_spill] sm:$0xff] %v9075_v47  ;;  %v3535_v44 = vmul.f32 %v9075_v47, %v12190_v50  ;;  %v9079_v2 = vpop.permute.xlu1 %3567  ;;  %v3508_v50 = vmul.f32 %v9045_v57, %v12194_v39 }
 0x4eb   : > { %12191 = vst [vmem:[#allocation92_spill] sm:$0xff] %v9079_v2  ;;  %3411 = vrot.lane.b32.xlu0 %v3403_v5, %s12090_s22 }
 0x4ec   : > { %3543 = vrot.lane.b32.xlu1 %v3535_v44, %s11785_s6  ;;  %s11793_s6 = smov 58  }
 0x4ed   : > { %v9085_v43 = vpop.permute.xlu0 %2575 }
 0x4ee   : > { %12193 = vst [vmem:[#allocation112_spill] sm:$0xff] %v9085_v43  ;;  %v9087_v33 = vpop.permute.xlu1 %6968 }
 0x4ef   : > { %v11787_v56 = vunpack.i.h.bf16 %v9087_v33  ;;  %3465 = vrot.lane.b32.xlu0 %v3457_v20, %s12041_s3 }
 0x4f1   : > { %v3565_v5 = vmul.f32 0.0, %v11787_v56  ;;  %v9095_v9 = vpop.permute.xlu0 %2610 }
 0x4f2   : > { %12195 = vst [vmem:[#allocation125_spill] sm:$0xff] %v9095_v9  ;;  %v9097_v44 = vpop.permute.xlu1 %6974 }
 0x4f3   : > { %12196 = vst [vmem:[#allocation94_spill] sm:$0xff] %v9097_v44  ;;  %v11792_v0 = vunpack.i.h.bf16 %v9097_v44  ;;  %3516 = vrot.lane.b32.xlu0 %v3508_v50, %s12105_s23  ;;  %v3572_v21 = vmul.f32 %v9079_v2, %v3565_v5  ;;  %v12200_v50 = vld [vmem:[#allocation81_spill] sm:$0xff]  ;;  %v12239_v2 = vunpack.i.l.bf16 %v9087_v33  ;;  %v12240_v47 = vunpack.i.h.bf16 %v9097_v44 }
 0x4f5   : > { %v3602_v53 = vmul.f32 0.0, %v11792_v0  ;;  %v9104_v20 = vpop.permute.xlu0 %3604 }
 0x4f6   : > { %12197 = vst [vmem:[#allocation114_spill] sm:$0xff] %v9104_v20  ;;  %v9107_v28 = vpop.permute.xlu1 %3660 }
 0x4f7   : > { %v3609_v39 = vmul.f32 %v9104_v20, %v3602_v53  ;;  %12198 = vst [vmem:[#allocation99_spill] sm:$0xff] %v9107_v28  ;;  %3580 = vrot.lane.b32.xlu0 %v3572_v21, %s11793_s6  ;;  %v3665_v5 = vmul.f32 %v9107_v28, %v12200_v50  ;;  %v12203_v53 = vld [vmem:[#allocation79_spill] sm:$0xff]  ;;  %s12205_s6 = smov 47  }
 0x4f9   : > { %v9110_v56 = vpop.permute.xlu0 %2634  ;;  %3617 = vrot.lane.b32.xlu1 %v3609_v39, %s11795_s13  ;;  %s11801_s13 = smov 44  }
 0x4fa   : > { %12199 = vst [vmem:[#allocation116_spill] sm:$0xff] %v9110_v56  ;;  %v12206_v56 = vld [vmem:[#allocation82_spill] sm:$0xff] }
 0x4fb   : > { %v9115_v27 = vpop.permute.xlu1 %3685 }
 0x4fc   : > { %12201 = vst [vmem:[#allocation102_spill] sm:$0xff] %v9115_v27  ;;  %v3690_v26 = vmul.f32 0.0, %v9115_v27 }
 0x4fd   : > { %v9117_v0 = vpop.permute.xlu0 %3632  ;;  %3673 = vrot.lane.b32.xlu1 %v3665_v5, %s11798_s4  ;;  %s11808_s4 = smov 43  }
 0x4fe   : > { %12202 = vst [vmem:[#allocation118_spill] sm:$0xff] %v9117_v0  ;;  %v3637_v23 = vmul.f32 %v9117_v0, %v12203_v53  ;;  %v12211_v53 = vld [vmem:[#allocation83_spill] sm:$0xff] }
 0x500   : > { %v9123_v21 = vpop.permute.xlu1 %3713  ;;  %3645 = vrot.lane.b32.xlu0 %v3637_v23, %s12205_s6 }
 0x501   : > { %12204 = vst [vmem:[#allocation103_spill] sm:$0xff] %v9123_v21  ;;  %v3718_v39 = vmul.f32 %v9123_v21, %v12206_v56  ;;  %v9128_v9 = vpop.permute.xlu0 %2670 }
 0x502   : > { %12207 = vst [vmem:[#allocation120_spill] sm:$0xff] %v9128_v9 }
 0x503   : > { %3726 = vrot.lane.b32.xlu1 %v3718_v39, %s11801_s13  ;;  %s11815_s13 = smov 42  }
 0x504   : > { %3698 = vrot.lane.b32.xlu0 %v3690_v26, %s12208_s24 }
 0x505   : > { %v9132_v50 = vpop.permute.xlu0 %2706  ;;  %v9134_v5 = vpop.permute.xlu1 %3741 }
 0x506   : > { %12209 = vst [vmem:[#allocation105_spill] sm:$0xff] %v9132_v50  ;;  %12210 = vst [vmem:[#allocation123_spill] sm:$0xff] %v9134_v5  ;;  %v3746_v41 = vmul.f32 %v9134_v5, %v12211_v53 }
 0x508   : > { %3754 = vrot.lane.b32.xlu0 %v3746_v41, %s11808_s4  ;;  %s11819_s4 = smov 32  }
 0x509   : > { %v9139_v23 = vpop.permute.xlu0 %2757 }
 0x50a   : > { %12212 = vst [vmem:[#allocation107_spill] sm:$0xff] %v9139_v23  ;;  %v9141_v56 = vpop.permute.xlu1 %3778 }
 0x50b   : > { %12213 = vst [vmem:[#allocation109_spill] sm:$0xff] %v9141_v56 }
 0x50d   : > { %v9143_v9 = vpop.permute.xlu0 %2793 }
 0x50e   : > { %12214 = vst [vmem:[#allocation111_spill] sm:$0xff] %v9143_v9  ;;  %v9145_v43 = vpop.permute.xlu1 %6985 }
 0x50f   : > { %12215 = vst [vmem:[#allocation115_spill] sm:$0xff] %v9145_v43  ;;  %v11807_v26 = vunpack.i.h.bf16 %v9145_v43 }
 0x511   : > { %v3776_v39 = vmul.f32 0.0, %v11807_v26  ;;  %v9150_v50 = vpop.permute.xlu0 %2820 }
 0x512   : > { %12216 = vst [vmem:[#allocation117_spill] sm:$0xff] %v9150_v50  ;;  %v9152_v25 = vpop.permute.xlu1 %6991 }
 0x513   : > { %v11812_v53 = vunpack.i.h.bf16 %v9152_v25  ;;  %v3783_v41 = vmul.f32 %v9141_v56, %v3776_v39 }
 0x515   : > { %v9156_v23 = vpop.permute.xlu0 %2847  ;;  %3791 = vrot.lane.b32.xlu1 %v3783_v41, %s11815_s13  ;;  %v3812_v9 = vmul.f32 0.0, %v11812_v53  ;;  %s12222_s13 = smov 31  }
 0x516   : > { %12217 = vst [vmem:[#allocation113_spill] sm:$0xff] %v9156_v23  ;;  %v9161_v21 = vpop.permute.xlu1 %6997 }
 0x517   : > { %v11821_v26 = vunpack.i.h.bf16 %v9161_v21 }
 0x519   : > { %v9163_v5 = vpop.permute.xlu0 %3814  ;;  %v3848_v23 = vmul.f32 0.0, %v11821_v26 }
 0x51a   : > { %12218 = vst [vmem:[#allocation119_spill] sm:$0xff] %v9163_v5  ;;  %v3819_v50 = vmul.f32 %v9163_v5, %v3812_v9  ;;  %v9172_v41 = vpop.permute.xlu1 %7003 }
 0x51b   : > { %12220 = vst [vmem:[#allocation121_spill] sm:$0xff] %v9172_v41  ;;  %v11826_v53 = vunpack.i.h.bf16 %v9172_v41 }
 0x51c   : > { %3827 = vrot.lane.b32.xlu0 %v3819_v50, %s11819_s4  ;;  %s12225_s4 = smov 30  }
 0x51d   : > { %v9168_v39 = vpop.permute.xlu0 %2871  ;;  %v3883_v9 = vmul.f32 0.0, %v11826_v53 }
 0x51e   : > { %12219 = vst [vmem:[#allocation71_spill] sm:$0xff] %v9168_v39 }
 0x521   : > { %v9174_v56 = vpop.permute.xlu0 %3850 }
 0x522   : > { %12221 = vst [vmem:[#allocation69_spill] sm:$0xff] %v9174_v56  ;;  %v3855_v28 = vmul.f32 %v9174_v56, %v3848_v23 }
 0x524   : > { %3863 = vrot.lane.b32.xlu1 %v3855_v28, %s12222_s13 }
 0x525   : > { %v9179_v0 = vpop.permute.xlu0 %2898 }
 0x526   : > { %12223 = vst [vmem:[#allocation50_spill] sm:$0xff] %v9179_v0 }
 0x529   : > { %v9183_v50 = vpop.permute.xlu0 %3885 }
 0x52a   : > { %12224 = vst [vmem:[#allocation49_spill] sm:$0xff] %v9183_v50  ;;  %v3890_v39 = vmul.f32 %v9183_v50, %v3883_v9 }
 0x52c   : > { %3898 = vrot.lane.b32.xlu0 %v3890_v39, %s12225_s4 }
 0x52d   : > { %v9187_v26 = vpop.permute.xlu0 %2925 }
 0x52e   : > { %12226 = vst [vmem:[#allocation72_spill] sm:$0xff] %v9187_v26  ;;  %v11833_v26 = vunpack.i.h.bf16 %v8923_v62 }
 0x531   : > { %v9189_v5 = vpop.permute.xlu0 %3909 }
 0x532   : > { %12227 = vst [vmem:[#allocation70_spill] sm:$0xff] %v9189_v5  ;;  %v3914_v20 = vmul.f32 0.0, %v9189_v5 }
 0x534   : > { %3922 = vrot.lane.b32.xlu1 %v3914_v20, %s12228_s30 }
 0x535   : > { %v9193_v28 = vpop.permute.xlu0 %2962 }
 0x536   : > { %12229 = vst [vmem:[#allocation75_spill] sm:$0xff] %v9193_v28 }
 0x539   : > { %v9195_v23 = vpop.permute.xlu0 %2998 }
 0x53a   : > { %12230 = vst [vmem:[#allocation53_spill] sm:$0xff] %v9195_v23  ;;  %v12234_v23 = vunpack.i.l.bf16 %v8923_v62 }
 0x53d   : > { %v9197_v0 = vpop.permute.xlu0 %3982 }
 0x53e   : > { %12231 = vst [vmem:[#allocation101_spill] sm:$0xff] %v9197_v0 }
 0x541   : > { %v9199_v53 = vpop.permute.xlu0 %3025 }
 0x542   : > { %12232 = vst [vmem:[#allocation73_spill] sm:$0xff] %v9199_v53  ;;  %v3150_v53 = vsel %vm11834_vm0, %v12234_v23, %v11833_v26  ;;  %v9231_v23 = vpop.permute.xlu1 %3945  ;;  %vm3389_vm0 = vcmask 105472  }
 0x543   : > { %12235 = vst [vmem:[#allocation68_spill] sm:$0xff] %v9231_v23  ;;  %v12236_v23 = vunpack.i.h.bf16 %v8986_v7 }
 0x545   : > { %v9201_v56 = vpop.permute.xlu0 %4019 }
 0x546   : > { %12233 = vst [vmem:[#allocation78_spill] sm:$0xff] %v9201_v56 }
 0x54a   : > { %v2423_v9 = vpop.permute.xlu0 %2422 }
 0x5a1   : > { %v2507_v39 = vpop.f32.mrf.mxu1 }
 0x5a2   : > { %v9203_v50 = vadd.f32 %v2507_v39, %v2423_v9 }
 0x5a3   : > { %v2509_v26 = vpop.f32.mrf.mxu1 }
 0x5a4   : > { %v2629_v20 = vmul.f32 %v8436_v51, %v9203_v50  ;;  %v3071_v28 = vmul.f32 %v8820_v10, %v9203_v50  ;;  %v9217_v39 = vmul.f32 %v3150_v53, %v9203_v50  ;;  %v2866_v56 = vmul.f32 %v8530_v29, %v9203_v50 }
 0x5a5   : > { %v3275_v0 = vmul.f32 %v8944_v37, %v9203_v50  ;;  %v3479_v53 = vmul.f32 %v9025_v40, %v9203_v50  ;;  %v9237_v62 = vadd.f32 %v2509_v26, %v2423_v9  ;;  %v12241_v26 = vunpack.i.l.bf16 %v9097_v44 }
 0x5a6   : > { %2636 = vrot.lane.b32.xlu1 %v2629_v20, %s12051_s19  ;;  %3078 = vrot.lane.b32.xlu0 %v3071_v28, %s12024_s9  ;;  %v3688_v20 = vmul.f32 %v9115_v27, %v9203_v50  ;;  %v3912_v28 = vmul.f32 %v9189_v5, %v9203_v50  ;;  %v9247_v5 = vpop.permute.xlu1 %7010  ;;  %v12246_v27 = vunpack.i.h.bf16 %v9172_v41 }
 0x5a7   : > { %v3596_v9 = vsel %vm11875_vm9, %v12241_v26, %v12240_v47  ;;  %v12248_v26 = vunpack.i.h.bf16 %v9247_v5  ;;  %vm12417_vm9 = vcmask 900096  }
 0x5aa   : > { %2873 = vrot.lane.b32.xlu1 %v2866_v56, %s12089_s16  ;;  %3694 = vrot.lane.b32.xlu0 %v3688_v20, %s12208_s24  ;;  %v11845_v56 = vunpack.i.l.bf16 %v8986_v7 }
 0x5ae   : > { %3279 = vrot.lane.b32.xlu1 %v3275_v0, %s12086_s2  ;;  %v12238_v0 = vunpack.i.h.bf16 %v9087_v33 }
 0x5b2   : > { %3485 = vrot.lane.b32.xlu1 %v3479_v53, %s12102_s0  ;;  %v3390_v53 = vsel %vm3389_vm0, %v11845_v56, %v12236_v23  ;;  %v3559_v23 = vsel %vm3558_vm4, %v12239_v2, %v12238_v0  ;;  %vm3936_vm0 = vcmask 400384   ;;  %v12244_v2 = vunpack.i.h.bf16 %v9145_v43 }
 0x5b3   : > { %v9253_v20 = vmul.f32 %v3390_v53, %v9237_v62  ;;  %v9267_v53 = vmul.f32 %v3559_v23, %v9237_v62  ;;  %v12245_v0 = vunpack.i.l.bf16 %v9145_v43  ;;  %v12249_v23 = vunpack.i.l.bf16 %v9247_v5 }
 0x5b4   : > { %v12252_v43 = vunpack.i.h.bf16 %v9152_v25  ;;  %vm2652_vm4 = vcmask 662528  }
 0x5b5   : > { %12237 = vst [vmem:[#allocation74_spill] sm:$0xff] %v9253_v20  ;;  %12242 = vst [vmem:[#allocation80_spill] sm:$0xff] %v9267_v53  ;;  %v3770_v56 = vsel %vm3769_vm15, %v12245_v0, %v12244_v2  ;;  %v12247_v20 = vunpack.i.l.bf16 %v9172_v41  ;;  %v3937_v53 = vsel %vm3936_vm0, %v12249_v23, %v12248_v26  ;;  %v12253_v2 = vunpack.i.l.bf16 %v9152_v25 }
 0x5b6   : > { %3918 = vrot.lane.b32.xlu1 %v3912_v28, %s12228_s30  ;;  %v9270_v28 = vmul.f32 %v3596_v9, %v9237_v62  ;;  %v12250_v9 = vunpack.i.h.bf16 %v9161_v21  ;;  %v9297_v41 = vmul.f32 %v3770_v56, %v9237_v62  ;;  %v11853_v23 = vunpack.i.h.bf16 %v8397_v22 }
 0x5b7   : > { %v3877_v47 = vsel %vm11885_vm11, %v12247_v20, %v12246_v27  ;;  %v3806_v0 = vsel %vm11881_vm2, %v12253_v2, %v12252_v43  ;;  %v12258_v43 = vunpack.i.l.bf16 %v8397_v22  ;;  %v11855_v2 = vunpack.i.h.bf16 %v12157_v36 }
 0x5b8   : > { %12243 = vst [vmem:[#allocation52_spill] sm:$0xff] %v9270_v28  ;;  %v12251_v28 = vunpack.i.l.bf16 %v9161_v21  ;;  %v9300_v27 = vmul.f32 %v3806_v0, %v9237_v62  ;;  %v9306_v26 = vmul.f32 %v3877_v47, %v9237_v62  ;;  %vm2688_vm15 = vcmask 670720  }
 0x5b9   : > { %v2558_v56 = vsel %vm2162_vm1, %v12258_v43, %v11853_v23  ;;  %v11857_v43 = vunpack.i.h.bf16 %v8448_v32  ;;  %v11856_v23 = vunpack.i.h.bf16 %v12158_v11  ;;  %vm2739_vm0 = vcmask 678912  }
 0x5ba   : > { %v3842_v44 = vsel %vm11882_vm14, %v12251_v28, %v12250_v9  ;;  %12254 = vst [vmem:[#allocation65_spill] sm:$0xff] %v9300_v27  ;;  %12256 = vst [vmem:[#allocation79_spill] sm:$0xff] %v9306_v26  ;;  %v9309_v28 = vmul.f32 %v3937_v53, %v9237_v62  ;;  %v11854_v9 = vunpack.i.h.bf16 %v8419_v54  ;;  %v2563_v53 = vmul.f32 %v2558_v56, %v9203_v50  ;;  %v9335_v56 = vpop.permute.xlu1 %7016 }
 0x5bb   : > { %v9303_v20 = vmul.f32 %v3842_v44, %v9237_v62  ;;  %v12259_v44 = vunpack.i.l.bf16 %v8419_v54  ;;  %vm11890_vm2 = vcmask 867328   ;;  %vm11889_vm14 = vcmask 416768  }
 0x5bc   : > { %12257 = vst [vmem:[#allocation82_spill] sm:$0xff] %v9309_v28  ;;  %v12260_v28 = vunpack.i.l.bf16 %v12157_v36  ;;  %v2570_v27 = vmul.f32 %v8381_v58, %v2563_v53  ;;  %vm12445_vm11 = vcmask 777216  }
 0x5bd   : > { %12255 = vst [vmem:[#allocation81_spill] sm:$0xff] %v9303_v20  ;;  %v2593_v47 = vsel %vm2137_vm3, %v12259_v44, %v11854_v9 }
 0x5be   : > { %v2598_v0 = vmul.f32 %v2593_v47, %v9203_v50  ;;  %v2689_v26 = vsel %vm2688_vm15, %v12260_v28, %v11855_v2  ;;  %2577 = vrot.lane.b32.xlu1 %v2570_v27, %s11973_s1  ;;  %v12261_v28 = vunpack.i.l.bf16 %v8448_v32  ;;  %v12262_v2 = vunpack.i.l.bf16 %v12158_v11 }
 0x5bf   : > { %v2694_v44 = vmul.f32 %v2689_v26, %v9203_v50  ;;  %vm2944_vm15 = vcmask 809984  }
 0x5c0   : > { %v2605_v9 = vmul.f32 %v12156_v42, %v2598_v0  ;;  %v2653_v47 = vsel %vm2652_vm4, %v12261_v28, %v11857_v43  ;;  %v2740_v26 = vsel %vm2739_vm0, %v12262_v2, %v11856_v23  ;;  %v11858_v0 = vunpack.i.h.bf16 %v12160_v19  ;;  %v9360_v23 = vpop.permute.xlu1 %7023 }
 0x5c1   : > { %v2658_v53 = vmul.f32 %v2653_v47, %v9203_v50  ;;  %v2745_v20 = vmul.f32 %v2740_v26, %v9203_v50  ;;  %v2701_v27 = vmul.f32 %v8467_v49, %v2694_v44  ;;  %v12264_v28 = vunpack.i.l.bf16 %v12160_v19  ;;  %12265 = vst [vmem:[#allocation83_spill] sm:$0xff] %v9360_v23  ;;  %v12267_v44 = vld [vmem:[#allocation104_spill] sm:$0xff] }
 0x5c2   : > { %2612 = vrot.lane.b32.xlu0 %v2605_v9, %s11979_s7  ;;  %v2630_v9 = vmul.f32 %v8436_v51, %v9237_v62  ;;  %vm3352_vm4 = vcmask 23552   ;;  %vm3973_vm0 = vcmask 408576  }
 0x5c3   : > { %v2776_v2 = vsel %vm2035_vm8, %v12264_v28, %v11858_v0  ;;  %v2752_v26 = vmul.f32 %v8480_v46, %v2745_v20  ;;  %v2665_v51 = vmul.f32 %v12159_v1, %v2658_v53  ;;  %v2867_v0 = vmul.f32 %v8530_v29, %v9237_v62 }
 0x5c4   : > { %2638 = vrot.lane.b32.xlu1 %v2630_v9, %s12051_s19  ;;  %v2781_v47 = vmul.f32 %v2776_v2, %v9203_v50  ;;  %v2808_v9 = vmul.f32 %v9203_v50, %v12267_v44  ;;  %v9374_v2 = vpop.permute.xlu1 %3103  ;;  %v11862_v20 = vunpack.i.h.bf16 %v8746_v30  ;;  %v11861_v53 = vunpack.i.h.bf16 %v8800_v34  ;;  %v12271_v44 = vld [vmem:[#allocation126_spill] sm:$0xff]  ;;  %s12282_s19 = smov 106  }
 0x5c5   : > { %12269 = vst [vmem:[#allocation104_spill] sm:$0xff] %v9374_v2 }
 0x5c6   : > { %2708 = vrot.lane.b32.xlu0 %v2701_v27, %s12263_s27  ;;  %v12268_v27 = vld [vmem:[#allocation96_spill] sm:$0xff]  ;;  %v2788_v28 = vmul.f32 %v8505_v13, %v2781_v47  ;;  %v2913_v47 = vmul.f32 %v9203_v50, %v12271_v44 }
 0x5c7   : > { %v2886_v43 = vmul.f32 %v9203_v50, %v12268_v27  ;;  %v2815_v27 = vmul.f32 %v8522_v6, %v2808_v9  ;;  %v9399_v9 = vpop.permute.xlu0 %3052 }
 0x5c8   : > { %2672 = vrot.lane.b32.xlu1 %v2665_v51, %s12083_s26  ;;  %v9397_v44 = vpop.permute.xlu1 %3167  ;;  %v2920_v23 = vmul.f32 %v8798_v16, %v2913_v47 }
 0x5c9   : > { %v2893_v29 = vmul.f32 %v8539_v55, %v2886_v43  ;;  %12274 = vst [vmem:[#allocation96_spill] sm:$0xff] %v9397_v44 }
 0x5ca   : > { %2759 = vrot.lane.b32.xlu0 %v2752_v26, %s12266_s12  ;;  %v12270_v26 = vld [vmem:[#allocation91_spill] sm:$0xff] }
 0x5cb   : > { %v2835_v51 = vmul.f32 %v9203_v50, %v12270_v26  ;;  %v12273_v26 = vunpack.i.l.bf16 %v8800_v34  ;;  %12275 = vst [vmem:[#allocation91_spill] sm:$0xff] %v9399_v9  ;;  %v9418_v47 = vpop.permute.xlu0 %3076 }
 0x5cc   : > { %2875 = vrot.lane.b32.xlu1 %v2867_v0, %s12089_s16  ;;  %v12272_v0 = vunpack.i.l.bf16 %v8746_v30  ;;  %s12276_s16 = smov 107  }
 0x5cd   : > { %v2981_v2 = vsel %vm11894_vm5, %v12273_v26, %v11861_v53  ;;  %v12278_v26 = vld [vmem:[#allocation97_spill] sm:$0xff] }
 0x5ce   : > { %2795 = vrot.lane.b32.xlu0 %v2788_v28, %s11976_s10  ;;  %v2945_v28 = vsel %vm2944_vm15, %v12272_v0, %v11862_v20  ;;  %v9408_v0 = vunpack.i.h.bf16 %v8932_v14  ;;  %v3013_v53 = vmul.f32 %v9203_v50, %v12278_v26  ;;  %v12279_v20 = vld [vmem:[#allocation100_spill] sm:$0xff]  ;;  %v12285_v26 = vld [vmem:[#allocation67_spill] sm:$0xff]  ;;  %vm11901_vm15 = vcmask 1006592  }
 0x5cf   : > { %v2950_v43 = vmul.f32 %v2945_v28, %v9203_v50  ;;  %v3118_v44 = vmul.f32 %v9203_v50, %v12279_v20  ;;  %12281 = vst [vmem:[#allocation100_spill] sm:$0xff] %v9418_v47  ;;  %v3040_v20 = vmul.f32 %v9203_v50, %v12285_v26 }
 0x5d0   : > { %2900 = vrot.lane.b32.xlu1 %v2893_v29, %s12056_s29  ;;  %v2842_v29 = vmul.f32 %v12163_v59, %v2835_v51  ;;  %12277 = vst [vmem:[#allocation126_spill] sm:$0xff] %v9408_v0  ;;  %v9416_v51 = vpop.permute.xlu1 %3230 }
 0x5d1   : > { %12280 = vst [vmem:[#allocation97_spill] sm:$0xff] %v9416_v51  ;;  %v3125_v51 = vmul.f32 %v8996_v4, %v3118_v44  ;;  %v3047_v26 = vmul.f32 %v8982_v38, %v3040_v20 }
 0x5d2   : > { %2822 = vrot.lane.b32.xlu0 %v2815_v27, %s11972_s18  ;;  %v2986_v27 = vmul.f32 %v2981_v2, %v9203_v50  ;;  %v2957_v2 = vmul.f32 %v12172_v8, %v2950_v43 }
 0x5d4   : > { %2927 = vrot.lane.b32.xlu1 %v2920_v23, %s12276_s16  ;;  %v2993_v28 = vmul.f32 %v8964_v24, %v2986_v27  ;;  %v12283_v23 = vunpack.i.l.bf16 %v8932_v14  ;;  %v3020_v27 = vmul.f32 %v8808_v35, %v3013_v53  ;;  %s12286_s16 = smov 91   ;;  %v9438_v14 = vpop.permute.xlu0 %3130  ;;  %v12290_v53 = vld [vmem:[#allocation59_spill] sm:$0xff] }
 0x5d5   : > { %12288 = vst [vmem:[#allocation143_spill] sm:$0xff] %v9438_v14  ;;  %v3091_v44 = vmul.f32 %v9203_v50, %v12290_v53  ;;  %v12296_v53 = vld [vmem:[#allocation129_spill] sm:$0xff] }
 0x5d6   : > { %2849 = vrot.lane.b32.xlu0 %v2842_v29, %s11982_s17  ;;  %v9426_v29 = vsel %vm1721_vm10, %v12283_v23, %v9408_v0 }
 0x5d7   : > { %12284 = vst [vmem:[#allocation142_spill] sm:$0xff] %v9426_v29  ;;  %v3191_v43 = vmul.f32 %v9426_v29, %v9203_v50 }
 0x5d8   : > { %2964 = vrot.lane.b32.xlu1 %v2957_v2, %s12282_s19  ;;  %v12289_v2 = vld [vmem:[#allocation56_spill] sm:$0xff] }
 0x5d9   : > { %v3245_v23 = vmul.f32 %v9203_v50, %v12289_v2  ;;  %v3198_v47 = vmul.f32 %v9009_v61, %v3191_v43  ;;  %v3098_v43 = vmul.f32 %v8903_v12, %v3091_v44  ;;  %v12301_v2 = vld [vmem:[#allocation58_spill] sm:$0xff] }
 0x5da   : > { %3000 = vrot.lane.b32.xlu0 %v2993_v28, %s11980_s5  ;;  %v9436_v28 = vpop.permute.xlu1 %3310 }
 0x5db   : > { %12287 = vst [vmem:[#allocation67_spill] sm:$0xff] %v9436_v28  ;;  %v9453_v28 = vpop.permute.xlu0 %3203 }
 0x5dc   : > { %3027 = vrot.lane.b32.xlu1 %v3020_v27, %s11983_s21  ;;  %v3252_v27 = vmul.f32 %v9021_v45, %v3245_v23  ;;  %12292 = vst [vmem:[#allocation144_spill] sm:$0xff] %v9453_v28  ;;  %v12327_v28 = vld [vmem:[#allocation118_spill] sm:$0xff] }
 0x5de   : > { %3132 = vrot.lane.b32.xlu0 %v3125_v51, %s12286_s16  ;;  %v3072_v51 = vmul.f32 %v8820_v10, %v9237_v62  ;;  %v9451_v29 = vpop.permute.xlu1 %3374 }
 0x5df   : > { %12291 = vst [vmem:[#allocation59_spill] sm:$0xff] %v9451_v29  ;;  %v9466_v23 = vpop.permute.xlu0 %3257 }
 0x5e0   : > { %3054 = vrot.lane.b32.xlu1 %v3047_v26, %s11999_s8  ;;  %v3276_v26 = vmul.f32 %v8944_v37, %v9237_v62  ;;  %12295 = vst [vmem:[#allocation146_spill] sm:$0xff] %v9466_v23  ;;  %v3162_v37 = vmul.f32 %v8915_v52, %v9217_v39 }
 0x5e2   : > { %3205 = vrot.lane.b32.xlu0 %v3198_v47, %s12094_s28  ;;  %v12293_v47 = vld [vmem:[#allocation122_spill] sm:$0xff]  ;;  %v9464_v10 = vpop.permute.xlu1 %3438 }
 0x5e3   : > { %v3320_v20 = vmul.f32 %v12293_v47, %v9203_v50  ;;  %12294 = vst [vmem:[#allocation145_spill] sm:$0xff] %v9464_v10  ;;  %v3448_v10 = vmul.f32 %v12301_v2, %v9203_v50  ;;  %v9489_v39 = vpop.permute.xlu0 %3337 }
 0x5e4   : > { %3080 = vrot.lane.b32.xlu1 %v3072_v51, %s12024_s9  ;;  %v12297_v51 = vunpack.i.l.bf16 %v8986_v7  ;;  %s12298_s9 = smov 75   ;;  %12304 = vst [vmem:[#allocation148_spill] sm:$0xff] %v9489_v39 }
 0x5e5   : > { %v3327_v44 = vmul.f32 %v9030_v63, %v3320_v20 }
 0x5e6   : > { %3259 = vrot.lane.b32.xlu0 %v3252_v27, %s12017_s25  ;;  %v3218_v27 = vmul.f32 %v9203_v50, %v12296_v53  ;;  %v3394_v47 = vmul.f32 %v12297_v51, %v9203_v50  ;;  %v9485_v51 = vunpack.i.l.bf16 %v8972_v18  ;;  %v9487_v20 = vpop.permute.xlu1 %3489 }
 0x5e7   : > { %12303 = vst [vmem:[#allocation147_spill] sm:$0xff] %v9487_v20 }
 0x5e8   : > { %3105 = vrot.lane.b32.xlu1 %v3098_v43, %s12082_s11  ;;  %v12300_v43 = vld [vmem:[#allocation60_spill] sm:$0xff]  ;;  %v3225_v53 = vmul.f32 %v8939_v48, %v3218_v27  ;;  %v3401_v7 = vmul.f32 %v9035_v3, %v3394_v47  ;;  %12302 = vst [vmem:[#allocation58_spill] sm:$0xff] %v9485_v51  ;;  %v3357_v2 = vmul.f32 %v9485_v51, %v9203_v50  ;;  %v9501_v47 = vpop.permute.xlu0 %3411 }
 0x5e9   : > { %12306 = vst [vmem:[#allocation150_spill] sm:$0xff] %v9501_v47 }
 0x5ea   : > { %3281 = vrot.lane.b32.xlu0 %v3276_v26, %s12086_s2  ;;  %s12299_s2 = smov 90   ;;  %v3293_v26 = vmul.f32 %v12300_v43, %v9203_v50  ;;  %v9497_v27 = vpop.permute.xlu1 %3543  ;;  %v12307_v43 = vld [vmem:[#allocation130_spill] sm:$0xff] }
 0x5eb   : > { %12305 = vst [vmem:[#allocation149_spill] sm:$0xff] %v9497_v27 }
 0x5ec   : > { %3169 = vrot.lane.b32.xlu1 %v3162_v37, %s12299_s2  ;;  %v3455_v37 = vmul.f32 %v9041_v60, %v3448_v10  ;;  %v3480_v10 = vmul.f32 %v9025_v40, %v9237_v62  ;;  %v9521_v40 = vpop.permute.xlu0 %3465 }
 0x5ee   : > { %3333 = vrot.lane.b32.xlu0 %v3327_v44, %s12298_s9  ;;  %v3300_v44 = vmul.f32 %v8952_v15, %v3293_v26  ;;  %v3364_v26 = vmul.f32 %v8959_v17, %v3357_v2  ;;  %v9510_v29 = vpop.permute.xlu1 %3617  ;;  %s12335_s9 = smov 46  }
 0x5ef   : > { %12309 = vst [vmem:[#allocation130_spill] sm:$0xff] %v9510_v29  ;;  %v12317_v29 = vld [vmem:[#allocation127_spill] sm:$0xff] }
 0x5f0   : > { %3232 = vrot.lane.b32.xlu1 %v3225_v53, %s12019_s14  ;;  %v12308_v53 = vld [vmem:[#allocation61_spill] sm:$0xff] }
 0x5f1   : > { %v3499_v20 = vmul.f32 %v12308_v53, %v9203_v50  ;;  %12313 = vst [vmem:[#allocation61_spill] sm:$0xff] %v9521_v40  ;;  %v12326_v40 = vld [vmem:[#allocation114_spill] sm:$0xff] }
 0x5f2   : > { %3407 = vrot.lane.b32.xlu0 %v3401_v7, %s12090_s22  ;;  %v3421_v7 = vmul.f32 %v12307_v43, %v9203_v50  ;;  %v12312_v43 = vunpack.i.l.bf16 %v9087_v33  ;;  %v9525_v2 = vpop.permute.xlu1 %3673  ;;  %v3628_v33 = vmul.f32 %v12317_v29, %v9203_v50  ;;  %s12321_s22 = smov 59  }
 0x5f3   : > { %v3506_v47 = vmul.f32 %v9045_v57, %v3499_v20  ;;  %v9536_v20 = vpop.permute.xlu0 %3516 }
 0x5f4   : > { %3306 = vrot.lane.b32.xlu1 %v3300_v44, %s12096_s20  ;;  %v12311_v44 = vld [vmem:[#allocation131_spill] sm:$0xff]  ;;  %v3563_v27 = vmul.f32 %v12312_v43, %v9203_v50  ;;  %v3428_v53 = vmul.f32 %v9001_v31, %v3421_v7  ;;  %v12318_v43 = vld [vmem:[#allocation110_spill] sm:$0xff]  ;;  %v12319_v7 = vld [vmem:[#allocation92_spill] sm:$0xff] }
 0x5f5   : > { %12314 = vst [vmem:[#allocation131_spill] sm:$0xff] %v9525_v2 }
 0x5f6   : > { %3461 = vrot.lane.b32.xlu0 %v3455_v37, %s12041_s3  ;;  %s12310_s3 = smov 74   ;;  %v3526_v37 = vmul.f32 %v12311_v44, %v9203_v50  ;;  %v3570_v23 = vmul.f32 %v12319_v7, %v3563_v27  ;;  %v12330_v27 = vld [vmem:[#allocation99_spill] sm:$0xff] }
 0x5f7   : > { %v9555_v9 = vpop.permute.xlu0 %3580 }
 0x5f8   : > { %3370 = vrot.lane.b32.xlu1 %v3364_v26, %s12310_s3  ;;  %v3533_v39 = vmul.f32 %v12318_v43, %v3526_v37  ;;  %v3635_v37 = vmul.f32 %v12327_v28, %v3628_v33 }
 0x5fa   : > { %3487 = vrot.lane.b32.xlu0 %v3480_v10, %s12102_s0  ;;  %v12315_v10 = vld [vmem:[#allocation94_spill] sm:$0xff]  ;;  %s12320_s0 = smov 58  }
 0x5fb   : > { %v12316_v26 = vunpack.i.l.bf16 %v12315_v10  ;;  %12322 = vst [vmem:[#allocation94_spill] sm:$0xff] %v9536_v20  ;;  %v12325_v10 = vld [vmem:[#allocation134_spill] sm:$0xff]  ;;  %v12331_v20 = vld [vmem:[#allocation123_spill] sm:$0xff] }
 0x5fc   : > { %3434 = vrot.lane.b32.xlu1 %v3428_v53, %s12098_s15  ;;  %v12324_v53 = vld [vmem:[#allocation132_spill] sm:$0xff] }
 0x5fd   : > { %v3600_v44 = vmul.f32 %v12316_v26, %v9203_v50  ;;  %v3656_v2 = vmul.f32 %v12324_v53, %v9203_v50  ;;  %v3737_v26 = vmul.f32 %v12325_v10, %v9203_v50  ;;  %12333 = vst [vmem:[#allocation132_spill] sm:$0xff] %v9555_v9  ;;  %v12337_v10 = vld [vmem:[#allocation121_spill] sm:$0xff]  ;;  %v12346_v9 = vld [vmem:[#allocation103_spill] sm:$0xff] }
 0x5fe   : > { %3512 = vrot.lane.b32.xlu0 %v3506_v47, %s12105_s23  ;;  %v9538_v47 = vpop.permute.xlu1 %3726  ;;  %s12328_s23 = smov 48  }
 0x5ff   : > { %12323 = vst [vmem:[#allocation127_spill] sm:$0xff] %v9538_v47  ;;  %v3607_v29 = vmul.f32 %v12326_v40, %v3600_v44  ;;  %v3663_v47 = vmul.f32 %v12330_v27, %v3656_v2  ;;  %v3744_v14 = vmul.f32 %v12331_v20, %v3737_v26  ;;  %v12336_v44 = vld [vmem:[#allocation133_spill] sm:$0xff] }
 0x600   : > { %3539 = vrot.lane.b32.xlu1 %v3533_v39, %s12321_s22  ;;  %v3709_v33 = vmul.f32 %v12336_v44, %v9203_v50 }
 0x602   : > { %3576 = vrot.lane.b32.xlu0 %v3570_v23, %s12320_s0  ;;  %v12329_v23 = vunpack.i.l.bf16 %v9152_v25  ;;  %v9553_v53 = vpop.permute.xlu1 %3791  ;;  %s12334_s0 = smov 43  }
 0x603   : > { %12332 = vst [vmem:[#allocation110_spill] sm:$0xff] %v9553_v53 }
 0x604   : > { %3613 = vrot.lane.b32.xlu1 %v3607_v29, %s12328_s23  ;;  %v3810_v39 = vmul.f32 %v12329_v23, %v9203_v50  ;;  %v12338_v29 = vunpack.i.l.bf16 %v12337_v10  ;;  %v12340_v23 = vld [vmem:[#allocation119_spill] sm:$0xff]  ;;  %v3716_v10 = vmul.f32 %v12346_v9, %v3709_v33  ;;  %v12353_v33 = vld [vmem:[#allocation109_spill] sm:$0xff] }
 0x606   : > { %3641 = vrot.lane.b32.xlu0 %v3635_v37, %s12205_s6  ;;  %v3881_v25 = vmul.f32 %v12338_v29, %v9203_v50  ;;  %v12339_v37 = vld [vmem:[#allocation102_spill] sm:$0xff]  ;;  %v3817_v26 = vmul.f32 %v12340_v23, %v3810_v39  ;;  %v9567_v20 = vpop.permute.xlu1 %3863  ;;  %s12342_s6 = smov 32   ;;  %v12347_v29 = vld [vmem:[#allocation49_spill] sm:$0xff]  ;;  %v12350_v39 = vunpack.i.l.bf16 %v9161_v21  ;;  %v12356_v21 = vunpack.i.h.bf16 %v8397_v22 }
 0x607   : > { %v3689_v2 = vmul.f32 %v12339_v37, %v9237_v62  ;;  %12341 = vst [vmem:[#allocation134_spill] sm:$0xff] %v9567_v20  ;;  %v12362_v22 = vld [vmem:[#allocation85_spill] sm:$0xff] }
 0x608   : > { %3669 = vrot.lane.b32.xlu1 %v3663_v47, %s12335_s9  ;;  %v12344_v47 = vld [vmem:[#allocation115_spill] sm:$0xff]  ;;  %v3888_v28 = vmul.f32 %v12347_v29, %v3881_v25  ;;  %v3846_v37 = vmul.f32 %v12350_v39, %v9203_v50  ;;  %v12357_v39 = vld [vmem:[#allocation57_spill] sm:$0xff] }
 0x609   : > { %v12345_v44 = vunpack.i.l.bf16 %v12344_v47  ;;  %v12352_v47 = vld [vmem:[#allocation70_spill] sm:$0xff] }
 0x60a   : > { %3750 = vrot.lane.b32.xlu0 %v3744_v14, %s12334_s0  ;;  %v9571_v14 = vpop.permute.xlu0 %3645  ;;  %v9578_v7 = vpop.permute.xlu1 %3922  ;;  %s12349_s0 = smov 44  }
 0x60b   : > { %12343 = vst [vmem:[#allocation114_spill] sm:$0xff] %v9571_v14  ;;  %v3774_v53 = vmul.f32 %v12345_v44, %v9203_v50  ;;  %12348 = vst [vmem:[#allocation99_spill] sm:$0xff] %v9578_v7  ;;  %v3913_v44 = vmul.f32 %v12352_v47, %v9237_v62  ;;  %v12358_v7 = vld [vmem:[#allocation69_spill] sm:$0xff]  ;;  %v12359_v47 = vld [vmem:[#allocation68_spill] sm:$0xff] }
 0x60c   : > { %3696 = vrot.lane.b32.xlu1 %v3689_v2, %s12208_s24  ;;  %v12351_v2 = vunpack.i.l.bf16 %v9247_v5  ;;  %s12355_s24 = smov 42   ;;  %v3853_v14 = vmul.f32 %v12358_v7, %v3846_v37 }
 0x60d   : > { %v3781_v20 = vmul.f32 %v12353_v33, %v3774_v53 }
 0x60e   : > { %3823 = vrot.lane.b32.xlu0 %v3817_v26, %s12342_s6  ;;  %v3941_v26 = vmul.f32 %v12351_v2, %v9203_v50  ;;  %v9591_v25 = vpop.permute.xlu0 %3698  ;;  %v3092_v2 = vmul.f32 %v12357_v39, %v9237_v62 }
 0x60f   : > { %12354 = vst [vmem:[#allocation133_spill] sm:$0xff] %v9591_v25 }
 0x610   : > { %3722 = vrot.lane.b32.xlu1 %v3716_v10, %s12349_s0  ;;  %v2564_v10 = vmul.f32 %v12356_v21, %v9237_v62  ;;  %v3948_v29 = vmul.f32 %v12359_v47, %v3941_v26  ;;  %v12363_v21 = vunpack.i.h.bf16 %v12362_v22  ;;  %v3099_v39 = vmul.f32 %v8903_v12, %v3092_v2  ;;  %v12368_v2 = vld [vmem:[#allocation62_spill] sm:$0xff] }
 0x612   : > { %3894 = vrot.lane.b32.xlu0 %v3888_v28, %s12225_s4  ;;  %s7385_s4 = smov 28   ;;  %v9606_v53 = vpop.permute.xlu0 %3754  ;;  %v3156_v25 = vmul.f32 %v12363_v21, %v9237_v62  ;;  %v2571_v37 = vmul.f32 %v8381_v58, %v2564_v10  ;;  %v3294_v21 = vmul.f32 %v9237_v62, %v12368_v2 }
 0x613   : > { %12360 = vst [vmem:[#allocation121_spill] sm:$0xff] %v9606_v53 }
 0x614   : > { %3787 = vrot.lane.b32.xlu1 %v3781_v20, %s12355_s24  ;;  %v12361_v20 = vunpack.i.h.bf16 %v8419_v54  ;;  %v12365_v54 = vld [vmem:[#allocation128_spill] sm:$0xff]  ;;  %v3163_v22 = vmul.f32 %v8915_v52, %v3156_v25  ;;  %v12370_v52 = vunpack.i.h.bf16 %v8972_v18  ;;  %v12373_v18 = vunpack.i.h.bf16 %v12160_v19 }
 0x615   : > { %v12378_v19 = vld [vmem:[#allocation84_spill] sm:$0xff] }
 0x616   : > { %3920 = vrot.lane.b32.xlu0 %v3913_v44, %s12228_s30  ;;  %v2599_v44 = vmul.f32 %v12361_v20, %v9237_v62  ;;  %v3219_v20 = vmul.f32 %v12365_v54, %v9237_v62  ;;  %v9625_v53 = vpop.permute.xlu0 %3827  ;;  %v9647_v25 = vsel %vm3352_vm4, %v9485_v51, %v12370_v52  ;;  %s12387_s30 = smov 107   ;;  %vm2763_vm4 = vcmask 998400   ;;  %v12427_v51 = vld [vmem:[#allocation50_spill] sm:$0xff] }
 0x617   : > { %12366 = vst [vmem:[#allocation102_spill] sm:$0xff] %v9625_v53  ;;  %12371 = vst [vmem:[#allocation115_spill] sm:$0xff] %v9647_v25 }
 0x618   : > { %v9595_v28 = vpop.permute.xlu1 %2636  ;;  %3859 = vrot.lane.b32.xlu1 %v3853_v14, %s12222_s13  ;;  %v12364_v14 = vunpack.i.h.bf16 %v8448_v32  ;;  %v2606_v12 = vmul.f32 %v12156_v42, %v2599_v44  ;;  %v12367_v32 = vunpack.i.h.bf16 %v12157_v36  ;;  %v12372_v36 = vunpack.i.h.bf16 %v12158_v11 }
 0x619   : > { %v2782_v11 = vmul.f32 %v12373_v18, %v9237_v62 }
 0x61a   : > { %3954 = vrot.lane.b32.xlu0 %v3948_v29, %s7385_s4  ;;  %v2659_v29 = vmul.f32 %v12364_v14, %v9237_v62  ;;  %v2695_v10 = vmul.f32 %v12367_v32, %v9237_v62  ;;  %v2746_v44 = vmul.f32 %v12372_v36, %v9237_v62 }
 0x61b   : > { %v2789_v52 = vmul.f32 %v8505_v13, %v2782_v11  ;;  %v12381_v13 = vld [vmem:[#allocation93_spill] sm:$0xff] }
 0x61c   : > { %v9616_v26 = vpop.permute.xlu1 %2873  ;;  %2579 = vrot.lane.b32.xlu1 %v2571_v37, %s11973_s1  ;;  %v9639_v37 = vpop.permute.xlu0 %3898  ;;  %v2666_v42 = vmul.f32 %v12159_v1, %v2659_v29  ;;  %v2702_v14 = vmul.f32 %v8467_v49, %v2695_v10  ;;  %v3358_v1 = vmul.f32 %v9647_v25, %v9237_v62 }
 0x61d   : > { %12369 = vst [vmem:[#allocation119_spill] sm:$0xff] %v9639_v37 }
 0x61e   : > { %3107 = vrot.lane.b32.xlu0 %v3099_v39, %s12082_s11  ;;  %v3226_v39 = vmul.f32 %v8939_v48, %v3219_v20  ;;  %v3301_v48 = vmul.f32 %v8952_v15, %v3294_v21  ;;  %v2753_v15 = vmul.f32 %v8480_v46, %v2746_v44  ;;  %v12377_v21 = vunpack.i.h.bf16 %v9247_v5  ;;  %v12380_v44 = vld [vmem:[#allocation136_spill] sm:$0xff]  ;;  %s12408_s11 = smov 64  }
 0x620   : > { %2614 = vrot.lane.b32.xlu1 %v2606_v12, %s11979_s7  ;;  %v9631_v58 = vpop.permute.xlu1 %3279  ;;  %v9654_v20 = vpop.permute.xlu0 %3078  ;;  %v3365_v12 = vmul.f32 %v8959_v17, %v3358_v1  ;;  %v12379_v17 = vld [vmem:[#allocation90_spill] sm:$0xff] }
 0x621   : > { %v2836_v36 = vmul.f32 %v12379_v17, %v9237_v62 }
 0x622   : > { %3171 = vrot.lane.b32.xlu0 %v3163_v22, %s12299_s2  ;;  %v12374_v22 = vld [vmem:[#allocation135_spill] sm:$0xff]  ;;  %s7388_s2 = smov 5  }
 0x623   : > { %v3422_v49 = vmul.f32 %v9237_v62, %v12374_v22  ;;  %v2843_v11 = vmul.f32 %v12163_v59, %v2836_v36  ;;  %v12386_v36 = vld [vmem:[#allocation138_spill] sm:$0xff] }
 0x624   : > { %2674 = vrot.lane.b32.xlu1 %v2666_v42, %s12083_s26  ;;  %v9658_v29 = vpop.permute.xlu1 %3485  ;;  %v9670_v32 = vpop.permute.xlu0 %3694  ;;  %v2809_v42 = vmul.f32 %v12378_v19, %v9237_v62 }
 0x625   : > { %12375 = vst [vmem:[#allocation103_spill] sm:$0xff] %v9670_v32  ;;  %v3429_v46 = vmul.f32 %v9001_v31, %v3422_v49  ;;  %v2887_v31 = vmul.f32 %v12381_v13, %v9237_v62 }
 0x626   : > { %3234 = vrot.lane.b32.xlu0 %v3226_v39, %s12019_s14  ;;  %v3943_v39 = vmul.f32 0.0, %v12377_v21  ;;  %v2816_v5 = vmul.f32 %v8522_v6, %v2809_v42  ;;  %v12383_v21 = vld [vmem:[#allocation137_spill] sm:$0xff]  ;;  %v12384_v42 = vld [vmem:[#allocation52_spill] sm:$0xff]  ;;  %s12424_s14 = smov 58  }
 0x627   : > { %v2894_v19 = vmul.f32 %v8539_v55, %v2887_v31  ;;  %v3608_v59 = vmul.f32 %v12326_v40, %v12384_v42  ;;  %v12392_v42 = vld [vmem:[#allocation81_spill] sm:$0xff] }
 0x628   : > { %2710 = vrot.lane.b32.xlu1 %v2702_v14, %s12263_s27  ;;  %v9673_v10 = vpop.permute.xlu1 %3918  ;;  %v3527_v14 = vmul.f32 %v9237_v62, %v12380_v44  ;;  %v3950_v1 = vmul.f32 %v12359_v47, %v3943_v39  ;;  %v3657_v39 = vmul.f32 %v9237_v62, %v12383_v21  ;;  %v3710_v44 = vmul.f32 %v9237_v62, %v12386_v36 }
 0x629   : > { %12376 = vst [vmem:[#allocation70_spill] sm:$0xff] %v9673_v10  ;;  %v7018_v21 = vunpack.i.l.bf16 %v9335_v56 }
 0x62a   : > { %3308 = vrot.lane.b32.xlu0 %v3301_v48, %s12096_s20  ;;  %v3534_v22 = vmul.f32 %v12318_v43, %v3527_v14  ;;  %v3664_v14 = vmul.f32 %v12330_v27, %v3657_v39  ;;  %v3717_v13 = vmul.f32 %v12346_v9, %v3710_v44  ;;  %v12389_v27 = vld [vmem:[#allocation95_spill] sm:$0xff]  ;;  %s12390_s20 = sld [smem:[#allocation20_spill]]  ;;  %v12391_v39 = vld [vmem:[#allocation66_spill] sm:$0xff] }
 0x62b   : > { %v12394_v44 = vld [vmem:[#allocation83_spill] sm:$0xff] }
 0x62c   : > { %2761 = vrot.lane.b32.xlu1 %v2753_v15, %s12266_s12  ;;  %v12382_v15 = vld [vmem:[#allocation124_spill] sm:$0xff] }
 0x62e   : > { %3372 = vrot.lane.b32.xlu0 %v3365_v12, %s12310_s3  ;;  %v2914_v12 = vmul.f32 %v12382_v15, %v9237_v62  ;;  %s12429_s3 = smov 47  }
 0x630   : > { %2797 = vrot.lane.b32.xlu1 %v2789_v52, %s11976_s10  ;;  %v9691_v18 = vpop.permute.xlu1 %2577  ;;  %v2921_v55 = vmul.f32 %v8798_v16, %v2914_v12 }
 0x632   : > { %3436 = vrot.lane.b32.xlu0 %v3429_v46, %s12098_s15  ;;  %v12385_v46 = vunpack.i.h.bf16 %v8746_v30  ;;  %s12446_s15 = smov 30  }
 0x634   : > { %v9688_v48 = vpop.permute.xlu0 %2612  ;;  %2824 = vrot.lane.b32.xlu1 %v2816_v5, %s11972_s18  ;;  %v2951_v17 = vmul.f32 %v12385_v46, %v9237_v62 }
 0x636   : > { %3958 = vrot.lane.b32.xlu0 %v3950_v1, %s7385_s4  ;;  %v9701_v6 = vpop.permute.xlu1 %2638  ;;  %v12388_v1 = vunpack.i.h.bf16 %v8800_v34  ;;  %v2958_v16 = vmul.f32 %v12172_v8, %v2951_v17  ;;  %v3782_v34 = vmul.f32 %v12353_v33, %v9297_v41  ;;  %v7019_v8 = vunpack.i.h.bf16 %v9335_v56  ;;  %v12393_v17 = vld [vmem:[#allocation108_spill] sm:$0xff]  ;;  %v4043_v56 = vld [vmem:[%s12390_s20] sm:$0xff]  ;;  %s7390_s20 = smov 121  }
 0x637   : > { %v3854_v41 = vmul.f32 %v12358_v7, %v12392_v42  ;;  %v11871_v36 = vunpack.i.l.bf16 %v12393_v17  ;;  %v12398_v42 = vld [vmem:[#allocation87_spill] sm:$0xff] }
 0x638   : > { %v9699_v49 = vpop.permute.xlu0 %2708  ;;  %2851 = vrot.lane.b32.xlu1 %v2843_v11, %s11982_s17  ;;  %v2987_v30 = vmul.f32 %v12388_v1, %v9237_v62  ;;  %v3974_v46 = vsel %vm3973_vm0, %v7018_v21, %v7019_v8  ;;  %vm12414_vm0 = vcmask 908288  }
 0x639   : > { %v3979_v1 = vmul.f32 %v3974_v46, %v9237_v62 }
 0x63a   : > { %3541 = vrot.lane.b32.xlu0 %v3534_v22, %s12321_s22  ;;  %v9714_v52 = vpop.permute.xlu1 %2672  ;;  %v3014_v22 = vmul.f32 %v12389_v27, %v9237_v62  ;;  %v2994_v15 = vmul.f32 %v8964_v24, %v2987_v30  ;;  %v3041_v24 = vmul.f32 %v12391_v39, %v9237_v62  ;;  %s12405_s22 = smov 75  }
 0x63c   : > { %v9712_v43 = vpop.permute.xlu0 %2759  ;;  %2902 = vrot.lane.b32.xlu1 %v2894_v19, %s12056_s29  ;;  %v3021_v19 = vmul.f32 %v8808_v35, %v3014_v22  ;;  %v3048_v7 = vmul.f32 %v8982_v38, %v3041_v24  ;;  %v3192_v22 = vmul.f32 %v9408_v0, %v9237_v62  ;;  %v12397_v24 = vld [vmem:[#allocation112_spill] sm:$0xff] }
 0x63e   : > { %3615 = vrot.lane.b32.xlu0 %v3608_v59, %s12328_s23  ;;  %v9727_v5 = vpop.permute.xlu1 %2875 }
 0x640   : > { %v9725_v40 = vpop.permute.xlu0 %2795  ;;  %2929 = vrot.lane.b32.xlu1 %v2921_v55, %s12387_s30  ;;  %v11872_v55 = vunpack.i.h.bf16 %v12394_v44  ;;  %s12550_s30 = smov 125  }
 0x642   : > { %3671 = vrot.lane.b32.xlu0 %v3664_v14, %s12335_s9  ;;  %v9737_v11 = vpop.permute.xlu1 %2900  ;;  %v12395_v14 = vld [vmem:[#allocation98_spill] sm:$0xff]  ;;  %v4017_v27 = vmul.f32 0.0, %v11872_v55  ;;  %s12531_s9 = smov 51  }
 0x643   : > { %v3119_v35 = vmul.f32 %v12395_v14, %v9237_v62 }
 0x644   : > { %v9735_v31 = vpop.permute.xlu0 %2822  ;;  %2966 = vrot.lane.b32.xlu1 %v2958_v16, %s12282_s19  ;;  %v2540_v16 = vmul.f32 0.0, %v11871_v36  ;;  %s12433_s19 = smov 43  }
 0x646   : > { %3724 = vrot.lane.b32.xlu0 %v3717_v13, %s12349_s0  ;;  %v9749_v9 = vpop.permute.xlu1 %2927  ;;  %s12540_s0 = sld [smem:[#allocation21_spill]] }
 0x648   : > { %v9745_v12 = vpop.permute.xlu0 %2849  ;;  %3002 = vrot.lane.b32.xlu1 %v2994_v15, %s11980_s5  ;;  %v3126_v15 = vmul.f32 %v8996_v4, %v3119_v35  ;;  %v12400_v4 = vld [vmem:[#allocation55_spill] sm:$0xff] }
 0x649   : > { %v3246_v35 = vmul.f32 %v12400_v4, %v9237_v62 }
 0x64a   : > { %3789 = vrot.lane.b32.xlu0 %v3782_v34, %s12355_s24  ;;  %v9762_v59 = vpop.permute.xlu1 %2964  ;;  %v12396_v34 = vld [vmem:[#allocation101_spill] sm:$0xff]  ;;  %s7389_s24 = smov 4  }
 0x64b   : > { %v3986_v38 = vmul.f32 %v12396_v34, %v3979_v1  ;;  %v3199_v1 = vmul.f32 %v9009_v61, %v3192_v22  ;;  %v12403_v22 = vld [vmem:[#allocation116_spill] sm:$0xff] }
 0x64c   : > { %v9760_v33 = vpop.permute.xlu0 %3000  ;;  %3029 = vrot.lane.b32.xlu1 %v3021_v19, %s11983_s21  ;;  %v2581_v19 = vsel %vm1234_vm6, %v12397_v24, %v9691_v18  ;;  %s7386_s21 = smov 27   ;;  %v3253_v24 = vmul.f32 %v9021_v45, %v3246_v35 }
 0x64e   : > { %3861 = vrot.lane.b32.xlu0 %v3854_v41, %s12222_s13  ;;  %v9775_v13 = vpop.permute.xlu1 %3027  ;;  %v2548_v41 = vmul.f32 %v12398_v42, %v2540_v16  ;;  %v12401_v16 = vld [vmem:[#allocation125_spill] sm:$0xff]  ;;  %s12530_s13 = sld [smem:[#allocation23_spill]] }
 0x650   : > { %v9773_v30 = vpop.permute.xlu0 %3132  ;;  %3056 = vrot.lane.b32.xlu1 %v3048_v7, %s11999_s8  ;;  %v2586_v7 = vadd.f32 %v2581_v19, %v2548_v41  ;;  %s7387_s8 = smov 26   ;;  %v2640_v19 = vsel %vm1721_vm10, %v12403_v22, %v9595_v28  ;;  %v12404_v41 = vld [vmem:[#allocation120_spill] sm:$0xff] }
 0x652   : > { %4046 = vperm.xlu0 %7021, %v4043_v56   ;;  %v9786_v39 = vpop.permute.xlu1 %3054  ;;  %v12399_v56 = vld [vmem:[#allocation78_spill] sm:$0xff] }
 0x653   : > { %v4024_v14 = vmul.f32 %v12399_v56, %v4017_v27 }
 0x654   : > { %v9792_v46 = vpop.permute.xlu0 %3205  ;;  %3134 = vrot.lane.b32.xlu1 %v3126_v15, %s12286_s16  ;;  %v12402_v15 = vld [vmem:[#allocation139_spill] sm:$0xff]  ;;  %s12415_s16 = smov 62  }
 0x655   : > { %v3321_v27 = vmul.f32 %v9237_v62, %v12402_v15 }
 0x656   : > { %3993 = vrot.lane.b32.xlu0 %v3986_v38, %s7386_s21  ;;  %v9800_v36 = vpop.permute.xlu1 %3080  ;;  %v2616_v38 = vsel %vm1285_vm12, %v12401_v16, %v9688_v48 }
 0x657   : > { %v2621_v55 = vadd.f32 %v2616_v38, %v2586_v7  ;;  %v3978_v7 = vmul.f32 %v7018_v21, %v9203_v50  ;;  %v12406_v38 = vld [vmem:[#allocation74_spill] sm:$0xff]  ;;  %v12409_v21 = vld [vmem:[#allocation107_spill] sm:$0xff] }
 0x658   : > { %3207 = vrot.lane.b32.xlu1 %v3199_v1, %s12094_s28  ;;  %v9810_v25 = vpop.permute.xlu0 %3259  ;;  %v3328_v1 = vmul.f32 %v9030_v63, %v3321_v27  ;;  %v3980_v27 = vmul.f32 0.0, %v7019_v8  ;;  %v12411_v8 = vld [vmem:[#allocation111_spill] sm:$0xff] }
 0x659   : > { %v2645_v16 = vadd.f32 %v2640_v19, %v2621_v55  ;;  %v3985_v19 = vmul.f32 %v12396_v34, %v3978_v7  ;;  %v2799_v7 = vsel %vm1321_vm13, %v12411_v8, %v9725_v40 }
 0x65a   : > { %4032 = vrot.lane.b32.xlu0 %v4024_v14, %s7387_s8  ;;  %v9812_v61 = vpop.permute.xlu1 %3105  ;;  %v2676_v14 = vsel %vm11902_vm7, %v12404_v41, %v9714_v52  ;;  %v12407_v41 = vld [vmem:[#allocation105_spill] sm:$0xff] }
 0x65b   : > { %v2681_v45 = vadd.f32 %v2676_v14, %v2645_v16  ;;  %v2713_v63 = vsel %vm11901_vm15, %v12407_v41, %v9699_v49  ;;  %v12410_v41 = vld [vmem:[#allocation63_spill] sm:$0xff] }
 0x65c   : > { %3261 = vrot.lane.b32.xlu1 %v3253_v24, %s12017_s25  ;;  %v9824_v35 = vpop.permute.xlu0 %3281  ;;  %v3402_v24 = vmul.f32 %v9035_v3, %v12406_v38  ;;  %v2764_v3 = vsel %vm2763_vm4, %v12409_v21, %v9712_v43  ;;  %v3987_v38 = vmul.f32 %v12396_v34, %v3980_v27  ;;  %v12412_v21 = vld [vmem:[#allocation64_spill] sm:$0xff]  ;;  %v12413_v27 = vld [vmem:[#allocation117_spill] sm:$0xff]  ;;  %s12418_s25 = smov 60  }
 0x65d   : > { %v2718_v55 = vadd.f32 %v2713_v63, %v2681_v45  ;;  %v3449_v45 = vmul.f32 %v9237_v62, %v12410_v41 }
 0x65e   : > { %v9822_v2 = vpop.permute.xlu1 %3169 }
 0x65f   : > { %v2769_v16 = vadd.f32 %v2764_v3, %v2718_v55  ;;  %v3500_v55 = vmul.f32 %v9237_v62, %v12412_v21  ;;  %v2826_v3 = vsel %vm12414_vm0, %v12413_v27, %v9735_v31  ;;  %vm2931_vm0 = vcmask 875520  }
 0x660   : > { %3335 = vrot.lane.b32.xlu1 %v3328_v1, %s12405_s22  ;;  %v9837_v14 = vpop.permute.xlu0 %3333  ;;  %s12563_s22 = sld [smem:[#allocation24_spill]] }
 0x661   : > { %v2804_v63 = vadd.f32 %v2799_v7, %v2769_v16  ;;  %v3507_v16 = vmul.f32 %v9045_v57, %v3500_v55  ;;  %v12422_v57 = vld [vmem:[#allocation71_spill] sm:$0xff] }
 0x662   : > { %v9830_v22 = vpop.permute.xlu1 %3232  ;;  %v2877_v55 = vsel %vm11894_vm5, %v12422_v57, %v9616_v26  ;;  %v12430_v57 = vld [vmem:[#allocation123_spill] sm:$0xff] }
 0x663   : > { %v2831_v41 = vadd.f32 %v2826_v3, %v2804_v63  ;;  %v12420_v63 = vld [vmem:[#allocation80_spill] sm:$0xff] }
 0x664   : > { %3409 = vrot.lane.b32.xlu1 %v3402_v24, %s12408_s11  ;;  %v9853_v15 = vpop.permute.xlu0 %3407 }
 0x666   : > { %v9839_v1 = vpop.permute.xlu1 %3306 }
 0x668   : > { %3991 = vrot.lane.b32.xlu1 %v3985_v19, %s7386_s21  ;;  %v3456_v19 = vmul.f32 %v9041_v60, %v3449_v45  ;;  %v9866_v8 = vpop.permute.xlu0 %3461  ;;  %v12419_v45 = vld [vmem:[#allocation141_spill] sm:$0xff] }
 0x669   : > { %v3629_v4 = vmul.f32 %v9237_v62, %v12419_v45 }
 0x66a   : > { %v9848_v24 = vpop.permute.xlu1 %3370 }
 0x66c   : > { %3995 = vrot.lane.b32.xlu1 %v3987_v38, %s7386_s21  ;;  %v12416_v38 = vld [vmem:[#allocation113_spill] sm:$0xff]  ;;  %v9883_v0 = vpop.permute.xlu0 %3487  ;;  %s7391_s21 = smov 120  }
 0x66d   : > { %v2853_v21 = vsel %vm12417_vm9, %v12416_v38, %v9745_v12  ;;  %12423 = vst [vmem:[#allocation109_spill] sm:$0xff] %v9883_v0  ;;  %v12426_v38 = vld [vmem:[#allocation118_spill] sm:$0xff]  ;;  %vm12428_vm9 = vcmask 883712  }
 0x66e   : > { %v9859_v34 = vpop.permute.xlu1 %3434  ;;  %v2858_v60 = vadd.f32 %v2853_v21, %v2831_v41  ;;  %v12425_v41 = vld [vmem:[#allocation140_spill] sm:$0xff]  ;;  %v3636_v21 = vmul.f32 %v12426_v38, %v3629_v4 }
 0x66f   : > { %v12432_v4 = vld [vmem:[#allocation72_spill] sm:$0xff] }
 0x670   : > { %3463 = vrot.lane.b32.xlu1 %v3456_v19, %s12415_s16  ;;  %v12421_v19 = vld [vmem:[#allocation92_spill] sm:$0xff]  ;;  %v2882_v54 = vadd.f32 %v2877_v55, %v2858_v60  ;;  %v7025_v60 = vunpack.i.l.bf16 %v12394_v44  ;;  %s7393_s16 = smov 118  }
 0x671   : > { %v3571_v3 = vmul.f32 %v12421_v19, %v12420_v63  ;;  %v2904_v63 = vsel %vm12428_vm9, %v12427_v51, %v9737_v11  ;;  %vm12439_vm9 = vcmask 785408  }
 0x672   : > { %v9868_v7 = vpop.permute.xlu1 %3539  ;;  %v2909_v19 = vadd.f32 %v2904_v63, %v2882_v54  ;;  %v4015_v51 = vmul.f32 %v7025_v60, %v9203_v50  ;;  %v12434_v54 = vld [vmem:[#allocation65_spill] sm:$0xff] }
 0x674   : > { %3514 = vrot.lane.b32.xlu1 %v3507_v16, %s12418_s25  ;;  %v3738_v16 = vmul.f32 %v9237_v62, %v12425_v41  ;;  %v2932_v41 = vsel %vm2931_vm0, %v12432_v4, %v9749_v9  ;;  %s12571_s25 = sld [smem:[#allocation25_spill]] }
 0x675   : > { %v2937_v38 = vadd.f32 %v2932_v41, %v2909_v19  ;;  %v4022_v19 = vmul.f32 %v12399_v56, %v4015_v51 }
 0x676   : > { %v9876_v27 = vpop.permute.xlu1 %3613  ;;  %v3745_v55 = vmul.f32 %v12430_v57, %v3738_v16  ;;  %v12436_v16 = vld [vmem:[#allocation75_spill] sm:$0xff] }
 0x677   : > { %v2969_v57 = vsel %vm11890_vm2, %v12436_v16, %v9762_v59  ;;  %vm3173_vm2 = vcmask 736256  }
 0x678   : > { %3578 = vrot.lane.b32.xlu1 %v3571_v3, %s12424_s14  ;;  %v9897_v3 = vpop.permute.xlu0 %3512  ;;  %v2974_v37 = vadd.f32 %v2969_v57, %v2937_v38  ;;  %s12576_s14 = sld [smem:[#allocation26_spill]] }
 0x67a   : > { %v9889_v45 = vpop.permute.xlu1 %3669 }
 0x67c   : > { %3643 = vrot.lane.b32.xlu1 %v3636_v21, %s12429_s3  ;;  %v3818_v21 = vmul.f32 %v12340_v23, %v12434_v54  ;;  %v9913_v53 = vpop.permute.xlu0 %3576  ;;  %v12440_v54 = vld [vmem:[#allocation79_spill] sm:$0xff]  ;;  %s7394_s3 = smov 16  }
 0x67e   : > { %v9899_v10 = vpop.permute.xlu1 %3696 }
 0x67f   : > { %12431 = vst [vmem:[#allocation57_spill] sm:$0xff] %v9899_v10  ;;  %v12441_v10 = vld [vmem:[#allocation49_spill] sm:$0xff] }
 0x680   : > { %3752 = vrot.lane.b32.xlu1 %v3745_v55, %s12433_s19  ;;  %v12438_v55 = vld [vmem:[#allocation53_spill] sm:$0xff]  ;;  %v3889_v16 = vmul.f32 %v12441_v10, %v12440_v54  ;;  %v9925_v38 = vpop.permute.xlu0 %3641  ;;  %v12449_v54 = vld [vmem:[#allocation82_spill] sm:$0xff]  ;;  %s12583_s19 = sld [smem:[#allocation28_spill]] }
 0x681   : > { %v3004_v41 = vsel %vm12439_vm9, %v12438_v55, %v9760_v33  ;;  %vm12448_vm9 = vcmask 769024  }
 0x682   : > { %v9908_v63 = vpop.permute.xlu1 %3722  ;;  %v3009_v23 = vadd.f32 %v3004_v41, %v2974_v37  ;;  %v12447_v37 = vld [vmem:[#allocation91_spill] sm:$0xff] }
 0x683   : > { %12435 = vst [vmem:[#allocation69_spill] sm:$0xff] %v9908_v63 }
 0x684   : > { %3825 = vrot.lane.b32.xlu1 %v3818_v21, %s12342_s6  ;;  %v12443_v21 = vunpack.i.h.bf16 %v12394_v44  ;;  %v9942_v32 = vpop.permute.xlu0 %3750 }
 0x685   : > { %12450 = vst [vmem:[#allocation135_spill] sm:$0xff] %v9942_v32 }
 0x686   : > { %v9917_v4 = vpop.permute.xlu1 %3787  ;;  %v4011_v51 = vsel %vm11889_vm14, %v7025_v60, %v12443_v21  ;;  %v12452_v21 = vld [vmem:[#allocation104_spill] sm:$0xff]  ;;  %vm12456_vm14 = vcmask 629760  }
 0x687   : > { %12437 = vst [vmem:[#allocation68_spill] sm:$0xff] %v9917_v4  ;;  %v12444_v4 = vld [vmem:[#allocation73_spill] sm:$0xff]  ;;  %v4016_v10 = vmul.f32 %v4011_v51, %v9237_v62 }
 0x688   : > { %4028 = vrot.lane.b32.xlu1 %v4022_v19, %s7387_s8  ;;  %v3031_v63 = vsel %vm12445_vm11, %v12444_v4, %v9775_v13  ;;  %v3058_v19 = vsel %vm12448_vm9, %v12447_v37, %v9786_v39  ;;  %v6963_v4 = vunpack.i.h.bf16 %v12393_v17  ;;  %vm12453_vm11 = vcmask 752640  }
 0x689   : > { %v3036_v55 = vadd.f32 %v3031_v63, %v3009_v23  ;;  %v4023_v60 = vmul.f32 %v12399_v56, %v4016_v10  ;;  %v12451_v23 = vld [vmem:[#allocation100_spill] sm:$0xff]  ;;  %v3109_v51 = vsel %vm12453_vm11, %v12452_v21, %v9812_v61  ;;  %vm3136_vm9 = vcmask 744448  }
 0x68a   : > { %v9927_v57 = vpop.permute.xlu1 %3859  ;;  %v12455_v56 = vunpack.i.l.bf16 %v12393_v17  ;;  %v2542_v10 = vmul.f32 %v6963_v4, %v9237_v62  ;;  %v12458_v21 = vld [vmem:[#allocation96_spill] sm:$0xff]  ;;  %vm12463_vm11 = vcmask 908288  }
 0x68b   : > { %12442 = vst [vmem:[#allocation85_spill] sm:$0xff] %v9927_v57  ;;  %v3949_v57 = vmul.f32 %v12359_v47, %v12449_v54  ;;  %v3063_v44 = vadd.f32 %v3058_v19, %v3036_v55  ;;  %v9954_v55 = vpop.permute.xlu0 %3823 }
 0x68c   : > { %3896 = vrot.lane.b32.xlu1 %v3889_v16, %s12446_s15  ;;  %v3082_v16 = vsel %vm2035_vm8, %v12451_v23, %v9654_v20  ;;  %12454 = vst [vmem:[#allocation84_spill] sm:$0xff] %v9954_v55  ;;  %v2536_v19 = vsel %vm12456_vm14, %v12455_v56, %v6963_v4  ;;  %v12457_v23 = vld [vmem:[#allocation143_spill] sm:$0xff]  ;;  %vm12460_vm14 = vcmask 654336   ;;  %s12585_s15 = sld [smem:[#allocation29_spill]] }
 0x68d   : > { %v3087_v37 = vadd.f32 %v3082_v16, %v3063_v44  ;;  %v2541_v54 = vmul.f32 %v2536_v19, %v9203_v50  ;;  %v3137_v44 = vsel %vm3136_vm9, %v12457_v23, %v9773_v30 }
 0x68e   : > { %v2580_v41 = vpop.permute.xlu1 %2579 }
 0x68f   : > { %v3114_v47 = vadd.f32 %v3109_v51, %v3087_v37  ;;  %v3174_v51 = vsel %vm3173_vm2, %v12458_v21, %v9822_v2  ;;  %v2550_v37 = vmul.f32 %v12398_v42, %v2542_v10  ;;  %v2582_v17 = vsel %vm1234_vm6, %v9691_v18, %v2580_v41  ;;  %v9970_v56 = vpop.permute.xlu0 %3894  ;;  %v12459_v21 = vld [vmem:[#allocation144_spill] sm:$0xff] }
 0x690   : > { %3956 = vrot.lane.b32.xlu1 %v3949_v57, %s7385_s4  ;;  %v2549_v62 = vmul.f32 %v12398_v42, %v2541_v54  ;;  %v3209_v10 = vsel %vm12460_vm14, %v12459_v21, %v9792_v46  ;;  %v2641_v42 = vsel %vm1721_vm10, %v9595_v28, %v9701_v6  ;;  %v12462_v28 = vld [vmem:[#allocation146_spill] sm:$0xff]  ;;  %vm12464_vm14 = vcmask 900096   ;;  %s12528_s4 = sld [smem:[#allocation22_spill]] }
 0x691   : > { %v3142_v16 = vadd.f32 %v3137_v44, %v3114_v47  ;;  %v2588_v50 = vadd.f32 %v2580_v41, %v2550_v37  ;;  %v12461_v41 = vld [vmem:[#allocation97_spill] sm:$0xff] }
 0x692   : > { %v2615_v63 = vpop.permute.xlu1 %2614  ;;  %v2587_v47 = vadd.f32 %v2582_v17, %v2549_v62 }
 0x693   : > { %v2617_v4 = vsel %vm1285_vm12, %v9688_v48, %v2615_v63  ;;  %v3179_v19 = vadd.f32 %v3174_v51, %v3142_v16  ;;  %v2623_v44 = vadd.f32 %v2615_v63, %v2588_v50  ;;  %v9978_v0 = vpop.permute.xlu0 %3920  ;;  %v3236_v48 = vsel %vm2137_vm3, %v12461_v41, %v9830_v22 }
 0x694   : > { %4030 = vrot.lane.b32.xlu1 %v4023_v60, %s7387_s8  ;;  %v2622_v55 = vadd.f32 %v2617_v4, %v2587_v47  ;;  %s7392_s8 = smov 119  }
 0x695   : > { %v3214_v32 = vadd.f32 %v3209_v10, %v3179_v19  ;;  %v2647_v54 = vadd.f32 %v9701_v6, %v2623_v44  ;;  %v3263_v19 = vsel %vm2162_vm1, %v12462_v28, %v9810_v25 }
 0x696   : > { %v2675_v57 = vpop.permute.xlu1 %2674  ;;  %v2646_v63 = vadd.f32 %v2641_v42, %v2622_v55 }
 0x697   : > { %v2677_v16 = vsel %vm11902_vm7, %v9714_v52, %v2675_v57  ;;  %v3241_v51 = vadd.f32 %v3236_v48, %v3214_v32  ;;  %v2683_v17 = vadd.f32 %v2675_v57, %v2647_v54  ;;  %v9991_v50 = vpop.permute.xlu0 %3954 }
 0x698   : > { %v2682_v4 = vadd.f32 %v2677_v16, %v2646_v63 }
 0x699   : > { %v3268_v55 = vadd.f32 %v3263_v19, %v3241_v51 }
 0x69a   : > { %v2711_v60 = vpop.permute.xlu1 %2710 }
 0x69b   : > { %v2714_v62 = vsel %vm11901_vm15, %v9699_v49, %v2711_v60  ;;  %v2720_v47 = vadd.f32 %v2711_v60, %v2683_v17  ;;  %v3287_v42 = vadd.f32 %v9631_v58, %v3268_v55  ;;  %v3108_v41 = vpop.permute.xlu0 %3107 }
 0x69c   : > { %v2719_v44 = vadd.f32 %v2714_v62, %v2682_v4 }
 0x69e   : > { %v2762_v23 = vpop.permute.xlu1 %2761 }
 0x69f   : > { %v2765_v6 = vsel %vm2763_vm4, %v9712_v43, %v2762_v23  ;;  %v2771_v32 = vadd.f32 %v2762_v23, %v2720_v47  ;;  %v3317_v23 = vadd.f32 %v9839_v1, %v3287_v42  ;;  %v3172_v17 = vpop.permute.xlu0 %3171 }
 0x6a0   : > { %v2770_v21 = vadd.f32 %v2765_v6, %v2719_v44 }
 0x6a1   : > { %v3345_v62 = vadd.f32 %v9837_v14, %v3317_v23  ;;  %v3083_v23 = vsel %vm2035_vm8, %v9654_v20, %v9800_v36  ;;  %vm12471_vm8 = vcmask 654336  }
 0x6a2   : > { %v2798_v18 = vpop.permute.xlu1 %2797 }
 0x6a3   : > { %v2800_v57 = vsel %vm1321_vm13, %v9725_v40, %v2798_v18  ;;  %v2806_v49 = vadd.f32 %v2798_v18, %v2771_v32  ;;  %v3382_v47 = vadd.f32 %v9848_v24, %v3345_v62  ;;  %v3235_v6 = vpop.permute.xlu0 %3234 }
 0x6a4   : > { %v2805_v48 = vadd.f32 %v2800_v57, %v2770_v21 }
 0x6a6   : > { %v2825_v37 = vpop.permute.xlu1 %2824 }
 0x6a7   : > { %v2827_v10 = vsel %vm12463_vm11, %v9735_v31, %v2825_v37  ;;  %v2833_v54 = vadd.f32 %v2825_v37, %v2806_v49  ;;  %v2878_v31 = vsel %vm11894_vm5, %v9616_v26, %v9727_v5  ;;  %vm12465_vm11 = vcmask 883712   ;;  %v3309_v42 = vpop.permute.xlu0 %3308 }
 0x6a8   : > { %v2832_v63 = vadd.f32 %v2827_v10, %v2805_v48  ;;  %vm12467_vm5 = vcmask 785408  }
 0x6aa   : > { %v2852_v52 = vpop.permute.xlu1 %2851 }
 0x6ab   : > { %v2854_v43 = vsel %vm12464_vm14, %v9745_v12, %v2852_v52  ;;  %v2860_v16 = vadd.f32 %v2852_v52, %v2833_v54  ;;  %vm12466_vm14 = vcmask 867328  }
 0x6ac   : > { %v2859_v51 = vadd.f32 %v2854_v43, %v2832_v63 }
 0x6ad   : > { %v2884_v18 = vadd.f32 %v9727_v5, %v2860_v16 }
 0x6ae   : > { %v2903_v60 = vpop.permute.xlu1 %2902  ;;  %v2883_v4 = vadd.f32 %v2878_v31, %v2859_v51 }
 0x6af   : > { %v2905_v12 = vsel %vm12465_vm11, %v9737_v11, %v2903_v60  ;;  %v2911_v28 = vadd.f32 %v2903_v60, %v2884_v18  ;;  %v3418_v11 = vadd.f32 %v9853_v15, %v3382_v47  ;;  %vm12469_vm11 = vcmask 769024  }
 0x6b0   : > { %v2910_v55 = vadd.f32 %v2905_v12, %v2883_v4 }
 0x6b1   : > { %v3445_v54 = vadd.f32 %v9859_v34, %v3418_v11 }
 0x6b2   : > { %v2930_v40 = vpop.permute.xlu1 %2929 }
 0x6b3   : > { %v2933_v19 = vsel %vm2931_vm0, %v9749_v9, %v2930_v40  ;;  %v2939_v52 = vadd.f32 %v2930_v40, %v2911_v28  ;;  %vm12468_vm0 = vcmask 777216   ;;  %v3373_v40 = vpop.permute.xlu0 %3372 }
 0x6b4   : > { %v2938_v5 = vadd.f32 %v2933_v19, %v2910_v55 }
 0x6b6   : > { %v2967_v37 = vpop.permute.xlu1 %2966 }
 0x6b7   : > { %v2970_v26 = vsel %vm12466_vm14, %v9762_v59, %v2967_v37  ;;  %v2976_v32 = vadd.f32 %v2967_v37, %v2939_v52  ;;  %v3437_v55 = vpop.permute.xlu0 %3436  ;;  %vm3376_vm14 = vcmask 605184  }
 0x6b8   : > { %v2975_v21 = vadd.f32 %v2970_v26, %v2938_v5 }
 0x6ba   : > { %v3003_v44 = vpop.permute.xlu1 %3002 }
 0x6bb   : > { %v3005_v57 = vsel %vm12467_vm5, %v9760_v33, %v3003_v44  ;;  %v3011_v10 = vadd.f32 %v3003_v44, %v2976_v32  ;;  %vm12470_vm5 = vcmask 752640  }
 0x6bc   : > { %v3010_v48 = vadd.f32 %v3005_v57, %v2975_v21  ;;  %v3110_v62 = vsel %vm12470_vm5, %v9812_v61, %v3108_v41  ;;  %v10046_v21 = vpop.permute.xlu0 %3958  ;;  %vm12481_vm5 = vcmask 515072  }
 0x6be   : > { %v3030_v49 = vpop.permute.xlu1 %3029 }
 0x6bf   : > { %v3032_v9 = vsel %vm12468_vm0, %v9775_v13, %v3030_v49  ;;  %v3038_v60 = vadd.f32 %v3030_v49, %v3011_v10  ;;  %v3472_v13 = vadd.f32 %v9866_v8, %v3445_v54  ;;  %vm12478_vm0 = vcmask 523264  }
 0x6c0   : > { %v3037_v43 = vadd.f32 %v3032_v9, %v3010_v48 }
 0x6c1   : > { %v3496_v28 = vadd.f32 %v9658_v29, %v3472_v13  ;;  %v12477_v13 = vld [vmem:[#allocation59_spill] sm:$0xff] }
 0x6c2   : > { %v3057_v59 = vpop.permute.xlu1 %3056 }
 0x6c3   : > { %v3059_v63 = vsel %vm12469_vm11, %v9786_v39, %v3057_v59  ;;  %v3065_v16 = vadd.f32 %v3057_v59, %v3038_v60  ;;  %v12476_v59 = vld [vmem:[#allocation148_spill] sm:$0xff]  ;;  %vm12480_vm11 = vmmov %vm12478_vm0 }
 0x6c4   : > { %v3064_v33 = vadd.f32 %v3059_v63, %v3037_v43 }
 0x6c5   : > { %v3089_v51 = vadd.f32 %v9800_v36, %v3065_v16  ;;  %v3175_v36 = vsel %vm3173_vm2, %v9822_v2, %v3172_v17  ;;  %vm12472_vm2 = vcmask 629760  }
 0x6c6   : > { %v3088_v31 = vadd.f32 %v3083_v23, %v3064_v33  ;;  %v3135_v18 = vpop.permute.xlu1 %3134  ;;  %v3283_v10 = vsel %vm12472_vm2, %v9631_v58, %v9824_v35  ;;  %vm12484_vm2 = vcmask 506880  }
 0x6c7   : > { %v3116_v4 = vadd.f32 %v3108_v41, %v3089_v51  ;;  %v3138_v39 = vsel %vm3136_vm9, %v9773_v30, %v3135_v18  ;;  %v3523_v41 = vadd.f32 %v9897_v3, %v3496_v28  ;;  %v3237_v30 = vsel %vm2137_vm3, %v9830_v22, %v3235_v6  ;;  %v12473_v22 = vld [vmem:[#allocation67_spill] sm:$0xff] }
 0x6c8   : > { %v3115_v37 = vadd.f32 %v3110_v62, %v3088_v31  ;;  %vm3339_vm9 = vcmask 613376   ;;  %vm12474_vm3 = vcmask 621568   ;;  %v3377_v51 = vsel %vm3376_vm14, %v9848_v24, %v3373_v40 }
 0x6c9   : > { %v3144_v12 = vadd.f32 %v3135_v18, %v3116_v4  ;;  %v3378_v31 = vsel %vm3376_vm14, %v3373_v40, %v12477_v13  ;;  %v3440_v40 = vsel %vm12481_vm5, %v9859_v34, %v3437_v55  ;;  %vm3545_vm14 = vcmask 482304  }
 0x6ca   : > { %v3143_v19 = vadd.f32 %v3138_v39, %v3115_v37  ;;  %v3208_v20 = vpop.permute.xlu1 %3207  ;;  %v12479_v37 = vld [vmem:[#allocation150_spill] sm:$0xff] }
 0x6cb   : > { %v3181_v47 = vadd.f32 %v3172_v17, %v3144_v12  ;;  %v3210_v52 = vsel %vm12471_vm8, %v9792_v46, %v3208_v20  ;;  %v3551_v17 = vadd.f32 %v9868_v7, %v3523_v41  ;;  %vm12483_vm8 = vmmov %vm12481_vm5  ;;  %v12485_v41 = vld [vmem:[#allocation61_spill] sm:$0xff]  ;;  %vm3582_vm5 = vcmask 474112  }
 0x6cc   : > { %v3180_v44 = vadd.f32 %v3175_v36, %v3143_v19 }
 0x6cd   : > { %v3216_v61 = vadd.f32 %v3208_v20, %v3181_v47  ;;  %v3588_v54 = vadd.f32 %v9913_v53, %v3551_v17  ;;  %v12482_v20 = vld [vmem:[#allocation145_spill] sm:$0xff] }
 0x6ce   : > { %v3215_v26 = vadd.f32 %v3210_v52, %v3180_v44  ;;  %v3262_v5 = vpop.permute.xlu1 %3261  ;;  %v3441_v36 = vsel %vm12483_vm8, %v3437_v55, %v12482_v20  ;;  %vm3619_vm8 = vcmask 392192   ;;  %v12504_v20 = vld [vmem:[#allocation131_spill] sm:$0xff] }
 0x6cf   : > { %v3243_v32 = vadd.f32 %v3235_v6, %v3216_v61  ;;  %v3264_v11 = vsel %vm2162_vm1, %v9810_v25, %v3262_v5  ;;  %v3313_v6 = vsel %vm12474_vm3, %v3309_v42, %v12473_v22  ;;  %vm12475_vm1 = vmmov %vm12474_vm3  ;;  %v3625_v18 = vadd.f32 %v9876_v27, %v3588_v54  ;;  %v12496_v54 = vld [vmem:[#allocation69_spill] sm:$0xff] }
 0x6d0   : > { %v3242_v57 = vadd.f32 %v3237_v30, %v3215_v26  ;;  %v3312_v25 = vsel %vm12475_vm1, %v9839_v1, %v3309_v42  ;;  %vm12488_vm3 = vcmask 498688  }
 0x6d1   : > { %v3270_v2 = vadd.f32 %v3262_v5, %v3243_v32  ;;  %vm12490_vm1 = vmmov %vm12488_vm3 }
 0x6d2   : > { %v3269_v49 = vadd.f32 %v3264_v11, %v3242_v57  ;;  %v3336_v46 = vpop.permute.xlu1 %3335  ;;  %v12487_v57 = vld [vmem:[#allocation109_spill] sm:$0xff]  ;;  %v12489_v11 = vld [vmem:[#allocation147_spill] sm:$0xff] }
 0x6d3   : > { %v3289_v9 = vadd.f32 %v9824_v35, %v3270_v2  ;;  %v3341_v63 = vsel %vm3339_vm9, %v3336_v46, %v12476_v59  ;;  %v3340_v58 = vsel %vm3339_vm9, %v9837_v14, %v3336_v46  ;;  %v3542_v35 = vpop.permute.xlu0 %3541  ;;  %v3653_v14 = vadd.f32 %v9925_v38, %v3625_v18  ;;  %vm12486_vm9 = vmmov %vm12484_vm2  ;;  %v12491_v2 = vld [vmem:[#allocation103_spill] sm:$0xff]  ;;  %v12498_v18 = vld [vmem:[#allocation130_spill] sm:$0xff] }
 0x6d4   : > { %v3288_v48 = vadd.f32 %v3283_v10, %v3269_v49  ;;  %v3491_v34 = vsel %vm12488_vm3, %v9658_v29, %v12487_v57  ;;  %v3492_v55 = vsel %vm12490_vm1, %v12487_v57, %v12489_v11  ;;  %v3546_v29 = vsel %vm3545_vm14, %v9868_v7, %v3542_v35 }
 0x6d5   : > { %v3319_v60 = vadd.f32 %v3313_v6, %v3289_v9  ;;  %v3681_v47 = vadd.f32 %v9889_v45, %v3653_v14  ;;  %v12493_v9 = vld [vmem:[#allocation94_spill] sm:$0xff]  ;;  %vm12503_vm3 = vcmask 375808  }
 0x6d6   : > { %v3318_v43 = vadd.f32 %v3312_v25, %v3288_v48  ;;  %v3410_v16 = vpop.permute.xlu1 %3409  ;;  %v12495_v25 = vld [vmem:[#allocation149_spill] sm:$0xff]  ;;  %v12501_v14 = vld [vmem:[#allocation114_spill] sm:$0xff]  ;;  %vm12505_vm1 = vmmov %vm12503_vm3 }
 0x6d7   : > { %v3347_v33 = vadd.f32 %v3341_v63, %v3319_v60  ;;  %v3413_v4 = vsel %vm12478_vm0, %v9853_v15, %v3410_v16  ;;  %v3414_v39 = vsel %vm12480_vm11, %v3410_v16, %v12479_v37  ;;  %v3616_v12 = vpop.permute.xlu0 %3615  ;;  %v3706_v17 = vadd.f32 %v12491_v2, %v3681_v47 }
 0x6d8   : > { %v3346_v23 = vadd.f32 %v3340_v58, %v3318_v43  ;;  %vm12492_vm0 = vcmask 490496   ;;  %v3547_v60 = vsel %vm3545_vm14, %v3542_v35, %v12495_v25  ;;  %v3621_v7 = vsel %vm3619_vm8, %v3616_v12, %v12498_v18  ;;  %v12499_v35 = vld [vmem:[#allocation135_spill] sm:$0xff]  ;;  %v12515_v25 = vld [vmem:[#allocation85_spill] sm:$0xff] }
 0x6d9   : > { %v3384_v42 = vadd.f32 %v3378_v31, %v3347_v33  ;;  %vm12494_vm11 = vmmov %vm12492_vm0  ;;  %v3734_v43 = vadd.f32 %v12496_v54, %v3706_v17  ;;  %v3620_v31 = vsel %vm3619_vm8, %v9876_v27, %v3616_v12  ;;  %vm3728_vm14 = vcmask 359424  }
 0x6da   : > { %v3383_v1 = vadd.f32 %v3377_v51, %v3346_v23  ;;  %v10062_v62 = vpop.permute.xlu1 %3991 }
 0x6db   : > { %v3420_v19 = vadd.f32 %v3414_v39, %v3384_v42  ;;  %v3672_v5 = vpop.permute.xlu0 %3671 }
 0x6dc   : > { %v3419_v28 = vadd.f32 %v3413_v4, %v3383_v1  ;;  %v3762_v1 = vadd.f32 %v12499_v35, %v3734_v43  ;;  %v3676_v27 = vsel %vm12503_vm3, %v9889_v45, %v3672_v5  ;;  %v3677_v12 = vsel %vm12505_vm1, %v3672_v5, %v12504_v20  ;;  %v12511_v5 = vld [vmem:[#allocation127_spill] sm:$0xff] }
 0x6dd   : > { %v3447_v52 = vadd.f32 %v3441_v36, %v3420_v19  ;;  %v12506_v36 = vld [vmem:[#allocation68_spill] sm:$0xff]  ;;  %vm12517_vm3 = vcmask 252928  }
 0x6de   : > { %v10069_v24 = vpop.permute.xlu1 %3995  ;;  %v3446_v15 = vadd.f32 %v3440_v40, %v3419_v28  ;;  %v3799_v47 = vadd.f32 %v12506_v36, %v3762_v1  ;;  %vm12519_vm1 = vmmov %vm12517_vm3 }
 0x6df   : > { %v3725_v59 = vpop.permute.xlu0 %3724 }
 0x6e0   : > { %v3729_v45 = vsel %vm3728_vm14, %v12496_v54, %v3725_v59  ;;  %v3730_v57 = vsel %vm3728_vm14, %v3725_v59, %v12511_v5  ;;  %vm12520_vm14 = vcmask 244736  }
 0x6e2   : > { %v3464_v44 = vpop.permute.xlu1 %3463 }
 0x6e3   : > { %v3467_v61 = vsel %vm12484_vm2, %v9866_v8, %v3464_v44  ;;  %v3468_v26 = vsel %vm12486_vm9, %v3464_v44, %v12485_v41  ;;  %vm12500_vm2 = vcmask 384000   ;;  %v3790_v28 = vpop.permute.xlu0 %3789  ;;  %v12509_v41 = vld [vmem:[#allocation133_spill] sm:$0xff] }
 0x6e4   : > { %v3473_v30 = vadd.f32 %v3467_v61, %v3446_v15  ;;  %v3474_v32 = vadd.f32 %v3468_v26, %v3447_v52  ;;  %vm12502_vm9 = vmmov %vm12500_vm2  ;;  %v12507_v61 = vld [vmem:[#allocation57_spill] sm:$0xff] }
 0x6e6   : > { %v3515_v49 = vpop.permute.xlu1 %3514  ;;  %v3497_v46 = vadd.f32 %v3491_v34, %v3473_v30  ;;  %v3498_v8 = vadd.f32 %v3492_v55, %v3474_v32  ;;  %v12512_v34 = vld [vmem:[#allocation84_spill] sm:$0xff] }
 0x6e7   : > { %v3518_v10 = vsel %vm12492_vm0, %v9897_v3, %v3515_v49  ;;  %v3519_v22 = vsel %vm12494_vm11, %v3515_v49, %v12493_v9  ;;  %v12497_v3 = vld [vmem:[#allocation132_spill] sm:$0xff]  ;;  %vm12508_vm0 = vcmask 367616   ;;  %v3835_v11 = vadd.f32 %v12512_v34, %v3799_v47  ;;  %v3862_v55 = vpop.permute.xlu0 %3861 }
 0x6e8   : > { %v3524_v6 = vadd.f32 %v3518_v10, %v3497_v46  ;;  %v3525_v48 = vadd.f32 %v3519_v22, %v3498_v8  ;;  %vm12510_vm11 = vmmov %vm12508_vm0  ;;  %v12513_v8 = vld [vmem:[#allocation121_spill] sm:$0xff] }
 0x6e9   : > { %v3702_v26 = vsel %vm12510_vm11, %v12507_v61, %v12509_v41  ;;  %vm3960_vm11 = vcmask 228352   ;;  %v12527_v41 = vld [vmem:[#allocation47_spill] sm:$0xff] }
 0x6ea   : > { %v3552_v63 = vadd.f32 %v3546_v29, %v3524_v6  ;;  %v3553_v16 = vadd.f32 %v3547_v60, %v3525_v48  ;;  %v3579_v58 = vpop.permute.xlu1 %3578  ;;  %v12514_v48 = vld [vmem:[#allocation110_spill] sm:$0xff]  ;;  %v3870_v60 = vadd.f32 %v12515_v25, %v3835_v11 }
 0x6eb   : > { %v3583_v33 = vsel %vm3582_vm5, %v9913_v53, %v3579_v58  ;;  %v3584_v23 = vsel %vm3582_vm5, %v3579_v58, %v12497_v3  ;;  %vm3756_vm5 = vcmask 351232   ;;  %v4047_v54 = vpop.permute.xlu0 %4046  ;;  %v12516_v58 = vld [vmem:[#allocation102_spill] sm:$0xff] }
 0x6ec   : > { %v3589_v51 = vadd.f32 %v3583_v33, %v3552_v63  ;;  %v3590_v13 = vadd.f32 %v3584_v23, %v3553_v16  ;;  %v3905_v18 = vadd.f32 %v9970_v56, %v3870_v60 }
 0x6ee   : > { %v3626_v42 = vadd.f32 %v3620_v31, %v3589_v51  ;;  %v3627_v4 = vadd.f32 %v3621_v7, %v3590_v13  ;;  %v3644_v37 = vpop.permute.xlu1 %3643  ;;  %v3865_v51 = vsel %vm12517_vm3, %v12515_v25, %v3862_v55  ;;  %v12518_v13 = vld [vmem:[#allocation134_spill] sm:$0xff]  ;;  %vm3997_vm3 = vcmask 220160  }
 0x6ef   : > { %v3648_v39 = vsel %vm12500_vm2, %v9925_v38, %v3644_v37  ;;  %v3649_v53 = vsel %vm12502_vm9, %v3644_v37, %v12501_v14  ;;  %v3701_v38 = vsel %vm12508_vm0, %v12491_v2, %v12507_v61  ;;  %vm3793_vm2 = vcmask 343040   ;;  %vm12522_vm0 = vmmov %vm12520_vm14 }
 0x6f0   : > { %v3654_v19 = vadd.f32 %v3648_v39, %v3626_v42  ;;  %v3655_v40 = vadd.f32 %v3649_v53, %v3627_v4  ;;  %vm3829_vm9 = vcmask 261120   ;;  %v3794_v6 = vsel %vm3793_vm2, %v12506_v36, %v3790_v28  ;;  %v12521_v4 = vld [vmem:[#allocation119_spill] sm:$0xff]  ;;  %v3994_v39 = vpop.permute.xlu0 %3993 }
 0x6f1   : > { %v3795_v29 = vsel %vm3793_vm2, %v3790_v28, %v12514_v48  ;;  %v3866_v31 = vsel %vm12519_vm1, %v3862_v55, %v12518_v13  ;;  %v12523_v28 = vld [vmem:[#allocation70_spill] sm:$0xff]  ;;  %vm4034_vm1 = vcmask 211968   ;;  %v3998_v61 = vsel %vm3997_vm3, %v10062_v62, %v3994_v39 }
 0x6f2   : > { %v3682_v44 = vadd.f32 %v3676_v27, %v3654_v19  ;;  %v3683_v15 = vadd.f32 %v3677_v12, %v3655_v40  ;;  %v3753_v52 = vpop.permute.xlu1 %3752  ;;  %v12525_v40 = vld [vmem:[#allocation99_spill] sm:$0xff]  ;;  %v3929_v20 = vadd.f32 %v12523_v28, %v3905_v18  ;;  %v12533_v48 = vmov 3  }
 0x6f3   : > { %v3757_v2 = vsel %vm3756_vm5, %v12499_v35, %v3753_v52  ;;  %v3758_v10 = vsel %vm3756_vm5, %v3753_v52, %v12513_v8  ;;  %vm12524_vm5 = vcmask 236544   ;;  %v12532_v8 = vmov 0.0  }
 0x6f4   : > { %v3707_v30 = vadd.f32 %v3701_v38, %v3682_v44  ;;  %v3708_v32 = vadd.f32 %v3702_v26, %v3683_v15  ;;  %v3924_v19 = vsel %vm12524_vm5, %v12523_v28, %v9978_v0  ;;  %vm12526_vm2 = vmmov %vm12524_vm5  ;;  %v3999_v38 = vsel %vm3997_vm3, %v3994_v39, %v10069_v24 }
 0x6f5   : > { %v3925_v27 = vsel %vm12526_vm2, %v9978_v0, %v12525_v40  ;;  %v4188_v26 = vadd.s32 4294967292, %v12527_v41  ;;  %v4033_v0 = vpop.permute.xlu0 %4032  ;;  %v4473_v25 = vadd.s32 5, %v12527_v41  ;;  %v12542_v39 = vmov 10  }
 0x6f6   : > { %v3735_v17 = vadd.f32 %v3729_v45, %v3707_v30  ;;  %v3736_v49 = vadd.f32 %v3730_v57, %v3708_v32  ;;  %v3826_v46 = vpop.permute.xlu1 %3825  ;;  %v3966_v30 = vadd.f32 %v9991_v50, %v3929_v20  ;;  %v12529_v57 = vld [vmem:[#allocation48_spill] sm:$0xff] }
 0x6f7   : > { %v3830_v16 = vsel %vm3829_vm9, %v12512_v34, %v3826_v46  ;;  %v3831_v33 = vsel %vm3829_vm9, %v3826_v46, %v12516_v58  ;;  %v4189_v34 = vadd.s32 4294967292, %v12529_v57  ;;  %v4474_v60 = vadd.s32 5, %v12529_v57 }
 0x6f8   : > { %v3763_v9 = vadd.f32 %v3757_v2, %v3735_v17  ;;  %v3764_v22 = vadd.f32 %v3758_v10, %v3736_v49  ;;  %v4003_v55 = vadd.f32 %v10062_v62, %v3966_v30  ;;  %v4424_v13 = vadd.s32 4, %v12529_v57 }
 0x6f9   : > { %vm4478_vm5 = vcmp.lt.s32.totalorder %v4474_v60, 16 }
 0x6fa   : > { %v3800_v43 = vadd.f32 %v3794_v6, %v3763_v9  ;;  %v3801_v59 = vadd.f32 %v3795_v29, %v3764_v22  ;;  %v4029_v63 = vpop.permute.xlu1 %4028  ;;  %v4148_v6 = vld [vmem:[%s12530_s13] sm:$0xff]  ;;  %v12534_v29 = vmov 2   ;;  %v6494_v58 = vsel %vm4478_vm5, 1.0, %v12532_v8  ;;  %s7396_s13 = smov 9  }
 0x6fb   : > { %v4040_v24 = vadd.f32 %v4029_v63, %v4003_v55  ;;  %vm12546_vm5 = vcmask 64512  }
 0x6fc   : > { %v3836_v3 = vadd.f32 %v3830_v16, %v3800_v43  ;;  %v3837_v23 = vadd.f32 %v3831_v33, %v3801_v59  ;;  %v12535_v43 = vmov 6   ;;  %v4153_v59 = vadd.s32 4294967291, %v12529_v57 }
 0x6fd   : > { %v4049_v22 = vadd.f32 %v4047_v54, %v4040_v24  ;;  %v12537_v33 = vmov 9  }
 0x6fe   : > { %v3871_v7 = vadd.f32 %v3865_v51, %v3836_v3  ;;  %v3872_v35 = vadd.f32 %v3866_v31, %v3837_v23  ;;  %v3897_v1 = vpop.permute.xlu1 %3896  ;;  %vm4155_vm3 = vcmp.ge.s32.totalorder %v4153_v59, 0  ;;  %v12538_v3 = vmov 5  }
 0x6ff   : > { %v3900_v42 = vsel %vm12520_vm14, %v9970_v56, %v3897_v1  ;;  %v3901_v37 = vsel %vm12522_vm0, %v3897_v1, %v12521_v4  ;;  %vm4190_vm14 = vcmp.ge.s32.totalorder %v4188_v26, 0  ;;  %vm4191_vm0 = vcmp.ge.s32.totalorder %v4189_v34, 0 }
 0x700   : > { %v3906_v14 = vadd.f32 %v3900_v42, %v3871_v7  ;;  %v3907_v53 = vadd.f32 %v3901_v37, %v3872_v35  ;;  %v6489_v10 = vsel %vm4190_vm14, 1.0, %v12532_v8  ;;  %v6490_v9 = vsel %vm4191_vm0, 1.0, %v12532_v8 }
 0x701   : > { %v7028_v62 = vpack.i.bf16 %v6490_v9, %v6489_v10  ;;  %v4423_v51 = vadd.s32 4, %v12527_v41  ;;  %v6488_v18 = vsel %vm4155_vm3, 1.0, %v12532_v8  ;;  %v12539_v35 = vmov 7  }
 0x702   : > { %v3930_v12 = vadd.f32 %v3924_v19, %v3906_v14  ;;  %v3931_v56 = vadd.f32 %v3925_v27, %v3907_v53  ;;  %v3957_v36 = vpop.permute.xlu1 %3956  ;;  %vm4428_vm14 = vcmp.lt.s32.totalorder %v4424_v13, 16  ;;  %v12541_v4 = vmov 8   ;;  %v4052_v27 = vld [vmem:[%s12540_s0] sm:$0xff]  ;;  %s12594_s0 = sld [smem:[#allocation27_spill]] }
 0x703   : > { %v3961_v47 = vsel %vm3960_vm11, %v9991_v50, %v3957_v36  ;;  %v3962_v44 = vsel %vm3960_vm11, %v3957_v36, %v10046_v21  ;;  %v4053_v50 = vld [vmem:[%s12528_s4] sm:$0xff]  ;;  %vm4477_vm11 = vcmp.lt.s32.totalorder %v4473_v25, 16  ;;  %v6492_v42 = vsel %vm4428_vm14, 1.0, %v12532_v8  ;;  %s7395_s4 = smov 8  }
 0x704   : > { %v3967_v15 = vadd.f32 %v3961_v47, %v3930_v12  ;;  %v3968_v52 = vadd.f32 %v3962_v44, %v3931_v56  ;;  %v6493_v16 = vsel %vm4477_vm11, 1.0, %v12532_v8  ;;  %v12543_v14 = vmov 0  }
 0x705   : > { %v7047_v23 = vpack.i.bf16 %v6494_v58, %v6493_v16  ;;  %vm12544_vm0 = vcmask 416768   ;;  %vm4491_vm3 = vcmask 39936   ;;  %vm4414_vm14 = vcmask 982016  }
 0x706   : > { %v4004_v32 = vadd.f32 %v3998_v61, %v3967_v15  ;;  %v4005_v45 = vadd.f32 %v3999_v38, %v3968_v52  ;;  %v4031_v5 = vpop.permute.xlu1 %4030  ;;  %vm12545_vm11 = vmmov %vm12544_vm0  ;;  %v12547_v38 = vld [vmem:[#allocation89_spill] sm:$0xff] }
 0x707   : > { %v4035_v11 = vsel %vm4034_vm1, %v4029_v63, %v4031_v5  ;;  %v4036_v21 = vsel %vm4034_vm1, %v4031_v5, %v4033_v0  ;;  %v12536_v63 = vmov 4   ;;  %vm4427_vm1 = vcmp.lt.s32.totalorder %v4423_v51, 16  ;;  %v12548_v0 = vld [vmem:[#allocation77_spill] sm:$0xff]  ;;  %v12549_v5 = vld [vmem:[#allocation51_spill] sm:$0xff] }
 0x708   : > { %v4041_v17 = vadd.f32 %v4035_v11, %v4004_v32  ;;  %v4042_v49 = vadd.f32 %v4036_v21, %v4005_v45  ;;  %v6491_v1 = vsel %vm4427_vm1, 1.0, %v12532_v8  ;;  %v12551_v11 = vld [vmem:[#allocation54_spill] sm:$0xff]  ;;  %vm4386_vm1 = vcmask 990208  }
 0x709   : > { %v7041_v37 = vpack.i.bf16 %v6492_v42, %v6491_v1  ;;  %v12557_v42 = vld [vmem:[#allocation56_spill] sm:$0xff] }
 0x70a   : > { %v4050_v46 = vadd.f32 %v4047_v54, %v4041_v17  ;;  %v4051_v2 = vadd.f32 %v4047_v54, %v4042_v49  ;;  %v4152_v54 = vadd.s32 4294967291, %v12527_v41  ;;  %v12552_v49 = vld [vmem:[#allocation76_spill] sm:$0xff] }
 0x70c   : > { %4066 = vrot.lane.b32.xlu0 %v4051_v2, %s12531_s9  ;;  %4064 = vrot.lane.b32.xlu1 %v4050_v46, %s12531_s9  ;;  %vm4154_vm2 = vcmp.ge.s32.totalorder %v4152_v54, 0  ;;  %v12553_v2 = vld [vmem:[#allocation106_spill] sm:$0xff] }
 0x70d   : > { %v6487_v31 = vsel %vm4154_vm2, 1.0, %v12532_v8  ;;  %vm12568_vm2 = vcmask 31744  }
 0x70e   : > { %v7053_v7 = vpack.i.bf16 %v6488_v18, %v6487_v31  ;;  %v12556_v31 = vld [vmem:[#allocation129_spill] sm:$0xff] }
 0x710   : > { %4056 = vperm.xlu0 %7021, %v4053_v50   ;;  %4062 = vrot.lane.b32.xlu1 %v4049_v22, %s12531_s9  ;;  %s7397_s9 = smov 10  }
 0x714   : > { %7029 = vrot.lane.b32.xlu0 %v7028_v62, %s12083_s26  ;;  %4214 = vperm.xlu1 %7027, %v4148_v6  }
 0x715   : > { %7034 = vset.pattern.permute.xlu0 %v12533_v48 }
 0x718   : > { %4268 = vperm.xlu0 %7034, %v4148_v6   ;;  %7033 = vset.pattern.permute.xlu1 %v12534_v29 }
 0x719   : > { %4241 = vperm.xlu1 %7033, %v4148_v6  }
 0x71c   : > { %7037 = vset.pattern.permute.xlu0 %v12535_v43 }
 0x71d   : > { %4344 = vperm.xlu0 %7037, %v4148_v6   ;;  %7035 = vset.pattern.permute.xlu1 %v12536_v63 }
 0x71e   : > { %4295 = vperm.xlu1 %7035, %v4148_v6  }
 0x721   : > { %7040 = vset.pattern.permute.xlu0 %v12537_v33 }
 0x722   : > { %7036 = vset.pattern.permute.xlu1 %v12538_v3  ;;  %4449 = vperm.xlu0 %7040, %v4148_v6  }
 0x723   : > { %4319 = vperm.xlu1 %7036, %v4148_v6  }
 0x726   : > { %7048 = vrot.lane.b32.xlu0 %v7047_v23, %s7388_s2  ;;  %v12555_v23 = vld [vmem:[#allocation142_spill] sm:$0xff] }
 0x727   : > { %7038 = vset.pattern.permute.xlu1 %v12539_v35  ;;  %7059 = vset.pattern.permute.xlu0 %v12534_v29 }
 0x728   : > { %4371 = vperm.xlu1 %7038, %v4148_v6  }
 0x72a   : > { %7054 = vrot.lane.b32.xlu0 %v7053_v7, %s12263_s27 }
 0x72c   : > { %7039 = vset.pattern.permute.xlu1 %v12541_v4 }
 0x72d   : > { %4399 = vperm.xlu1 %7039, %v4148_v6  }
 0x731   : > { %7042 = vrot.lane.b32.xlu1 %v7041_v37, %s7389_s24  ;;  %s7399_s24 = smov 7  }
 0x732   : > { %7046 = vset.pattern.permute.xlu1 %v12542_v39 }
 0x735   : > { %4500 = vperm.xlu1 %7046, %v4148_v6  }
 0x739   : > { %7052 = vset.pattern.permute.xlu1 %v12543_v14 }
 0x73a   : > { %4179 = vperm.xlu1 %7052, %v4148_v6  }
 0x77e   : > { %v4067_v53 = vpop.permute.xlu0 %4066  ;;  %v4065_v28 = vpop.permute.xlu1 %4064 }
 0x77f   : > { %v4069_v19 = vsel %vm12544_vm0, %v4065_v28, %v4067_v53  ;;  %vm4464_vm0 = vcmask 973824  }
 0x780   : > { %4105 = vmatprep.subr.mxu0 %v4069_v19 }
 0x782   : > { %v4063_v40 = vpop.permute.xlu1 %4062 }
 0x783   : > { %v4068_v20 = vsel %vm12545_vm11, %v4063_v40, %v4065_v28  ;;  %v12558_v40 = vld [vmem:[#allocation60_spill] sm:$0xff]  ;;  %vm11903_vm11 = vcmask 965632  }
 0x784   : > { %4106 = vmatpush1.msra.mxu0 %v4068_v20 }
 0x785   : > { %6486 = vmatmul.mubr.msk.f32.vlgmr.msra.gmra.mxu0 %vm12546_vm5, %v4052_v27  ;;  %vm12577_vm5 = vcmask 785408  }
 0x786   : > { %6253 = vmatprep.mubr.f32.mxu0 %v12532_v8 }
 0x78b   : > { %v4057_v12 = vpop.permute.xlu0 %4056 }
 0x78f   : > { %v7030_v56 = vpop.permute.xlu0 %7029  ;;  %v10190_v36 = vpop.permute.xlu1 %4214 }
 0x790   : > { %v7031_v47 = vunpack.i.l.bf16 %v7030_v56  ;;  %v10237_v25 = vunpack.i.h.bf16 %v7030_v56 }
 0x792   : > { %v10192_v44 = vmul.f32 0.0, %v7031_v47  ;;  %12554 = vst [vmem:[#allocation90_spill] sm:$0xff] %v10237_v25  ;;  %v10243_v59 = vsel %vm11902_vm7, %v7031_v47, %v10237_v25 }
 0x793   : > { %v10194_v15 = vpop.permute.xlu0 %4268 }
 0x794   : > { %v4217_v52 = vmul.f32 %v10190_v36, %v10192_v44  ;;  %v10198_v61 = vpop.permute.xlu1 %4241  ;;  %v4271_v30 = vmul.f32 %v10194_v15, %v12548_v0 }
 0x795   : > { %v4244_v26 = vmul.f32 %v10198_v61, %v12547_v38 }
 0x796   : > { %4223 = vrot.lane.b32.xlu1 %v4217_v52, %s11973_s1 }
 0x797   : > { %4250 = vrot.lane.b32.xlu0 %v4244_v26, %s11979_s7  ;;  %v12561_v26 = vld [vmem:[#allocation58_spill] sm:$0xff] }
 0x798   : > { %v10206_v32 = vpop.permute.xlu0 %4344 }
 0x799   : > { %v10208_v45 = vpop.permute.xlu1 %4295  ;;  %v4349_v21 = vmul.f32 %v10206_v32, %v12551_v11 }
 0x79a   : > { %v4298_v34 = vmul.f32 %v10208_v45, %v12549_v5  ;;  %4277 = vrot.lane.b32.xlu1 %v4271_v30, %s12550_s30 }
 0x79c   : > { %4304 = vrot.lane.b32.xlu0 %v4298_v34, %s12083_s26 }
 0x79d   : > { %v10232_v62 = vpop.permute.xlu0 %4449 }
 0x79e   : > { %4357 = vrot.lane.b32.xlu1 %v4349_v21, %s12266_s12  ;;  %v4320_v55 = vpop.permute.xlu1 %4319 }
 0x7a3   : > { %v10217_v17 = vpop.permute.xlu1 %4371 }
 0x7a4   : > { %v4376_v24 = vmul.f32 %v10217_v17, %v12552_v49 }
 0x7a6   : > { %4384 = vrot.lane.b32.xlu0 %v4376_v24, %s7390_s20 }
 0x7a8   : > { %v10222_v46 = vpop.permute.xlu1 %4399 }
 0x7a9   : > { %v4404_v50 = vmul.f32 %v10222_v46, %v12553_v2 }
 0x7ab   : > { %4412 = vrot.lane.b32.xlu1 %v4404_v50, %s7391_s21  ;;  %v7049_v50 = vpop.permute.xlu0 %7048 }
 0x7ac   : > { %v10227_v10 = vpop.permute.xlu1 %7042 }
 0x7ad   : > { %v7045_v9 = vunpack.i.h.bf16 %v10227_v10  ;;  %v10267_v20 = vunpack.i.l.bf16 %v10227_v10  ;;  %v10285_v10 = vunpack.i.l.bf16 %v7049_v50 }
 0x7af   : > { %v10230_v22 = vmul.f32 0.0, %v7045_v9  ;;  %12559 = vst [vmem:[#allocation136_spill] sm:$0xff] %v10267_v20  ;;  %12562 = vst [vmem:[#allocation93_spill] sm:$0xff] %v10285_v10 }
 0x7b1   : > { %v4454_v6 = vmul.f32 %v10232_v62, %v10230_v22 }
 0x7b3   : > { %4462 = vrot.lane.b32.xlu0 %v4454_v6, %s7392_s8 }
 0x845   : > { %v4141_v60 = vpop.f32.mrf.mxu0 }
 0x846   : > { %v10239_v54 = vadd.f32 %v4141_v60, %v4057_v12  ;;  %v12564_v60 = vld [vmem:[#allocation126_spill] sm:$0xff] }
 0x847   : > { %v4143_v7 = vpop.f32.mrf.mxu0 }
 0x848   : > { %v4322_v16 = vmul.f32 %v4320_v55, %v10239_v54  ;;  %v4211_v58 = vmul.f32 %v10243_v59, %v10239_v54  ;;  %v4238_v51 = vmul.f32 %v10239_v54, %v12555_v23  ;;  %v4265_v18 = vmul.f32 %v10239_v54, %v12556_v31 }
 0x849   : > { %v4292_v37 = vmul.f32 %v10239_v54, %v12557_v42  ;;  %v10258_v53 = vadd.f32 %v4143_v7, %v4057_v12  ;;  %v4340_v27 = vmul.f32 %v12558_v40, %v10239_v54  ;;  %v12560_v12 = vld [vmem:[#allocation122_spill] sm:$0xff]  ;;  %v4395_v30 = vmul.f32 %v12561_v26, %v10239_v54 }
 0x84a   : > { %4326 = vrot.lane.b32.xlu1 %v4322_v16, %s12263_s27  ;;  %v4218_v13 = vmul.f32 %v10190_v36, %v4211_v58  ;;  %v4245_v1 = vmul.f32 %v10198_v61, %v4238_v51  ;;  %v4272_v28 = vmul.f32 %v10194_v15, %v4265_v18  ;;  %v4367_v47 = vmul.f32 %v12560_v12, %v10239_v54  ;;  %v12565_v51 = vld [vmem:[#allocation128_spill] sm:$0xff] }
 0x84b   : > { %v4299_v19 = vmul.f32 %v10208_v45, %v4292_v37  ;;  %v4323_v56 = vmul.f32 %v4320_v55, %v10258_v53  ;;  %v4347_v52 = vmul.f32 %v10206_v32, %v4340_v27  ;;  %v4445_v21 = vmul.f32 %v10267_v20, %v10239_v54  ;;  %v4501_v37 = vpop.permute.xlu1 %4500  ;;  %v4524_v27 = vld [vmem:[%s12563_s22] sm:$0xff]  ;;  %s7400_s22 = smov 116  }
 0x84c   : > { %4225 = vrot.lane.b32.xlu0 %v4218_v13, %s11973_s1  ;;  %v4374_v34 = vmul.f32 %v10217_v17, %v4367_v47  ;;  %v4402_v55 = vmul.f32 %v10222_v46, %v4395_v30  ;;  %v4212_v24 = vmul.f32 %v10237_v25, %v10258_v53  ;;  %v4239_v16 = vmul.f32 %v12564_v60, %v10258_v53  ;;  %v12570_v30 = vld [vmem:[#allocation62_spill] sm:$0xff] }
 0x84d   : > { %v4452_v6 = vmul.f32 %v10232_v62, %v4445_v21  ;;  %v4266_v13 = vmul.f32 %v12565_v51, %v10258_v53  ;;  %v4496_v7 = vmul.f32 %v10285_v10, %v10239_v54  ;;  %v10310_v47 = vsel %vm12568_vm2, %v10267_v20, %v7045_v9  ;;  %vm12578_vm2 = vmmov %vm12577_vm5 }
 0x84e   : > { %4252 = vrot.lane.b32.xlu1 %v4245_v1, %s11979_s7  ;;  %v4219_v58 = vmul.f32 %v10190_v36, %v4212_v24  ;;  %v4246_v18 = vmul.f32 %v10198_v61, %v4239_v16  ;;  %v12566_v36 = vld [vmem:[#allocation55_spill] sm:$0xff]  ;;  %12569 = vst [vmem:[#allocation124_spill] sm:$0xff] %v10310_v47 }
 0x84f   : > { %v4273_v1 = vmul.f32 %v10194_v15, %v4266_v13 }
 0x850   : > { %4279 = vrot.lane.b32.xlu0 %v4272_v28, %s12550_s30  ;;  %v4503_v28 = vmul.f32 %v4501_v37, %v4496_v7  ;;  %v10340_v7 = vld [vmem:[%s12571_s25] sm:$0xff]  ;;  %s7401_s25 = smov 117  }
 0x852   : > { %4306 = vrot.lane.b32.xlu1 %v4299_v19, %s12083_s26  ;;  %v4293_v19 = vmul.f32 %v12566_v36, %v10258_v53 }
 0x854   : > { %4328 = vrot.lane.b32.xlu0 %v4323_v56, %s12263_s27  ;;  %v12567_v56 = vld [vmem:[#allocation139_spill] sm:$0xff]  ;;  %v4300_v15 = vmul.f32 %v10208_v45, %v4293_v19 }
 0x855   : > { %v4368_v61 = vmul.f32 %v10258_v53, %v12567_v56  ;;  %v12573_v45 = vld [vmem:[#allocation115_spill] sm:$0xff] }
 0x856   : > { %4353 = vrot.lane.b32.xlu1 %v4347_v52, %s12266_s12  ;;  %v7051_v52 = vunpack.i.h.bf16 %v7049_v50  ;;  %v4396_v50 = vmul.f32 %v10258_v53, %v12573_v45 }
 0x857   : > { %v4375_v21 = vmul.f32 %v10217_v17, %v4368_v61 }
 0x858   : > { %4380 = vrot.lane.b32.xlu0 %v4374_v34, %s7390_s20  ;;  %v4341_v34 = vmul.f32 %v10258_v53, %v12570_v30  ;;  %v10321_v9 = vsel %vm4491_vm3, %v10285_v10, %v7051_v52  ;;  %v4403_v13 = vmul.f32 %v10222_v46, %v4396_v50  ;;  %v4180_v46 = vpop.permute.xlu1 %4179 }
 0x859   : > { %12572 = vst [vmem:[#allocation137_spill] sm:$0xff] %v10321_v9  ;;  %v4497_v16 = vmul.f32 %v10321_v9, %v10258_v53 }
 0x85a   : > { %4408 = vrot.lane.b32.xlu1 %v4402_v55, %s7391_s21  ;;  %v4446_v55 = vmul.f32 %v10310_v47, %v10258_v53  ;;  %v4348_v24 = vmul.f32 %v10206_v32, %v4341_v34 }
 0x85b   : > { %v4504_v32 = vmul.f32 %v4501_v37, %v4497_v16 }
 0x85c   : > { %4458 = vrot.lane.b32.xlu0 %v4452_v6, %s7392_s8  ;;  %v12574_v6 = vmov 1   ;;  %v4453_v17 = vmul.f32 %v10232_v62, %v4446_v55  ;;  %v7055_v62 = vpop.permute.xlu0 %7054 }
 0x85d   : > { %v10361_v30 = vunpack.i.h.bf16 %v7055_v62 }
 0x85e   : > { %4227 = vrot.lane.b32.xlu1 %v4219_v58, %s11973_s1  ;;  %v10332_v58 = vmul.f32 0.0, %v7051_v52  ;;  %v7056_v52 = vunpack.i.l.bf16 %v7055_v62 }
 0x85f   : > { %12575 = vst [vmem:[#allocation52_spill] sm:$0xff] %v10361_v30 }
 0x860   : > { %4254 = vrot.lane.b32.xlu0 %v4246_v18, %s11979_s7  ;;  %v4505_v18 = vmul.f32 %v4501_v37, %v10332_v58  ;;  %v4251_v37 = vpop.permute.xlu0 %4250  ;;  %v10366_v25 = vsel %vm11901_vm15, %v7056_v52, %v10361_v30 }
 0x862   : > { %4281 = vrot.lane.b32.xlu1 %v4273_v1, %s12550_s30  ;;  %v4224_v1 = vpop.permute.xlu1 %4223 }
 0x864   : > { %4509 = vrot.lane.b32.xlu0 %v4503_v28, %s7393_s16  ;;  %v4305_v19 = vpop.permute.xlu0 %4304 }
 0x866   : > { %4527 = vperm.xlu1 %7052, %v4524_v27   ;;  %v4278_v28 = vpop.permute.xlu1 %4277 }
 0x868   : > { %4308 = vrot.lane.b32.xlu0 %v4300_v15, %s12083_s26  ;;  %v10349_v61 = vpop.permute.xlu0 %4384 }
 0x86a   : > { %4382 = vrot.lane.b32.xlu1 %v4375_v21, %s7390_s20  ;;  %v4358_v27 = vpop.permute.xlu1 %4357  ;;  %v10355_v21 = vmul.f32 0.0, %v7056_v52 }
 0x86b   : > { %7058 = vset.pattern.permute.xlu1 %v12574_v6 }
 0x86c   : > { %4355 = vrot.lane.b32.xlu0 %v4348_v24, %s12266_s12  ;;  %v10353_v34 = vpop.permute.xlu0 %4462  ;;  %v4182_v24 = vmul.f32 %v4180_v46, %v10355_v21 }
 0x86e   : > { %4460 = vrot.lane.b32.xlu1 %v4453_v17, %s7392_s8  ;;  %v10351_v15 = vpop.permute.xlu1 %4412 }
 0x870   : > { %4410 = vrot.lane.b32.xlu0 %v4403_v13, %s7391_s21 }
 0x872   : > { %4511 = vrot.lane.b32.xlu1 %v4504_v32, %s7393_s16 }
 0x874   : > { %4513 = vrot.lane.b32.xlu0 %v4505_v18, %s7393_s16 }
 0x876   : > { %4564 = vperm.xlu1 %7058, %v10340_v7  }
 0x878   : > { %4588 = vperm.xlu0 %7059, %v10340_v7  }
 0x87a   : > { %7060 = vset.pattern.permute.xlu1 %v12533_v48 }
 0x87b   : > { %4612 = vperm.xlu1 %7060, %v10340_v7  }
 0x87c   : > { %7061 = vset.pattern.permute.xlu0 %v12536_v63 }
 0x87f   : > { %7062 = vset.pattern.permute.xlu1 %v12538_v3 }
 0x8bc   : > { %v4327_v55 = vpop.permute.xlu1 %4326 }
 0x8be   : > { %v4226_v50 = vpop.permute.xlu0 %4225 }
 0x8bf   : > { %v4229_v17 = vsel %vm1234_vm6, %v4224_v1, %v4226_v50 }
 0x8c0   : > { %v4234_v16 = vadd.f32 %v4229_v17, %v4182_v24  ;;  %v4253_v13 = vpop.permute.xlu1 %4252 }
 0x8c1   : > { %v4256_v32 = vsel %vm1285_vm12, %v4251_v37, %v4253_v13  ;;  %v4175_v37 = vmul.f32 %v10366_v25, %v10239_v54 }
 0x8c2   : > { %v4261_v18 = vadd.f32 %v4256_v32, %v4234_v16  ;;  %v4280_v47 = vpop.permute.xlu0 %4279 }
 0x8c3   : > { %v4283_v56 = vsel %vm1721_vm10, %v4278_v28, %v4280_v47  ;;  %v4176_v28 = vmul.f32 %v10361_v30, %v10258_v53  ;;  %v4183_v32 = vmul.f32 %v4180_v46, %v4175_v37 }
 0x8c4   : > { %v4307_v9 = vpop.permute.xlu1 %4306  ;;  %v4288_v45 = vadd.f32 %v4283_v56, %v4261_v18 }
 0x8c5   : > { %v4310_v51 = vsel %vm11902_vm7, %v4305_v19, %v4307_v9  ;;  %v4184_v18 = vmul.f32 %v4180_v46, %v4176_v28 }
 0x8c6   : > { %v4329_v36 = vpop.permute.xlu0 %4328  ;;  %v4315_v1 = vadd.f32 %v4310_v51, %v4288_v45 }
 0x8c8   : > { %v4354_v60 = vpop.permute.xlu1 %4353  ;;  %v4334_v62 = vadd.f32 %v4327_v55, %v4315_v1 }
 0x8ca   : > { %v4381_v24 = vpop.permute.xlu0 %4380  ;;  %v4364_v20 = vadd.f32 %v4354_v60, %v4334_v62 }
 0x8cc   : > { %v4409_v17 = vpop.permute.xlu1 %4408  ;;  %v4392_v40 = vadd.f32 %v4381_v24, %v4364_v20 }
 0x8ce   : > { %v4459_v16 = vpop.permute.xlu0 %4458  ;;  %v4420_v1 = vadd.f32 %v4409_v17, %v4392_v40 }
 0x8d0   : > { %v4228_v56 = vpop.permute.xlu1 %4227  ;;  %v4470_v62 = vadd.f32 %v4459_v16, %v4420_v1 }
 0x8d1   : > { %v4230_v19 = vsel %vm1234_vm6, %v4226_v50, %v4228_v56  ;;  %v4236_v10 = vadd.f32 %v4228_v56, %v4184_v18  ;;  %v4330_v56 = vsel %vm11901_vm15, %v4327_v55, %v4329_v36 }
 0x8d2   : > { %v4255_v12 = vpop.permute.xlu0 %4254  ;;  %v4235_v52 = vadd.f32 %v4230_v19, %v4183_v32 }
 0x8d3   : > { %v4257_v51 = vsel %vm1285_vm12, %v4253_v13, %v4255_v12  ;;  %v4263_v42 = vadd.f32 %v4255_v12, %v4236_v10 }
 0x8d4   : > { %v4282_v45 = vpop.permute.xlu1 %4281  ;;  %v4262_v54 = vadd.f32 %v4257_v51, %v4235_v52 }
 0x8d5   : > { %v4284_v53 = vsel %vm1721_vm10, %v4280_v47, %v4282_v45  ;;  %v4290_v37 = vadd.f32 %v4282_v45, %v4263_v42 }
 0x8d6   : > { %v4510_v26 = vpop.permute.xlu0 %4509  ;;  %v4289_v23 = vadd.f32 %v4284_v53, %v4262_v54 }
 0x8d7   : > { %v4521_v13 = vadd.f32 %v4510_v26, %v4470_v62 }
 0x8da   : > { %v4309_v30 = vpop.permute.xlu0 %4308 }
 0x8db   : > { %v4311_v46 = vsel %vm11902_vm7, %v4307_v9, %v4309_v30  ;;  %v4317_v28 = vadd.f32 %v4309_v30, %v4290_v37  ;;  %vm12581_vm7 = vcmask 523264  }
 0x8dc   : > { %v4316_v50 = vadd.f32 %v4311_v46, %v4289_v23 }
 0x8dd   : > { %v4336_v18 = vadd.f32 %v4329_v36, %v4317_v28 }
 0x8de   : > { %v4356_v32 = vpop.permute.xlu0 %4355  ;;  %v4335_v20 = vadd.f32 %v4330_v56, %v4316_v50 }
 0x8df   : > { %v4359_v12 = vsel %vm2763_vm4, %v4354_v60, %v4356_v32  ;;  %v4360_v10 = vsel %vm2763_vm4, %v4356_v32, %v4358_v27 }
 0x8e0   : > { %v4365_v42 = vadd.f32 %v4359_v12, %v4335_v20  ;;  %v4366_v47 = vadd.f32 %v4360_v10, %v4336_v18 }
 0x8e1   : > { %v4528_v19 = vpop.permute.xlu1 %4527 }
 0x8e2   : > { %v4530_v40 = vadd.f32 %v4528_v19, %v4521_v13  ;;  %v4411_v23 = vpop.permute.xlu0 %4410 }
 0x8e3   : > { %v4415_v60 = vsel %vm4414_vm14, %v4409_v17, %v4411_v23  ;;  %v4416_v27 = vsel %vm4414_vm14, %v4411_v23, %v10351_v15 }
 0x8e4   : > { %4536 = vrot.lane.b32.xlu1 %v4530_v40, %s7388_s2 }
 0x8e5   : > { %v4383_v30 = vpop.permute.xlu1 %4382 }
 0x8e6   : > { %v4387_v9 = vsel %vm4386_vm1, %v4381_v24, %v4383_v30  ;;  %v4388_v36 = vsel %vm4386_vm1, %v4383_v30, %v10349_v61  ;;  %v4514_v24 = vpop.permute.xlu0 %4513 }
 0x8e7   : > { %v4393_v55 = vadd.f32 %v4387_v9, %v4365_v42  ;;  %v4394_v52 = vadd.f32 %v4388_v36, %v4366_v47 }
 0x8e9   : > { %v4421_v51 = vadd.f32 %v4415_v60, %v4393_v55  ;;  %v4422_v45 = vadd.f32 %v4416_v27, %v4394_v52  ;;  %v4461_v54 = vpop.permute.xlu1 %4460 }
 0x8ea   : > { %v4465_v53 = vsel %vm4464_vm0, %v4459_v16, %v4461_v54  ;;  %v4466_v1 = vsel %vm4464_vm0, %v4461_v54, %v10353_v34 }
 0x8eb   : > { %v4471_v37 = vadd.f32 %v4465_v53, %v4421_v51  ;;  %v4472_v61 = vadd.f32 %v4466_v1, %v4422_v45 }
 0x8ed   : > { %v4512_v46 = vpop.permute.xlu1 %4511 }
 0x8ee   : > { %v4516_v50 = vsel %vm11903_vm11, %v4510_v26, %v4512_v46  ;;  %v4517_v17 = vsel %vm11903_vm11, %v4512_v46, %v4514_v24  ;;  %vm12582_vm11 = vmmov %vm12581_vm7 }
 0x8ef   : > { %v4522_v28 = vadd.f32 %v4516_v50, %v4471_v37  ;;  %v4523_v62 = vadd.f32 %v4517_v17, %v4472_v61 }
 0x8f1   : > { %v4531_v15 = vadd.f32 %v4528_v19, %v4522_v28  ;;  %v4532_v32 = vadd.f32 %v4528_v19, %v4523_v62  ;;  %v4565_v34 = vpop.permute.xlu1 %4564 }
 0x8f2   : > { %v4567_v26 = vmul.f32 0.0, %v4565_v34 }
 0x8f3   : > { %4540 = vrot.lane.b32.xlu0 %v4532_v32, %s7388_s2  ;;  %4538 = vrot.lane.b32.xlu1 %v4531_v15, %s7388_s2  ;;  %v4589_v13 = vpop.permute.xlu0 %4588  ;;  %s7398_s2 = smov 6  }
 0x8f4   : > { %v4591_v18 = vmul.f32 0.0, %v4589_v13 }
 0x8f6   : > { %v4613_v16 = vpop.permute.xlu1 %4612 }
 0x8f7   : > { %4636 = vperm.xlu0 %7061, %v10340_v7   ;;  %4660 = vperm.xlu1 %7062, %v10340_v7   ;;  %v4615_v56 = vmul.f32 0.0, %v4613_v16 }
 0x8fb   : > { %7064 = vset.pattern.permute.xlu0 %v12539_v35  ;;  %7063 = vset.pattern.permute.xlu1 %v12535_v43 }
 0x8fc   : > { %4706 = vperm.xlu0 %7064, %v10340_v7   ;;  %4682 = vperm.xlu1 %7063, %v10340_v7  }
 0x900   : > { %7065 = vset.pattern.permute.xlu1 %v12537_v33  ;;  %4573 = vrot.lane.b32.xlu0 %v4567_v26, %s11976_s10 }
 0x901   : > { %4741 = vperm.xlu1 %7065, %v10340_v7   ;;  %7067 = vset.pattern.permute.xlu0 %v12541_v4 }
 0x904   : > { %4621 = vrot.lane.b32.xlu0 %v4615_v56, %s12094_s28 }
 0x905   : > { %7066 = vset.pattern.permute.xlu1 %v12542_v39 }
 0x906   : > { %4765 = vperm.xlu1 %7066, %v10340_v7  }
 0x908   : > { %4731 = vperm.xlu0 %7067, %v10340_v7  }
 0x90a   : > { %4597 = vrot.lane.b32.xlu1 %v4591_v18, %s11980_s5 }
 0x90b   : > { %7069 = vset.pattern.permute.xlu1 %v12543_v14 }
 0x90c   : > { %7068 = vset.pattern.permute.xlu0 %v12543_v14 }
 0x90d   : > { %4554 = vperm.xlu0 %7068, %v10340_v7   ;;  %v4788_v7 = vld [vmem:[%s12576_s14] sm:$0xff]  ;;  %s12600_s14 = smov 115  }
 0x956   : > { %v4537_v20 = vpop.permute.xlu1 %4536 }
 0x965   : > { %v4541_v19 = vpop.permute.xlu0 %4540  ;;  %v4539_v12 = vpop.permute.xlu1 %4538 }
 0x966   : > { %v10416_v52 = vsel %vm4491_vm3, %v4537_v20, %v4539_v12  ;;  %v10419_v60 = vsel %vm4491_vm3, %v4539_v12, %v4541_v19  ;;  %vm12579_vm3 = vcmask 654336  }
 0x967   : > { %v4593_v27 = vmul.f32 %v4589_v13, %v10419_v60  ;;  %v4568_v51 = vmul.f32 %v4565_v34, %v10416_v52  ;;  %v4616_v45 = vmul.f32 %v4613_v16, %v10416_v52  ;;  %v4569_v54 = vmul.f32 %v4565_v34, %v10419_v60  ;;  %vm12580_vm15 = vmmov %vm12579_vm3 }
 0x968   : > { %v4592_v1 = vmul.f32 %v4589_v13, %v10416_v52  ;;  %v4617_v37 = vmul.f32 %v4613_v16, %v10419_v60 }
 0x972   : > { %v4637_v10 = vpop.permute.xlu0 %4636  ;;  %v4661_v40 = vpop.permute.xlu1 %4660 }
 0x973   : > { %v4639_v42 = vmul.f32 0.0, %v4637_v10  ;;  %v4641_v53 = vmul.f32 %v4637_v10, %v10419_v60  ;;  %v4663_v24 = vmul.f32 %v4661_v40, %v10416_v52  ;;  %v4640_v61 = vmul.f32 %v4637_v10, %v10416_v52 }
 0x974   : > { %v4664_v50 = vmul.f32 %v4661_v40, %v10419_v60 }
 0x975   : > { %4645 = vrot.lane.b32.xlu1 %v4639_v42, %s12408_s11 }
 0x977   : > { %v4707_v47 = vpop.permute.xlu0 %4706  ;;  %v4683_v23 = vpop.permute.xlu1 %4682 }
 0x978   : > { %v4711_v30 = vmul.f32 0.0, %v4707_v47  ;;  %v4687_v9 = vmul.f32 0.0, %v4683_v23  ;;  %v4710_v46 = vmul.f32 %v4707_v47, %v10419_v60  ;;  %v4685_v15 = vmul.f32 %v4683_v23, %v10416_v52 }
 0x979   : > { %v4686_v32 = vmul.f32 %v4683_v23, %v10419_v60  ;;  %v4709_v34 = vmul.f32 %v4707_v47, %v10416_v52 }
 0x97a   : > { %4719 = vrot.lane.b32.xlu1 %v4711_v30, %s7394_s3  ;;  %4695 = vrot.lane.b32.xlu0 %v4687_v9, %s12342_s6 }
 0x97b   : > { %v4574_v13 = vpop.permute.xlu0 %4573 }
 0x97c   : > { %v4742_v36 = vpop.permute.xlu1 %4741 }
 0x97d   : > { %v4746_v55 = vmul.f32 0.0, %v4742_v36  ;;  %v4745_v17 = vmul.f32 %v4742_v36, %v10419_v60  ;;  %v4744_v26 = vmul.f32 %v4742_v36, %v10416_v52 }
 0x97e   : > { %4791 = vperm.xlu0 %7068, %v4788_v7  }
 0x97f   : > { %4754 = vrot.lane.b32.xlu1 %v4746_v55, %s11976_s10  ;;  %v4622_v20 = vpop.permute.xlu0 %4621 }
 0x981   : > { %v4766_v28 = vpop.permute.xlu1 %4765 }
 0x982   : > { %4601 = vrot.lane.b32.xlu0 %v4593_v27, %s11980_s5  ;;  %v4770_v62 = vmul.f32 0.0, %v4766_v28  ;;  %v4769_v16 = vmul.f32 %v4766_v28, %v10419_v60  ;;  %v4768_v56 = vmul.f32 %v4766_v28, %v10416_v52 }
 0x983   : > { %4575 = vrot.lane.b32.xlu1 %v4568_v51, %s11976_s10  ;;  %7070 = vset.pattern.permute.xlu0 %v12574_v6  ;;  %v10460_v12 = vpop.permute.xlu0 %4731 }
 0x985   : > { %v4598_v18 = vpop.permute.xlu1 %4597 }
 0x986   : > { %4623 = vrot.lane.b32.xlu0 %v4616_v45, %s12094_s28 }
 0x987   : > { %4577 = vrot.lane.b32.xlu1 %v4569_v54, %s11976_s10 }
 0x988   : > { %v4555_v42 = vpop.permute.xlu0 %4554 }
 0x989   : > { %v4557_v54 = vmul.f32 0.0, %v4555_v42 }
 0x98a   : > { %4649 = vrot.lane.b32.xlu0 %v4641_v53, %s12408_s11  ;;  %v4559_v53 = vmul.f32 %v4555_v42, %v10419_v60 }
 0x98b   : > { %4599 = vrot.lane.b32.xlu1 %v4592_v1, %s11980_s5 }
 0x98e   : > { %4667 = vrot.lane.b32.xlu0 %v4663_v24, %s12328_s23 }
 0x98f   : > { %4625 = vrot.lane.b32.xlu1 %v4617_v37, %s12094_s28  ;;  %v4558_v37 = vmul.f32 %v4555_v42, %v10416_v52 }
 0x992   : > { %4717 = vrot.lane.b32.xlu0 %v4710_v46, %s7394_s3 }
 0x993   : > { %4647 = vrot.lane.b32.xlu1 %v4640_v61, %s12408_s11 }
 0x996   : > { %4752 = vrot.lane.b32.xlu0 %v4745_v17, %s11976_s10 }
 0x997   : > { %4669 = vrot.lane.b32.xlu1 %v4664_v50, %s12328_s23 }
 0x99a   : > { %4778 = vrot.lane.b32.xlu0 %v4770_v62, %s11980_s5 }
 0x99b   : > { %4691 = vrot.lane.b32.xlu1 %v4685_v15, %s12342_s6 }
 0x99f   : > { %4693 = vrot.lane.b32.xlu1 %v4686_v32, %s12342_s6 }
 0x9a3   : > { %4715 = vrot.lane.b32.xlu1 %v4709_v34, %s7394_s3 }
 0x9a7   : > { %4750 = vrot.lane.b32.xlu1 %v4744_v26, %s11976_s10 }
 0x9ab   : > { %4776 = vrot.lane.b32.xlu1 %v4769_v16, %s11980_s5 }
 0x9af   : > { %4774 = vrot.lane.b32.xlu1 %v4768_v56, %s11980_s5 }
 0x9e7   : > { %v4646_v19 = vpop.permute.xlu1 %4645 }
 0x9ec   : > { %v4720_v10 = vpop.permute.xlu1 %4719  ;;  %v4696_v23 = vpop.permute.xlu0 %4695 }
 0x9f1   : > { %v10462_v40 = vpop.permute.xlu1 %4754 }
 0x9f5   : > { %v4576_v47 = vpop.permute.xlu1 %4575 }
 0x9f6   : > { %v4579_v1 = vsel %vm1321_vm13, %v4574_v13, %v4576_v47 }
 0x9f7   : > { %v4584_v62 = vadd.f32 %v4579_v1, %v4557_v54 }
 0x9f9   : > { %v4578_v30 = vpop.permute.xlu1 %4577  ;;  %v10464_v9 = vpop.permute.xlu0 %4791 }
 0x9fa   : > { %v4580_v24 = vsel %vm1321_vm13, %v4576_v47, %v4578_v30  ;;  %v4586_v61 = vadd.f32 %v4578_v30, %v4559_v53 }
 0x9fb   : > { %v4585_v15 = vadd.f32 %v4580_v24, %v4558_v37 }
 0x9fd   : > { %v4600_v36 = vpop.permute.xlu1 %4599  ;;  %v4602_v7 = vpop.permute.xlu0 %4601 }
 0x9fe   : > { %v4603_v50 = vsel %vm12577_vm5, %v4598_v18, %v4600_v36  ;;  %v4604_v17 = vsel %vm12578_vm2, %v4600_v36, %v4602_v7  ;;  %v4610_v32 = vadd.f32 %v4602_v7, %v4586_v61  ;;  %vm11904_vm5 = vcmask 130048  }
 0x9ff   : > { %v4608_v16 = vadd.f32 %v4603_v50, %v4584_v62  ;;  %v4609_v56 = vadd.f32 %v4604_v17, %v4585_v15  ;;  %v4736_v50 = vmul.f32 0.0, %v10460_v12 }
 0xa01   : > { %v4626_v55 = vpop.permute.xlu1 %4625  ;;  %v4624_v27 = vpop.permute.xlu0 %4623 }
 0xa02   : > { %v4627_v34 = vsel %vm12579_vm3, %v4622_v20, %v4624_v27  ;;  %v4628_v26 = vsel %vm12580_vm15, %v4624_v27, %v4626_v55  ;;  %v4634_v13 = vadd.f32 %v4626_v55, %v4610_v32 }
 0xa03   : > { %v4632_v18 = vadd.f32 %v4627_v34, %v4608_v16  ;;  %v4633_v31 = vadd.f32 %v4628_v26, %v4609_v56  ;;  %v4933_v16 = vadd.s32 4294967287, %v12527_v41 }
 0xa05   : > { %v4648_v51 = vpop.permute.xlu1 %4647  ;;  %v4650_v45 = vpop.permute.xlu0 %4649 }
 0xa06   : > { %v4651_v42 = vsel %vm12581_vm7, %v4646_v19, %v4648_v51  ;;  %v4652_v30 = vsel %vm12582_vm11, %v4648_v51, %v4650_v45  ;;  %v4658_v36 = vadd.f32 %v4650_v45, %v4634_v13  ;;  %vm4935_vm7 = vcmp.ge.s32.totalorder %v4933_v16, 0  ;;  %vm12584_vm11 = vmmov %vm12578_vm2 }
 0xa07   : > { %v4656_v1 = vadd.f32 %v4651_v42, %v4632_v18  ;;  %v4657_v7 = vadd.f32 %v4652_v30, %v4633_v31  ;;  %v4934_v42 = vadd.s32 4294967287, %v12529_v57  ;;  %v4734_v30 = vmul.f32 %v10460_v12, %v10416_v52 }
 0xa08   : > { %v6498_v52 = vsel %vm4935_vm7, 1.0, %v12532_v8 }
 0xa09   : > { %v4670_v46 = vpop.permute.xlu1 %4669  ;;  %v4668_v28 = vpop.permute.xlu0 %4667  ;;  %vm4936_vm15 = vcmp.ge.s32.totalorder %v4934_v42, 0  ;;  %v5523_v42 = vadd.s32 8, %v12527_v41 }
 0xa0a   : > { %v4671_v54 = vsel %vm3619_vm8, %v4668_v28, %v4670_v46  ;;  %v4677_v24 = vadd.f32 %v4670_v46, %v4658_v36  ;;  %v4675_v17 = vadd.f32 %v4668_v28, %v4656_v1  ;;  %v4735_v46 = vmul.f32 %v10460_v12, %v10419_v60 }
 0xa0b   : > { %v4676_v37 = vadd.f32 %v4671_v54, %v4657_v7  ;;  %v6499_v12 = vsel %vm4936_vm15, 1.0, %v12532_v8 }
 0xa0d   : > { %v4692_v47 = vpop.permute.xlu1 %4691  ;;  %v4718_v53 = vpop.permute.xlu0 %4717 }
 0xa0e   : > { %v4723_v19 = vsel %vm11904_vm5, %v4718_v53, %v4720_v10  ;;  %v4702_v32 = vadd.f32 %v4692_v47, %v4675_v17  ;;  %v5031_v17 = vadd.s32 4294967289, %v12527_v41 }
 0xa10   : > { %vm5033_vm15 = vcmp.ge.s32.totalorder %v5031_v17, 0  ;;  %v12591_v17 = vmov 14  }
 0xa11   : > { %v4694_v20 = vpop.permute.xlu1 %4693  ;;  %v4753_v51 = vpop.permute.xlu0 %4752 }
 0xa12   : > { %v4697_v27 = vsel %vm3829_vm9, %v4692_v47, %v4694_v20  ;;  %v4698_v55 = vsel %vm3829_vm9, %v4694_v20, %v4696_v23  ;;  %v4757_v60 = vsel %vm1321_vm13, %v4753_v51, %v10462_v40  ;;  %v4798_v20 = vld [vmem:[%s12583_s19] sm:$0xff]  ;;  %s12601_s19 = smov 113  }
 0xa13   : > { %v4704_v61 = vadd.f32 %v4698_v55, %v4677_v24  ;;  %v4703_v45 = vadd.f32 %v4697_v27, %v4676_v37  ;;  %v4982_v37 = vadd.s32 4294967288, %v12527_v41 }
 0xa15   : > { %v4729_v62 = vadd.f32 %v4723_v19, %v4704_v61  ;;  %v4716_v15 = vpop.permute.xlu1 %4715  ;;  %v4779_v23 = vpop.permute.xlu0 %4778  ;;  %v4983_v61 = vadd.s32 4294967288, %v12529_v57  ;;  %vm4984_vm3 = vcmp.ge.s32.totalorder %v4982_v37, 0  ;;  %v5423_v37 = vadd.s32 6, %v12527_v41 }
 0xa16   : > { %v4722_v31 = vsel %vm11904_vm5, %v4716_v15, %v4718_v53  ;;  %v4727_v56 = vadd.f32 %v4716_v15, %v4702_v32  ;;  %v10510_v15 = vld [vmem:[%s12585_s15] sm:$0xff]  ;;  %v5081_v32 = vadd.s32 4294967290, %v12529_v57  ;;  %s12602_s15 = smov 114  }
 0xa17   : > { %v4728_v34 = vadd.f32 %v4722_v31, %v4703_v45  ;;  %v4739_v26 = vadd.f32 %v4736_v50, %v4729_v62  ;;  %v7071_v50 = vpack.i.bf16 %v6499_v12, %v6498_v52  ;;  %vm4985_vm7 = vcmp.ge.s32.totalorder %v4983_v61, 0 }
 0xa18   : > { %v4737_v47 = vadd.f32 %v4734_v30, %v4727_v56  ;;  %v5032_v62 = vadd.s32 4294967289, %v12529_v57  ;;  %v6500_v31 = vsel %vm4984_vm3, 1.0, %v12532_v8  ;;  %vm5083_vm5 = vcmp.ge.s32.totalorder %v5081_v32, 0 }
 0xa19   : > { %v4738_v10 = vadd.f32 %v4735_v46, %v4728_v34  ;;  %v4751_v13 = vpop.permute.xlu1 %4750  ;;  %v4763_v28 = vadd.f32 %v10462_v40, %v4739_v26  ;;  %v6501_v46 = vsel %vm4985_vm7, 1.0, %v12532_v8  ;;  %v6502_v26 = vsel %vm5033_vm15, 1.0, %v12532_v8 }
 0xa1a   : > { %v4756_v1 = vsel %vm1321_vm13, %v4751_v13, %v4753_v51  ;;  %v7077_v34 = vpack.i.bf16 %v6501_v46, %v6500_v31  ;;  %v5524_v30 = vadd.s32 8, %v12529_v57  ;;  %v5424_v61 = vadd.s32 6, %v12529_v57 }
 0xa1b   : > { %v4787_v53 = vadd.f32 %v4779_v23, %v4763_v28  ;;  %v4762_v36 = vadd.f32 %v4757_v60, %v4738_v10  ;;  %v4761_v40 = vadd.f32 %v4756_v1, %v4737_v47  ;;  %v6505_v10 = vsel %vm5083_vm5, 1.0, %v12532_v8 }
 0xa1c   : > { %v12586_v28 = vmov 12   ;;  %vm5527_vm5 = vcmp.lt.s32.totalorder %v5523_v42, 16  ;;  %vm5528_vm3 = vcmp.lt.s32.totalorder %v5524_v30, 16  ;;  %v5572_v60 = vadd.s32 9, %v12527_v41 }
 0xa1d   : > { %v4796_v18 = vadd.f32 %v10464_v9, %v4787_v53  ;;  %v4777_v54 = vpop.permute.xlu1 %4776  ;;  %v12587_v53 = vmov 15   ;;  %v5573_v47 = vadd.s32 9, %v12529_v57  ;;  %v5622_v1 = vadd.s32 10, %v12527_v41 }
 0xa1e   : > { %v4781_v7 = vsel %vm12584_vm11, %v4777_v54, %v4779_v23  ;;  %vm5034_vm11 = vcmp.ge.s32.totalorder %v5032_v62, 0  ;;  %vm5576_vm7 = vcmp.lt.s32.totalorder %v5572_v60, 16  ;;  %v5474_v62 = vadd.s32 7, %v12529_v57 }
 0xa1f   : > { %v4786_v24 = vadd.f32 %v4781_v7, %v4762_v36  ;;  %4811 = vrot.lane.b32.xlu1 %v4796_v18, %s12094_s28  ;;  %v6503_v23 = vsel %vm5034_vm11, 1.0, %v12532_v8  ;;  %v6510_v18 = vsel %vm5527_vm5, 1.0, %v12532_v8  ;;  %v6511_v36 = vsel %vm5528_vm3, 1.0, %v12532_v8 }
 0xa20   : > { %v7083_v16 = vpack.i.bf16 %v6503_v23, %v6502_v26  ;;  %vm5577_vm15 = vcmp.lt.s32.totalorder %v5573_v47, 16  ;;  %v5623_v7 = vadd.s32 10, %v12529_v57  ;;  %v6512_v52 = vsel %vm5576_vm7, 1.0, %v12532_v8 }
 0xa21   : > { %v4795_v27 = vadd.f32 %v10464_v9, %v4786_v24  ;;  %v4775_v55 = vpop.permute.xlu1 %4774  ;;  %v12589_v24 = vmov 17   ;;  %v6513_v12 = vsel %vm5577_vm15, 1.0, %v12532_v8  ;;  %vm5626_vm11 = vcmp.lt.s32.totalorder %v5622_v1, 16 }
 0xa22   : > { %v4780_v19 = vsel %vm12578_vm2, %v4775_v55, %v4777_v54  ;;  %v12588_v54 = vmov 11   ;;  %v12590_v55 = vmov 13   ;;  %vm5427_vm7 = vcmp.lt.s32.totalorder %v5423_v37, 16 }
 0xa23   : > { %v4785_v51 = vadd.f32 %v4780_v19, %v4761_v40  ;;  %4801 = vperm.xlu1 %7069, %v4798_v20   ;;  %4809 = vrot.lane.b32.xlu0 %v4795_v27, %s12094_s28  ;;  %v7118_v20 = vpack.i.bf16 %v6511_v36, %v6510_v18  ;;  %v4897_v40 = vadd.s32 4294967286, %v12527_v41  ;;  %v4898_v27 = vadd.s32 4294967286, %v12529_v57  ;;  %v4797_v18 = vld [vmem:[%s12594_s0] sm:$0xff] }
 0xa24   : > { %v7124_v19 = vpack.i.bf16 %v6513_v12, %v6512_v52  ;;  %vm5428_vm15 = vcmp.lt.s32.totalorder %v5424_v61, 16  ;;  %v12592_v57 = vmov 16  }
 0xa25   : > { %v4794_v45 = vadd.f32 %v10464_v9, %v4785_v51  ;;  %v5080_v9 = vadd.s32 4294967290, %v12527_v41  ;;  %v6514_v51 = vsel %vm5626_vm11, 1.0, %v12532_v8  ;;  %vm4899_vm5 = vcmp.ge.s32.totalorder %v4897_v40, 0 }
 0xa26   : > { %vm4900_vm3 = vcmp.ge.s32.totalorder %v4898_v27, 0  ;;  %v6496_v46 = vsel %vm4899_vm5, 1.0, %v12532_v8  ;;  %v6507_v32 = vsel %vm5428_vm15, 1.0, %v12532_v8  ;;  %vm12597_vm5 = vcmask 654336  }
 0xa27   : > { %7072 = vrot.lane.b32.xlu1 %v7071_v50, %s7392_s8  ;;  %4807 = vrot.lane.b32.xlu0 %v4794_v45, %s12094_s28  ;;  %vm5082_vm2 = vcmp.ge.s32.totalorder %v5080_v9, 0  ;;  %v5473_v45 = vadd.s32 7, %v12527_v41  ;;  %v6497_v9 = vsel %vm4900_vm3, 1.0, %v12532_v8  ;;  %vm12598_vm3 = vmmov %vm12597_vm5  ;;  %vm5491_vm15 = vcmask 56320  }
 0xa28   : > { %7076 = vset.pattern.permute.xlu1 %v12534_v29  ;;  %v6504_v56 = vsel %vm5082_vm2, 1.0, %v12532_v8  ;;  %vm5627_vm2 = vcmp.lt.s32.totalorder %v5623_v7, 16  ;;  %v7136_v41 = vpack.i.bf16 %v6497_v9, %v6496_v46 }
 0xa29   : > { %v7089_v13 = vpack.i.bf16 %v6505_v10, %v6504_v56  ;;  %v6515_v50 = vsel %vm5627_vm2, 1.0, %v12532_v8  ;;  %vm5477_vm11 = vcmp.lt.s32.totalorder %v5473_v45, 16  ;;  %vm5478_vm2 = vcmp.lt.s32.totalorder %v5474_v62, 16 }
 0xa2a   : > { %v7130_v31 = vpack.i.bf16 %v6515_v50, %v6514_v51  ;;  %v6508_v26 = vsel %vm5477_vm11, 1.0, %v12532_v8  ;;  %v6509_v23 = vsel %vm5478_vm2, 1.0, %v12532_v8  ;;  %v12593_v56 = vmov 18  }
 0xa2b   : > { %5008 = vperm.xlu1 %7076, %v10510_v15   ;;  %4959 = vperm.xlu0 %7070, %v10510_v15   ;;  %v12595_v10 = vmov 19   ;;  %vm5590_vm11 = vcmask 72704   ;;  %vm5441_vm2 = vcmask 48128  }
 0xa2f   : > { %7082 = vset.pattern.permute.xlu1 %v12533_v48  ;;  %7078 = vrot.lane.b32.xlu0 %v7077_v34, %s7391_s21 }
 0xa30   : > { %5057 = vperm.xlu1 %7082, %v10510_v15   ;;  %7095 = vset.pattern.permute.xlu0 %v12535_v43 }
 0xa33   : > { %7084 = vrot.lane.b32.xlu0 %v7083_v16, %s7390_s20  ;;  %v7112_v16 = vpack.i.bf16 %v6509_v23, %v6508_v26 }
 0xa34   : > { %7088 = vset.pattern.permute.xlu1 %v12536_v63 }
 0xa35   : > { %5106 = vperm.xlu1 %7088, %v10510_v15  }
 0xa37   : > { %7090 = vrot.lane.b32.xlu0 %v7089_v13, %s12266_s12  ;;  %v12596_v13 = vmov 20  }
 0xa39   : > { %7094 = vset.pattern.permute.xlu1 %v12538_v3 }
 0xa3a   : > { %5133 = vperm.xlu1 %7094, %v10510_v15  }
 0xa3b   : > { %5160 = vperm.xlu0 %7095, %v10510_v15  }
 0xa3e   : > { %7096 = vset.pattern.permute.xlu1 %v12539_v35 }
 0xa3f   : > { %5187 = vperm.xlu1 %7096, %v10510_v15   ;;  %7098 = vset.pattern.permute.xlu0 %v12537_v33 }
 0xa40   : > { %5241 = vperm.xlu0 %7098, %v10510_v15  }
 0xa43   : > { %7097 = vset.pattern.permute.xlu1 %v12541_v4 }
 0xa44   : > { %5214 = vperm.xlu1 %7097, %v10510_v15   ;;  %7101 = vset.pattern.permute.xlu0 %v12586_v28 }
 0xa45   : > { %5318 = vperm.xlu0 %7101, %v10510_v15  }
 0xa48   : > { %7099 = vset.pattern.permute.xlu1 %v12542_v39 }
 0xa49   : > { %5265 = vperm.xlu1 %7099, %v10510_v15   ;;  %7104 = vset.pattern.permute.xlu0 %v12587_v53 }
 0xa4a   : > { %5400 = vperm.xlu0 %7104, %v10510_v15  }
 0xa4d   : > { %7100 = vset.pattern.permute.xlu1 %v12588_v54 }
 0xa4e   : > { %5290 = vperm.xlu1 %7100, %v10510_v15   ;;  %7111 = vset.pattern.permute.xlu0 %v12589_v24 }
 0xa4f   : > { %5500 = vperm.xlu0 %7111, %v10510_v15  }
 0xa52   : > { %7102 = vset.pattern.permute.xlu1 %v12590_v55 }
 0xa53   : > { %5346 = vperm.xlu1 %7102, %v10510_v15   ;;  %7119 = vrot.lane.b32.xlu0 %v7118_v20, %s7395_s4  ;;  %s12603_s4 = sld [smem:[#allocation30_spill]] }
 0xa54   : > { %7142 = vset.pattern.permute.xlu0 %v12534_v29  ;;  %v6506_v29 = vsel %vm5427_vm7, 1.0, %v12532_v8  ;;  %vm12599_vm7 = vcmask 64512  }
 0xa55   : > { %v7106_v34 = vpack.i.bf16 %v6507_v32, %v6506_v29 }
 0xa57   : > { %7103 = vset.pattern.permute.xlu1 %v12591_v17  ;;  %7125 = vrot.lane.b32.xlu0 %v7124_v19, %s7396_s13  ;;  %s12604_s13 = sld [smem:[#allocation31_spill]] }
 0xa58   : > { %5373 = vperm.xlu1 %7103, %v10510_v15  }
 0xa5b   : > { %7131 = vrot.lane.b32.xlu0 %v7130_v31, %s7397_s9 }
 0xa5c   : > { %7105 = vset.pattern.permute.xlu1 %v12592_v57 }
 0xa5d   : > { %5450 = vperm.xlu1 %7105, %v10510_v15  }
 0xa5f   : > { %7137 = vrot.lane.b32.xlu0 %v7136_v41, %s7393_s16 }
 0xa61   : > { %7107 = vrot.lane.b32.xlu1 %v7106_v34, %s7398_s2  ;;  %s12605_s2 = smov 109  }
 0xa62   : > { %7117 = vset.pattern.permute.xlu1 %v12593_v56 }
 0xa65   : > { %7113 = vrot.lane.b32.xlu1 %v7112_v16, %s7399_s24 }
 0xa69   : > { %5549 = vperm.xlu1 %7117, %v10510_v15  }
 0xa6d   : > { %7123 = vset.pattern.permute.xlu1 %v12595_v10 }
 0xa6e   : > { %5599 = vperm.xlu1 %7123, %v10510_v15  }
 0xa72   : > { %7129 = vset.pattern.permute.xlu1 %v12596_v13 }
 0xa73   : > { %5649 = vperm.xlu1 %7129, %v10510_v15  }
 0xa77   : > { %7135 = vset.pattern.permute.xlu1 %v12543_v14 }
 0xa78   : > { %4924 = vperm.xlu1 %7135, %v10510_v15  }
 0xa91   : > { %v4812_v42 = vpop.permute.xlu1 %4811 }
 0xa95   : > { %v4810_v30 = vpop.permute.xlu0 %4809 }
 0xa96   : > { %v4814_v60 = vsel %vm12597_vm5, %v4810_v30, %v4812_v42  ;;  %vm5640_vm5 = vcmask 80896  }
 0xa97   : > { %4850 = vmatprep.subr.mxu1 %v4814_v60 }
 0xa99   : > { %v4808_v47 = vpop.permute.xlu0 %4807 }
 0xa9a   : > { %v4813_v36 = vsel %vm12598_vm3, %v4808_v47, %v4810_v30  ;;  %vm12633_vm3 = vmmov %vm12599_vm7 }
 0xa9b   : > { %4851 = vmatpush1.msra.mxu1 %v4813_v36 }
 0xa9c   : > { %6495 = vmatmul.mubr.msk.f32.vlgmr.msra.gmra.mxu1 %vm12599_vm7, %v4797_v18  ;;  %vm12634_vm7 = vcmask 965632  }
 0xa9d   : > { %6342 = vmatprep.mubr.f32.mxu1 %v12532_v8 }
 0xa9e   : > { %v10595_v1 = vpop.permute.xlu1 %4801 }
 0xaa2   : > { %v10597_v7 = vpop.permute.xlu1 %7072 }
 0xaa3   : > { %v7074_v15 = vunpack.i.l.bf16 %v10597_v7 }
 0xaa5   : > { %v4955_v20 = vmul.f32 0.0, %v7074_v15 }
 0xaa6   : > { %v10602_v52 = vpop.permute.xlu0 %4959  ;;  %v10604_v12 = vpop.permute.xlu1 %5008 }
 0xaa7   : > { %v4962_v40 = vmul.f32 %v10602_v52, %v4955_v20 }
 0xaa9   : > { %4968 = vrot.lane.b32.xlu1 %v4962_v40, %s11973_s1 }
 0xaaa   : > { %v10608_v27 = vpop.permute.xlu0 %7078 }
 0xaab   : > { %v7080_v8 = vunpack.i.l.bf16 %v10608_v27  ;;  %v10611_v37 = vpop.permute.xlu1 %5057 }
 0xaad   : > { %v5004_v61 = vmul.f32 0.0, %v7080_v8 }
 0xaae   : > { %v10615_v19 = vpop.permute.xlu0 %7084 }
 0xaaf   : > { %v11908_v51 = vunpack.i.l.bf16 %v10615_v19  ;;  %v5011_v50 = vmul.f32 %v10604_v12, %v5004_v61 }
 0xab0   : > { %v10619_v45 = vpop.permute.xlu1 %5106 }
 0xab1   : > { %v5053_v62 = vmul.f32 0.0, %v11908_v51  ;;  %5017 = vrot.lane.b32.xlu0 %v5011_v50, %s11979_s7 }
 0xab2   : > { %v10624_v31 = vpop.permute.xlu0 %7090 }
 0xab3   : > { %v7092_v46 = vunpack.i.l.bf16 %v10624_v31  ;;  %v5060_v9 = vmul.f32 %v10611_v37, %v5053_v62 }
 0xab5   : > { %v5102_v29 = vmul.f32 0.0, %v7092_v46  ;;  %v10630_v32 = vpop.permute.xlu1 %5133  ;;  %5066 = vrot.lane.b32.xlu1 %v5060_v9, %s12550_s30 }
 0xab6   : > { %v5136_v41 = vmul.f32 %v10630_v32, %v10355_v21  ;;  %v10635_v34 = vpop.permute.xlu0 %5160 }
 0xab7   : > { %v5109_v26 = vmul.f32 %v10619_v45, %v5102_v29  ;;  %v5163_v16 = vmul.f32 %v10635_v34, %v10192_v44 }
 0xab9   : > { %5115 = vrot.lane.b32.xlu0 %v5109_v26, %s12083_s26  ;;  %5142 = vrot.lane.b32.xlu1 %v5136_v41, %s12263_s27 }
 0xaba   : > { %v10640_v23 = vpop.permute.xlu1 %5187 }
 0xabb   : > { %v5190_v42 = vmul.f32 %v10640_v23, %v12547_v38  ;;  %v10646_v30 = vpop.permute.xlu0 %5241 }
 0xabc   : > { %v5244_v21 = vmul.f32 %v10646_v30, %v12549_v5 }
 0xabd   : > { %5169 = vrot.lane.b32.xlu0 %v5163_v16, %s12266_s12  ;;  %5196 = vrot.lane.b32.xlu1 %v5190_v42, %s7390_s20 }
 0xabf   : > { %v10652_v60 = vpop.permute.xlu1 %5214 }
 0xac0   : > { %v5217_v47 = vmul.f32 %v10652_v60, %v12548_v0  ;;  %v10656_v18 = vpop.permute.xlu0 %5318 }
 0xac1   : > { %5250 = vrot.lane.b32.xlu1 %v5244_v21, %s7392_s8  ;;  %v5323_v44 = vmul.f32 %v10656_v18, %v12552_v49 }
 0xac2   : > { %5223 = vrot.lane.b32.xlu0 %v5217_v47, %s7391_s21 }
 0xac4   : > { %v10662_v38 = vpop.permute.xlu1 %5265 }
 0xac5   : > { %5331 = vrot.lane.b32.xlu1 %v5323_v44, %s7400_s22  ;;  %v10674_v40 = vpop.permute.xlu0 %5400 }
 0xac6   : > { %v5405_v49 = vmul.f32 %v10674_v40, %v10332_v58 }
 0xac9   : > { %v10665_v5 = vpop.permute.xlu1 %5290 }
 0xaca   : > { %v5295_v36 = vmul.f32 %v10665_v5, %v12551_v11  ;;  %v10683_v50 = vpop.permute.xlu0 %5500 }
 0xacc   : > { %5303 = vrot.lane.b32.xlu0 %v5295_v36, %s7401_s25 }
 0xace   : > { %v10670_v0 = vpop.permute.xlu1 %5346  ;;  %v10689_v62 = vpop.permute.xlu0 %7119 }
 0xacf   : > { %v5351_v20 = vmul.f32 %v10670_v0, %v12553_v2 }
 0xad1   : > { %5359 = vrot.lane.b32.xlu0 %v5351_v20, %s12600_s14  ;;  %v5672_v20 = vld [vmem:[%s12603_s4] sm:$0xff] }
 0xad2   : > { %v10699_v26 = vpop.permute.xlu0 %7125 }
 0xad3   : > { %v10679_v61 = vpop.permute.xlu1 %5373  ;;  %v11910_v21 = vunpack.i.h.bf16 %v10699_v26 }
 0xad4   : > { %v5378_v11 = vmul.f32 %v10679_v61, %v10230_v22  ;;  %v11906_v22 = vunpack.i.h.bf16 %v10689_v62 }
 0xad5   : > { %5413 = vrot.lane.b32.xlu0 %v5405_v49, %s12601_s19 }
 0xad6   : > { %5386 = vrot.lane.b32.xlu1 %v5378_v11, %s12602_s15  ;;  %v5547_v44 = vmul.f32 0.0, %v11906_v22  ;;  %v5597_v11 = vmul.f32 0.0, %v11910_v21 }
 0xad8   : > { %v10687_v2 = vpop.permute.xlu1 %5450 }
 0xadc   : > { %v10691_v9 = vpop.permute.xlu1 %7107 }
 0xadd   : > { %v11905_v58 = vunpack.i.h.bf16 %v10691_v9 }
 0xadf   : > { %v5448_v29 = vmul.f32 0.0, %v11905_v58 }
 0xae0   : > { %v10697_v41 = vpop.permute.xlu1 %7113 }
 0xae1   : > { %v11907_v16 = vunpack.i.h.bf16 %v10697_v41  ;;  %v5455_v42 = vmul.f32 %v10687_v2, %v5448_v29  ;;  %v10715_v29 = vpop.permute.xlu0 %7131 }
 0xae2   : > { %v11909_v58 = vunpack.i.h.bf16 %v10715_v29 }
 0xae3   : > { %v5498_v47 = vmul.f32 0.0, %v11907_v16  ;;  %5463 = vrot.lane.b32.xlu1 %v5455_v42, %s11976_s10 }
 0xae4   : > { %v10709_v36 = vpop.permute.xlu1 %5549  ;;  %v5647_v51 = vmul.f32 0.0, %v11909_v58 }
 0xae5   : > { %v5505_v49 = vmul.f32 %v10683_v50, %v5498_v47  ;;  %v5554_v22 = vmul.f32 %v10709_v36, %v5547_v44  ;;  %v10729_v47 = vld [vmem:[%s12604_s13] sm:$0xff]  ;;  %v11911_v44 = vunpack.i.h.bf16 %v10597_v7 }
 0xae7   : > { %5675 = vperm.xlu1 %7135, %v5672_v20   ;;  %5513 = vrot.lane.b32.xlu0 %v5505_v49, %s11972_s18 }
 0xae9   : > { %v10720_v16 = vpop.permute.xlu1 %5599 }
 0xaea   : > { %v5604_v42 = vmul.f32 %v10720_v16, %v5597_v11 }
 0xaeb   : > { %5562 = vrot.lane.b32.xlu0 %v5554_v22, %s11982_s17  ;;  %7141 = vset.pattern.permute.xlu1 %v12574_v6  ;;  %v11912_v22 = vunpack.i.h.bf16 %v10608_v27  ;;  %v7093_v6 = vunpack.i.h.bf16 %v10624_v31  ;;  %v12619_v31 = vld [vmem:[#allocation126_spill] sm:$0xff] }
 0xaec   : > { %5612 = vrot.lane.b32.xlu1 %v5604_v42, %s12605_s2 }
 0xaee   : > { %v10731_v20 = vpop.permute.xlu1 %5649 }
 0xaef   : > { %v5654_v49 = vmul.f32 %v10731_v20, %v5647_v51  ;;  %v4951_v51 = vsel %vm4464_vm0, %v7074_v15, %v11911_v44  ;;  %v5098_v15 = vsel %vm2763_vm4, %v7092_v46, %v7093_v6 }
 0xaf0   : > { %5712 = vperm.xlu1 %7141, %v10729_v47  }
 0xaf1   : > { %5662 = vrot.lane.b32.xlu0 %v5654_v49, %s12056_s29  ;;  %v7087_v49 = vunpack.i.h.bf16 %v10615_v19 }
 0xaf4   : > { %7144 = vset.pattern.permute.xlu1 %v12536_v63  ;;  %v5000_v63 = vsel %vm4414_vm14, %v7080_v8, %v11912_v22  ;;  %v12606_v22 = vunpack.i.l.bf16 %v10615_v19  ;;  %v12618_v19 = vld [vmem:[#allocation90_spill] sm:$0xff] }
 0xb5c   : > { %v4886_v11 = vpop.f32.mrf.mxu1 }
 0xb5d   : > { %v10741_v42 = vadd.f32 %v4886_v11, %v10595_v1 }
 0xb5f   : > { %v5268_v58 = vmul.f32 %v10662_v38, %v10741_v42  ;;  %v5005_v11 = vmul.f32 %v5000_v63, %v10741_v42  ;;  %v4956_v21 = vmul.f32 %v4951_v51, %v10741_v42  ;;  %v5103_v8 = vmul.f32 %v5098_v15, %v10741_v42 }
 0xb60   : > { %v5049_v63 = vsel %vm4386_vm1, %v12606_v22, %v7087_v49  ;;  %v5130_v22 = vmul.f32 %v10741_v42, %v10366_v25 }
 0xb61   : > { %5272 = vrot.lane.b32.xlu0 %v5268_v58, %s7393_s16  ;;  %v5012_v44 = vmul.f32 %v10604_v12, %v5005_v11  ;;  %v4963_v51 = vmul.f32 %v10602_v52, %v4956_v21  ;;  %v5054_v57 = vmul.f32 %v5049_v63, %v10741_v42  ;;  %v5110_v46 = vmul.f32 %v10619_v45, %v5103_v8  ;;  %v4888_v63 = vpop.f32.mrf.mxu1 }
 0xb62   : > { %v5157_v58 = vmul.f32 %v10741_v42, %v10243_v59  ;;  %v5137_v8 = vmul.f32 %v10630_v32, %v5130_v22  ;;  %v12608_v59 = vld [vmem:[#allocation142_spill] sm:$0xff] }
 0xb63   : > { %5019 = vrot.lane.b32.xlu1 %v5012_v44, %s11979_s7  ;;  %v5061_v11 = vmul.f32 %v10611_v37, %v5054_v57  ;;  %v12607_v44 = vld [vmem:[#allocation129_spill] sm:$0xff]  ;;  %v10791_v57 = vadd.f32 %v4888_v63, %v10595_v1 }
 0xb64   : > { %v5164_v21 = vmul.f32 %v10635_v34, %v5157_v58  ;;  %v5211_v15 = vmul.f32 %v10741_v42, %v12607_v44  ;;  %v12609_v58 = vld [vmem:[#allocation56_spill] sm:$0xff] }
 0xb65   : > { %4970 = vrot.lane.b32.xlu0 %v4963_v51, %s11973_s1  ;;  %v5184_v51 = vmul.f32 %v10741_v42, %v12608_v59  ;;  %v5269_v22 = vmul.f32 %v10662_v38, %v10791_v57  ;;  %v12612_v59 = vld [vmem:[#allocation93_spill] sm:$0xff] }
 0xb66   : > { %v5218_v25 = vmul.f32 %v10652_v60, %v5211_v15  ;;  %v12611_v15 = vld [vmem:[#allocation60_spill] sm:$0xff] }
 0xb67   : > { %5117 = vrot.lane.b32.xlu1 %v5110_v46, %s12083_s26  ;;  %v5191_v46 = vmul.f32 %v10640_v23, %v5184_v51  ;;  %v5286_v63 = vmul.f32 %v12611_v15, %v10741_v42  ;;  %v5396_v51 = vmul.f32 %v12612_v59, %v10741_v42 }
 0xb69   : > { %5068 = vrot.lane.b32.xlu0 %v5061_v11, %s12550_s30  ;;  %v5238_v11 = vmul.f32 %v10741_v42, %v12609_v58  ;;  %v5293_v38 = vmul.f32 %v10665_v5, %v5286_v63  ;;  %v7109_v63 = vunpack.i.l.bf16 %v10691_v9 }
 0xb6b   : > { %5171 = vrot.lane.b32.xlu1 %v5164_v21, %s12266_s12  ;;  %v12610_v21 = vld [vmem:[#allocation58_spill] sm:$0xff]  ;;  %v5245_v44 = vmul.f32 %v10646_v30, %v5238_v11  ;;  %v5403_v11 = vmul.f32 %v10674_v40, %v5396_v51  ;;  %v7133_v51 = vunpack.i.l.bf16 %v10715_v29 }
 0xb6c   : > { %v5342_v1 = vmul.f32 %v12610_v21, %v10741_v42  ;;  %v7127_v21 = vunpack.i.l.bf16 %v10699_v26 }
 0xb6d   : > { %5144 = vrot.lane.b32.xlu0 %v5137_v8, %s12263_s27 }
 0xb6e   : > { %v5349_v8 = vmul.f32 %v10670_v0, %v5342_v1  ;;  %v5595_v59 = vmul.f32 %v7127_v21, %v10741_v42 }
 0xb6f   : > { %5225 = vrot.lane.b32.xlu1 %v5218_v25, %s7391_s21  ;;  %v7115_v25 = vunpack.i.l.bf16 %v10697_v41 }
 0xb71   : > { %5198 = vrot.lane.b32.xlu0 %v5191_v46, %s7390_s20  ;;  %v12613_v46 = vld [vmem:[#allocation122_spill] sm:$0xff] }
 0xb72   : > { %v5314_v58 = vmul.f32 %v12613_v46, %v10741_v42  ;;  %v5446_v46 = vmul.f32 %v7109_v63, %v10741_v42 }
 0xb73   : > { %5274 = vrot.lane.b32.xlu1 %v5269_v22, %s7393_s16  ;;  %v5496_v22 = vmul.f32 %v7115_v25, %v10741_v42  ;;  %s7402_s16 = smov [#allocation3]  }
 0xb74   : > { %v5321_v1 = vmul.f32 %v10656_v18, %v5314_v58  ;;  %v11913_v58 = vunpack.i.l.bf16 %v10689_v62 }
 0xb75   : > { %5252 = vrot.lane.b32.xlu0 %v5245_v44, %s7392_s8  ;;  %v12614_v44 = vld [vmem:[#allocation136_spill] sm:$0xff] }
 0xb76   : > { %v5369_v15 = vmul.f32 %v12614_v44, %v10741_v42  ;;  %v5545_v44 = vmul.f32 %v11913_v58, %v10741_v42 }
 0xb77   : > { %5355 = vrot.lane.b32.xlu1 %v5349_v8, %s12600_s14  ;;  %v5503_v8 = vmul.f32 %v10683_v50, %v5496_v22  ;;  %v5645_v22 = vmul.f32 %v7133_v51, %v10741_v42 }
 0xb79   : > { %5299 = vrot.lane.b32.xlu0 %v5293_v38, %s7401_s25  ;;  %v5376_v38 = vmul.f32 %v10679_v61, %v5369_v15  ;;  %v5652_v15 = vmul.f32 %v10731_v20, %v5645_v22  ;;  %v5055_v22 = vmul.f32 %v7087_v49, %v10791_v57  ;;  %v5158_v49 = vmul.f32 %v12618_v19, %v10791_v57  ;;  %v12625_v19 = vld [vmem:[#allocation139_spill] sm:$0xff] }
 0xb7b   : > { %5409 = vrot.lane.b32.xlu1 %v5403_v11, %s12601_s19  ;;  %v5602_v11 = vmul.f32 %v10720_v16, %v5595_v59 }
 0xb7d   : > { %5327 = vrot.lane.b32.xlu0 %v5321_v1, %s7400_s22  ;;  %v5453_v1 = vmul.f32 %v10687_v2, %v5446_v46 }
 0xb7f   : > { %5509 = vrot.lane.b32.xlu1 %v5503_v8, %s11972_s18  ;;  %v12615_v8 = vunpack.i.h.bf16 %v10597_v7 }
 0xb81   : > { %5382 = vrot.lane.b32.xlu0 %v5376_v38, %s12602_s15  ;;  %v4957_v59 = vmul.f32 %v12615_v8, %v10791_v57  ;;  %v5552_v38 = vmul.f32 %v10709_v36, %v5545_v44  ;;  %v12617_v44 = vld [vmem:[#allocation52_spill] sm:$0xff] }
 0xb83   : > { %5608 = vrot.lane.b32.xlu1 %v5602_v11, %s12605_s2  ;;  %v12616_v11 = vunpack.i.h.bf16 %v10608_v27  ;;  %v4964_v58 = vmul.f32 %v10602_v52, %v4957_v59  ;;  %v5062_v27 = vmul.f32 %v10611_v37, %v5055_v22  ;;  %v5165_v37 = vmul.f32 %v10635_v34, %v5158_v49  ;;  %v10886_v59 = vpop.permute.xlu1 %4924  ;;  %v10896_v34 = vpop.permute.xlu0 %7137 }
 0xb84   : > { %v12626_v49 = vunpack.i.h.bf16 %v10697_v41 }
 0xb85   : > { %5459 = vrot.lane.b32.xlu0 %v5453_v1, %s11976_s10  ;;  %v5006_v46 = vmul.f32 %v12616_v11, %v10791_v57  ;;  %v5104_v1 = vmul.f32 %v7093_v6, %v10791_v57  ;;  %v5185_v6 = vmul.f32 %v12619_v31, %v10791_v57 }
 0xb87   : > { %5658 = vrot.lane.b32.xlu1 %v5652_v15, %s12056_s29  ;;  %v5013_v7 = vmul.f32 %v10604_v12, %v5006_v46  ;;  %v5131_v15 = vmul.f32 %v12617_v44, %v10791_v57  ;;  %v5111_v52 = vmul.f32 %v10619_v45, %v5104_v1  ;;  %v5192_v45 = vmul.f32 %v10640_v23, %v5185_v6  ;;  %v12622_v46 = vld [vmem:[#allocation115_spill] sm:$0xff]  ;;  %v12623_v1 = vld [vmem:[#allocation62_spill] sm:$0xff]  ;;  %v10902_v23 = vpop.permute.xlu1 %4968  ;;  %v10916_v31 = vpop.permute.xlu0 %5017 }
 0xb88   : > { %v5343_v22 = vmul.f32 %v10791_v57, %v12622_v46 }
 0xb89   : > { %5558 = vrot.lane.b32.xlu0 %v5552_v38, %s11982_s17  ;;  %v5138_v12 = vmul.f32 %v10630_v32, %v5131_v15  ;;  %v12621_v38 = vld [vmem:[#allocation55_spill] sm:$0xff] }
 0xb8a   : > { %v5239_v11 = vmul.f32 %v12621_v38, %v10791_v57  ;;  %v5350_v44 = vmul.f32 %v10670_v0, %v5343_v22  ;;  %v12629_v38 = vunpack.i.h.bf16 %v10691_v9  ;;  %v12631_v22 = vunpack.i.h.bf16 %v10689_v62 }
 0xb8b   : > { %4972 = vrot.lane.b32.xlu1 %v4964_v58, %s11973_s1  ;;  %v12620_v58 = vld [vmem:[#allocation128_spill] sm:$0xff] }
 0xb8c   : > { %v5212_v8 = vmul.f32 %v12620_v58, %v10791_v57  ;;  %v12627_v58 = vld [vmem:[#allocation124_spill] sm:$0xff] }
 0xb8d   : > { %5021 = vrot.lane.b32.xlu0 %v5013_v7, %s11979_s7  ;;  %v5246_v7 = vmul.f32 %v10646_v30, %v5239_v11  ;;  %v5315_v30 = vmul.f32 %v10791_v57, %v12625_v19  ;;  %v5370_v41 = vmul.f32 %v10791_v57, %v12627_v58  ;;  %v10938_v11 = vpop.permute.xlu0 %5115 }
 0xb8e   : > { %v5219_v32 = vmul.f32 %v10652_v60, %v5212_v8  ;;  %v12624_v60 = vld [vmem:[#allocation137_spill] sm:$0xff] }
 0xb8f   : > { %5070 = vrot.lane.b32.xlu1 %v5062_v27, %s12550_s30  ;;  %v5287_v27 = vmul.f32 %v10791_v57, %v12623_v1  ;;  %v5397_v15 = vmul.f32 %v10791_v57, %v12624_v60 }
 0xb91   : > { %5119 = vrot.lane.b32.xlu0 %v5111_v52, %s12083_s26  ;;  %v5294_v52 = vmul.f32 %v10665_v5, %v5287_v27  ;;  %v5404_v0 = vmul.f32 %v10674_v40, %v5397_v15  ;;  %v5322_v5 = vmul.f32 %v10656_v18, %v5315_v30  ;;  %v5442_v18 = vsel %vm5441_vm2, %v7109_v63, %v12629_v38  ;;  %v10961_v1 = vpop.permute.xlu0 %5169  ;;  %s12681_s26 = sld [smem:[#allocation39_spill]] }
 0xb93   : > { %5146 = vrot.lane.b32.xlu1 %v5138_v12, %s12263_s27  ;;  %v5492_v12 = vsel %vm5491_vm15, %v7115_v25, %v12626_v49  ;;  %v12628_v25 = vunpack.i.h.bf16 %v10699_v26  ;;  %v5447_v26 = vmul.f32 %v5442_v18, %v10791_v57  ;;  %vm12635_vm15 = vcmask 1014784   ;;  %s12678_s27 = sld [smem:[#allocation33_spill]] }
 0xb94   : > { %v5497_v6 = vmul.f32 %v5492_v12, %v10791_v57 }
 0xb95   : > { %5173 = vrot.lane.b32.xlu0 %v5165_v37, %s12266_s12  ;;  %v10921_v37 = vpop.permute.xlu1 %5066  ;;  %v5591_v8 = vsel %vm5590_vm11, %v7127_v21, %v12628_v25  ;;  %v12630_v21 = vunpack.i.h.bf16 %v10715_v29  ;;  %v5454_v29 = vmul.f32 %v10687_v2, %v5447_v26  ;;  %vm12636_vm11 = vcmask 1006592   ;;  %s12676_s12 = sld [smem:[#allocation36_spill]] }
 0xb96   : > { %v5504_v40 = vmul.f32 %v10683_v50, %v5497_v6  ;;  %vm12638_vm2 = vmmov %vm12636_vm11 }
 0xb97   : > { %5200 = vrot.lane.b32.xlu1 %v5192_v45, %s7390_s20  ;;  %v5596_v45 = vmul.f32 %v5591_v8, %v10791_v57  ;;  %v5641_v50 = vsel %vm5640_vm5, %v7133_v51, %v12630_v21 }
 0xb98   : > { %v5646_v63 = vmul.f32 %v5641_v50, %v10791_v57 }
 0xb99   : > { %5227 = vrot.lane.b32.xlu0 %v5219_v32, %s7391_s21  ;;  %v5377_v32 = vmul.f32 %v10679_v61, %v5370_v41  ;;  %v10948_v46 = vpop.permute.xlu1 %5142  ;;  %v5603_v9 = vmul.f32 %v10720_v16, %v5596_v45  ;;  %v12632_v61 = vunpack.i.l.bf16 %v10689_v62 }
 0xb9a   : > { %v5653_v16 = vmul.f32 %v10731_v20, %v5646_v63 }
 0xb9b   : > { %5254 = vrot.lane.b32.xlu1 %v5246_v7, %s7392_s8  ;;  %v5541_v7 = vsel %vm12633_vm3, %v12632_v61, %v12631_v22 }
 0xb9c   : > { %v5546_v51 = vmul.f32 %v5541_v7, %v10791_v57 }
 0xb9d   : > { %5357 = vrot.lane.b32.xlu0 %v5350_v44, %s12600_s14  ;;  %v10965_v27 = vpop.permute.xlu1 %5196  ;;  %v10970_v44 = vpop.permute.xlu0 %5223 }
 0xb9e   : > { %v5553_v62 = vmul.f32 %v10709_v36, %v5546_v51 }
 0xb9f   : > { %5301 = vrot.lane.b32.xlu1 %v5294_v52, %s7401_s25 }
 0xba1   : > { %5411 = vrot.lane.b32.xlu0 %v5404_v0, %s12601_s19  ;;  %v10973_v2 = vpop.permute.xlu1 %5250  ;;  %v10976_v60 = vpop.permute.xlu0 %5303 }
 0xba3   : > { %5329 = vrot.lane.b32.xlu1 %v5322_v5, %s7400_s22 }
 0xba5   : > { %5511 = vrot.lane.b32.xlu0 %v5504_v40, %s11972_s18  ;;  %v10981_v20 = vpop.permute.xlu1 %5331  ;;  %v10985_v36 = vpop.permute.xlu0 %5359  ;;  %s949_s18 = sand.u32 1, %s12681_s26  }
 0xba6   : > { %s6463_s1 = sshll.u32 %s949_s18, 3  ;;  %s6355_s21 = scalar_lea.sflag [#allocation4], %s949_s18 }
 0xba7   : > { %5384 = vrot.lane.b32.xlu1 %v5377_v32, %s12602_s15 }
 0xba9   : > { %5610 = vrot.lane.b32.xlu0 %v5603_v9, %s12605_s2  ;;  %v10988_v15 = vpop.permute.xlu1 %5386 }
 0xbab   : > { %5461 = vrot.lane.b32.xlu1 %v5454_v29, %s11976_s10 }
 0xbad   : > { %5660 = vrot.lane.b32.xlu0 %v5653_v16, %s12056_s29  ;;  %s12675_s29 = sld [smem:[#allocation34_spill]] }
 0xbaf   : > { %5560 = vrot.lane.b32.xlu1 %v5553_v62, %s11982_s17  ;;  %s12655_s17 = sld [smem:[#allocation32_spill]] }
 0xbb1   : > { %5736 = vperm.xlu0 %7142, %v10729_v47  }
 0xbb3   : > { %5782 = vperm.xlu1 %7144, %v10729_v47  }
 0xbb5   : > { %7143 = vset.pattern.permute.xlu0 %v12533_v48  ;;  %v10993_v48 = vpop.permute.xlu1 %5463 }
 0xbb6   : > { %5758 = vperm.xlu0 %7143, %v10729_v47  }
 0xbb7   : > { %7146 = vset.pattern.permute.xlu1 %v12535_v43  ;;  %v10996_v43 = vpop.permute.xlu0 %5413 }
 0xbb8   : > { %5830 = vperm.xlu1 %7146, %v10729_v47  }
 0xbba   : > { %7145 = vset.pattern.permute.xlu0 %v12538_v3 }
 0xbbb   : > { %5806 = vperm.xlu0 %7145, %v10729_v47   ;;  %v11001_v3 = vpop.permute.xlu0 %5513 }
 0xbbc   : > { %7147 = vset.pattern.permute.xlu1 %v12539_v35  ;;  %v11004_v35 = vpop.permute.xlu1 %5675 }
 0xbbd   : > { %5854 = vperm.xlu1 %7147, %v10729_v47  }
 0xbbf   : > { %7148 = vset.pattern.permute.xlu0 %v12537_v33  ;;  %v11008_v33 = vpop.permute.xlu0 %5562 }
 0xbc0   : > { %5888 = vperm.xlu0 %7148, %v10729_v47   ;;  %v11011_v52 = vpop.permute.xlu1 %5612 }
 0xbc1   : > { %7149 = vset.pattern.permute.xlu1 %v12542_v39 }
 0xbc2   : > { %5912 = vperm.xlu1 %7149, %v10729_v47  }
 0xbc3   : > { %v11016_v39 = vpop.permute.xlu0 %5662 }
 0xbc4   : > { %7151 = vset.pattern.permute.xlu0 %v12586_v28  ;;  %v11018_v28 = vpop.permute.xlu1 %5712 }
 0xbc5   : > { %5958 = vperm.xlu0 %7151, %v10729_v47  }
 0xbc6   : > { %7150 = vset.pattern.permute.xlu1 %v12588_v54  ;;  %v5715_v54 = vmul.f32 0.0, %v11018_v28 }
 0xbc7   : > { %5934 = vperm.xlu1 %7150, %v10729_v47  }
 0xbc9   : > { %7154 = vset.pattern.permute.xlu0 %v12587_v53 }
 0xbca   : > { %6030 = vperm.xlu0 %7154, %v10729_v47  }
 0xbcb   : > { %7152 = vset.pattern.permute.xlu1 %v12590_v55 }
 0xbcc   : > { %5982 = vperm.xlu1 %7152, %v10729_v47  }
 0xbce   : > { %7157 = vset.pattern.permute.xlu0 %v12595_v10 }
 0xbcf   : > { %6110 = vperm.xlu0 %7157, %v10729_v47  }
 0xbd0   : > { %7153 = vset.pattern.permute.xlu1 %v12591_v17 }
 0xbd1   : > { %6006 = vperm.xlu1 %7153, %v10729_v47  }
 0xbd3   : > { %v11025_v53 = vpop.permute.xlu0 %5272  ;;  %5723 = vrot.lane.b32.xlu0 %v5715_v54, %s11976_s10 }
 0xbd4   : > { %7160 = vset.pattern.permute.xlu0 %v12541_v4 }
 0xbd5   : > { %7155 = vset.pattern.permute.xlu1 %v12589_v24  ;;  %v5020_v55 = vpop.permute.xlu1 %5019  ;;  %v7139_v24 = vunpack.i.l.bf16 %v10896_v34 }
 0xbd6   : > { %6064 = vperm.xlu1 %7155, %v10729_v47   ;;  %v5023_v40 = vsel %vm1285_vm12, %v10916_v31, %v5020_v55 }
 0xbd7   : > { %v4971_v10 = vpop.permute.xlu0 %4970  ;;  %5721 = vrot.lane.b32.xlu0 %v5715_v54, %s11976_s10  ;;  %v4919_v0 = vmul.f32 0.0, %v7139_v24 }
 0xbd9   : > { %v5118_v19 = vpop.permute.xlu1 %5117  ;;  %v4927_v5 = vmul.f32 %v10886_v59, %v4919_v0 }
 0xbda   : > { %7156 = vset.pattern.permute.xlu1 %v12593_v56  ;;  %v5121_v31 = vsel %vm12635_vm15, %v10938_v11, %v5118_v19 }
 0xbdb   : > { %6088 = vperm.xlu1 %7156, %v10729_v47   ;;  %v5069_v17 = vpop.permute.xlu0 %5068 }
 0xbdc   : > { %v5072_v18 = vsel %vm1721_vm10, %v10921_v37, %v5069_v17 }
 0xbdd   : > { %v11034_v30 = vpop.permute.xlu1 %5171 }
 0xbde   : > { %v5175_v54 = vsel %vm2763_vm4, %v10961_v1, %v11034_v30 }
 0xbdf   : > { %7158 = vset.pattern.permute.xlu1 %v12596_v13  ;;  %v5145_v49 = vpop.permute.xlu0 %5144  ;;  %v4974_v13 = vsel %vm1234_vm6, %v10902_v23, %v4971_v10  ;;  %v7140_v23 = vunpack.i.h.bf16 %v10896_v34 }
 0xbe0   : > { %6134 = vperm.xlu1 %7158, %v10729_v47   ;;  %v4979_v41 = vadd.f32 %v4974_v13, %v4927_v5  ;;  %v5148_v37 = vsel %vm12636_vm11, %v10948_v46, %v5145_v49  ;;  %vm12646_vm11 = vcmask 908288  }
 0xbe1   : > { %v11038_v4 = vpop.permute.xlu1 %5225  ;;  %v4915_v9 = vsel %vm12634_vm7, %v7139_v24, %v7140_v23  ;;  %v4921_v61 = vmul.f32 %v7140_v23, %v10791_v57 }
 0xbe2   : > { %v5028_v45 = vadd.f32 %v5023_v40, %v4979_v41  ;;  %v4920_v34 = vmul.f32 %v4915_v9, %v10741_v42 }
 0xbe3   : > { %v11041_v12 = vpop.permute.xlu0 %5198  ;;  %v4929_v16 = vmul.f32 %v10886_v59, %v4921_v61 }
 0xbe4   : > { %7159 = vset.pattern.permute.xlu1 %v12543_v14  ;;  %v5077_v26 = vadd.f32 %v5072_v18, %v5028_v45  ;;  %v4928_v62 = vmul.f32 %v10886_v59, %v4920_v34  ;;  %v5202_v42 = vsel %vm4386_vm1, %v10965_v27, %v11041_v12  ;;  %v5229_v27 = vsel %vm4414_vm14, %v10970_v44, %v11038_v4 }
 0xbe5   : > { %5702 = vperm.xlu1 %7159, %v10729_v47   ;;  %v11045_v56 = vpop.permute.xlu1 %5274 }
 0xbe6   : > { %v5126_v63 = vadd.f32 %v5121_v31, %v5077_v26 }
 0xbe7   : > { %v11047_v6 = vpop.permute.xlu0 %5252 }
 0xbe8   : > { %v5153_v29 = vadd.f32 %v5148_v37, %v5126_v63 }
 0xbe9   : > { %v11052_v58 = vpop.permute.xlu1 %5355 }
 0xbea   : > { %v5180_v57 = vadd.f32 %v5175_v54, %v5153_v29 }
 0xbeb   : > { %v11054_v25 = vpop.permute.xlu0 %5299 }
 0xbec   : > { %v5207_v23 = vadd.f32 %v5202_v42, %v5180_v57 }
 0xbed   : > { %v11056_v8 = vpop.permute.xlu1 %5409 }
 0xbee   : > { %v5234_v61 = vadd.f32 %v5229_v27, %v5207_v23 }
 0xbef   : > { %v11060_v38 = vpop.permute.xlu0 %5327 }
 0xbf1   : > { %v11064_v32 = vpop.permute.xlu1 %5509 }
 0xbf3   : > { %v11067_v21 = vpop.permute.xlu0 %5382 }
 0xbf5   : > { %v11069_v50 = vpop.permute.xlu1 %5608 }
 0xbf7   : > { %v11074_v22 = vpop.permute.xlu0 %5459 }
 0xbf9   : > { %v11079_v7 = vpop.permute.xlu1 %5658 }
 0xbfb   : > { %v11082_v51 = vpop.permute.xlu0 %5558 }
 0xbfd   : > { %v4973_v11 = vpop.permute.xlu1 %4972 }
 0xbfe   : > { %v4975_v46 = vsel %vm1234_vm6, %v4971_v10, %v4973_v11  ;;  %v4981_v24 = vadd.f32 %v4973_v11, %v4929_v16  ;;  %vm12637_vm6 = vmmov %vm12635_vm15 }
 0xbff   : > { %v4980_v0 = vadd.f32 %v4975_v46, %v4928_v62  ;;  %v5022_v13 = vpop.permute.xlu0 %5021 }
 0xc00   : > { %v5024_v5 = vsel %vm1285_vm12, %v5020_v55, %v5022_v13  ;;  %v5030_v41 = vadd.f32 %v5022_v13, %v4981_v24  ;;  %vm5305_vm12 = vcmask 957440  }
 0xc01   : > { %v5029_v40 = vadd.f32 %v5024_v5, %v4980_v0  ;;  %v5071_v59 = vpop.permute.xlu1 %5070 }
 0xc02   : > { %v5073_v45 = vsel %vm1721_vm10, %v5069_v17, %v5071_v59  ;;  %v5079_v18 = vadd.f32 %v5071_v59, %v5030_v41  ;;  %v5256_v17 = vsel %vm4464_vm0, %v10973_v2, %v11047_v6  ;;  %vm5333_vm10 = vcmask 949248  }
 0xc03   : > { %v5078_v1 = vadd.f32 %v5073_v45, %v5029_v40  ;;  %v5120_v26 = vpop.permute.xlu0 %5119  ;;  %v5261_v46 = vadd.f32 %v5256_v17, %v5234_v61 }
 0xc04   : > { %v5122_v10 = vsel %vm12637_vm6, %v5118_v19, %v5120_v26  ;;  %v5128_v9 = vadd.f32 %v5120_v26, %v5079_v18  ;;  %vm12647_vm6 = vcmask 900096  }
 0xc05   : > { %v5127_v31 = vadd.f32 %v5122_v10, %v5078_v1  ;;  %v5147_v63 = vpop.permute.xlu1 %5146  ;;  %v5280_v2 = vadd.f32 %v11025_v53, %v5261_v46 }
 0xc06   : > { %v5149_v55 = vsel %vm12638_vm2, %v5145_v49, %v5147_v63  ;;  %v5155_v37 = vadd.f32 %v5147_v63, %v5128_v9  ;;  %vm12648_vm2 = vmmov %vm12646_vm11 }
 0xc07   : > { %v5154_v34 = vadd.f32 %v5149_v55, %v5127_v31  ;;  %v5174_v29 = vpop.permute.xlu0 %5173 }
 0xc08   : > { %v5176_v19 = vsel %vm2763_vm4, %v11034_v30, %v5174_v29  ;;  %v5182_v16 = vadd.f32 %v5174_v29, %v5155_v37  ;;  %vm12639_vm4 = vmmov %vm12634_vm7  ;;  %vm12644_vm7 = vcmask 924672  }
 0xc09   : > { %v5181_v62 = vadd.f32 %v5176_v19, %v5154_v34  ;;  %v5201_v11 = vpop.permute.xlu1 %5200  ;;  %v5276_v26 = vsel %vm12639_vm4, %v11025_v53, %v11045_v56  ;;  %vm12645_vm15 = vmmov %vm12644_vm7 }
 0xc0a   : > { %v5203_v54 = vsel %vm4386_vm1, %v11041_v12, %v5201_v11  ;;  %v5209_v44 = vadd.f32 %v5201_v11, %v5182_v16  ;;  %v5311_v12 = vadd.f32 %v11054_v25, %v5280_v2  ;;  %vm12640_vm1 = vcmask 941056  }
 0xc0b   : > { %v5228_v49 = vpop.permute.xlu0 %5227  ;;  %v5208_v24 = vadd.f32 %v5203_v54, %v5181_v62 }
 0xc0c   : > { %v5236_v57 = vadd.f32 %v5228_v49, %v5209_v44  ;;  %v5230_v13 = vsel %vm4414_vm14, %v11038_v4, %v5228_v49  ;;  %v5339_v1 = vadd.f32 %v11060_v38, %v5311_v12  ;;  %vm12641_vm14 = vcmask 932864  }
 0xc0d   : > { %v5255_v0 = vpop.permute.xlu1 %5254  ;;  %v5235_v5 = vadd.f32 %v5230_v13, %v5208_v24  ;;  %vm12643_vm3 = vmmov %vm12641_vm14 }
 0xc0e   : > { %v5263_v30 = vadd.f32 %v5255_v0, %v5236_v57  ;;  %v5257_v40 = vsel %vm4464_vm0, %v11047_v6, %v5255_v0  ;;  %v5366_v63 = vadd.f32 %v11052_v58, %v5339_v1  ;;  %vm12642_vm0 = vmmov %vm12640_vm1 }
 0xc0f   : > { %v5358_v42 = vpop.permute.xlu0 %5357  ;;  %v5262_v59 = vadd.f32 %v5257_v40, %v5235_v5 }
 0xc10   : > { %v5282_v45 = vadd.f32 %v11045_v56, %v5263_v30  ;;  %v5362_v34 = vsel %vm12640_vm1, %v5358_v42, %v10985_v36  ;;  %v5393_v29 = vadd.f32 %v11067_v21, %v5366_v63  ;;  %vm12653_vm1 = vcmask 883712  }
 0xc11   : > { %v5302_v41 = vpop.permute.xlu1 %5301  ;;  %v5281_v6 = vadd.f32 %v5276_v26, %v5262_v59 }
 0xc12   : > { %v5307_v23 = vsel %vm5305_vm12, %v5302_v41, %v10976_v60  ;;  %v5306_v31 = vsel %vm5305_vm12, %v11054_v25, %v5302_v41  ;;  %v5361_v25 = vsel %vm12642_vm0, %v11052_v58, %v5358_v42  ;;  %v5420_v19 = vadd.f32 %v11056_v8, %v5393_v29  ;;  %vm12649_vm12 = vmmov %vm12647_vm6 }
 0xc13   : > { %v5412_v4 = vpop.permute.xlu0 %5411  ;;  %v5313_v9 = vadd.f32 %v5307_v23, %v5282_v45  ;;  %v5312_v60 = vadd.f32 %v5306_v31, %v5281_v6  ;;  %vm12657_vm0 = vcmask 523264  }
 0xc14   : > { %v5416_v36 = vsel %vm12644_vm7, %v5412_v4, %v10996_v43  ;;  %v5470_v54 = vadd.f32 %v11074_v22, %v5420_v19  ;;  %v5415_v49 = vsel %vm12645_vm15, %v11056_v8, %v5412_v4  ;;  %vm12659_vm7 = vcmask 130048  }
 0xc15   : > { %v5330_v18 = vpop.permute.xlu1 %5329 }
 0xc16   : > { %v5335_v10 = vsel %vm5333_vm10, %v5330_v18, %v10981_v20  ;;  %v5334_v55 = vsel %vm5333_vm10, %v11060_v38, %v5330_v18  ;;  %v5520_v57 = vadd.f32 %v11064_v32, %v5470_v54  ;;  %vm12650_vm10 = vcmask 891904  }
 0xc17   : > { %v5341_v27 = vadd.f32 %v5335_v10, %v5313_v9  ;;  %v5512_v37 = vpop.permute.xlu0 %5511  ;;  %v5340_v53 = vadd.f32 %v5334_v55, %v5312_v60  ;;  %vm12652_vm4 = vmmov %vm12650_vm10 }
 0xc18   : > { %v5516_v42 = vsel %vm12646_vm11, %v5512_v37, %v11001_v3  ;;  %v5569_v5 = vadd.f32 %v11082_v51, %v5520_v57  ;;  %v5515_v3 = vsel %vm12648_vm2, %v11064_v32, %v5512_v37  ;;  %vm12661_vm11 = vmmov %vm12657_vm0 }
 0xc19   : > { %v5385_v61 = vpop.permute.xlu1 %5384  ;;  %v5368_v56 = vadd.f32 %v5362_v34, %v5341_v27  ;;  %v5367_v38 = vadd.f32 %v5361_v25, %v5340_v53 }
 0xc1a   : > { %v5389_v20 = vsel %vm12641_vm14, %v5385_v61, %v10988_v15  ;;  %v5388_v62 = vsel %vm12643_vm3, %v11067_v21, %v5385_v61  ;;  %v5619_v59 = vadd.f32 %v11069_v50, %v5569_v5  ;;  %vm12654_vm14 = vmmov %vm12653_vm1  ;;  %vm12658_vm3 = vcmask 785408  }
 0xc1b   : > { %v5611_v17 = vpop.permute.xlu0 %5610  ;;  %v5395_v16 = vadd.f32 %v5389_v20, %v5368_v56  ;;  %v5394_v44 = vadd.f32 %v5388_v62, %v5367_v38 }
 0xc1c   : > { %v5669_v32 = vadd.f32 %v11079_v7, %v5619_v59  ;;  %v5614_v31 = vsel %vm12652_vm4, %v11069_v50, %v5611_v17 }
 0xc1d   : > { %v5462_v11 = vpop.permute.xlu1 %5461  ;;  %v5422_v46 = vadd.f32 %v5416_v36, %v5395_v16  ;;  %v5421_v0 = vadd.f32 %v5415_v49, %v5394_v44 }
 0xc1e   : > { %v5466_v15 = vsel %vm1321_vm13, %v5462_v11, %v10993_v48  ;;  %v5465_v13 = vsel %vm1321_vm13, %v11074_v22, %v5462_v11  ;;  %v5678_v37 = vadd.f32 %v11004_v35, %v5669_v32 }
 0xc1f   : > { %v5661_v58 = vpop.permute.xlu0 %5660  ;;  %v5472_v21 = vadd.f32 %v5466_v15, %v5422_v46  ;;  %v5471_v8 = vadd.f32 %v5465_v13, %v5421_v0 }
 0xc20   : > { %v5664_v34 = vsel %vm12654_vm14, %v11079_v7, %v5661_v58 }
 0xc21   : > { %v5561_v24 = vpop.permute.xlu1 %5560  ;;  %v5522_v30 = vadd.f32 %v5516_v42, %v5472_v21  ;;  %v5521_v45 = vadd.f32 %v5515_v3, %v5471_v8 }
 0xc22   : > { %v5565_v22 = vsel %vm12647_vm6, %v5561_v24, %v11008_v33  ;;  %v5564_v4 = vsel %vm12649_vm12, %v11082_v51, %v5561_v24  ;;  %v5615_v33 = vsel %vm12650_vm10, %v5611_v17, %v11011_v52  ;;  %v12651_v51 = vmov 16   ;;  %vm12662_vm6 = vmmov %vm12659_vm7 }
 0xc23   : > { %v5571_v18 = vadd.f32 %v5565_v22, %v5522_v30  ;;  %v5570_v26 = vadd.f32 %v5564_v4, %v5521_v45  ;;  %v5665_v52 = vsel %vm12653_vm1, %v5661_v58, %v11016_v39  ;;  %vm12664_vm12 = vmmov %vm12657_vm0 }
 0xc24   : > { %vm12665_vm10 = vmmov %vm12658_vm3 }
 0xc25   : > { %v5621_v10 = vadd.f32 %v5615_v33, %v5571_v18  ;;  %v5620_v63 = vadd.f32 %v5614_v31, %v5570_v26  ;;  %vm12667_vm1 = vmmov %vm12657_vm0 }
 0xc26   : > { %vm12668_vm14 = vmmov %vm12662_vm6 }
 0xc27   : > { %v5671_v27 = vadd.f32 %v5665_v52, %v5621_v10  ;;  %v5670_v50 = vadd.f32 %v5664_v34, %v5620_v63 }
 0xc29   : > { %v5680_v39 = vadd.f32 %v11004_v35, %v5671_v27  ;;  %v5679_v20 = vadd.f32 %v11004_v35, %v5670_v50 }
 0xc2c   : > { %v11143_v43 = vpop.permute.xlu0 %5736 }
 0xc2d   : > { %v5739_v2 = vmul.f32 0.0, %v11143_v43 }
 0xc2e   : > { %v11148_v48 = vpop.permute.xlu1 %5782 }
 0xc2f   : > { %5743 = vrot.lane.b32.xlu1 %v5739_v2, %s11980_s5  ;;  %v5785_v41 = vmul.f32 0.0, %v11148_v48 }
 0xc31   : > { %v11155_v40 = vpop.permute.xlu0 %5758  ;;  %5791 = vrot.lane.b32.xlu0 %v5785_v41, %s12408_s11 }
 0xc32   : > { %v5761_v12 = vmul.f32 0.0, %v11155_v40 }
 0xc33   : > { %v11162_v23 = vpop.permute.xlu1 %5830 }
 0xc34   : > { %5767 = vrot.lane.b32.xlu1 %v5761_v12, %s12094_s28  ;;  %v5833_v25 = vmul.f32 0.0, %v11162_v23 }
 0xc35   : > { %5878 = vperm.xlu0 %7160, %v10729_v47  }
 0xc36   : > { %v11170_v1 = vpop.permute.xlu0 %5806 }
 0xc37   : > { %v5809_v6 = vmul.f32 0.0, %v11170_v1 }
 0xc38   : > { %v11174_v9 = vpop.permute.xlu1 %5854 }
 0xc39   : > { %5815 = vrot.lane.b32.xlu1 %v5809_v6, %s12328_s23  ;;  %7161 = vset.pattern.permute.xlu0 %v12651_v51  ;;  %v5857_v17 = vmul.f32 0.0, %v11174_v9 }
 0xc3b   : > { %v11182_v55 = vpop.permute.xlu0 %5888 }
 0xc3c   : > { %v5891_v60 = vmul.f32 0.0, %v11182_v55 }
 0xc3d   : > { %5684 = vrot.lane.b32.xlu1 %v5678_v37, %s7397_s9  ;;  %v11187_v61 = vpop.permute.xlu1 %5912 }
 0xc3e   : > { %5897 = vrot.lane.b32.xlu0 %v5891_v60, %s11976_s10 }
 0xc40   : > { %v11193_v29 = vpop.permute.xlu0 %5958 }
 0xc41   : > { %v5963_v53 = vmul.f32 0.0, %v11193_v29  ;;  %5688 = vrot.lane.b32.xlu1 %v5680_v39, %s7397_s9 }
 0xc42   : > { %v11197_v56 = vpop.permute.xlu1 %5934 }
 0xc43   : > { %5971 = vrot.lane.b32.xlu0 %v5963_v53, %s12408_s11  ;;  %v5939_v38 = vmul.f32 0.0, %v11197_v56 }
 0xc45   : > { %5686 = vrot.lane.b32.xlu1 %v5679_v20, %s7397_s9  ;;  %v11219_v62 = vpop.permute.xlu0 %6030 }
 0xc47   : > { %6054 = vperm.xlu0 %7161, %v10729_v47   ;;  %v11204_v7 = vpop.permute.xlu1 %5982 }
 0xc48   : > { %v5987_v47 = vmul.f32 0.0, %v11204_v7 }
 0xc49   : > { %5839 = vrot.lane.b32.xlu1 %v5833_v25, %s12342_s6 }
 0xc4a   : > { %v11226_v54 = vpop.permute.xlu0 %6110 }
 0xc4b   : > { %7162 = vset.pattern.permute.xlu0 %v12543_v14  ;;  %v6035_v14 = vmul.f32 0.0, %v11219_v62  ;;  %v6114_v46 = vmul.f32 0.0, %v11226_v54 }
 0xc4c   : > { %v11209_v19 = vpop.permute.xlu1 %6006 }
 0xc4d   : > { %5863 = vrot.lane.b32.xlu1 %v5857_v17, %s7394_s3  ;;  %v6011_v35 = vmul.f32 0.0, %v11209_v19 }
 0xc4e   : > { %v11237_v58 = vpop.permute.xlu0 %5723 }
 0xc4f   : > { %6019 = vrot.lane.b32.xlu0 %v6011_v35, %s12342_s6 }
 0xc51   : > { %v11216_v16 = vpop.permute.xlu1 %6064  ;;  %5947 = vrot.lane.b32.xlu1 %v5939_v38, %s12094_s28 }
 0xc52   : > { %v6069_v44 = vmul.f32 0.0, %v11216_v16  ;;  %v5722_v24 = vpop.permute.xlu0 %5721 }
 0xc53   : > { %v5727_v21 = vsel %vm1321_vm13, %v5722_v24, %v11237_v58 }
 0xc55   : > { %5995 = vrot.lane.b32.xlu1 %v5987_v47, %s12328_s23 }
 0xc56   : > { %v11223_v11 = vpop.permute.xlu1 %6088 }
 0xc57   : > { %v6092_v36 = vmul.f32 0.0, %v11223_v11 }
 0xc59   : > { %6043 = vrot.lane.b32.xlu1 %v6035_v14, %s7394_s3  ;;  %6097 = vrot.lane.b32.xlu0 %v6092_v36, %s11980_s5 }
 0xc5b   : > { %v11235_v15 = vpop.permute.xlu1 %6134 }
 0xc5d   : > { %6077 = vrot.lane.b32.xlu1 %v6069_v44, %s11976_s10  ;;  %6121 = vrot.lane.b32.xlu0 %v6114_v46, %s12094_s28 }
 0xc60   : > { %v11239_v49 = vpop.permute.xlu1 %5702 }
 0xc61   : > { %6123 = vrot.lane.b32.xlu1 %v6114_v46, %s12094_s28  ;;  %v11242_v57 = vmul.f32 0.0, %v11239_v49 }
 0xc63   : > { %v5732_v13 = vadd.f32 %v5727_v21, %v11242_v57  ;;  %v6157_v21 = vld [vmem:[%s12655_s17] sm:$0xff] }
 0xca1   : > { %v11244_v0 = vpop.permute.xlu1 %5743 }
 0xca2   : > { %v5751_v2 = vadd.f32 %v11244_v0, %v5732_v13  ;;  %v6138_v13 = vmul.f32 0.0, %v11235_v15 }
 0xca3   : > { %v11252_v5 = vpop.permute.xlu0 %5791 }
 0xca6   : > { %v11250_v42 = vpop.permute.xlu1 %5767 }
 0xca7   : > { %v5778_v8 = vadd.f32 %v11250_v42, %v5751_v2 }
 0xca9   : > { %v5802_v30 = vadd.f32 %v11252_v5, %v5778_v8 }
 0xcab   : > { %v11256_v41 = vpop.permute.xlu1 %5815 }
 0xcac   : > { %v5826_v10 = vadd.f32 %v11256_v41, %v5802_v30 }
 0xcaf   : > { %v5685_v22 = vpop.permute.xlu1 %5684 }
 0xcb0   : > { %v11258_v3 = vpop.permute.xlu0 %5878 }
 0xcb3   : > { %v5689_v12 = vpop.permute.xlu1 %5688 }
 0xcb4   : > { %v11260_v59 = vpop.permute.xlu0 %5897 }
 0xcb7   : > { %v5687_v45 = vpop.permute.xlu1 %5686 }
 0xcb8   : > { %v11263_v18 = vsel %vm5640_vm5, %v5685_v22, %v5687_v45  ;;  %v11270_v32 = vsel %vm5640_vm5, %v5687_v45, %v5689_v12  ;;  %v11277_v6 = vpop.permute.xlu0 %5971  ;;  %vm12656_vm5 = vcmask 654336  }
 0xcb9   : > { %v5717_v4 = vmul.f32 %v11018_v28, %v11263_v18  ;;  %v5740_v33 = vmul.f32 %v11143_v43, %v11263_v18  ;;  %v5763_v51 = vmul.f32 %v11155_v40, %v11270_v32  ;;  %v5762_v28 = vmul.f32 %v11155_v40, %v11263_v18  ;;  %vm12660_vm15 = vmmov %vm12656_vm5 }
 0xcba   : > { %v5881_v43 = vmul.f32 0.0, %v11258_v3  ;;  %v5786_v27 = vmul.f32 %v11148_v48, %v11263_v18  ;;  %v5787_v37 = vmul.f32 %v11148_v48, %v11270_v32  ;;  %v5811_v39 = vmul.f32 %v11170_v1, %v11270_v32  ;;  %vm12663_vm2 = vmmov %vm12656_vm5 }
 0xcbb   : > { %v11272_v26 = vpop.permute.xlu1 %5839  ;;  %5725 = vrot.lane.b32.xlu1 %v5717_v4, %s11976_s10  ;;  %5745 = vrot.lane.b32.xlu0 %v5740_v33, %s11980_s5  ;;  %v5810_v48 = vmul.f32 %v11170_v1, %v11263_v18  ;;  %v5834_v53 = vmul.f32 %v11162_v23, %v11263_v18  ;;  %v5835_v20 = vmul.f32 %v11162_v23, %v11270_v32  ;;  %vm12666_vm4 = vmmov %vm12663_vm2 }
 0xcbc   : > { %v5850_v31 = vadd.f32 %v11272_v26, %v5826_v10  ;;  %v5859_v25 = vmul.f32 %v11174_v9, %v11270_v32  ;;  %v5858_v1 = vmul.f32 %v11174_v9, %v11263_v18  ;;  %v5893_v17 = vmul.f32 %v11182_v55, %v11270_v32 }
 0xcbd   : > { %v5892_v23 = vmul.f32 %v11182_v55, %v11263_v18  ;;  %v5915_v38 = vmul.f32 %v11187_v61, %v11263_v18  ;;  %v5916_v9 = vmul.f32 %v11187_v61, %v11270_v32  ;;  %v5937_v35 = vmul.f32 %v11197_v56, %v11263_v18 }
 0xcbe   : > { %v5938_v55 = vmul.f32 %v11197_v56, %v11270_v32  ;;  %v5962_v47 = vmul.f32 %v11193_v29, %v11270_v32  ;;  %v5961_v61 = vmul.f32 %v11193_v29, %v11263_v18  ;;  %v5985_v14 = vmul.f32 %v11204_v7, %v11263_v18 }
 0xcbf   : > { %v11285_v52 = vpop.permute.xlu1 %5863  ;;  %5771 = vrot.lane.b32.xlu1 %v5763_v51, %s12094_s28  ;;  %5769 = vrot.lane.b32.xlu0 %v5762_v28, %s12094_s28  ;;  %v5986_v56 = vmul.f32 %v11204_v7, %v11270_v32  ;;  %v6009_v36 = vmul.f32 %v11209_v19, %v11263_v18  ;;  %v6034_v29 = vmul.f32 %v11219_v62, %v11270_v32 }
 0xcc0   : > { %v5874_v63 = vadd.f32 %v11285_v52, %v5850_v31  ;;  %v6010_v44 = vmul.f32 %v11209_v19, %v11270_v32  ;;  %v6068_v7 = vmul.f32 %v11216_v16, %v11270_v32  ;;  %v6033_v46 = vmul.f32 %v11219_v62, %v11263_v18 }
 0xcc1   : > { %v6067_v24 = vmul.f32 %v11216_v16, %v11263_v18  ;;  %v6091_v19 = vmul.f32 %v11223_v11, %v11270_v32  ;;  %v6113_v2 = vmul.f32 %v11226_v54, %v11270_v32  ;;  %v6137_v16 = vmul.f32 %v11235_v15, %v11270_v32 }
 0xcc2   : > { %v11294_v60 = vadd.f32 %v5881_v43, %v5874_v63  ;;  %v11296_v40 = vpop.permute.xlu0 %6054  ;;  %v5707_v33 = vmul.f32 %v11239_v49, %v11263_v18 }
 0xcc3   : > { %v11300_v34 = vmul.f32 %v11296_v40, %v11263_v18  ;;  %v11304_v50 = vmul.f32 %v11296_v40, %v11270_v32  ;;  %5793 = vrot.lane.b32.xlu1 %v5786_v27, %s12408_s11  ;;  %5795 = vrot.lane.b32.xlu0 %v5787_v37, %s12408_s11  ;;  %v5948_v62 = vpop.permute.xlu1 %5947 }
 0xcc6   : > { %v11391_v30 = vpop.permute.xlu0 %6019 }
 0xcc7   : > { %5819 = vrot.lane.b32.xlu1 %v5811_v39, %s12328_s23  ;;  %5817 = vrot.lane.b32.xlu0 %v5810_v48, %s12328_s23  ;;  %v11387_v11 = vpop.permute.xlu1 %5995 }
 0xccb   : > { %5841 = vrot.lane.b32.xlu1 %v5834_v53, %s12342_s6  ;;  %5843 = vrot.lane.b32.xlu0 %v5835_v20, %s12342_s6  ;;  %v11389_v8 = vpop.permute.xlu1 %6043  ;;  %v11395_v54 = vpop.permute.xlu0 %6097 }
 0xccf   : > { %5867 = vrot.lane.b32.xlu1 %v5859_v25, %s7394_s3  ;;  %5865 = vrot.lane.b32.xlu0 %v5858_v1, %s7394_s3  ;;  %v11393_v22 = vpop.permute.xlu1 %6077  ;;  %v11399_v45 = vpop.permute.xlu0 %6121 }
 0xcd3   : > { %5901 = vrot.lane.b32.xlu1 %v5893_v17, %s11976_s10  ;;  %5899 = vrot.lane.b32.xlu0 %v5892_v23, %s11976_s10  ;;  %v11397_v12 = vpop.permute.xlu1 %6123 }
 0xcd7   : > { %5919 = vrot.lane.b32.xlu1 %v5915_v38, %s11980_s5  ;;  %5921 = vrot.lane.b32.xlu0 %v5916_v9, %s11980_s5 }
 0xcdb   : > { %5943 = vrot.lane.b32.xlu1 %v5937_v35, %s12094_s28  ;;  %5945 = vrot.lane.b32.xlu0 %v5938_v55, %s12094_s28 }
 0xcdf   : > { %5969 = vrot.lane.b32.xlu1 %v5962_v47, %s12408_s11  ;;  %5967 = vrot.lane.b32.xlu0 %v5961_v61, %s12408_s11 }
 0xce3   : > { %5991 = vrot.lane.b32.xlu1 %v5985_v14, %s12328_s23  ;;  %5993 = vrot.lane.b32.xlu0 %v5986_v56, %s12328_s23  ;;  %s12679_s23 = sld [smem:[#allocation35_spill]] }
 0xce7   : > { %6015 = vrot.lane.b32.xlu1 %v6009_v36, %s12342_s6  ;;  %6041 = vrot.lane.b32.xlu0 %v6034_v29, %s7394_s3  ;;  %v5883_v36 = vmul.f32 %v11258_v3, %v11270_v32 }
 0xceb   : > { %6017 = vrot.lane.b32.xlu1 %v6010_v44, %s12342_s6  ;;  %6075 = vrot.lane.b32.xlu0 %v6068_v7, %s11976_s10 }
 0xcef   : > { %6039 = vrot.lane.b32.xlu1 %v6033_v46, %s7394_s3  ;;  %6073 = vrot.lane.b32.xlu0 %v6067_v24, %s11976_s10  ;;  %s12685_s10 = sld [smem:[#allocation37_spill]]  ;;  %s7177_s3 = sshll.u32 %s7402_s16, 4  ;;  %s7178_s3 = int_to_ptr.vmem [resolvable:$false] %s7177_s3 }
 0xcf0   : > { %s7179_s9 = scalar_lea.vmem %s7178_s3, 256 }
 0xcf3   : > { %6095 = vrot.lane.b32.xlu1 %v6091_v19, %s11980_s5  ;;  %6160 = vperm.xlu0 %7162, %v6157_v21   ;;  %s12673_s5 = sld [smem:[#allocation8_spill]] }
 0xcf7   : > { %6119 = vrot.lane.b32.xlu1 %v6113_v2, %s12094_s28  ;;  %6147 = vrot.lane.b32.xlu0 %v6138_v13, %s12408_s11  ;;  %s12682_s28 = sld [smem:[#allocation42_spill]] }
 0xcfb   : > { %6143 = vrot.lane.b32.xlu1 %v6137_v16, %s12408_s11 }
 0xcff   : > { %6145 = vrot.lane.b32.xlu1 %v6138_v13, %s12408_s11  ;;  %s951_s11 = scalar_lea.vmem [#allocation3], %s6463_s1 }
 0xd00   : > { %s6369_s30 = sshll.u32 %s951_s11, 4  ;;  %s6370_s30 = int_to_ptr.vmem [resolvable:$true] %s6369_s30 }
 0xd01   : > { %s7173_s8 = scalar_lea.vmem %s6370_s30, 128  ;;  %p7180_p0 = scmp.lt.s32.totalorder %s6370_s30, %s7178_s3 }
 0xd02   : > { %p7174_p11 = scmp.ne.s32.totalorder %s6370_s30, %s7173_s8  ;;  %p7181_p1 = scmp.lt.s32.totalorder %s7179_s9, %s7173_s8 }
 0xd04   : > { %p7175_p12 = pnand %p7174_p11, %p7606_p5  ;;  %p7182_p2 = por %p7181_p1, %p7180_p0 }
 0xd06   : > { %p7176_p13 = pneg %p7175_p12 }
 0xd08   : > { %p7183_p3 = pnand %p7182_p2, %p7176_p13 }
 0xd2d   : > { %v5726_v15 = vpop.permute.xlu1 %5725  ;;  %v5746_v4 = vpop.permute.xlu0 %5745 }
 0xd2e   : > { %v5734_v28 = vadd.f32 %v5726_v15, %v5707_v33  ;;  %v5728_v20 = vsel %vm1321_vm13, %v11237_v58, %v5726_v15  ;;  %v5747_v61 = vsel %vm12658_vm3, %v11244_v0, %v5746_v4 }
 0xd2f   : > { %v5733_v38 = vadd.f32 %v5728_v20, %v11242_v57 }
 0xd30   : > { %v5753_v63 = vadd.f32 %v5746_v4, %v5734_v28 }
 0xd31   : > { %v5772_v10 = vpop.permute.xlu1 %5771  ;;  %v5770_v51 = vpop.permute.xlu0 %5769  ;;  %v5752_v56 = vadd.f32 %v5747_v61, %v5733_v38 }
 0xd32   : > { %v5774_v27 = vsel %vm12656_vm5, %v5770_v51, %v5772_v10  ;;  %v5773_v29 = vsel %vm12660_vm15, %v11250_v42, %v5770_v51  ;;  %vm12670_vm5 = vmmov %vm12658_vm3  ;;  %vm12680_vm15 = vcmask 64512  }
 0xd33   : > { %v5780_v53 = vadd.f32 %v5774_v27, %v5753_v63  ;;  %v5779_v0 = vadd.f32 %v5773_v29, %v5752_v56  ;;  %v6059_v29 = vmul.f32 0.0, %v11296_v40 }
 0xd35   : > { %v5794_v43 = vpop.permute.xlu1 %5793  ;;  %v5796_v31 = vpop.permute.xlu0 %5795 }
 0xd36   : > { %v5798_v48 = vsel %vm12657_vm0, %v5794_v43, %v5796_v31  ;;  %v5797_v46 = vsel %vm12661_vm11, %v11252_v5, %v5794_v43  ;;  %vm12671_vm0 = vmmov %vm12663_vm2 }
 0xd37   : > { %v5804_v1 = vadd.f32 %v5798_v48, %v5780_v53  ;;  %v5803_v13 = vadd.f32 %v5797_v46, %v5779_v0  ;;  %vm12672_vm3 = vmmov %vm12671_vm0 }
 0xd39   : > { %v5820_v37 = vpop.permute.xlu1 %5819  ;;  %v5818_v39 = vpop.permute.xlu0 %5817 }
 0xd3a   : > { %v5822_v25 = vsel %vm3619_vm8, %v5818_v39, %v5820_v37  ;;  %v5821_v19 = vsel %vm3619_vm8, %v11256_v41, %v5818_v39  ;;  %v5882_v41 = vmul.f32 %v11258_v3, %v11263_v18 }
 0xd3b   : > { %v5828_v9 = vadd.f32 %v5822_v25, %v5804_v1  ;;  %v5827_v16 = vadd.f32 %v5821_v19, %v5803_v13 }
 0xd3d   : > { %v5842_v49 = vpop.permute.xlu1 %5841  ;;  %v5844_v17 = vpop.permute.xlu0 %5843 }
 0xd3e   : > { %v5846_v23 = vsel %vm3829_vm9, %v5842_v49, %v5844_v17  ;;  %v5845_v42 = vsel %vm3829_vm9, %v11272_v26, %v5842_v49 }
 0xd3f   : > { %v5852_v35 = vadd.f32 %v5846_v23, %v5828_v9  ;;  %v5851_v4 = vadd.f32 %v5845_v42, %v5827_v16 }
 0xd41   : > { %v5868_v55 = vpop.permute.xlu1 %5867  ;;  %v5866_v47 = vpop.permute.xlu0 %5865 }
 0xd42   : > { %v5870_v14 = vsel %vm12659_vm7, %v5866_v47, %v5868_v55  ;;  %v5869_v5 = vsel %vm12662_vm6, %v11285_v52, %v5866_v47  ;;  %vm12674_vm7 = vmmov %vm12667_vm1 }
 0xd43   : > { %v5876_v58 = vadd.f32 %v5870_v14, %v5852_v35 }
 0xd45   : > { %v5902_v44 = vpop.permute.xlu1 %5901  ;;  %v5886_v7 = vadd.f32 %v5883_v36, %v5876_v58  ;;  %v5900_v57 = vpop.permute.xlu0 %5899 }
 0xd46   : > { %v5903_v24 = vsel %vm1321_vm13, %v11260_v59, %v5900_v57  ;;  %v5904_v52 = vsel %vm1321_vm13, %v5900_v57, %v5902_v44 }
 0xd47   : > { %v5908_v21 = vadd.f32 %v5903_v24, %v11294_v60  ;;  %v5910_v15 = vadd.f32 %v5902_v44, %v5886_v7  ;;  %v5875_v60 = vadd.f32 %v5869_v5, %v5851_v4 }
 0xd49   : > { %v5920_v32 = vpop.permute.xlu1 %5919  ;;  %v5922_v2 = vpop.permute.xlu0 %5921  ;;  %v5885_v63 = vadd.f32 %v5882_v41, %v5875_v60 }
 0xd4a   : > { %v5929_v51 = vadd.f32 %v5922_v2, %v5910_v15  ;;  %v5923_v48 = vsel %vm12665_vm10, %v5920_v32, %v5922_v2  ;;  %v5927_v53 = vadd.f32 %v5920_v32, %v5908_v21 }
 0xd4d   : > { %v5944_v33 = vpop.permute.xlu1 %5943  ;;  %v5946_v59 = vpop.permute.xlu0 %5945 }
 0xd4e   : > { %v5950_v10 = vsel %vm12663_vm2, %v5946_v59, %v5948_v62  ;;  %v5909_v62 = vadd.f32 %v5904_v52, %v5885_v63  ;;  %v5949_v20 = vsel %vm12666_vm4, %v5944_v33, %v5946_v59  ;;  %v5954_v18 = vadd.f32 %v5944_v33, %v5927_v53 }
 0xd4f   : > { %v5956_v28 = vadd.f32 %v5950_v10, %v5929_v51  ;;  %v6126_v51 = vsel %vm12672_vm3, %v11399_v45, %v11397_v12 }
 0xd50   : > { %v5928_v25 = vadd.f32 %v5923_v48, %v5909_v62  ;;  %v6167_v48 = vld [vmem:[%s12675_s29] sm:$0xf] }
 0xd51   : > { %v5970_v43 = vpop.permute.xlu1 %5969  ;;  %v5968_v31 = vpop.permute.xlu0 %5967  ;;  %v6263_v62 = vld [vmem:[%s12676_s12] sm:$0xf] }
 0xd52   : > { %v5974_v26 = vsel %vm12664_vm12, %v5970_v43, %v11277_v6  ;;  %v5973_v1 = vsel %vm12667_vm1, %v5968_v31, %v5970_v43  ;;  %v5955_v49 = vadd.f32 %v5949_v20, %v5928_v25  ;;  %v5978_v23 = vadd.f32 %v5968_v31, %v5954_v18  ;;  %v6166_v18 = vld [vmem:[%s12678_s27] sm:$0xf] }
 0xd53   : > { %v5980_v27 = vadd.f32 %v5974_v26, %v5956_v28 }
 0xd54   : > { %v5979_v9 = vadd.f32 %v5973_v1, %v5955_v49 }
 0xd55   : > { %v5992_v37 = vpop.permute.xlu1 %5991  ;;  %v5994_v39 = vpop.permute.xlu0 %5993 }
 0xd56   : > { %v5998_v6 = vsel %vm3619_vm8, %v5994_v39, %v11387_v11  ;;  %v5997_v38 = vsel %vm3619_vm8, %v5992_v37, %v5994_v39  ;;  %v6002_v47 = vadd.f32 %v5992_v37, %v5978_v23  ;;  %vm12669_vm8 = vmmov %vm12662_vm6  ;;  %vm12688_vm6 = vcmask 31744  }
 0xd57   : > { %v6004_v35 = vadd.f32 %v5998_v6, %v5980_v27  ;;  %v6003_v56 = vadd.f32 %v5997_v38, %v5979_v9  ;;  %v12683_v9 = vld [vmem:[#allocation88_spill] sm:$0xff] }
 0xd59   : > { %v6016_v3 = vpop.permute.xlu1 %6015  ;;  %v6042_v17 = vpop.permute.xlu0 %6041 }
 0xd5a   : > { %v6026_v36 = vadd.f32 %v6016_v3, %v6002_v47  ;;  %v6046_v11 = vsel %vm12668_vm14, %v6042_v17, %v11389_v8  ;;  %v12684_v47 = vld [vmem:[#allocation86_spill] sm:$0xff] }
 0xd5d   : > { %v6018_v55 = vpop.permute.xlu1 %6017  ;;  %v6076_v57 = vpop.permute.xlu0 %6075 }
 0xd5e   : > { %v6021_v61 = vsel %vm3829_vm9, %v6016_v3, %v6018_v55  ;;  %v6022_v14 = vsel %vm3829_vm9, %v6018_v55, %v11391_v30  ;;  %v6080_v40 = vsel %vm1321_vm13, %v6076_v57, %v11393_v22 }
 0xd5f   : > { %v6028_v58 = vadd.f32 %v6022_v14, %v6004_v35  ;;  %v6027_v44 = vadd.f32 %v6021_v61, %v6003_v56 }
 0xd61   : > { %v6052_v7 = vadd.f32 %v6046_v11, %v6028_v58  ;;  %v6040_v46 = vpop.permute.xlu1 %6039  ;;  %v6074_v42 = vpop.permute.xlu0 %6073  ;;  %v6262_v58 = vld [vmem:[%s12679_s23] sm:$0xf] }
 0xd62   : > { %v6045_v24 = vsel %vm12669_vm8, %v6040_v46, %v6042_v17  ;;  %v6050_v0 = vadd.f32 %v6040_v46, %v6026_v36  ;;  %v6079_v5 = vsel %vm1321_vm13, %v6074_v42, %v6076_v57  ;;  %vm12677_vm13 = vmmov %vm12667_vm1 }
 0xd63   : > { %v6062_v21 = vadd.f32 %v6059_v29, %v6052_v7  ;;  %v6051_v19 = vadd.f32 %v6045_v24, %v6027_v44 }
 0xd64   : > { %v6060_v13 = vadd.f32 %v11300_v34, %v6050_v0 }
 0xd65   : > { %v6061_v30 = vadd.f32 %v11304_v50, %v6051_v19  ;;  %v6096_v32 = vpop.permute.xlu1 %6095  ;;  %v6086_v2 = vadd.f32 %v11393_v22, %v6062_v21 }
 0xd66   : > { %v6084_v4 = vadd.f32 %v6079_v5, %v6060_v13  ;;  %v6099_v33 = vsel %vm12670_vm5, %v6096_v32, %v11395_v54 }
 0xd67   : > { %v6105_v8 = vadd.f32 %v11395_v54, %v6086_v2  ;;  %v6085_v16 = vadd.f32 %v6080_v40, %v6061_v30 }
 0xd68   : > { %v6103_v60 = vadd.f32 %v6096_v32, %v6084_v4 }
 0xd69   : > { %v6120_v15 = vpop.permute.xlu1 %6119  ;;  %v6104_v34 = vadd.f32 %v6099_v33, %v6085_v16  ;;  %v6132_v43 = vadd.f32 %v6126_v51, %v6105_v8 }
 0xd6a   : > { %v6125_v50 = vsel %vm12671_vm0, %v6120_v15, %v11399_v45  ;;  %v6130_v31 = vadd.f32 %v6120_v15, %v6103_v60  ;;  %v992_v45 = vld [vmem:[%s12673_s5] sm:$0xf] }
 0xd6b   : > { %v6131_v22 = vadd.f32 %v6125_v50, %v6104_v34 }
 0xd6d   : > { %v6144_v59 = vpop.permute.xlu1 %6143 }
 0xd6e   : > { %v6161_v10 = vpop.permute.xlu0 %6160  ;;  %v6154_v52 = vadd.f32 %v6144_v59, %v6130_v31 }
 0xd70   : > { %v6163_v12 = vadd.f32 %v6161_v10, %v6154_v52 }
 0xd71   : > { %v6146_v41 = vpop.permute.xlu1 %6145 }
 0xd72   : > { %v6149_v28 = vsel %vm12674_vm7, %v6144_v59, %v6146_v41  ;;  %v6148_v54 = vpop.permute.xlu0 %6147 }
 0xd73   : > { %v6155_v26 = vadd.f32 %v6149_v28, %v6131_v22  ;;  %v6150_v63 = vsel %vm12677_vm13, %v6146_v41, %v6148_v54 }
 0xd74   : > { %v6156_v27 = vadd.f32 %v6150_v63, %v6132_v43 }
 0xd75   : > { %v6164_v37 = vadd.f32 %v6161_v10, %v6155_v26 }
 0xd76   : > { %v6165_v39 = vadd.f32 %v6161_v10, %v6156_v27 }
 0xd77   : > { %6178 = vrot.lane.b32.xlu1 %v6164_v37, %s12342_s6 }
 0xd78   : > { %6180 = vrot.lane.b32.xlu0 %v6165_v39, %s12342_s6 }
 0xd7b   : > { %6176 = vrot.lane.b32.xlu1 %v6163_v12, %s12342_s6  ;;  %s6526_s6 = sshll.u32 %s12682_s28, 7 }
 0xd7c   : > { %995 = vperm.xlu0 %7162, %v992_v45   ;;  %s6367_s20 = scalar_lea.hbm %s12685_s10, %s6526_s6 }
 0xd7f   : > { %6170 = vperm.xlu1 %7159, %v6167_v48  }
 0xd80   : > { %6266 = vperm.xlu0 %7162, %v6263_v62  }
 0xde9   : > { %v6179_v53 = vpop.permute.xlu1 %6178 }
 0xdea   : > { %v6181_v20 = vpop.permute.xlu0 %6180 }
 0xdeb   : > { %v6183_v25 = vsel %vm3829_vm9, %v6179_v53, %v6181_v20 }
 0xdec   : > { %6219 = vmatprep.subr.mxu0 %v6183_v25 }
 0xded   : > { %v6177_v3 = vpop.permute.xlu1 %6176 }
 0xdee   : > { %v6182_v1 = vsel %vm3829_vm9, %v6177_v3, %v6179_v53  ;;  %vm12686_vm9 = vcmask 1043456  }
 0xdef   : > { %6220 = vmatpush1.msra.mxu0 %v6182_v1  ;;  %vm12687_vm11 = vmmov %vm12686_vm9 }
 0xdf0   : > { %6516 = vmatmul.mubr.msk.f32.vlgmr.msra.gmra.mxu0 %vm12680_vm15, %v6166_v18 }
 0xdf7   : > { %v996_v6 = vpop.permute.xlu0 %995 }
 0xdf8   : > { %v1078_v35 = vadd.f32 %v12683_v9, %v996_v6  ;;  %v1076_v61 = vadd.f32 %v12684_v47, %v996_v6 }
 0xdfa   : > { %v6171_v17 = vpop.permute.xlu1 %6170 }
 0xdfb   : > { %v6267_v11 = vpop.permute.xlu0 %6266 }
 0xeb0   : > { %v6255_v49 = vpop.f32.mrf.mxu0 }
 0xeb1   : > { %v6256_v23 = vadd.f32 %v6255_v49, %v6171_v17 }
 0xeb2   : > { %v6257_v38 = vpop.f32.mrf.mxu0 }
 0xeb3   : > { %v6258_v55 = vadd.f32 %v6257_v38, %v6171_v17  ;;  %v6260_v56 = vmul.f32 %v6256_v23, %v1076_v61 }
 0xeb5   : > { %v6261_v14 = vmul.f32 %v6258_v55, %v1078_v35 }
 0xeb7   : > { %6517 = vmatprep.subr.msk.mxu1 %vm12686_vm9, %v6261_v14 }
 0xeb8   : > { %6518 = vmatpush1.msk.msra.mxu1 %vm12687_vm11, %v6260_v56 }
 0xeb9   : > { %6519 = vmatmul.mubr.msk.f32.vlgmr.msra.gmra.mxu1 %vm12688_vm6, %v6262_v58 }
 0xf79   : > { %v6344_v36 = vpop.f32.mrf.mxu1 }
 0xf7a   : > { %v6345_v44 = vadd.f32 %v6344_v36, %v6267_v11 }
 0xf7b   : > { %v6346_v29 = vpop.f32.mrf.mxu1 }
 0xf7c   : > { %v6347_v7 = vadd.f32 %v6346_v29, %v6267_v11 }
 0xf7e   : > { %v6351_v57 = vcombine.low %v6345_v44, %v6347_v7 }
 0xf80   : > { %6353 = vst [vmem:[%s951_s11] sm:$0xff] %v6351_v57 }
 0xf81   : > { %7186 = shalt.err (!%p7183_p3)
}
 0xf82   : > { %s7187_s0 = scalar_lea.hbm %s6367_s20, 128  ;;  %s7191_s24 = scalar_lea.hbm %s12685_s10, 256 }
 0xf83   : > { %p7188_p4 = scmp.ne.s32.totalorder %s6367_s20, %s7187_s0  ;;  %p7192_p9 = scmp.lt.s32.totalorder %s6367_s20, %s12685_s10 }
 0xf84   : > { %p7193_p10 = scmp.lt.s32.totalorder %s7191_s24, %s7187_s0 }
 0xf85   : > { %p7189_p7 = pnand %p7188_p4, %p7606_p5 }
 0xf86   : > { %p7194_p11 = por %p7193_p10, %p7192_p9 }
 0xf87   : > { %p7190_p8 = pneg %p7189_p7 }
 0xf89   : > { %p7195_p12 = pnand %p7194_p11, %p7190_p8 }
 0xf8b   : > { %7198 = shalt.err (!%p7195_p12)
}
 0xf8c   : > { %6527 = dma.vmem_to_hbm [thread:$0]  (%p7606_p5), %s6370_s30, 128, %s6367_s20, %s6355_s21  }
 0xf8d PF: > { %s12690_s22 = sld [smem:[#allocation41_spill]] }
 0xf8e   : > { %s12691_s25 = sld [smem:[#allocation38_spill]] }
 0xf93   : > { %p6533_p13 = scmp.ge.s32.totalorder %s12690_s22, 2 }
 0xf94   : > { %s6381_s19 = sand.u32 1, %s12691_s25  }
 0xf95   : > { %p6530_p0 = pnand %p6533_p13, %p7610_p6  ;;  %s6382_s15 = scalar_lea.sflag [#allocation4], %s6381_s19 }
 0xf97   : > { %p6531_p1 = pneg %p6530_p0 }
 0xf99   : > { %7216 = dma.done.wait (%p6531_p1), %s6382_s15, 128  }
 0xf9a   : > { %7218 = vsyncadd (%p6531_p1), %s6382_s15, 4294967168  ;;  %s12693_s28 = sld [smem:[#allocation43_spill]] }
 0xf9b   : > { %s12694_s22 = sld [smem:[#allocation39_spill]] }
 0xf9c   : > { %s12695_s23 = sld [smem:[#allocation40_spill]] }
 0xf9d   : > { %s12696_s26 = sld [smem:[#allocation44_spill]] }
 0xfa0   : > { %p73_p2 = scmp.ge.s32.totalorder %s12693_s28, 4  }
 0xfa2   :  { %75 = sbr.rel (!%p73_p2) target bundleno = 78 (0x4e), region = 210 }
 0xfa7   :  { %6387 = vsyncpa [#allocation4], 1 }
 0xfa8   :  { %6389 = vsyncpa [#allocation4 + $0x1], 1 }

</bundles_post_ra>
